<compile_context>
chip_gen: v7x
topology: tpu7x:2x2x1
jax: 0.10.0
libtpu: 0.0.40
codegen_flags: <defaults>
</compile_context>

<pallas_src>
import jax
import jax.numpy as jnp
from jax.experimental import pallas as pl
from jax.experimental.pallas import tpu as pltpu  # noqa: F401

HIDDEN = 64
N_LAYERS = 3
BATCH = 2
INPUT_DIM1 = 40
NL_TOTAL = 2 * N_LAYERS          # 6 LSTM layers total (lstm1 + lstm2)
SEQ_LEN = 8

_HIGHEST = jax.lax.Precision.HIGHEST


# ------------------------------ fused kernel ---------------------------------
def _make_fused_kernel(T, B, H, L):
    def kernel(x_ref, wih_ref, whh_ref, b_ref, h0_ref, c0_ref,
               v_ref, bh_ref, out_ref):
        # x_ref   : (T, B, H)   time-major input, feature-padded to H (f32)
        # wih_ref : (L, H, 4H)  W_ih^T per layer, bf16 (layer-0 zero-padded rows,
        #                       g-gate columns pre-scaled by 2)
        # whh_ref : (L, H, 4H)  W_hh^T per layer, bf16 (g-cols *2)
        # b_ref   : (L, 1, 4H)  b_ih + b_hh per layer, f32 (g-cols *2)
        # h0/c0   : (L, B, H)   initial states, f32 (lstm1 layers then lstm2)
        # v_ref   : (1, H)      folded head weight  (W1^T @ w2^T)^T, f32
        # bh_ref  : (1, 1)      folded head bias    b1·w2 + b2, f32
        # out_ref : (B, T)      final sigmoid output
        h = [h0_ref[l] for l in range(L)]
        c = [c0_ref[l] for l in range(L)]

        # Wavefront over (layer, time): at step s, layer l processes t = s - l.
        for s in range(T + L - 1):
            # Walk layers top-down so layer l reads layer l-1's output produced
            # at the PREVIOUS wavefront step (== time t) before it is updated.
            for l in range(L - 1, -1, -1):
                t = s - l
                if not (0 <= t < T):
                    continue
                x_t = x_ref[t] if l == 0 else h[l - 1]              # (B, H) f32
                gates = (
                    jnp.dot(x_t.astype(jnp.bfloat16), wih_ref[l],
                            preferred_element_type=jnp.float32)
                    + jnp.dot(h[l].astype(jnp.bfloat16), whh_ref[l],
                              preferred_element_type=jnp.float32)
                    + b_ref[l])                                     # (B, 4H) f32
                sg = jax.nn.sigmoid(gates)                          # one EUP call
                i = sg[:, 0 * H:1 * H]
                f = sg[:, 1 * H:2 * H]
                g = 2.0 * sg[:, 2 * H:3 * H] - 1.0                  # tanh via 2*sigmoid(2z)-1
                o = sg[:, 3 * H:4 * H]
                c[l] = f * c[l] + i * g
                h[l] = o * jnp.tanh(c[l])
                if l == L - 1:
                    # Folded head: Linear(64,128)->Linear(128,1) == h·v + bh.
                    y = (jnp.sum(h[l] * v_ref[...], axis=-1, keepdims=True)
                         + bh_ref[...])                             # (B, 1)
                    out_ref[:, t:t + 1] = jax.nn.sigmoid(y)

    return kernel


def toy_model_forward(data, packed):
    """data: (B, T, 40) batch-first, like the PyTorch module. Returns (B, T)."""
    B, T, d_in = data.shape
    H = HIDDEN
    # time-major, zero-pad features to H
    x = jnp.transpose(data, (1, 0, 2))                              # (T, B, d_in)
    x = jnp.pad(x, ((0, 0), (0, 0), (0, H - d_in)))                 # (T, B, H)

    return pl.pallas_call(
        _make_fused_kernel(T, B, H, NL_TOTAL),
        out_shape=jax.ShapeDtypeStruct((B, T), jnp.float32),
    )(x, packed["wih"], packed["whh"], packed["b"],
      packed["h0"], packed["c0"], packed["v"], packed["bh"])


toy_model_forward = jax.jit(toy_model_forward)


# ---------------------------- parameter handling ------------------------------
def init_params(key):
    """Raw parameters in PyTorch layout (for reference + packing)."""
    H = HIDDEN
    k = 1.0 / (H ** 0.5)
    keys = iter(jax.random.split(key, 64))

    def u(shape, kk):
        return jax.random.uniform(next(keys), shape, jnp.float32,
                                  minval=-kk, maxval=kk)

    def lstm_params(input_sizes):
        return [dict(w_ih=u((4 * H, d), k), w_hh=u((4 * H, H), k),
                     b_ih=u((4 * H,), k), b_hh=u((4 * H,), k))
                for d in input_sizes]

    return {
        "lstm1": lstm_params([INPUT_DIM1, H, H]),
        "lstm2": lstm_params([H, H, H]),
        "h1": jax.random.normal(next(keys), (N_LAYERS, BATCH, H), jnp.float32),
        "c1": jax.random.normal(next(keys), (N_LAYERS, BATCH, H), jnp.float32),
        "h2": jax.random.normal(next(keys), (N_LAYERS, BATCH, H), jnp.float32),
        "c2": jax.random.normal(next(keys), (N_LAYERS, BATCH, H), jnp.float32),
        # output_stack = Linear(64,128) -> Linear(128,1)
        "w1": u((128, H), 1.0 / (H ** 0.5)),
        "b1": u((128,), 1.0 / (H ** 0.5)),
        "w2": u((1, 128), 1.0 / (128 ** 0.5)),
        "b2": u((1,), 1.0 / (128 ** 0.5)),
    }


def pack_for_kernel(raw):
    """Stack / transpose / pre-scale / pre-cast parameters for the kernel."""
    H = HIDDEN
    # g (cell-candidate) gate columns get scaled by 2 so the kernel can use one
    # full-width sigmoid and recover tanh(z) = 2*sigmoid(2z) - 1 exactly
    # (power-of-two scale commutes with the bf16 cast).
    scale = jnp.ones((1, 4 * H), jnp.float32).at[:, 2 * H:3 * H].set(2.0)

    wih_l, whh_l, b_l = [], [], []
    for stack in ("lstm1", "lstm2"):
        for p in raw[stack]:
            w_ih_t = p["w_ih"].T                                   # (D, 4H)
            d = w_ih_t.shape[0]
            if d < H:                                              # zero-pad layer 0
                w_ih_t = jnp.pad(w_ih_t, ((0, H - d), (0, 0)))
            wih_l.append((w_ih_t * scale).astype(jnp.bfloat16))
            whh_l.append((p["w_hh"].T * scale).astype(jnp.bfloat16))
            b_l.append((p["b_ih"] + p["b_hh"]).reshape(1, 4 * H) * scale)

    # Fold the output head:  (h @ W1^T + b1) @ W2^T + b2 == h·v + bh.
    v = jnp.dot(raw["w1"].T, raw["w2"].T, precision=_HIGHEST).reshape(1, H)
    bh = (jnp.dot(raw["b1"], raw["w2"].T, precision=_HIGHEST)
          + raw["b2"]).reshape(1, 1)

    return dict(
        wih=jnp.stack(wih_l, 0),                                   # (6, H, 4H) bf16
        whh=jnp.stack(whh_l, 0),                                   # (6, H, 4H) bf16
        b=jnp.stack(b_l, 0),                                       # (6, 1, 4H) f32
        h0=jnp.concatenate([raw["h1"], raw["h2"]], 0),             # (6, B, H) f32
        c0=jnp.concatenate([raw["c1"], raw["c2"]], 0),             # (6, B, H) f32
        v=v,                                                       # (1, H)   f32
        bh=bh,                                                     # (1, 1)   f32
    )


# ------------------------- pure-JAX fp32 reference ----------------------------
def reference_forward(data, raw):
    H = HIDDEN
    x = jnp.transpose(data, (1, 0, 2))                             # (T, B, D)
    for stack, hk, ck in (("lstm1", "h1", "c1"), ("lstm2", "h2", "c2")):
        for l, p in enumerate(raw[stack]):
            h, c = raw[hk][l], raw[ck][l]
            ys = []
            for t in range(x.shape[0]):
                gates = (jnp.dot(x[t], p["w_ih"].T, precision=_HIGHEST) + p["b_ih"]
                         + jnp.dot(h, p["w_hh"].T, precision=_HIGHEST) + p["b_hh"])
                i = jax.nn.sigmoid(gates[:, 0 * H:1 * H])
                f = jax.nn.sigmoid(gates[:, 1 * H:2 * H])
                g = jnp.tanh(gates[:, 2 * H:3 * H])
                o = jax.nn.sigmoid(gates[:, 3 * H:4 * H])
                c = f * c + i * g
                h = o * jnp.tanh(c)
                ys.append(h)
            x = jnp.stack(ys, 0)                                   # (T, B, H)
    hid = jnp.dot(x, raw["w1"].T, precision=_HIGHEST) + raw["b1"]  # (T, B, 128)
    y = jax.nn.sigmoid(jnp.dot(hid, raw["w2"].T, precision=_HIGHEST) + raw["b2"])
    return jnp.transpose(y[..., 0], (1, 0))                        # (B, T)


# ---------------------------------- main ---------------------------------------
if __name__ == "__main__":
    raw = init_params(jax.random.PRNGKey(0))
    packed = pack_for_kernel(raw)

    data = jax.random.normal(jax.random.PRNGKey(1),
                             (BATCH, SEQ_LEN, INPUT_DIM1), jnp.float32)

    out = toy_model_forward(data, packed)
    out = jax.block_until_ready(out)

    assert out.shape == (BATCH, SEQ_LEN), out.shape
    assert bool(jnp.all(jnp.isfinite(out)))

    # Kernel uses single-pass bf16 MXU contractions (per perf guidance) while the
    # reference is full fp32, so the bound covers bf16 contraction rounding
    # propagated through 6 stacked LSTM layers; real bugs (gate order, wavefront
    # dependencies, head fold) would show up as ~1e-1-scale errors.
    ref = reference_forward(data, raw)
    max_err = float(jnp.max(jnp.abs(out - ref)))
    assert max_err < 5e-3, f"mismatch vs fp32 reference: max abs err {max_err}"

    print("KERNEL_OK")
</pallas_src>

<mosaic_0001>
module attributes {stable_mosaic.version = 11 : i64} {
  func.func @kernel(%arg0: memref<8x2x64xf32, #tpu.memory_space<vmem>>, %arg1: memref<6x64x256xbf16, #tpu.memory_space<vmem>>, %arg2: memref<6x64x256xbf16, #tpu.memory_space<vmem>>, %arg3: memref<6x1x256xf32, #tpu.memory_space<vmem>>, %arg4: memref<6x2x64xf32, #tpu.memory_space<vmem>>, %arg5: memref<6x2x64xf32, #tpu.memory_space<vmem>>, %arg6: memref<1x64xf32, #tpu.memory_space<vmem>>, %arg7: memref<1x1xf32, #tpu.memory_space<vmem>>, %arg8: memref<2x8xf32, #tpu.memory_space<vmem>>) attributes {dimension_semantics = [], scalar_prefetch = 0 : i64, scratch_operands = 0 : i64, tpu.core_type = #tpu.core_type<tc>} {
    %c0 = arith.constant 0 : index
    %c0_0 = arith.constant 0 : index
    %c0_1 = arith.constant 0 : index
    %0 = vector.load %arg4[%c0, %c0_0, %c0_1] : memref<6x2x64xf32, #tpu.memory_space<vmem>>, vector<1x2x64xf32>
    %1 = vector.shape_cast %0 : vector<1x2x64xf32> to vector<2x64xf32>
    %c1 = arith.constant 1 : index
    %c0_2 = arith.constant 0 : index
    %c0_3 = arith.constant 0 : index
    %2 = vector.load %arg4[%c1, %c0_2, %c0_3] : memref<6x2x64xf32, #tpu.memory_space<vmem>>, vector<1x2x64xf32>
    %3 = vector.shape_cast %2 : vector<1x2x64xf32> to vector<2x64xf32>
    %c2 = arith.constant 2 : index
    %c0_4 = arith.constant 0 : index
    %c0_5 = arith.constant 0 : index
    %4 = vector.load %arg4[%c2, %c0_4, %c0_5] : memref<6x2x64xf32, #tpu.memory_space<vmem>>, vector<1x2x64xf32>
    %5 = vector.shape_cast %4 : vector<1x2x64xf32> to vector<2x64xf32>
    %c3 = arith.constant 3 : index
    %c0_6 = arith.constant 0 : index
    %c0_7 = arith.constant 0 : index
    %6 = vector.load %arg4[%c3, %c0_6, %c0_7] : memref<6x2x64xf32, #tpu.memory_space<vmem>>, vector<1x2x64xf32>
    %7 = vector.shape_cast %6 : vector<1x2x64xf32> to vector<2x64xf32>
    %c4 = arith.constant 4 : index
    %c0_8 = arith.constant 0 : index
    %c0_9 = arith.constant 0 : index
    %8 = vector.load %arg4[%c4, %c0_8, %c0_9] : memref<6x2x64xf32, #tpu.memory_space<vmem>>, vector<1x2x64xf32>
    %9 = vector.shape_cast %8 : vector<1x2x64xf32> to vector<2x64xf32>
    %c5 = arith.constant 5 : index
    %c0_10 = arith.constant 0 : index
    %c0_11 = arith.constant 0 : index
    %10 = vector.load %arg4[%c5, %c0_10, %c0_11] : memref<6x2x64xf32, #tpu.memory_space<vmem>>, vector<1x2x64xf32>
    %11 = vector.shape_cast %10 : vector<1x2x64xf32> to vector<2x64xf32>
    %c0_12 = arith.constant 0 : index
    %c0_13 = arith.constant 0 : index
    %c0_14 = arith.constant 0 : index
    %12 = vector.load %arg5[%c0_12, %c0_13, %c0_14] : memref<6x2x64xf32, #tpu.memory_space<vmem>>, vector<1x2x64xf32>
    %13 = vector.shape_cast %12 : vector<1x2x64xf32> to vector<2x64xf32>
    %c1_15 = arith.constant 1 : index
    %c0_16 = arith.constant 0 : index
    %c0_17 = arith.constant 0 : index
    %14 = vector.load %arg5[%c1_15, %c0_16, %c0_17] : memref<6x2x64xf32, #tpu.memory_space<vmem>>, vector<1x2x64xf32>
    %15 = vector.shape_cast %14 : vector<1x2x64xf32> to vector<2x64xf32>
    %c2_18 = arith.constant 2 : index
    %c0_19 = arith.constant 0 : index
    %c0_20 = arith.constant 0 : index
    %16 = vector.load %arg5[%c2_18, %c0_19, %c0_20] : memref<6x2x64xf32, #tpu.memory_space<vmem>>, vector<1x2x64xf32>
    %17 = vector.shape_cast %16 : vector<1x2x64xf32> to vector<2x64xf32>
    %c3_21 = arith.constant 3 : index
    %c0_22 = arith.constant 0 : index
    %c0_23 = arith.constant 0 : index
    %18 = vector.load %arg5[%c3_21, %c0_22, %c0_23] : memref<6x2x64xf32, #tpu.memory_space<vmem>>, vector<1x2x64xf32>
    %19 = vector.shape_cast %18 : vector<1x2x64xf32> to vector<2x64xf32>
    %c4_24 = arith.constant 4 : index
    %c0_25 = arith.constant 0 : index
    %c0_26 = arith.constant 0 : index
    %20 = vector.load %arg5[%c4_24, %c0_25, %c0_26] : memref<6x2x64xf32, #tpu.memory_space<vmem>>, vector<1x2x64xf32>
    %21 = vector.shape_cast %20 : vector<1x2x64xf32> to vector<2x64xf32>
    %c5_27 = arith.constant 5 : index
    %c0_28 = arith.constant 0 : index
    %c0_29 = arith.constant 0 : index
    %22 = vector.load %arg5[%c5_27, %c0_28, %c0_29] : memref<6x2x64xf32, #tpu.memory_space<vmem>>, vector<1x2x64xf32>
    %23 = vector.shape_cast %22 : vector<1x2x64xf32> to vector<2x64xf32>
    %c0_30 = arith.constant 0 : index
    %c0_31 = arith.constant 0 : index
    %c0_32 = arith.constant 0 : index
    %24 = vector.load %arg0[%c0_30, %c0_31, %c0_32] : memref<8x2x64xf32, #tpu.memory_space<vmem>>, vector<1x2x64xf32>
    %25 = vector.shape_cast %24 : vector<1x2x64xf32> to vector<2x64xf32>
    %26 = arith.truncf %25 : vector<2x64xf32> to vector<2x64xbf16>
    %c0_33 = arith.constant 0 : index
    %c0_34 = arith.constant 0 : index
    %c0_35 = arith.constant 0 : index
    %27 = vector.load %arg1[%c0_33, %c0_34, %c0_35] : memref<6x64x256xbf16, #tpu.memory_space<vmem>>, vector<1x64x256xbf16>
    %28 = vector.shape_cast %27 : vector<1x64x256xbf16> to vector<64x256xbf16>
    %cst = arith.constant dense<0.000000e+00> : vector<2x256xf32>
    %29 = tpu.matmul %26, %28, %cst {dimension_numbers = #tpu.dot_dimension_numbers<[1], [0], [0], [1], [0, 0, 1, 1], [], []>} : vector<2x64xbf16>, vector<64x256xbf16>, vector<2x256xf32> -> vector<2x256xf32>
    %30 = arith.truncf %1 : vector<2x64xf32> to vector<2x64xbf16>
    %c0_36 = arith.constant 0 : index
    %c0_37 = arith.constant 0 : index
    %c0_38 = arith.constant 0 : index
    %31 = vector.load %arg2[%c0_36, %c0_37, %c0_38] : memref<6x64x256xbf16, #tpu.memory_space<vmem>>, vector<1x64x256xbf16>
    %32 = vector.shape_cast %31 : vector<1x64x256xbf16> to vector<64x256xbf16>
    %cst_39 = arith.constant dense<0.000000e+00> : vector<2x256xf32>
    %33 = tpu.matmul %30, %32, %cst_39 {dimension_numbers = #tpu.dot_dimension_numbers<[1], [0], [0], [1], [0, 0, 1, 1], [], []>} : vector<2x64xbf16>, vector<64x256xbf16>, vector<2x256xf32> -> vector<2x256xf32>
    %34 = arith.addf %29, %33 : vector<2x256xf32>
    %c0_40 = arith.constant 0 : index
    %c0_41 = arith.constant 0 : index
    %c0_42 = arith.constant 0 : index
    %35 = vector.load %arg3[%c0_40, %c0_41, %c0_42] : memref<6x1x256xf32, #tpu.memory_space<vmem>>, vector<1x1x256xf32>
    %36 = vector.shape_cast %35 : vector<1x1x256xf32> to vector<1x256xf32>
    %37 = vector.broadcast %36 : vector<1x256xf32> to vector<2x256xf32>
    %38 = arith.addf %34, %37 : vector<2x256xf32>
    %39 = arith.negf %38 : vector<2x256xf32>
    %40 = math.exp %39 : vector<2x256xf32>
    %cst_43 = arith.constant 1.000000e+00 : f32
    %41 = vector.broadcast %cst_43 : f32 to vector<2x256xf32>
    %42 = arith.addf %41, %40 : vector<2x256xf32>
    %43 = arith.divf %41, %42 : vector<2x256xf32>
    %44 = vector.extract_strided_slice %43 {offsets = [0, 0], sizes = [2, 64], strides = [1, 1]} : vector<2x256xf32> to vector<2x64xf32>
    %45 = vector.extract_strided_slice %43 {offsets = [0, 64], sizes = [2, 64], strides = [1, 1]} : vector<2x256xf32> to vector<2x64xf32>
    %46 = vector.extract_strided_slice %43 {offsets = [0, 128], sizes = [2, 64], strides = [1, 1]} : vector<2x256xf32> to vector<2x64xf32>
    %cst_44 = arith.constant 2.000000e+00 : f32
    %47 = vector.broadcast %cst_44 : f32 to vector<2x64xf32>
    %48 = arith.mulf %47, %46 : vector<2x64xf32>
    %cst_45 = arith.constant 1.000000e+00 : f32
    %49 = vector.broadcast %cst_45 : f32 to vector<2x64xf32>
    %50 = arith.subf %48, %49 : vector<2x64xf32>
    %51 = vector.extract_strided_slice %43 {offsets = [0, 192], sizes = [2, 64], strides = [1, 1]} : vector<2x256xf32> to vector<2x64xf32>
    %52 = arith.mulf %45, %13 : vector<2x64xf32>
    %53 = arith.mulf %44, %50 : vector<2x64xf32>
    %54 = arith.addf %52, %53 : vector<2x64xf32>
    %55 = math.tanh %54 : vector<2x64xf32>
    %56 = arith.mulf %51, %55 : vector<2x64xf32>
    %57 = arith.truncf %56 : vector<2x64xf32> to vector<2x64xbf16>
    %c1_46 = arith.constant 1 : index
    %c0_47 = arith.constant 0 : index
    %c0_48 = arith.constant 0 : index
    %58 = vector.load %arg1[%c1_46, %c0_47, %c0_48] : memref<6x64x256xbf16, #tpu.memory_space<vmem>>, vector<1x64x256xbf16>
    %59 = vector.shape_cast %58 : vector<1x64x256xbf16> to vector<64x256xbf16>
    %cst_49 = arith.constant dense<0.000000e+00> : vector<2x256xf32>
    %60 = tpu.matmul %57, %59, %cst_49 {dimension_numbers = #tpu.dot_dimension_numbers<[1], [0], [0], [1], [0, 0, 1, 1], [], []>} : vector<2x64xbf16>, vector<64x256xbf16>, vector<2x256xf32> -> vector<2x256xf32>
    %61 = arith.truncf %3 : vector<2x64xf32> to vector<2x64xbf16>
    %c1_50 = arith.constant 1 : index
    %c0_51 = arith.constant 0 : index
    %c0_52 = arith.constant 0 : index
    %62 = vector.load %arg2[%c1_50, %c0_51, %c0_52] : memref<6x64x256xbf16, #tpu.memory_space<vmem>>, vector<1x64x256xbf16>
    %63 = vector.shape_cast %62 : vector<1x64x256xbf16> to vector<64x256xbf16>
    %cst_53 = arith.constant dense<0.000000e+00> : vector<2x256xf32>
    %64 = tpu.matmul %61, %63, %cst_53 {dimension_numbers = #tpu.dot_dimension_numbers<[1], [0], [0], [1], [0, 0, 1, 1], [], []>} : vector<2x64xbf16>, vector<64x256xbf16>, vector<2x256xf32> -> vector<2x256xf32>
    %65 = arith.addf %60, %64 : vector<2x256xf32>
    %c1_54 = arith.constant 1 : index
    %c0_55 = arith.constant 0 : index
    %c0_56 = arith.constant 0 : index
    %66 = vector.load %arg3[%c1_54, %c0_55, %c0_56] : memref<6x1x256xf32, #tpu.memory_space<vmem>>, vector<1x1x256xf32>
    %67 = vector.shape_cast %66 : vector<1x1x256xf32> to vector<1x256xf32>
    %68 = vector.broadcast %67 : vector<1x256xf32> to vector<2x256xf32>
    %69 = arith.addf %65, %68 : vector<2x256xf32>
    %70 = arith.negf %69 : vector<2x256xf32>
    %71 = math.exp %70 : vector<2x256xf32>
    %cst_57 = arith.constant 1.000000e+00 : f32
    %72 = vector.broadcast %cst_57 : f32 to vector<2x256xf32>
    %73 = arith.addf %72, %71 : vector<2x256xf32>
    %74 = arith.divf %72, %73 : vector<2x256xf32>
    %75 = vector.extract_strided_slice %74 {offsets = [0, 0], sizes = [2, 64], strides = [1, 1]} : vector<2x256xf32> to vector<2x64xf32>
    %76 = vector.extract_strided_slice %74 {offsets = [0, 64], sizes = [2, 64], strides = [1, 1]} : vector<2x256xf32> to vector<2x64xf32>
    %77 = vector.extract_strided_slice %74 {offsets = [0, 128], sizes = [2, 64], strides = [1, 1]} : vector<2x256xf32> to vector<2x64xf32>
    %cst_58 = arith.constant 2.000000e+00 : f32
    %78 = vector.broadcast %cst_58 : f32 to vector<2x64xf32>
    %79 = arith.mulf %78, %77 : vector<2x64xf32>
    %cst_59 = arith.constant 1.000000e+00 : f32
    %80 = vector.broadcast %cst_59 : f32 to vector<2x64xf32>
    %81 = arith.subf %79, %80 : vector<2x64xf32>
    %82 = vector.extract_strided_slice %74 {offsets = [0, 192], sizes = [2, 64], strides = [1, 1]} : vector<2x256xf32> to vector<2x64xf32>
    %83 = arith.mulf %76, %15 : vector<2x64xf32>
    %84 = arith.mulf %75, %81 : vector<2x64xf32>
    %85 = arith.addf %83, %84 : vector<2x64xf32>
    %86 = math.tanh %85 : vector<2x64xf32>
    %87 = arith.mulf %82, %86 : vector<2x64xf32>
    %c1_60 = arith.constant 1 : index
    %c0_61 = arith.constant 0 : index
    %c0_62 = arith.constant 0 : index
    %88 = vector.load %arg0[%c1_60, %c0_61, %c0_62] : memref<8x2x64xf32, #tpu.memory_space<vmem>>, vector<1x2x64xf32>
    %89 = vector.shape_cast %88 : vector<1x2x64xf32> to vector<2x64xf32>
    %90 = arith.truncf %89 : vector<2x64xf32> to vector<2x64xbf16>
    %c0_63 = arith.constant 0 : index
    %c0_64 = arith.constant 0 : index
    %c0_65 = arith.constant 0 : index
    %91 = vector.load %arg1[%c0_63, %c0_64, %c0_65] : memref<6x64x256xbf16, #tpu.memory_space<vmem>>, vector<1x64x256xbf16>
    %92 = vector.shape_cast %91 : vector<1x64x256xbf16> to vector<64x256xbf16>
    %cst_66 = arith.constant dense<0.000000e+00> : vector<2x256xf32>
    %93 = tpu.matmul %90, %92, %cst_66 {dimension_numbers = #tpu.dot_dimension_numbers<[1], [0], [0], [1], [0, 0, 1, 1], [], []>} : vector<2x64xbf16>, vector<64x256xbf16>, vector<2x256xf32> -> vector<2x256xf32>
    %94 = arith.truncf %56 : vector<2x64xf32> to vector<2x64xbf16>
    %c0_67 = arith.constant 0 : index
    %c0_68 = arith.constant 0 : index
    %c0_69 = arith.constant 0 : index
    %95 = vector.load %arg2[%c0_67, %c0_68, %c0_69] : memref<6x64x256xbf16, #tpu.memory_space<vmem>>, vector<1x64x256xbf16>
    %96 = vector.shape_cast %95 : vector<1x64x256xbf16> to vector<64x256xbf16>
    %cst_70 = arith.constant dense<0.000000e+00> : vector<2x256xf32>
    %97 = tpu.matmul %94, %96, %cst_70 {dimension_numbers = #tpu.dot_dimension_numbers<[1], [0], [0], [1], [0, 0, 1, 1], [], []>} : vector<2x64xbf16>, vector<64x256xbf16>, vector<2x256xf32> -> vector<2x256xf32>
    %98 = arith.addf %93, %97 : vector<2x256xf32>
    %c0_71 = arith.constant 0 : index
    %c0_72 = arith.constant 0 : index
    %c0_73 = arith.constant 0 : index
    %99 = vector.load %arg3[%c0_71, %c0_72, %c0_73] : memref<6x1x256xf32, #tpu.memory_space<vmem>>, vector<1x1x256xf32>
    %100 = vector.shape_cast %99 : vector<1x1x256xf32> to vector<1x256xf32>
    %101 = vector.broadcast %100 : vector<1x256xf32> to vector<2x256xf32>
    %102 = arith.addf %98, %101 : vector<2x256xf32>
    %103 = arith.negf %102 : vector<2x256xf32>
    %104 = math.exp %103 : vector<2x256xf32>
    %cst_74 = arith.constant 1.000000e+00 : f32
    %105 = vector.broadcast %cst_74 : f32 to vector<2x256xf32>
    %106 = arith.addf %105, %104 : vector<2x256xf32>
    %107 = arith.divf %105, %106 : vector<2x256xf32>
    %108 = vector.extract_strided_slice %107 {offsets = [0, 0], sizes = [2, 64], strides = [1, 1]} : vector<2x256xf32> to vector<2x64xf32>
    %109 = vector.extract_strided_slice %107 {offsets = [0, 64], sizes = [2, 64], strides = [1, 1]} : vector<2x256xf32> to vector<2x64xf32>
    %110 = vector.extract_strided_slice %107 {offsets = [0, 128], sizes = [2, 64], strides = [1, 1]} : vector<2x256xf32> to vector<2x64xf32>
    %cst_75 = arith.constant 2.000000e+00 : f32
    %111 = vector.broadcast %cst_75 : f32 to vector<2x64xf32>
    %112 = arith.mulf %111, %110 : vector<2x64xf32>
    %cst_76 = arith.constant 1.000000e+00 : f32
    %113 = vector.broadcast %cst_76 : f32 to vector<2x64xf32>
    %114 = arith.subf %112, %113 : vector<2x64xf32>
    %115 = vector.extract_strided_slice %107 {offsets = [0, 192], sizes = [2, 64], strides = [1, 1]} : vector<2x256xf32> to vector<2x64xf32>
    %116 = arith.mulf %109, %54 : vector<2x64xf32>
    %117 = arith.mulf %108, %114 : vector<2x64xf32>
    %118 = arith.addf %116, %117 : vector<2x64xf32>
    %119 = math.tanh %118 : vector<2x64xf32>
    %120 = arith.mulf %115, %119 : vector<2x64xf32>
    %121 = arith.truncf %87 : vector<2x64xf32> to vector<2x64xbf16>
    %c2_77 = arith.constant 2 : index
    %c0_78 = arith.constant 0 : index
    %c0_79 = arith.constant 0 : index
    %122 = vector.load %arg1[%c2_77, %c0_78, %c0_79] : memref<6x64x256xbf16, #tpu.memory_space<vmem>>, vector<1x64x256xbf16>
    %123 = vector.shape_cast %122 : vector<1x64x256xbf16> to vector<64x256xbf16>
    %cst_80 = arith.constant dense<0.000000e+00> : vector<2x256xf32>
    %124 = tpu.matmul %121, %123, %cst_80 {dimension_numbers = #tpu.dot_dimension_numbers<[1], [0], [0], [1], [0, 0, 1, 1], [], []>} : vector<2x64xbf16>, vector<64x256xbf16>, vector<2x256xf32> -> vector<2x256xf32>
    %125 = arith.truncf %5 : vector<2x64xf32> to vector<2x64xbf16>
    %c2_81 = arith.constant 2 : index
    %c0_82 = arith.constant 0 : index
    %c0_83 = arith.constant 0 : index
    %126 = vector.load %arg2[%c2_81, %c0_82, %c0_83] : memref<6x64x256xbf16, #tpu.memory_space<vmem>>, vector<1x64x256xbf16>
    %127 = vector.shape_cast %126 : vector<1x64x256xbf16> to vector<64x256xbf16>
    %cst_84 = arith.constant dense<0.000000e+00> : vector<2x256xf32>
    %128 = tpu.matmul %125, %127, %cst_84 {dimension_numbers = #tpu.dot_dimension_numbers<[1], [0], [0], [1], [0, 0, 1, 1], [], []>} : vector<2x64xbf16>, vector<64x256xbf16>, vector<2x256xf32> -> vector<2x256xf32>
    %129 = arith.addf %124, %128 : vector<2x256xf32>
    %c2_85 = arith.constant 2 : index
    %c0_86 = arith.constant 0 : index
    %c0_87 = arith.constant 0 : index
    %130 = vector.load %arg3[%c2_85, %c0_86, %c0_87] : memref<6x1x256xf32, #tpu.memory_space<vmem>>, vector<1x1x256xf32>
    %131 = vector.shape_cast %130 : vector<1x1x256xf32> to vector<1x256xf32>
    %132 = vector.broadcast %131 : vector<1x256xf32> to vector<2x256xf32>
    %133 = arith.addf %129, %132 : vector<2x256xf32>
    %134 = arith.negf %133 : vector<2x256xf32>
    %135 = math.exp %134 : vector<2x256xf32>
    %cst_88 = arith.constant 1.000000e+00 : f32
    %136 = vector.broadcast %cst_88 : f32 to vector<2x256xf32>
    %137 = arith.addf %136, %135 : vector<2x256xf32>
    %138 = arith.divf %136, %137 : vector<2x256xf32>
    %139 = vector.extract_strided_slice %138 {offsets = [0, 0], sizes = [2, 64], strides = [1, 1]} : vector<2x256xf32> to vector<2x64xf32>
    %140 = vector.extract_strided_slice %138 {offsets = [0, 64], sizes = [2, 64], strides = [1, 1]} : vector<2x256xf32> to vector<2x64xf32>
    %141 = vector.extract_strided_slice %138 {offsets = [0, 128], sizes = [2, 64], strides = [1, 1]} : vector<2x256xf32> to vector<2x64xf32>
    %cst_89 = arith.constant 2.000000e+00 : f32
    %142 = vector.broadcast %cst_89 : f32 to vector<2x64xf32>
    %143 = arith.mulf %142, %141 : vector<2x64xf32>
    %cst_90 = arith.constant 1.000000e+00 : f32
    %144 = vector.broadcast %cst_90 : f32 to vector<2x64xf32>
    %145 = arith.subf %143, %144 : vector<2x64xf32>
    %146 = vector.extract_strided_slice %138 {offsets = [0, 192], sizes = [2, 64], strides = [1, 1]} : vector<2x256xf32> to vector<2x64xf32>
    %147 = arith.mulf %140, %17 : vector<2x64xf32>
    %148 = arith.mulf %139, %145 : vector<2x64xf32>
    %149 = arith.addf %147, %148 : vector<2x64xf32>
    %150 = math.tanh %149 : vector<2x64xf32>
    %151 = arith.mulf %146, %150 : vector<2x64xf32>
    %152 = arith.truncf %120 : vector<2x64xf32> to vector<2x64xbf16>
    %c1_91 = arith.constant 1 : index
    %c0_92 = arith.constant 0 : index
    %c0_93 = arith.constant 0 : index
    %153 = vector.load %arg1[%c1_91, %c0_92, %c0_93] : memref<6x64x256xbf16, #tpu.memory_space<vmem>>, vector<1x64x256xbf16>
    %154 = vector.shape_cast %153 : vector<1x64x256xbf16> to vector<64x256xbf16>
    %cst_94 = arith.constant dense<0.000000e+00> : vector<2x256xf32>
    %155 = tpu.matmul %152, %154, %cst_94 {dimension_numbers = #tpu.dot_dimension_numbers<[1], [0], [0], [1], [0, 0, 1, 1], [], []>} : vector<2x64xbf16>, vector<64x256xbf16>, vector<2x256xf32> -> vector<2x256xf32>
    %156 = arith.truncf %87 : vector<2x64xf32> to vector<2x64xbf16>
    %c1_95 = arith.constant 1 : index
    %c0_96 = arith.constant 0 : index
    %c0_97 = arith.constant 0 : index
    %157 = vector.load %arg2[%c1_95, %c0_96, %c0_97] : memref<6x64x256xbf16, #tpu.memory_space<vmem>>, vector<1x64x256xbf16>
    %158 = vector.shape_cast %157 : vector<1x64x256xbf16> to vector<64x256xbf16>
    %cst_98 = arith.constant dense<0.000000e+00> : vector<2x256xf32>
    %159 = tpu.matmul %156, %158, %cst_98 {dimension_numbers = #tpu.dot_dimension_numbers<[1], [0], [0], [1], [0, 0, 1, 1], [], []>} : vector<2x64xbf16>, vector<64x256xbf16>, vector<2x256xf32> -> vector<2x256xf32>
    %160 = arith.addf %155, %159 : vector<2x256xf32>
    %c1_99 = arith.constant 1 : index
    %c0_100 = arith.constant 0 : index
    %c0_101 = arith.constant 0 : index
    %161 = vector.load %arg3[%c1_99, %c0_100, %c0_101] : memref<6x1x256xf32, #tpu.memory_space<vmem>>, vector<1x1x256xf32>
    %162 = vector.shape_cast %161 : vector<1x1x256xf32> to vector<1x256xf32>
    %163 = vector.broadcast %162 : vector<1x256xf32> to vector<2x256xf32>
    %164 = arith.addf %160, %163 : vector<2x256xf32>
    %165 = arith.negf %164 : vector<2x256xf32>
    %166 = math.exp %165 : vector<2x256xf32>
    %cst_102 = arith.constant 1.000000e+00 : f32
    %167 = vector.broadcast %cst_102 : f32 to vector<2x256xf32>
    %168 = arith.addf %167, %166 : vector<2x256xf32>
    %169 = arith.divf %167, %168 : vector<2x256xf32>
    %170 = vector.extract_strided_slice %169 {offsets = [0, 0], sizes = [2, 64], strides = [1, 1]} : vector<2x256xf32> to vector<2x64xf32>
    %171 = vector.extract_strided_slice %169 {offsets = [0, 64], sizes = [2, 64], strides = [1, 1]} : vector<2x256xf32> to vector<2x64xf32>
    %172 = vector.extract_strided_slice %169 {offsets = [0, 128], sizes = [2, 64], strides = [1, 1]} : vector<2x256xf32> to vector<2x64xf32>
    %cst_103 = arith.constant 2.000000e+00 : f32
    %173 = vector.broadcast %cst_103 : f32 to vector<2x64xf32>
    %174 = arith.mulf %173, %172 : vector<2x64xf32>
    %cst_104 = arith.constant 1.000000e+00 : f32
    %175 = vector.broadcast %cst_104 : f32 to vector<2x64xf32>
    %176 = arith.subf %174, %175 : vector<2x64xf32>
    %177 = vector.extract_strided_slice %169 {offsets = [0, 192], sizes = [2, 64], strides = [1, 1]} : vector<2x256xf32> to vector<2x64xf32>
    %178 = arith.mulf %171, %85 : vector<2x64xf32>
    %179 = arith.mulf %170, %176 : vector<2x64xf32>
    %180 = arith.addf %178, %179 : vector<2x64xf32>
    %181 = math.tanh %180 : vector<2x64xf32>
    %182 = arith.mulf %177, %181 : vector<2x64xf32>
    %c2_105 = arith.constant 2 : index
    %c0_106 = arith.constant 0 : index
    %c0_107 = arith.constant 0 : index
    %183 = vector.load %arg0[%c2_105, %c0_106, %c0_107] : memref<8x2x64xf32, #tpu.memory_space<vmem>>, vector<1x2x64xf32>
    %184 = vector.shape_cast %183 : vector<1x2x64xf32> to vector<2x64xf32>
    %185 = arith.truncf %184 : vector<2x64xf32> to vector<2x64xbf16>
    %c0_108 = arith.constant 0 : index
    %c0_109 = arith.constant 0 : index
    %c0_110 = arith.constant 0 : index
    %186 = vector.load %arg1[%c0_108, %c0_109, %c0_110] : memref<6x64x256xbf16, #tpu.memory_space<vmem>>, vector<1x64x256xbf16>
    %187 = vector.shape_cast %186 : vector<1x64x256xbf16> to vector<64x256xbf16>
    %cst_111 = arith.constant dense<0.000000e+00> : vector<2x256xf32>
    %188 = tpu.matmul %185, %187, %cst_111 {dimension_numbers = #tpu.dot_dimension_numbers<[1], [0], [0], [1], [0, 0, 1, 1], [], []>} : vector<2x64xbf16>, vector<64x256xbf16>, vector<2x256xf32> -> vector<2x256xf32>
    %189 = arith.truncf %120 : vector<2x64xf32> to vector<2x64xbf16>
    %c0_112 = arith.constant 0 : index
    %c0_113 = arith.constant 0 : index
    %c0_114 = arith.constant 0 : index
    %190 = vector.load %arg2[%c0_112, %c0_113, %c0_114] : memref<6x64x256xbf16, #tpu.memory_space<vmem>>, vector<1x64x256xbf16>
    %191 = vector.shape_cast %190 : vector<1x64x256xbf16> to vector<64x256xbf16>
    %cst_115 = arith.constant dense<0.000000e+00> : vector<2x256xf32>
    %192 = tpu.matmul %189, %191, %cst_115 {dimension_numbers = #tpu.dot_dimension_numbers<[1], [0], [0], [1], [0, 0, 1, 1], [], []>} : vector<2x64xbf16>, vector<64x256xbf16>, vector<2x256xf32> -> vector<2x256xf32>
    %193 = arith.addf %188, %192 : vector<2x256xf32>
    %c0_116 = arith.constant 0 : index
    %c0_117 = arith.constant 0 : index
    %c0_118 = arith.constant 0 : index
    %194 = vector.load %arg3[%c0_116, %c0_117, %c0_118] : memref<6x1x256xf32, #tpu.memory_space<vmem>>, vector<1x1x256xf32>
    %195 = vector.shape_cast %194 : vector<1x1x256xf32> to vector<1x256xf32>
    %196 = vector.broadcast %195 : vector<1x256xf32> to vector<2x256xf32>
    %197 = arith.addf %193, %196 : vector<2x256xf32>
    %198 = arith.negf %197 : vector<2x256xf32>
    %199 = math.exp %198 : vector<2x256xf32>
    %cst_119 = arith.constant 1.000000e+00 : f32
    %200 = vector.broadcast %cst_119 : f32 to vector<2x256xf32>
    %201 = arith.addf %200, %199 : vector<2x256xf32>
    %202 = arith.divf %200, %201 : vector<2x256xf32>
    %203 = vector.extract_strided_slice %202 {offsets = [0, 0], sizes = [2, 64], strides = [1, 1]} : vector<2x256xf32> to vector<2x64xf32>
    %204 = vector.extract_strided_slice %202 {offsets = [0, 64], sizes = [2, 64], strides = [1, 1]} : vector<2x256xf32> to vector<2x64xf32>
    %205 = vector.extract_strided_slice %202 {offsets = [0, 128], sizes = [2, 64], strides = [1, 1]} : vector<2x256xf32> to vector<2x64xf32>
    %cst_120 = arith.constant 2.000000e+00 : f32
    %206 = vector.broadcast %cst_120 : f32 to vector<2x64xf32>
    %207 = arith.mulf %206, %205 : vector<2x64xf32>
    %cst_121 = arith.constant 1.000000e+00 : f32
    %208 = vector.broadcast %cst_121 : f32 to vector<2x64xf32>
    %209 = arith.subf %207, %208 : vector<2x64xf32>
    %210 = vector.extract_strided_slice %202 {offsets = [0, 192], sizes = [2, 64], strides = [1, 1]} : vector<2x256xf32> to vector<2x64xf32>
    %211 = arith.mulf %204, %118 : vector<2x64xf32>
    %212 = arith.mulf %203, %209 : vector<2x64xf32>
    %213 = arith.addf %211, %212 : vector<2x64xf32>
    %214 = math.tanh %213 : vector<2x64xf32>
    %215 = arith.mulf %210, %214 : vector<2x64xf32>
    %216 = arith.truncf %151 : vector<2x64xf32> to vector<2x64xbf16>
    %c3_122 = arith.constant 3 : index
    %c0_123 = arith.constant 0 : index
    %c0_124 = arith.constant 0 : index
    %217 = vector.load %arg1[%c3_122, %c0_123, %c0_124] : memref<6x64x256xbf16, #tpu.memory_space<vmem>>, vector<1x64x256xbf16>
    %218 = vector.shape_cast %217 : vector<1x64x256xbf16> to vector<64x256xbf16>
    %cst_125 = arith.constant dense<0.000000e+00> : vector<2x256xf32>
    %219 = tpu.matmul %216, %218, %cst_125 {dimension_numbers = #tpu.dot_dimension_numbers<[1], [0], [0], [1], [0, 0, 1, 1], [], []>} : vector<2x64xbf16>, vector<64x256xbf16>, vector<2x256xf32> -> vector<2x256xf32>
    %220 = arith.truncf %7 : vector<2x64xf32> to vector<2x64xbf16>
    %c3_126 = arith.constant 3 : index
    %c0_127 = arith.constant 0 : index
    %c0_128 = arith.constant 0 : index
    %221 = vector.load %arg2[%c3_126, %c0_127, %c0_128] : memref<6x64x256xbf16, #tpu.memory_space<vmem>>, vector<1x64x256xbf16>
    %222 = vector.shape_cast %221 : vector<1x64x256xbf16> to vector<64x256xbf16>
    %cst_129 = arith.constant dense<0.000000e+00> : vector<2x256xf32>
    %223 = tpu.matmul %220, %222, %cst_129 {dimension_numbers = #tpu.dot_dimension_numbers<[1], [0], [0], [1], [0, 0, 1, 1], [], []>} : vector<2x64xbf16>, vector<64x256xbf16>, vector<2x256xf32> -> vector<2x256xf32>
    %224 = arith.addf %219, %223 : vector<2x256xf32>
    %c3_130 = arith.constant 3 : index
    %c0_131 = arith.constant 0 : index
    %c0_132 = arith.constant 0 : index
    %225 = vector.load %arg3[%c3_130, %c0_131, %c0_132] : memref<6x1x256xf32, #tpu.memory_space<vmem>>, vector<1x1x256xf32>
    %226 = vector.shape_cast %225 : vector<1x1x256xf32> to vector<1x256xf32>
    %227 = vector.broadcast %226 : vector<1x256xf32> to vector<2x256xf32>
    %228 = arith.addf %224, %227 : vector<2x256xf32>
    %229 = arith.negf %228 : vector<2x256xf32>
    %230 = math.exp %229 : vector<2x256xf32>
    %cst_133 = arith.constant 1.000000e+00 : f32
    %231 = vector.broadcast %cst_133 : f32 to vector<2x256xf32>
    %232 = arith.addf %231, %230 : vector<2x256xf32>
    %233 = arith.divf %231, %232 : vector<2x256xf32>
    %234 = vector.extract_strided_slice %233 {offsets = [0, 0], sizes = [2, 64], strides = [1, 1]} : vector<2x256xf32> to vector<2x64xf32>
    %235 = vector.extract_strided_slice %233 {offsets = [0, 64], sizes = [2, 64], strides = [1, 1]} : vector<2x256xf32> to vector<2x64xf32>
    %236 = vector.extract_strided_slice %233 {offsets = [0, 128], sizes = [2, 64], strides = [1, 1]} : vector<2x256xf32> to vector<2x64xf32>
    %cst_134 = arith.constant 2.000000e+00 : f32
    %237 = vector.broadcast %cst_134 : f32 to vector<2x64xf32>
    %238 = arith.mulf %237, %236 : vector<2x64xf32>
    %cst_135 = arith.constant 1.000000e+00 : f32
    %239 = vector.broadcast %cst_135 : f32 to vector<2x64xf32>
    %240 = arith.subf %238, %239 : vector<2x64xf32>
    %241 = vector.extract_strided_slice %233 {offsets = [0, 192], sizes = [2, 64], strides = [1, 1]} : vector<2x256xf32> to vector<2x64xf32>
    %242 = arith.mulf %235, %19 : vector<2x64xf32>
    %243 = arith.mulf %234, %240 : vector<2x64xf32>
    %244 = arith.addf %242, %243 : vector<2x64xf32>
    %245 = math.tanh %244 : vector<2x64xf32>
    %246 = arith.mulf %241, %245 : vector<2x64xf32>
    %247 = arith.truncf %182 : vector<2x64xf32> to vector<2x64xbf16>
    %c2_136 = arith.constant 2 : index
    %c0_137 = arith.constant 0 : index
    %c0_138 = arith.constant 0 : index
    %248 = vector.load %arg1[%c2_136, %c0_137, %c0_138] : memref<6x64x256xbf16, #tpu.memory_space<vmem>>, vector<1x64x256xbf16>
    %249 = vector.shape_cast %248 : vector<1x64x256xbf16> to vector<64x256xbf16>
    %cst_139 = arith.constant dense<0.000000e+00> : vector<2x256xf32>
    %250 = tpu.matmul %247, %249, %cst_139 {dimension_numbers = #tpu.dot_dimension_numbers<[1], [0], [0], [1], [0, 0, 1, 1], [], []>} : vector<2x64xbf16>, vector<64x256xbf16>, vector<2x256xf32> -> vector<2x256xf32>
    %251 = arith.truncf %151 : vector<2x64xf32> to vector<2x64xbf16>
    %c2_140 = arith.constant 2 : index
    %c0_141 = arith.constant 0 : index
    %c0_142 = arith.constant 0 : index
    %252 = vector.load %arg2[%c2_140, %c0_141, %c0_142] : memref<6x64x256xbf16, #tpu.memory_space<vmem>>, vector<1x64x256xbf16>
    %253 = vector.shape_cast %252 : vector<1x64x256xbf16> to vector<64x256xbf16>
    %cst_143 = arith.constant dense<0.000000e+00> : vector<2x256xf32>
    %254 = tpu.matmul %251, %253, %cst_143 {dimension_numbers = #tpu.dot_dimension_numbers<[1], [0], [0], [1], [0, 0, 1, 1], [], []>} : vector<2x64xbf16>, vector<64x256xbf16>, vector<2x256xf32> -> vector<2x256xf32>
    %255 = arith.addf %250, %254 : vector<2x256xf32>
    %c2_144 = arith.constant 2 : index
    %c0_145 = arith.constant 0 : index
    %c0_146 = arith.constant 0 : index
    %256 = vector.load %arg3[%c2_144, %c0_145, %c0_146] : memref<6x1x256xf32, #tpu.memory_space<vmem>>, vector<1x1x256xf32>
    %257 = vector.shape_cast %256 : vector<1x1x256xf32> to vector<1x256xf32>
    %258 = vector.broadcast %257 : vector<1x256xf32> to vector<2x256xf32>
    %259 = arith.addf %255, %258 : vector<2x256xf32>
    %260 = arith.negf %259 : vector<2x256xf32>
    %261 = math.exp %260 : vector<2x256xf32>
    %cst_147 = arith.constant 1.000000e+00 : f32
    %262 = vector.broadcast %cst_147 : f32 to vector<2x256xf32>
    %263 = arith.addf %262, %261 : vector<2x256xf32>
    %264 = arith.divf %262, %263 : vector<2x256xf32>
    %265 = vector.extract_strided_slice %264 {offsets = [0, 0], sizes = [2, 64], strides = [1, 1]} : vector<2x256xf32> to vector<2x64xf32>
    %266 = vector.extract_strided_slice %264 {offsets = [0, 64], sizes = [2, 64], strides = [1, 1]} : vector<2x256xf32> to vector<2x64xf32>
    %267 = vector.extract_strided_slice %264 {offsets = [0, 128], sizes = [2, 64], strides = [1, 1]} : vector<2x256xf32> to vector<2x64xf32>
    %cst_148 = arith.constant 2.000000e+00 : f32
    %268 = vector.broadcast %cst_148 : f32 to vector<2x64xf32>
    %269 = arith.mulf %268, %267 : vector<2x64xf32>
    %cst_149 = arith.constant 1.000000e+00 : f32
    %270 = vector.broadcast %cst_149 : f32 to vector<2x64xf32>
    %271 = arith.subf %269, %270 : vector<2x64xf32>
    %272 = vector.extract_strided_slice %264 {offsets = [0, 192], sizes = [2, 64], strides = [1, 1]} : vector<2x256xf32> to vector<2x64xf32>
    %273 = arith.mulf %266, %149 : vector<2x64xf32>
    %274 = arith.mulf %265, %271 : vector<2x64xf32>
    %275 = arith.addf %273, %274 : vector<2x64xf32>
    %276 = math.tanh %275 : vector<2x64xf32>
    %277 = arith.mulf %272, %276 : vector<2x64xf32>
    %278 = arith.truncf %215 : vector<2x64xf32> to vector<2x64xbf16>
    %c1_150 = arith.constant 1 : index
    %c0_151 = arith.constant 0 : index
    %c0_152 = arith.constant 0 : index
    %279 = vector.load %arg1[%c1_150, %c0_151, %c0_152] : memref<6x64x256xbf16, #tpu.memory_space<vmem>>, vector<1x64x256xbf16>
    %280 = vector.shape_cast %279 : vector<1x64x256xbf16> to vector<64x256xbf16>
    %cst_153 = arith.constant dense<0.000000e+00> : vector<2x256xf32>
    %281 = tpu.matmul %278, %280, %cst_153 {dimension_numbers = #tpu.dot_dimension_numbers<[1], [0], [0], [1], [0, 0, 1, 1], [], []>} : vector<2x64xbf16>, vector<64x256xbf16>, vector<2x256xf32> -> vector<2x256xf32>
    %282 = arith.truncf %182 : vector<2x64xf32> to vector<2x64xbf16>
    %c1_154 = arith.constant 1 : index
    %c0_155 = arith.constant 0 : index
    %c0_156 = arith.constant 0 : index
    %283 = vector.load %arg2[%c1_154, %c0_155, %c0_156] : memref<6x64x256xbf16, #tpu.memory_space<vmem>>, vector<1x64x256xbf16>
    %284 = vector.shape_cast %283 : vector<1x64x256xbf16> to vector<64x256xbf16>
    %cst_157 = arith.constant dense<0.000000e+00> : vector<2x256xf32>
    %285 = tpu.matmul %282, %284, %cst_157 {dimension_numbers = #tpu.dot_dimension_numbers<[1], [0], [0], [1], [0, 0, 1, 1], [], []>} : vector<2x64xbf16>, vector<64x256xbf16>, vector<2x256xf32> -> vector<2x256xf32>
    %286 = arith.addf %281, %285 : vector<2x256xf32>
    %c1_158 = arith.constant 1 : index
    %c0_159 = arith.constant 0 : index
    %c0_160 = arith.constant 0 : index
    %287 = vector.load %arg3[%c1_158, %c0_159, %c0_160] : memref<6x1x256xf32, #tpu.memory_space<vmem>>, vector<1x1x256xf32>
    %288 = vector.shape_cast %287 : vector<1x1x256xf32> to vector<1x256xf32>
    %289 = vector.broadcast %288 : vector<1x256xf32> to vector<2x256xf32>
    %290 = arith.addf %286, %289 : vector<2x256xf32>
    %291 = arith.negf %290 : vector<2x256xf32>
    %292 = math.exp %291 : vector<2x256xf32>
    %cst_161 = arith.constant 1.000000e+00 : f32
    %293 = vector.broadcast %cst_161 : f32 to vector<2x256xf32>
    %294 = arith.addf %293, %292 : vector<2x256xf32>
    %295 = arith.divf %293, %294 : vector<2x256xf32>
    %296 = vector.extract_strided_slice %295 {offsets = [0, 0], sizes = [2, 64], strides = [1, 1]} : vector<2x256xf32> to vector<2x64xf32>
    %297 = vector.extract_strided_slice %295 {offsets = [0, 64], sizes = [2, 64], strides = [1, 1]} : vector<2x256xf32> to vector<2x64xf32>
    %298 = vector.extract_strided_slice %295 {offsets = [0, 128], sizes = [2, 64], strides = [1, 1]} : vector<2x256xf32> to vector<2x64xf32>
    %cst_162 = arith.constant 2.000000e+00 : f32
    %299 = vector.broadcast %cst_162 : f32 to vector<2x64xf32>
    %300 = arith.mulf %299, %298 : vector<2x64xf32>
    %cst_163 = arith.constant 1.000000e+00 : f32
    %301 = vector.broadcast %cst_163 : f32 to vector<2x64xf32>
    %302 = arith.subf %300, %301 : vector<2x64xf32>
    %303 = vector.extract_strided_slice %295 {offsets = [0, 192], sizes = [2, 64], strides = [1, 1]} : vector<2x256xf32> to vector<2x64xf32>
    %304 = arith.mulf %297, %180 : vector<2x64xf32>
    %305 = arith.mulf %296, %302 : vector<2x64xf32>
    %306 = arith.addf %304, %305 : vector<2x64xf32>
    %307 = math.tanh %306 : vector<2x64xf32>
    %308 = arith.mulf %303, %307 : vector<2x64xf32>
    %c3_164 = arith.constant 3 : index
    %c0_165 = arith.constant 0 : index
    %c0_166 = arith.constant 0 : index
    %309 = vector.load %arg0[%c3_164, %c0_165, %c0_166] : memref<8x2x64xf32, #tpu.memory_space<vmem>>, vector<1x2x64xf32>
    %310 = vector.shape_cast %309 : vector<1x2x64xf32> to vector<2x64xf32>
    %311 = arith.truncf %310 : vector<2x64xf32> to vector<2x64xbf16>
    %c0_167 = arith.constant 0 : index
    %c0_168 = arith.constant 0 : index
    %c0_169 = arith.constant 0 : index
    %312 = vector.load %arg1[%c0_167, %c0_168, %c0_169] : memref<6x64x256xbf16, #tpu.memory_space<vmem>>, vector<1x64x256xbf16>
    %313 = vector.shape_cast %312 : vector<1x64x256xbf16> to vector<64x256xbf16>
    %cst_170 = arith.constant dense<0.000000e+00> : vector<2x256xf32>
    %314 = tpu.matmul %311, %313, %cst_170 {dimension_numbers = #tpu.dot_dimension_numbers<[1], [0], [0], [1], [0, 0, 1, 1], [], []>} : vector<2x64xbf16>, vector<64x256xbf16>, vector<2x256xf32> -> vector<2x256xf32>
    %315 = arith.truncf %215 : vector<2x64xf32> to vector<2x64xbf16>
    %c0_171 = arith.constant 0 : index
    %c0_172 = arith.constant 0 : index
    %c0_173 = arith.constant 0 : index
    %316 = vector.load %arg2[%c0_171, %c0_172, %c0_173] : memref<6x64x256xbf16, #tpu.memory_space<vmem>>, vector<1x64x256xbf16>
    %317 = vector.shape_cast %316 : vector<1x64x256xbf16> to vector<64x256xbf16>
    %cst_174 = arith.constant dense<0.000000e+00> : vector<2x256xf32>
    %318 = tpu.matmul %315, %317, %cst_174 {dimension_numbers = #tpu.dot_dimension_numbers<[1], [0], [0], [1], [0, 0, 1, 1], [], []>} : vector<2x64xbf16>, vector<64x256xbf16>, vector<2x256xf32> -> vector<2x256xf32>
    %319 = arith.addf %314, %318 : vector<2x256xf32>
    %c0_175 = arith.constant 0 : index
    %c0_176 = arith.constant 0 : index
    %c0_177 = arith.constant 0 : index
    %320 = vector.load %arg3[%c0_175, %c0_176, %c0_177] : memref<6x1x256xf32, #tpu.memory_space<vmem>>, vector<1x1x256xf32>
    %321 = vector.shape_cast %320 : vector<1x1x256xf32> to vector<1x256xf32>
    %322 = vector.broadcast %321 : vector<1x256xf32> to vector<2x256xf32>
    %323 = arith.addf %319, %322 : vector<2x256xf32>
    %324 = arith.negf %323 : vector<2x256xf32>
    %325 = math.exp %324 : vector<2x256xf32>
    %cst_178 = arith.constant 1.000000e+00 : f32
    %326 = vector.broadcast %cst_178 : f32 to vector<2x256xf32>
    %327 = arith.addf %326, %325 : vector<2x256xf32>
    %328 = arith.divf %326, %327 : vector<2x256xf32>
    %329 = vector.extract_strided_slice %328 {offsets = [0, 0], sizes = [2, 64], strides = [1, 1]} : vector<2x256xf32> to vector<2x64xf32>
    %330 = vector.extract_strided_slice %328 {offsets = [0, 64], sizes = [2, 64], strides = [1, 1]} : vector<2x256xf32> to vector<2x64xf32>
    %331 = vector.extract_strided_slice %328 {offsets = [0, 128], sizes = [2, 64], strides = [1, 1]} : vector<2x256xf32> to vector<2x64xf32>
    %cst_179 = arith.constant 2.000000e+00 : f32
    %332 = vector.broadcast %cst_179 : f32 to vector<2x64xf32>
    %333 = arith.mulf %332, %331 : vector<2x64xf32>
    %cst_180 = arith.constant 1.000000e+00 : f32
    %334 = vector.broadcast %cst_180 : f32 to vector<2x64xf32>
    %335 = arith.subf %333, %334 : vector<2x64xf32>
    %336 = vector.extract_strided_slice %328 {offsets = [0, 192], sizes = [2, 64], strides = [1, 1]} : vector<2x256xf32> to vector<2x64xf32>
    %337 = arith.mulf %330, %213 : vector<2x64xf32>
    %338 = arith.mulf %329, %335 : vector<2x64xf32>
    %339 = arith.addf %337, %338 : vector<2x64xf32>
    %340 = math.tanh %339 : vector<2x64xf32>
    %341 = arith.mulf %336, %340 : vector<2x64xf32>
    %342 = arith.truncf %246 : vector<2x64xf32> to vector<2x64xbf16>
    %c4_181 = arith.constant 4 : index
    %c0_182 = arith.constant 0 : index
    %c0_183 = arith.constant 0 : index
    %343 = vector.load %arg1[%c4_181, %c0_182, %c0_183] : memref<6x64x256xbf16, #tpu.memory_space<vmem>>, vector<1x64x256xbf16>
    %344 = vector.shape_cast %343 : vector<1x64x256xbf16> to vector<64x256xbf16>
    %cst_184 = arith.constant dense<0.000000e+00> : vector<2x256xf32>
    %345 = tpu.matmul %342, %344, %cst_184 {dimension_numbers = #tpu.dot_dimension_numbers<[1], [0], [0], [1], [0, 0, 1, 1], [], []>} : vector<2x64xbf16>, vector<64x256xbf16>, vector<2x256xf32> -> vector<2x256xf32>
    %346 = arith.truncf %9 : vector<2x64xf32> to vector<2x64xbf16>
    %c4_185 = arith.constant 4 : index
    %c0_186 = arith.constant 0 : index
    %c0_187 = arith.constant 0 : index
    %347 = vector.load %arg2[%c4_185, %c0_186, %c0_187] : memref<6x64x256xbf16, #tpu.memory_space<vmem>>, vector<1x64x256xbf16>
    %348 = vector.shape_cast %347 : vector<1x64x256xbf16> to vector<64x256xbf16>
    %cst_188 = arith.constant dense<0.000000e+00> : vector<2x256xf32>
    %349 = tpu.matmul %346, %348, %cst_188 {dimension_numbers = #tpu.dot_dimension_numbers<[1], [0], [0], [1], [0, 0, 1, 1], [], []>} : vector<2x64xbf16>, vector<64x256xbf16>, vector<2x256xf32> -> vector<2x256xf32>
    %350 = arith.addf %345, %349 : vector<2x256xf32>
    %c4_189 = arith.constant 4 : index
    %c0_190 = arith.constant 0 : index
    %c0_191 = arith.constant 0 : index
    %351 = vector.load %arg3[%c4_189, %c0_190, %c0_191] : memref<6x1x256xf32, #tpu.memory_space<vmem>>, vector<1x1x256xf32>
    %352 = vector.shape_cast %351 : vector<1x1x256xf32> to vector<1x256xf32>
    %353 = vector.broadcast %352 : vector<1x256xf32> to vector<2x256xf32>
    %354 = arith.addf %350, %353 : vector<2x256xf32>
    %355 = arith.negf %354 : vector<2x256xf32>
    %356 = math.exp %355 : vector<2x256xf32>
    %cst_192 = arith.constant 1.000000e+00 : f32
    %357 = vector.broadcast %cst_192 : f32 to vector<2x256xf32>
    %358 = arith.addf %357, %356 : vector<2x256xf32>
    %359 = arith.divf %357, %358 : vector<2x256xf32>
    %360 = vector.extract_strided_slice %359 {offsets = [0, 0], sizes = [2, 64], strides = [1, 1]} : vector<2x256xf32> to vector<2x64xf32>
    %361 = vector.extract_strided_slice %359 {offsets = [0, 64], sizes = [2, 64], strides = [1, 1]} : vector<2x256xf32> to vector<2x64xf32>
    %362 = vector.extract_strided_slice %359 {offsets = [0, 128], sizes = [2, 64], strides = [1, 1]} : vector<2x256xf32> to vector<2x64xf32>
    %cst_193 = arith.constant 2.000000e+00 : f32
    %363 = vector.broadcast %cst_193 : f32 to vector<2x64xf32>
    %364 = arith.mulf %363, %362 : vector<2x64xf32>
    %cst_194 = arith.constant 1.000000e+00 : f32
    %365 = vector.broadcast %cst_194 : f32 to vector<2x64xf32>
    %366 = arith.subf %364, %365 : vector<2x64xf32>
    %367 = vector.extract_strided_slice %359 {offsets = [0, 192], sizes = [2, 64], strides = [1, 1]} : vector<2x256xf32> to vector<2x64xf32>
    %368 = arith.mulf %361, %21 : vector<2x64xf32>
    %369 = arith.mulf %360, %366 : vector<2x64xf32>
    %370 = arith.addf %368, %369 : vector<2x64xf32>
    %371 = math.tanh %370 : vector<2x64xf32>
    %372 = arith.mulf %367, %371 : vector<2x64xf32>
    %373 = arith.truncf %277 : vector<2x64xf32> to vector<2x64xbf16>
    %c3_195 = arith.constant 3 : index
    %c0_196 = arith.constant 0 : index
    %c0_197 = arith.constant 0 : index
    %374 = vector.load %arg1[%c3_195, %c0_196, %c0_197] : memref<6x64x256xbf16, #tpu.memory_space<vmem>>, vector<1x64x256xbf16>
    %375 = vector.shape_cast %374 : vector<1x64x256xbf16> to vector<64x256xbf16>
    %cst_198 = arith.constant dense<0.000000e+00> : vector<2x256xf32>
    %376 = tpu.matmul %373, %375, %cst_198 {dimension_numbers = #tpu.dot_dimension_numbers<[1], [0], [0], [1], [0, 0, 1, 1], [], []>} : vector<2x64xbf16>, vector<64x256xbf16>, vector<2x256xf32> -> vector<2x256xf32>
    %377 = arith.truncf %246 : vector<2x64xf32> to vector<2x64xbf16>
    %c3_199 = arith.constant 3 : index
    %c0_200 = arith.constant 0 : index
    %c0_201 = arith.constant 0 : index
    %378 = vector.load %arg2[%c3_199, %c0_200, %c0_201] : memref<6x64x256xbf16, #tpu.memory_space<vmem>>, vector<1x64x256xbf16>
    %379 = vector.shape_cast %378 : vector<1x64x256xbf16> to vector<64x256xbf16>
    %cst_202 = arith.constant dense<0.000000e+00> : vector<2x256xf32>
    %380 = tpu.matmul %377, %379, %cst_202 {dimension_numbers = #tpu.dot_dimension_numbers<[1], [0], [0], [1], [0, 0, 1, 1], [], []>} : vector<2x64xbf16>, vector<64x256xbf16>, vector<2x256xf32> -> vector<2x256xf32>
    %381 = arith.addf %376, %380 : vector<2x256xf32>
    %c3_203 = arith.constant 3 : index
    %c0_204 = arith.constant 0 : index
    %c0_205 = arith.constant 0 : index
    %382 = vector.load %arg3[%c3_203, %c0_204, %c0_205] : memref<6x1x256xf32, #tpu.memory_space<vmem>>, vector<1x1x256xf32>
    %383 = vector.shape_cast %382 : vector<1x1x256xf32> to vector<1x256xf32>
    %384 = vector.broadcast %383 : vector<1x256xf32> to vector<2x256xf32>
    %385 = arith.addf %381, %384 : vector<2x256xf32>
    %386 = arith.negf %385 : vector<2x256xf32>
    %387 = math.exp %386 : vector<2x256xf32>
    %cst_206 = arith.constant 1.000000e+00 : f32
    %388 = vector.broadcast %cst_206 : f32 to vector<2x256xf32>
    %389 = arith.addf %388, %387 : vector<2x256xf32>
    %390 = arith.divf %388, %389 : vector<2x256xf32>
    %391 = vector.extract_strided_slice %390 {offsets = [0, 0], sizes = [2, 64], strides = [1, 1]} : vector<2x256xf32> to vector<2x64xf32>
    %392 = vector.extract_strided_slice %390 {offsets = [0, 64], sizes = [2, 64], strides = [1, 1]} : vector<2x256xf32> to vector<2x64xf32>
    %393 = vector.extract_strided_slice %390 {offsets = [0, 128], sizes = [2, 64], strides = [1, 1]} : vector<2x256xf32> to vector<2x64xf32>
    %cst_207 = arith.constant 2.000000e+00 : f32
    %394 = vector.broadcast %cst_207 : f32 to vector<2x64xf32>
    %395 = arith.mulf %394, %393 : vector<2x64xf32>
    %cst_208 = arith.constant 1.000000e+00 : f32
    %396 = vector.broadcast %cst_208 : f32 to vector<2x64xf32>
    %397 = arith.subf %395, %396 : vector<2x64xf32>
    %398 = vector.extract_strided_slice %390 {offsets = [0, 192], sizes = [2, 64], strides = [1, 1]} : vector<2x256xf32> to vector<2x64xf32>
    %399 = arith.mulf %392, %244 : vector<2x64xf32>
    %400 = arith.mulf %391, %397 : vector<2x64xf32>
    %401 = arith.addf %399, %400 : vector<2x64xf32>
    %402 = math.tanh %401 : vector<2x64xf32>
    %403 = arith.mulf %398, %402 : vector<2x64xf32>
    %404 = arith.truncf %308 : vector<2x64xf32> to vector<2x64xbf16>
    %c2_209 = arith.constant 2 : index
    %c0_210 = arith.constant 0 : index
    %c0_211 = arith.constant 0 : index
    %405 = vector.load %arg1[%c2_209, %c0_210, %c0_211] : memref<6x64x256xbf16, #tpu.memory_space<vmem>>, vector<1x64x256xbf16>
    %406 = vector.shape_cast %405 : vector<1x64x256xbf16> to vector<64x256xbf16>
    %cst_212 = arith.constant dense<0.000000e+00> : vector<2x256xf32>
    %407 = tpu.matmul %404, %406, %cst_212 {dimension_numbers = #tpu.dot_dimension_numbers<[1], [0], [0], [1], [0, 0, 1, 1], [], []>} : vector<2x64xbf16>, vector<64x256xbf16>, vector<2x256xf32> -> vector<2x256xf32>
    %408 = arith.truncf %277 : vector<2x64xf32> to vector<2x64xbf16>
    %c2_213 = arith.constant 2 : index
    %c0_214 = arith.constant 0 : index
    %c0_215 = arith.constant 0 : index
    %409 = vector.load %arg2[%c2_213, %c0_214, %c0_215] : memref<6x64x256xbf16, #tpu.memory_space<vmem>>, vector<1x64x256xbf16>
    %410 = vector.shape_cast %409 : vector<1x64x256xbf16> to vector<64x256xbf16>
    %cst_216 = arith.constant dense<0.000000e+00> : vector<2x256xf32>
    %411 = tpu.matmul %408, %410, %cst_216 {dimension_numbers = #tpu.dot_dimension_numbers<[1], [0], [0], [1], [0, 0, 1, 1], [], []>} : vector<2x64xbf16>, vector<64x256xbf16>, vector<2x256xf32> -> vector<2x256xf32>
    %412 = arith.addf %407, %411 : vector<2x256xf32>
    %c2_217 = arith.constant 2 : index
    %c0_218 = arith.constant 0 : index
    %c0_219 = arith.constant 0 : index
    %413 = vector.load %arg3[%c2_217, %c0_218, %c0_219] : memref<6x1x256xf32, #tpu.memory_space<vmem>>, vector<1x1x256xf32>
    %414 = vector.shape_cast %413 : vector<1x1x256xf32> to vector<1x256xf32>
    %415 = vector.broadcast %414 : vector<1x256xf32> to vector<2x256xf32>
    %416 = arith.addf %412, %415 : vector<2x256xf32>
    %417 = arith.negf %416 : vector<2x256xf32>
    %418 = math.exp %417 : vector<2x256xf32>
    %cst_220 = arith.constant 1.000000e+00 : f32
    %419 = vector.broadcast %cst_220 : f32 to vector<2x256xf32>
    %420 = arith.addf %419, %418 : vector<2x256xf32>
    %421 = arith.divf %419, %420 : vector<2x256xf32>
    %422 = vector.extract_strided_slice %421 {offsets = [0, 0], sizes = [2, 64], strides = [1, 1]} : vector<2x256xf32> to vector<2x64xf32>
    %423 = vector.extract_strided_slice %421 {offsets = [0, 64], sizes = [2, 64], strides = [1, 1]} : vector<2x256xf32> to vector<2x64xf32>
    %424 = vector.extract_strided_slice %421 {offsets = [0, 128], sizes = [2, 64], strides = [1, 1]} : vector<2x256xf32> to vector<2x64xf32>
    %cst_221 = arith.constant 2.000000e+00 : f32
    %425 = vector.broadcast %cst_221 : f32 to vector<2x64xf32>
    %426 = arith.mulf %425, %424 : vector<2x64xf32>
    %cst_222 = arith.constant 1.000000e+00 : f32
    %427 = vector.broadcast %cst_222 : f32 to vector<2x64xf32>
    %428 = arith.subf %426, %427 : vector<2x64xf32>
    %429 = vector.extract_strided_slice %421 {offsets = [0, 192], sizes = [2, 64], strides = [1, 1]} : vector<2x256xf32> to vector<2x64xf32>
    %430 = arith.mulf %423, %275 : vector<2x64xf32>
    %431 = arith.mulf %422, %428 : vector<2x64xf32>
    %432 = arith.addf %430, %431 : vector<2x64xf32>
    %433 = math.tanh %432 : vector<2x64xf32>
    %434 = arith.mulf %429, %433 : vector<2x64xf32>
    %435 = arith.truncf %341 : vector<2x64xf32> to vector<2x64xbf16>
    %c1_223 = arith.constant 1 : index
    %c0_224 = arith.constant 0 : index
    %c0_225 = arith.constant 0 : index
    %436 = vector.load %arg1[%c1_223, %c0_224, %c0_225] : memref<6x64x256xbf16, #tpu.memory_space<vmem>>, vector<1x64x256xbf16>
    %437 = vector.shape_cast %436 : vector<1x64x256xbf16> to vector<64x256xbf16>
    %cst_226 = arith.constant dense<0.000000e+00> : vector<2x256xf32>
    %438 = tpu.matmul %435, %437, %cst_226 {dimension_numbers = #tpu.dot_dimension_numbers<[1], [0], [0], [1], [0, 0, 1, 1], [], []>} : vector<2x64xbf16>, vector<64x256xbf16>, vector<2x256xf32> -> vector<2x256xf32>
    %439 = arith.truncf %308 : vector<2x64xf32> to vector<2x64xbf16>
    %c1_227 = arith.constant 1 : index
    %c0_228 = arith.constant 0 : index
    %c0_229 = arith.constant 0 : index
    %440 = vector.load %arg2[%c1_227, %c0_228, %c0_229] : memref<6x64x256xbf16, #tpu.memory_space<vmem>>, vector<1x64x256xbf16>
    %441 = vector.shape_cast %440 : vector<1x64x256xbf16> to vector<64x256xbf16>
    %cst_230 = arith.constant dense<0.000000e+00> : vector<2x256xf32>
    %442 = tpu.matmul %439, %441, %cst_230 {dimension_numbers = #tpu.dot_dimension_numbers<[1], [0], [0], [1], [0, 0, 1, 1], [], []>} : vector<2x64xbf16>, vector<64x256xbf16>, vector<2x256xf32> -> vector<2x256xf32>
    %443 = arith.addf %438, %442 : vector<2x256xf32>
    %c1_231 = arith.constant 1 : index
    %c0_232 = arith.constant 0 : index
    %c0_233 = arith.constant 0 : index
    %444 = vector.load %arg3[%c1_231, %c0_232, %c0_233] : memref<6x1x256xf32, #tpu.memory_space<vmem>>, vector<1x1x256xf32>
    %445 = vector.shape_cast %444 : vector<1x1x256xf32> to vector<1x256xf32>
    %446 = vector.broadcast %445 : vector<1x256xf32> to vector<2x256xf32>
    %447 = arith.addf %443, %446 : vector<2x256xf32>
    %448 = arith.negf %447 : vector<2x256xf32>
    %449 = math.exp %448 : vector<2x256xf32>
    %cst_234 = arith.constant 1.000000e+00 : f32
    %450 = vector.broadcast %cst_234 : f32 to vector<2x256xf32>
    %451 = arith.addf %450, %449 : vector<2x256xf32>
    %452 = arith.divf %450, %451 : vector<2x256xf32>
    %453 = vector.extract_strided_slice %452 {offsets = [0, 0], sizes = [2, 64], strides = [1, 1]} : vector<2x256xf32> to vector<2x64xf32>
    %454 = vector.extract_strided_slice %452 {offsets = [0, 64], sizes = [2, 64], strides = [1, 1]} : vector<2x256xf32> to vector<2x64xf32>
    %455 = vector.extract_strided_slice %452 {offsets = [0, 128], sizes = [2, 64], strides = [1, 1]} : vector<2x256xf32> to vector<2x64xf32>
    %cst_235 = arith.constant 2.000000e+00 : f32
    %456 = vector.broadcast %cst_235 : f32 to vector<2x64xf32>
    %457 = arith.mulf %456, %455 : vector<2x64xf32>
    %cst_236 = arith.constant 1.000000e+00 : f32
    %458 = vector.broadcast %cst_236 : f32 to vector<2x64xf32>
    %459 = arith.subf %457, %458 : vector<2x64xf32>
    %460 = vector.extract_strided_slice %452 {offsets = [0, 192], sizes = [2, 64], strides = [1, 1]} : vector<2x256xf32> to vector<2x64xf32>
    %461 = arith.mulf %454, %306 : vector<2x64xf32>
    %462 = arith.mulf %453, %459 : vector<2x64xf32>
    %463 = arith.addf %461, %462 : vector<2x64xf32>
    %464 = math.tanh %463 : vector<2x64xf32>
    %465 = arith.mulf %460, %464 : vector<2x64xf32>
    %c4_237 = arith.constant 4 : index
    %c0_238 = arith.constant 0 : index
    %c0_239 = arith.constant 0 : index
    %466 = vector.load %arg0[%c4_237, %c0_238, %c0_239] : memref<8x2x64xf32, #tpu.memory_space<vmem>>, vector<1x2x64xf32>
    %467 = vector.shape_cast %466 : vector<1x2x64xf32> to vector<2x64xf32>
    %468 = arith.truncf %467 : vector<2x64xf32> to vector<2x64xbf16>
    %c0_240 = arith.constant 0 : index
    %c0_241 = arith.constant 0 : index
    %c0_242 = arith.constant 0 : index
    %469 = vector.load %arg1[%c0_240, %c0_241, %c0_242] : memref<6x64x256xbf16, #tpu.memory_space<vmem>>, vector<1x64x256xbf16>
    %470 = vector.shape_cast %469 : vector<1x64x256xbf16> to vector<64x256xbf16>
    %cst_243 = arith.constant dense<0.000000e+00> : vector<2x256xf32>
    %471 = tpu.matmul %468, %470, %cst_243 {dimension_numbers = #tpu.dot_dimension_numbers<[1], [0], [0], [1], [0, 0, 1, 1], [], []>} : vector<2x64xbf16>, vector<64x256xbf16>, vector<2x256xf32> -> vector<2x256xf32>
    %472 = arith.truncf %341 : vector<2x64xf32> to vector<2x64xbf16>
    %c0_244 = arith.constant 0 : index
    %c0_245 = arith.constant 0 : index
    %c0_246 = arith.constant 0 : index
    %473 = vector.load %arg2[%c0_244, %c0_245, %c0_246] : memref<6x64x256xbf16, #tpu.memory_space<vmem>>, vector<1x64x256xbf16>
    %474 = vector.shape_cast %473 : vector<1x64x256xbf16> to vector<64x256xbf16>
    %cst_247 = arith.constant dense<0.000000e+00> : vector<2x256xf32>
    %475 = tpu.matmul %472, %474, %cst_247 {dimension_numbers = #tpu.dot_dimension_numbers<[1], [0], [0], [1], [0, 0, 1, 1], [], []>} : vector<2x64xbf16>, vector<64x256xbf16>, vector<2x256xf32> -> vector<2x256xf32>
    %476 = arith.addf %471, %475 : vector<2x256xf32>
    %c0_248 = arith.constant 0 : index
    %c0_249 = arith.constant 0 : index
    %c0_250 = arith.constant 0 : index
    %477 = vector.load %arg3[%c0_248, %c0_249, %c0_250] : memref<6x1x256xf32, #tpu.memory_space<vmem>>, vector<1x1x256xf32>
    %478 = vector.shape_cast %477 : vector<1x1x256xf32> to vector<1x256xf32>
    %479 = vector.broadcast %478 : vector<1x256xf32> to vector<2x256xf32>
    %480 = arith.addf %476, %479 : vector<2x256xf32>
    %481 = arith.negf %480 : vector<2x256xf32>
    %482 = math.exp %481 : vector<2x256xf32>
    %cst_251 = arith.constant 1.000000e+00 : f32
    %483 = vector.broadcast %cst_251 : f32 to vector<2x256xf32>
    %484 = arith.addf %483, %482 : vector<2x256xf32>
    %485 = arith.divf %483, %484 : vector<2x256xf32>
    %486 = vector.extract_strided_slice %485 {offsets = [0, 0], sizes = [2, 64], strides = [1, 1]} : vector<2x256xf32> to vector<2x64xf32>
    %487 = vector.extract_strided_slice %485 {offsets = [0, 64], sizes = [2, 64], strides = [1, 1]} : vector<2x256xf32> to vector<2x64xf32>
    %488 = vector.extract_strided_slice %485 {offsets = [0, 128], sizes = [2, 64], strides = [1, 1]} : vector<2x256xf32> to vector<2x64xf32>
    %cst_252 = arith.constant 2.000000e+00 : f32
    %489 = vector.broadcast %cst_252 : f32 to vector<2x64xf32>
    %490 = arith.mulf %489, %488 : vector<2x64xf32>
    %cst_253 = arith.constant 1.000000e+00 : f32
    %491 = vector.broadcast %cst_253 : f32 to vector<2x64xf32>
    %492 = arith.subf %490, %491 : vector<2x64xf32>
    %493 = vector.extract_strided_slice %485 {offsets = [0, 192], sizes = [2, 64], strides = [1, 1]} : vector<2x256xf32> to vector<2x64xf32>
    %494 = arith.mulf %487, %339 : vector<2x64xf32>
    %495 = arith.mulf %486, %492 : vector<2x64xf32>
    %496 = arith.addf %494, %495 : vector<2x64xf32>
    %497 = math.tanh %496 : vector<2x64xf32>
    %498 = arith.mulf %493, %497 : vector<2x64xf32>
    %499 = arith.truncf %372 : vector<2x64xf32> to vector<2x64xbf16>
    %c5_254 = arith.constant 5 : index
    %c0_255 = arith.constant 0 : index
    %c0_256 = arith.constant 0 : index
    %500 = vector.load %arg1[%c5_254, %c0_255, %c0_256] : memref<6x64x256xbf16, #tpu.memory_space<vmem>>, vector<1x64x256xbf16>
    %501 = vector.shape_cast %500 : vector<1x64x256xbf16> to vector<64x256xbf16>
    %cst_257 = arith.constant dense<0.000000e+00> : vector<2x256xf32>
    %502 = tpu.matmul %499, %501, %cst_257 {dimension_numbers = #tpu.dot_dimension_numbers<[1], [0], [0], [1], [0, 0, 1, 1], [], []>} : vector<2x64xbf16>, vector<64x256xbf16>, vector<2x256xf32> -> vector<2x256xf32>
    %503 = arith.truncf %11 : vector<2x64xf32> to vector<2x64xbf16>
    %c5_258 = arith.constant 5 : index
    %c0_259 = arith.constant 0 : index
    %c0_260 = arith.constant 0 : index
    %504 = vector.load %arg2[%c5_258, %c0_259, %c0_260] : memref<6x64x256xbf16, #tpu.memory_space<vmem>>, vector<1x64x256xbf16>
    %505 = vector.shape_cast %504 : vector<1x64x256xbf16> to vector<64x256xbf16>
    %cst_261 = arith.constant dense<0.000000e+00> : vector<2x256xf32>
    %506 = tpu.matmul %503, %505, %cst_261 {dimension_numbers = #tpu.dot_dimension_numbers<[1], [0], [0], [1], [0, 0, 1, 1], [], []>} : vector<2x64xbf16>, vector<64x256xbf16>, vector<2x256xf32> -> vector<2x256xf32>
    %507 = arith.addf %502, %506 : vector<2x256xf32>
    %c5_262 = arith.constant 5 : index
    %c0_263 = arith.constant 0 : index
    %c0_264 = arith.constant 0 : index
    %508 = vector.load %arg3[%c5_262, %c0_263, %c0_264] : memref<6x1x256xf32, #tpu.memory_space<vmem>>, vector<1x1x256xf32>
    %509 = vector.shape_cast %508 : vector<1x1x256xf32> to vector<1x256xf32>
    %510 = vector.broadcast %509 : vector<1x256xf32> to vector<2x256xf32>
    %511 = arith.addf %507, %510 : vector<2x256xf32>
    %512 = arith.negf %511 : vector<2x256xf32>
    %513 = math.exp %512 : vector<2x256xf32>
    %cst_265 = arith.constant 1.000000e+00 : f32
    %514 = vector.broadcast %cst_265 : f32 to vector<2x256xf32>
    %515 = arith.addf %514, %513 : vector<2x256xf32>
    %516 = arith.divf %514, %515 : vector<2x256xf32>
    %517 = vector.extract_strided_slice %516 {offsets = [0, 0], sizes = [2, 64], strides = [1, 1]} : vector<2x256xf32> to vector<2x64xf32>
    %518 = vector.extract_strided_slice %516 {offsets = [0, 64], sizes = [2, 64], strides = [1, 1]} : vector<2x256xf32> to vector<2x64xf32>
    %519 = vector.extract_strided_slice %516 {offsets = [0, 128], sizes = [2, 64], strides = [1, 1]} : vector<2x256xf32> to vector<2x64xf32>
    %cst_266 = arith.constant 2.000000e+00 : f32
    %520 = vector.broadcast %cst_266 : f32 to vector<2x64xf32>
    %521 = arith.mulf %520, %519 : vector<2x64xf32>
    %cst_267 = arith.constant 1.000000e+00 : f32
    %522 = vector.broadcast %cst_267 : f32 to vector<2x64xf32>
    %523 = arith.subf %521, %522 : vector<2x64xf32>
    %524 = vector.extract_strided_slice %516 {offsets = [0, 192], sizes = [2, 64], strides = [1, 1]} : vector<2x256xf32> to vector<2x64xf32>
    %525 = arith.mulf %518, %23 : vector<2x64xf32>
    %526 = arith.mulf %517, %523 : vector<2x64xf32>
    %527 = arith.addf %525, %526 : vector<2x64xf32>
    %528 = math.tanh %527 : vector<2x64xf32>
    %529 = arith.mulf %524, %528 : vector<2x64xf32>
    %c0_268 = arith.constant 0 : index
    %c0_269 = arith.constant 0 : index
    %530 = vector.load %arg6[%c0_268, %c0_269] : memref<1x64xf32, #tpu.memory_space<vmem>>, vector<1x64xf32>
    %531 = vector.broadcast %530 : vector<1x64xf32> to vector<2x64xf32>
    %532 = arith.mulf %529, %531 : vector<2x64xf32>
    %cst_270 = arith.constant dense<0.000000e+00> : vector<2xf32>
    %533 = vector.multi_reduction <add>, %532, %cst_270 [1] : vector<2x64xf32> to vector<2xf32>
    %534 = vector.shape_cast %533 : vector<2xf32> to vector<2x1xf32>
    %c0_271 = arith.constant 0 : index
    %c0_272 = arith.constant 0 : index
    %535 = vector.load %arg7[%c0_271, %c0_272] : memref<1x1xf32, #tpu.memory_space<vmem>>, vector<1x1xf32>
    %536 = vector.broadcast %535 : vector<1x1xf32> to vector<2x1xf32>
    %537 = arith.addf %534, %536 : vector<2x1xf32>
    %538 = arith.negf %537 : vector<2x1xf32>
    %539 = math.exp %538 : vector<2x1xf32>
    %cst_273 = arith.constant 1.000000e+00 : f32
    %540 = vector.broadcast %cst_273 : f32 to vector<2x1xf32>
    %541 = arith.addf %540, %539 : vector<2x1xf32>
    %542 = arith.divf %540, %541 : vector<2x1xf32>
    %c0_274 = arith.constant 0 : index
    %c0_275 = arith.constant 0 : index
    %543 = vector.load %arg8[%c0_274, %c0_275] : memref<2x8xf32, #tpu.memory_space<vmem>>, vector<2x1xf32>
    tpu.vector_store %arg8[%c0_274, %c0_275], %542 {strides = array<i32>} : memref<2x8xf32, #tpu.memory_space<vmem>>, vector<2x1xf32>,
    %544 = arith.truncf %403 : vector<2x64xf32> to vector<2x64xbf16>
    %c4_276 = arith.constant 4 : index
    %c0_277 = arith.constant 0 : index
    %c0_278 = arith.constant 0 : index
    %545 = vector.load %arg1[%c4_276, %c0_277, %c0_278] : memref<6x64x256xbf16, #tpu.memory_space<vmem>>, vector<1x64x256xbf16>
    %546 = vector.shape_cast %545 : vector<1x64x256xbf16> to vector<64x256xbf16>
    %cst_279 = arith.constant dense<0.000000e+00> : vector<2x256xf32>
    %547 = tpu.matmul %544, %546, %cst_279 {dimension_numbers = #tpu.dot_dimension_numbers<[1], [0], [0], [1], [0, 0, 1, 1], [], []>} : vector<2x64xbf16>, vector<64x256xbf16>, vector<2x256xf32> -> vector<2x256xf32>
    %548 = arith.truncf %372 : vector<2x64xf32> to vector<2x64xbf16>
    %c4_280 = arith.constant 4 : index
    %c0_281 = arith.constant 0 : index
    %c0_282 = arith.constant 0 : index
    %549 = vector.load %arg2[%c4_280, %c0_281, %c0_282] : memref<6x64x256xbf16, #tpu.memory_space<vmem>>, vector<1x64x256xbf16>
    %550 = vector.shape_cast %549 : vector<1x64x256xbf16> to vector<64x256xbf16>
    %cst_283 = arith.constant dense<0.000000e+00> : vector<2x256xf32>
    %551 = tpu.matmul %548, %550, %cst_283 {dimension_numbers = #tpu.dot_dimension_numbers<[1], [0], [0], [1], [0, 0, 1, 1], [], []>} : vector<2x64xbf16>, vector<64x256xbf16>, vector<2x256xf32> -> vector<2x256xf32>
    %552 = arith.addf %547, %551 : vector<2x256xf32>
    %c4_284 = arith.constant 4 : index
    %c0_285 = arith.constant 0 : index
    %c0_286 = arith.constant 0 : index
    %553 = vector.load %arg3[%c4_284, %c0_285, %c0_286] : memref<6x1x256xf32, #tpu.memory_space<vmem>>, vector<1x1x256xf32>
    %554 = vector.shape_cast %553 : vector<1x1x256xf32> to vector<1x256xf32>
    %555 = vector.broadcast %554 : vector<1x256xf32> to vector<2x256xf32>
    %556 = arith.addf %552, %555 : vector<2x256xf32>
    %557 = arith.negf %556 : vector<2x256xf32>
    %558 = math.exp %557 : vector<2x256xf32>
    %cst_287 = arith.constant 1.000000e+00 : f32
    %559 = vector.broadcast %cst_287 : f32 to vector<2x256xf32>
    %560 = arith.addf %559, %558 : vector<2x256xf32>
    %561 = arith.divf %559, %560 : vector<2x256xf32>
    %562 = vector.extract_strided_slice %561 {offsets = [0, 0], sizes = [2, 64], strides = [1, 1]} : vector<2x256xf32> to vector<2x64xf32>
    %563 = vector.extract_strided_slice %561 {offsets = [0, 64], sizes = [2, 64], strides = [1, 1]} : vector<2x256xf32> to vector<2x64xf32>
    %564 = vector.extract_strided_slice %561 {offsets = [0, 128], sizes = [2, 64], strides = [1, 1]} : vector<2x256xf32> to vector<2x64xf32>
    %cst_288 = arith.constant 2.000000e+00 : f32
    %565 = vector.broadcast %cst_288 : f32 to vector<2x64xf32>
    %566 = arith.mulf %565, %564 : vector<2x64xf32>
    %cst_289 = arith.constant 1.000000e+00 : f32
    %567 = vector.broadcast %cst_289 : f32 to vector<2x64xf32>
    %568 = arith.subf %566, %567 : vector<2x64xf32>
    %569 = vector.extract_strided_slice %561 {offsets = [0, 192], sizes = [2, 64], strides = [1, 1]} : vector<2x256xf32> to vector<2x64xf32>
    %570 = arith.mulf %563, %370 : vector<2x64xf32>
    %571 = arith.mulf %562, %568 : vector<2x64xf32>
    %572 = arith.addf %570, %571 : vector<2x64xf32>
    %573 = math.tanh %572 : vector<2x64xf32>
    %574 = arith.mulf %569, %573 : vector<2x64xf32>
    %575 = arith.truncf %434 : vector<2x64xf32> to vector<2x64xbf16>
    %c3_290 = arith.constant 3 : index
    %c0_291 = arith.constant 0 : index
    %c0_292 = arith.constant 0 : index
    %576 = vector.load %arg1[%c3_290, %c0_291, %c0_292] : memref<6x64x256xbf16, #tpu.memory_space<vmem>>, vector<1x64x256xbf16>
    %577 = vector.shape_cast %576 : vector<1x64x256xbf16> to vector<64x256xbf16>
    %cst_293 = arith.constant dense<0.000000e+00> : vector<2x256xf32>
    %578 = tpu.matmul %575, %577, %cst_293 {dimension_numbers = #tpu.dot_dimension_numbers<[1], [0], [0], [1], [0, 0, 1, 1], [], []>} : vector<2x64xbf16>, vector<64x256xbf16>, vector<2x256xf32> -> vector<2x256xf32>
    %579 = arith.truncf %403 : vector<2x64xf32> to vector<2x64xbf16>
    %c3_294 = arith.constant 3 : index
    %c0_295 = arith.constant 0 : index
    %c0_296 = arith.constant 0 : index
    %580 = vector.load %arg2[%c3_294, %c0_295, %c0_296] : memref<6x64x256xbf16, #tpu.memory_space<vmem>>, vector<1x64x256xbf16>
    %581 = vector.shape_cast %580 : vector<1x64x256xbf16> to vector<64x256xbf16>
    %cst_297 = arith.constant dense<0.000000e+00> : vector<2x256xf32>
    %582 = tpu.matmul %579, %581, %cst_297 {dimension_numbers = #tpu.dot_dimension_numbers<[1], [0], [0], [1], [0, 0, 1, 1], [], []>} : vector<2x64xbf16>, vector<64x256xbf16>, vector<2x256xf32> -> vector<2x256xf32>
    %583 = arith.addf %578, %582 : vector<2x256xf32>
    %c3_298 = arith.constant 3 : index
    %c0_299 = arith.constant 0 : index
    %c0_300 = arith.constant 0 : index
    %584 = vector.load %arg3[%c3_298, %c0_299, %c0_300] : memref<6x1x256xf32, #tpu.memory_space<vmem>>, vector<1x1x256xf32>
    %585 = vector.shape_cast %584 : vector<1x1x256xf32> to vector<1x256xf32>
    %586 = vector.broadcast %585 : vector<1x256xf32> to vector<2x256xf32>
    %587 = arith.addf %583, %586 : vector<2x256xf32>
    %588 = arith.negf %587 : vector<2x256xf32>
    %589 = math.exp %588 : vector<2x256xf32>
    %cst_301 = arith.constant 1.000000e+00 : f32
    %590 = vector.broadcast %cst_301 : f32 to vector<2x256xf32>
    %591 = arith.addf %590, %589 : vector<2x256xf32>
    %592 = arith.divf %590, %591 : vector<2x256xf32>
    %593 = vector.extract_strided_slice %592 {offsets = [0, 0], sizes = [2, 64], strides = [1, 1]} : vector<2x256xf32> to vector<2x64xf32>
    %594 = vector.extract_strided_slice %592 {offsets = [0, 64], sizes = [2, 64], strides = [1, 1]} : vector<2x256xf32> to vector<2x64xf32>
    %595 = vector.extract_strided_slice %592 {offsets = [0, 128], sizes = [2, 64], strides = [1, 1]} : vector<2x256xf32> to vector<2x64xf32>
    %cst_302 = arith.constant 2.000000e+00 : f32
    %596 = vector.broadcast %cst_302 : f32 to vector<2x64xf32>
    %597 = arith.mulf %596, %595 : vector<2x64xf32>
    %cst_303 = arith.constant 1.000000e+00 : f32
    %598 = vector.broadcast %cst_303 : f32 to vector<2x64xf32>
    %599 = arith.subf %597, %598 : vector<2x64xf32>
    %600 = vector.extract_strided_slice %592 {offsets = [0, 192], sizes = [2, 64], strides = [1, 1]} : vector<2x256xf32> to vector<2x64xf32>
    %601 = arith.mulf %594, %401 : vector<2x64xf32>
    %602 = arith.mulf %593, %599 : vector<2x64xf32>
    %603 = arith.addf %601, %602 : vector<2x64xf32>
    %604 = math.tanh %603 : vector<2x64xf32>
    %605 = arith.mulf %600, %604 : vector<2x64xf32>
    %606 = arith.truncf %465 : vector<2x64xf32> to vector<2x64xbf16>
    %c2_304 = arith.constant 2 : index
    %c0_305 = arith.constant 0 : index
    %c0_306 = arith.constant 0 : index
    %607 = vector.load %arg1[%c2_304, %c0_305, %c0_306] : memref<6x64x256xbf16, #tpu.memory_space<vmem>>, vector<1x64x256xbf16>
    %608 = vector.shape_cast %607 : vector<1x64x256xbf16> to vector<64x256xbf16>
    %cst_307 = arith.constant dense<0.000000e+00> : vector<2x256xf32>
    %609 = tpu.matmul %606, %608, %cst_307 {dimension_numbers = #tpu.dot_dimension_numbers<[1], [0], [0], [1], [0, 0, 1, 1], [], []>} : vector<2x64xbf16>, vector<64x256xbf16>, vector<2x256xf32> -> vector<2x256xf32>
    %610 = arith.truncf %434 : vector<2x64xf32> to vector<2x64xbf16>
    %c2_308 = arith.constant 2 : index
    %c0_309 = arith.constant 0 : index
    %c0_310 = arith.constant 0 : index
    %611 = vector.load %arg2[%c2_308, %c0_309, %c0_310] : memref<6x64x256xbf16, #tpu.memory_space<vmem>>, vector<1x64x256xbf16>
    %612 = vector.shape_cast %611 : vector<1x64x256xbf16> to vector<64x256xbf16>
    %cst_311 = arith.constant dense<0.000000e+00> : vector<2x256xf32>
    %613 = tpu.matmul %610, %612, %cst_311 {dimension_numbers = #tpu.dot_dimension_numbers<[1], [0], [0], [1], [0, 0, 1, 1], [], []>} : vector<2x64xbf16>, vector<64x256xbf16>, vector<2x256xf32> -> vector<2x256xf32>
    %614 = arith.addf %609, %613 : vector<2x256xf32>
    %c2_312 = arith.constant 2 : index
    %c0_313 = arith.constant 0 : index
    %c0_314 = arith.constant 0 : index
    %615 = vector.load %arg3[%c2_312, %c0_313, %c0_314] : memref<6x1x256xf32, #tpu.memory_space<vmem>>, vector<1x1x256xf32>
    %616 = vector.shape_cast %615 : vector<1x1x256xf32> to vector<1x256xf32>
    %617 = vector.broadcast %616 : vector<1x256xf32> to vector<2x256xf32>
    %618 = arith.addf %614, %617 : vector<2x256xf32>
    %619 = arith.negf %618 : vector<2x256xf32>
    %620 = math.exp %619 : vector<2x256xf32>
    %cst_315 = arith.constant 1.000000e+00 : f32
    %621 = vector.broadcast %cst_315 : f32 to vector<2x256xf32>
    %622 = arith.addf %621, %620 : vector<2x256xf32>
    %623 = arith.divf %621, %622 : vector<2x256xf32>
    %624 = vector.extract_strided_slice %623 {offsets = [0, 0], sizes = [2, 64], strides = [1, 1]} : vector<2x256xf32> to vector<2x64xf32>
    %625 = vector.extract_strided_slice %623 {offsets = [0, 64], sizes = [2, 64], strides = [1, 1]} : vector<2x256xf32> to vector<2x64xf32>
    %626 = vector.extract_strided_slice %623 {offsets = [0, 128], sizes = [2, 64], strides = [1, 1]} : vector<2x256xf32> to vector<2x64xf32>
    %cst_316 = arith.constant 2.000000e+00 : f32
    %627 = vector.broadcast %cst_316 : f32 to vector<2x64xf32>
    %628 = arith.mulf %627, %626 : vector<2x64xf32>
    %cst_317 = arith.constant 1.000000e+00 : f32
    %629 = vector.broadcast %cst_317 : f32 to vector<2x64xf32>
    %630 = arith.subf %628, %629 : vector<2x64xf32>
    %631 = vector.extract_strided_slice %623 {offsets = [0, 192], sizes = [2, 64], strides = [1, 1]} : vector<2x256xf32> to vector<2x64xf32>
    %632 = arith.mulf %625, %432 : vector<2x64xf32>
    %633 = arith.mulf %624, %630 : vector<2x64xf32>
    %634 = arith.addf %632, %633 : vector<2x64xf32>
    %635 = math.tanh %634 : vector<2x64xf32>
    %636 = arith.mulf %631, %635 : vector<2x64xf32>
    %637 = arith.truncf %498 : vector<2x64xf32> to vector<2x64xbf16>
    %c1_318 = arith.constant 1 : index
    %c0_319 = arith.constant 0 : index
    %c0_320 = arith.constant 0 : index
    %638 = vector.load %arg1[%c1_318, %c0_319, %c0_320] : memref<6x64x256xbf16, #tpu.memory_space<vmem>>, vector<1x64x256xbf16>
    %639 = vector.shape_cast %638 : vector<1x64x256xbf16> to vector<64x256xbf16>
    %cst_321 = arith.constant dense<0.000000e+00> : vector<2x256xf32>
    %640 = tpu.matmul %637, %639, %cst_321 {dimension_numbers = #tpu.dot_dimension_numbers<[1], [0], [0], [1], [0, 0, 1, 1], [], []>} : vector<2x64xbf16>, vector<64x256xbf16>, vector<2x256xf32> -> vector<2x256xf32>
    %641 = arith.truncf %465 : vector<2x64xf32> to vector<2x64xbf16>
    %c1_322 = arith.constant 1 : index
    %c0_323 = arith.constant 0 : index
    %c0_324 = arith.constant 0 : index
    %642 = vector.load %arg2[%c1_322, %c0_323, %c0_324] : memref<6x64x256xbf16, #tpu.memory_space<vmem>>, vector<1x64x256xbf16>
    %643 = vector.shape_cast %642 : vector<1x64x256xbf16> to vector<64x256xbf16>
    %cst_325 = arith.constant dense<0.000000e+00> : vector<2x256xf32>
    %644 = tpu.matmul %641, %643, %cst_325 {dimension_numbers = #tpu.dot_dimension_numbers<[1], [0], [0], [1], [0, 0, 1, 1], [], []>} : vector<2x64xbf16>, vector<64x256xbf16>, vector<2x256xf32> -> vector<2x256xf32>
    %645 = arith.addf %640, %644 : vector<2x256xf32>
    %c1_326 = arith.constant 1 : index
    %c0_327 = arith.constant 0 : index
    %c0_328 = arith.constant 0 : index
    %646 = vector.load %arg3[%c1_326, %c0_327, %c0_328] : memref<6x1x256xf32, #tpu.memory_space<vmem>>, vector<1x1x256xf32>
    %647 = vector.shape_cast %646 : vector<1x1x256xf32> to vector<1x256xf32>
    %648 = vector.broadcast %647 : vector<1x256xf32> to vector<2x256xf32>
    %649 = arith.addf %645, %648 : vector<2x256xf32>
    %650 = arith.negf %649 : vector<2x256xf32>
    %651 = math.exp %650 : vector<2x256xf32>
    %cst_329 = arith.constant 1.000000e+00 : f32
    %652 = vector.broadcast %cst_329 : f32 to vector<2x256xf32>
    %653 = arith.addf %652, %651 : vector<2x256xf32>
    %654 = arith.divf %652, %653 : vector<2x256xf32>
    %655 = vector.extract_strided_slice %654 {offsets = [0, 0], sizes = [2, 64], strides = [1, 1]} : vector<2x256xf32> to vector<2x64xf32>
    %656 = vector.extract_strided_slice %654 {offsets = [0, 64], sizes = [2, 64], strides = [1, 1]} : vector<2x256xf32> to vector<2x64xf32>
    %657 = vector.extract_strided_slice %654 {offsets = [0, 128], sizes = [2, 64], strides = [1, 1]} : vector<2x256xf32> to vector<2x64xf32>
    %cst_330 = arith.constant 2.000000e+00 : f32
    %658 = vector.broadcast %cst_330 : f32 to vector<2x64xf32>
    %659 = arith.mulf %658, %657 : vector<2x64xf32>
    %cst_331 = arith.constant 1.000000e+00 : f32
    %660 = vector.broadcast %cst_331 : f32 to vector<2x64xf32>
    %661 = arith.subf %659, %660 : vector<2x64xf32>
    %662 = vector.extract_strided_slice %654 {offsets = [0, 192], sizes = [2, 64], strides = [1, 1]} : vector<2x256xf32> to vector<2x64xf32>
    %663 = arith.mulf %656, %463 : vector<2x64xf32>
    %664 = arith.mulf %655, %661 : vector<2x64xf32>
    %665 = arith.addf %663, %664 : vector<2x64xf32>
    %666 = math.tanh %665 : vector<2x64xf32>
    %667 = arith.mulf %662, %666 : vector<2x64xf32>
    %c5_332 = arith.constant 5 : index
    %c0_333 = arith.constant 0 : index
    %c0_334 = arith.constant 0 : index
    %668 = vector.load %arg0[%c5_332, %c0_333, %c0_334] : memref<8x2x64xf32, #tpu.memory_space<vmem>>, vector<1x2x64xf32>
    %669 = vector.shape_cast %668 : vector<1x2x64xf32> to vector<2x64xf32>
    %670 = arith.truncf %669 : vector<2x64xf32> to vector<2x64xbf16>
    %c0_335 = arith.constant 0 : index
    %c0_336 = arith.constant 0 : index
    %c0_337 = arith.constant 0 : index
    %671 = vector.load %arg1[%c0_335, %c0_336, %c0_337] : memref<6x64x256xbf16, #tpu.memory_space<vmem>>, vector<1x64x256xbf16>
    %672 = vector.shape_cast %671 : vector<1x64x256xbf16> to vector<64x256xbf16>
    %cst_338 = arith.constant dense<0.000000e+00> : vector<2x256xf32>
    %673 = tpu.matmul %670, %672, %cst_338 {dimension_numbers = #tpu.dot_dimension_numbers<[1], [0], [0], [1], [0, 0, 1, 1], [], []>} : vector<2x64xbf16>, vector<64x256xbf16>, vector<2x256xf32> -> vector<2x256xf32>
    %674 = arith.truncf %498 : vector<2x64xf32> to vector<2x64xbf16>
    %c0_339 = arith.constant 0 : index
    %c0_340 = arith.constant 0 : index
    %c0_341 = arith.constant 0 : index
    %675 = vector.load %arg2[%c0_339, %c0_340, %c0_341] : memref<6x64x256xbf16, #tpu.memory_space<vmem>>, vector<1x64x256xbf16>
    %676 = vector.shape_cast %675 : vector<1x64x256xbf16> to vector<64x256xbf16>
    %cst_342 = arith.constant dense<0.000000e+00> : vector<2x256xf32>
    %677 = tpu.matmul %674, %676, %cst_342 {dimension_numbers = #tpu.dot_dimension_numbers<[1], [0], [0], [1], [0, 0, 1, 1], [], []>} : vector<2x64xbf16>, vector<64x256xbf16>, vector<2x256xf32> -> vector<2x256xf32>
    %678 = arith.addf %673, %677 : vector<2x256xf32>
    %c0_343 = arith.constant 0 : index
    %c0_344 = arith.constant 0 : index
    %c0_345 = arith.constant 0 : index
    %679 = vector.load %arg3[%c0_343, %c0_344, %c0_345] : memref<6x1x256xf32, #tpu.memory_space<vmem>>, vector<1x1x256xf32>
    %680 = vector.shape_cast %679 : vector<1x1x256xf32> to vector<1x256xf32>
    %681 = vector.broadcast %680 : vector<1x256xf32> to vector<2x256xf32>
    %682 = arith.addf %678, %681 : vector<2x256xf32>
    %683 = arith.negf %682 : vector<2x256xf32>
    %684 = math.exp %683 : vector<2x256xf32>
    %cst_346 = arith.constant 1.000000e+00 : f32
    %685 = vector.broadcast %cst_346 : f32 to vector<2x256xf32>
    %686 = arith.addf %685, %684 : vector<2x256xf32>
    %687 = arith.divf %685, %686 : vector<2x256xf32>
    %688 = vector.extract_strided_slice %687 {offsets = [0, 0], sizes = [2, 64], strides = [1, 1]} : vector<2x256xf32> to vector<2x64xf32>
    %689 = vector.extract_strided_slice %687 {offsets = [0, 64], sizes = [2, 64], strides = [1, 1]} : vector<2x256xf32> to vector<2x64xf32>
    %690 = vector.extract_strided_slice %687 {offsets = [0, 128], sizes = [2, 64], strides = [1, 1]} : vector<2x256xf32> to vector<2x64xf32>
    %cst_347 = arith.constant 2.000000e+00 : f32
    %691 = vector.broadcast %cst_347 : f32 to vector<2x64xf32>
    %692 = arith.mulf %691, %690 : vector<2x64xf32>
    %cst_348 = arith.constant 1.000000e+00 : f32
    %693 = vector.broadcast %cst_348 : f32 to vector<2x64xf32>
    %694 = arith.subf %692, %693 : vector<2x64xf32>
    %695 = vector.extract_strided_slice %687 {offsets = [0, 192], sizes = [2, 64], strides = [1, 1]} : vector<2x256xf32> to vector<2x64xf32>
    %696 = arith.mulf %689, %496 : vector<2x64xf32>
    %697 = arith.mulf %688, %694 : vector<2x64xf32>
    %698 = arith.addf %696, %697 : vector<2x64xf32>
    %699 = math.tanh %698 : vector<2x64xf32>
    %700 = arith.mulf %695, %699 : vector<2x64xf32>
    %701 = arith.truncf %574 : vector<2x64xf32> to vector<2x64xbf16>
    %c5_349 = arith.constant 5 : index
    %c0_350 = arith.constant 0 : index
    %c0_351 = arith.constant 0 : index
    %702 = vector.load %arg1[%c5_349, %c0_350, %c0_351] : memref<6x64x256xbf16, #tpu.memory_space<vmem>>, vector<1x64x256xbf16>
    %703 = vector.shape_cast %702 : vector<1x64x256xbf16> to vector<64x256xbf16>
    %cst_352 = arith.constant dense<0.000000e+00> : vector<2x256xf32>
    %704 = tpu.matmul %701, %703, %cst_352 {dimension_numbers = #tpu.dot_dimension_numbers<[1], [0], [0], [1], [0, 0, 1, 1], [], []>} : vector<2x64xbf16>, vector<64x256xbf16>, vector<2x256xf32> -> vector<2x256xf32>
    %705 = arith.truncf %529 : vector<2x64xf32> to vector<2x64xbf16>
    %c5_353 = arith.constant 5 : index
    %c0_354 = arith.constant 0 : index
    %c0_355 = arith.constant 0 : index
    %706 = vector.load %arg2[%c5_353, %c0_354, %c0_355] : memref<6x64x256xbf16, #tpu.memory_space<vmem>>, vector<1x64x256xbf16>
    %707 = vector.shape_cast %706 : vector<1x64x256xbf16> to vector<64x256xbf16>
    %cst_356 = arith.constant dense<0.000000e+00> : vector<2x256xf32>
    %708 = tpu.matmul %705, %707, %cst_356 {dimension_numbers = #tpu.dot_dimension_numbers<[1], [0], [0], [1], [0, 0, 1, 1], [], []>} : vector<2x64xbf16>, vector<64x256xbf16>, vector<2x256xf32> -> vector<2x256xf32>
    %709 = arith.addf %704, %708 : vector<2x256xf32>
    %c5_357 = arith.constant 5 : index
    %c0_358 = arith.constant 0 : index
    %c0_359 = arith.constant 0 : index
    %710 = vector.load %arg3[%c5_357, %c0_358, %c0_359] : memref<6x1x256xf32, #tpu.memory_space<vmem>>, vector<1x1x256xf32>
    %711 = vector.shape_cast %710 : vector<1x1x256xf32> to vector<1x256xf32>
    %712 = vector.broadcast %711 : vector<1x256xf32> to vector<2x256xf32>
    %713 = arith.addf %709, %712 : vector<2x256xf32>
    %714 = arith.negf %713 : vector<2x256xf32>
    %715 = math.exp %714 : vector<2x256xf32>
    %cst_360 = arith.constant 1.000000e+00 : f32
    %716 = vector.broadcast %cst_360 : f32 to vector<2x256xf32>
    %717 = arith.addf %716, %715 : vector<2x256xf32>
    %718 = arith.divf %716, %717 : vector<2x256xf32>
    %719 = vector.extract_strided_slice %718 {offsets = [0, 0], sizes = [2, 64], strides = [1, 1]} : vector<2x256xf32> to vector<2x64xf32>
    %720 = vector.extract_strided_slice %718 {offsets = [0, 64], sizes = [2, 64], strides = [1, 1]} : vector<2x256xf32> to vector<2x64xf32>
    %721 = vector.extract_strided_slice %718 {offsets = [0, 128], sizes = [2, 64], strides = [1, 1]} : vector<2x256xf32> to vector<2x64xf32>
    %cst_361 = arith.constant 2.000000e+00 : f32
    %722 = vector.broadcast %cst_361 : f32 to vector<2x64xf32>
    %723 = arith.mulf %722, %721 : vector<2x64xf32>
    %cst_362 = arith.constant 1.000000e+00 : f32
    %724 = vector.broadcast %cst_362 : f32 to vector<2x64xf32>
    %725 = arith.subf %723, %724 : vector<2x64xf32>
    %726 = vector.extract_strided_slice %718 {offsets = [0, 192], sizes = [2, 64], strides = [1, 1]} : vector<2x256xf32> to vector<2x64xf32>
    %727 = arith.mulf %720, %527 : vector<2x64xf32>
    %728 = arith.mulf %719, %725 : vector<2x64xf32>
    %729 = arith.addf %727, %728 : vector<2x64xf32>
    %730 = math.tanh %729 : vector<2x64xf32>
    %731 = arith.mulf %726, %730 : vector<2x64xf32>
    %c0_363 = arith.constant 0 : index
    %c0_364 = arith.constant 0 : index
    %732 = vector.load %arg6[%c0_363, %c0_364] : memref<1x64xf32, #tpu.memory_space<vmem>>, vector<1x64xf32>
    %733 = vector.broadcast %732 : vector<1x64xf32> to vector<2x64xf32>
    %734 = arith.mulf %731, %733 : vector<2x64xf32>
    %cst_365 = arith.constant dense<0.000000e+00> : vector<2xf32>
    %735 = vector.multi_reduction <add>, %734, %cst_365 [1] : vector<2x64xf32> to vector<2xf32>
    %736 = vector.shape_cast %735 : vector<2xf32> to vector<2x1xf32>
    %c0_366 = arith.constant 0 : index
    %c0_367 = arith.constant 0 : index
    %737 = vector.load %arg7[%c0_366, %c0_367] : memref<1x1xf32, #tpu.memory_space<vmem>>, vector<1x1xf32>
    %738 = vector.broadcast %737 : vector<1x1xf32> to vector<2x1xf32>
    %739 = arith.addf %736, %738 : vector<2x1xf32>
    %740 = arith.negf %739 : vector<2x1xf32>
    %741 = math.exp %740 : vector<2x1xf32>
    %cst_368 = arith.constant 1.000000e+00 : f32
    %742 = vector.broadcast %cst_368 : f32 to vector<2x1xf32>
    %743 = arith.addf %742, %741 : vector<2x1xf32>
    %744 = arith.divf %742, %743 : vector<2x1xf32>
    %c0_369 = arith.constant 0 : index
    %c1_370 = arith.constant 1 : index
    %745 = vector.load %arg8[%c0_369, %c1_370] : memref<2x8xf32, #tpu.memory_space<vmem>>, vector<2x1xf32>
    tpu.vector_store %arg8[%c0_369, %c1_370], %744 {strides = array<i32>} : memref<2x8xf32, #tpu.memory_space<vmem>>, vector<2x1xf32>,
    %746 = arith.truncf %605 : vector<2x64xf32> to vector<2x64xbf16>
    %c4_371 = arith.constant 4 : index
    %c0_372 = arith.constant 0 : index
    %c0_373 = arith.constant 0 : index
    %747 = vector.load %arg1[%c4_371, %c0_372, %c0_373] : memref<6x64x256xbf16, #tpu.memory_space<vmem>>, vector<1x64x256xbf16>
    %748 = vector.shape_cast %747 : vector<1x64x256xbf16> to vector<64x256xbf16>
    %cst_374 = arith.constant dense<0.000000e+00> : vector<2x256xf32>
    %749 = tpu.matmul %746, %748, %cst_374 {dimension_numbers = #tpu.dot_dimension_numbers<[1], [0], [0], [1], [0, 0, 1, 1], [], []>} : vector<2x64xbf16>, vector<64x256xbf16>, vector<2x256xf32> -> vector<2x256xf32>
    %750 = arith.truncf %574 : vector<2x64xf32> to vector<2x64xbf16>
    %c4_375 = arith.constant 4 : index
    %c0_376 = arith.constant 0 : index
    %c0_377 = arith.constant 0 : index
    %751 = vector.load %arg2[%c4_375, %c0_376, %c0_377] : memref<6x64x256xbf16, #tpu.memory_space<vmem>>, vector<1x64x256xbf16>
    %752 = vector.shape_cast %751 : vector<1x64x256xbf16> to vector<64x256xbf16>
    %cst_378 = arith.constant dense<0.000000e+00> : vector<2x256xf32>
    %753 = tpu.matmul %750, %752, %cst_378 {dimension_numbers = #tpu.dot_dimension_numbers<[1], [0], [0], [1], [0, 0, 1, 1], [], []>} : vector<2x64xbf16>, vector<64x256xbf16>, vector<2x256xf32> -> vector<2x256xf32>
    %754 = arith.addf %749, %753 : vector<2x256xf32>
    %c4_379 = arith.constant 4 : index
    %c0_380 = arith.constant 0 : index
    %c0_381 = arith.constant 0 : index
    %755 = vector.load %arg3[%c4_379, %c0_380, %c0_381] : memref<6x1x256xf32, #tpu.memory_space<vmem>>, vector<1x1x256xf32>
    %756 = vector.shape_cast %755 : vector<1x1x256xf32> to vector<1x256xf32>
    %757 = vector.broadcast %756 : vector<1x256xf32> to vector<2x256xf32>
    %758 = arith.addf %754, %757 : vector<2x256xf32>
    %759 = arith.negf %758 : vector<2x256xf32>
    %760 = math.exp %759 : vector<2x256xf32>
    %cst_382 = arith.constant 1.000000e+00 : f32
    %761 = vector.broadcast %cst_382 : f32 to vector<2x256xf32>
    %762 = arith.addf %761, %760 : vector<2x256xf32>
    %763 = arith.divf %761, %762 : vector<2x256xf32>
    %764 = vector.extract_strided_slice %763 {offsets = [0, 0], sizes = [2, 64], strides = [1, 1]} : vector<2x256xf32> to vector<2x64xf32>
    %765 = vector.extract_strided_slice %763 {offsets = [0, 64], sizes = [2, 64], strides = [1, 1]} : vector<2x256xf32> to vector<2x64xf32>
    %766 = vector.extract_strided_slice %763 {offsets = [0, 128], sizes = [2, 64], strides = [1, 1]} : vector<2x256xf32> to vector<2x64xf32>
    %cst_383 = arith.constant 2.000000e+00 : f32
    %767 = vector.broadcast %cst_383 : f32 to vector<2x64xf32>
    %768 = arith.mulf %767, %766 : vector<2x64xf32>
    %cst_384 = arith.constant 1.000000e+00 : f32
    %769 = vector.broadcast %cst_384 : f32 to vector<2x64xf32>
    %770 = arith.subf %768, %769 : vector<2x64xf32>
    %771 = vector.extract_strided_slice %763 {offsets = [0, 192], sizes = [2, 64], strides = [1, 1]} : vector<2x256xf32> to vector<2x64xf32>
    %772 = arith.mulf %765, %572 : vector<2x64xf32>
    %773 = arith.mulf %764, %770 : vector<2x64xf32>
    %774 = arith.addf %772, %773 : vector<2x64xf32>
    %775 = math.tanh %774 : vector<2x64xf32>
    %776 = arith.mulf %771, %775 : vector<2x64xf32>
    %777 = arith.truncf %636 : vector<2x64xf32> to vector<2x64xbf16>
    %c3_385 = arith.constant 3 : index
    %c0_386 = arith.constant 0 : index
    %c0_387 = arith.constant 0 : index
    %778 = vector.load %arg1[%c3_385, %c0_386, %c0_387] : memref<6x64x256xbf16, #tpu.memory_space<vmem>>, vector<1x64x256xbf16>
    %779 = vector.shape_cast %778 : vector<1x64x256xbf16> to vector<64x256xbf16>
    %cst_388 = arith.constant dense<0.000000e+00> : vector<2x256xf32>
    %780 = tpu.matmul %777, %779, %cst_388 {dimension_numbers = #tpu.dot_dimension_numbers<[1], [0], [0], [1], [0, 0, 1, 1], [], []>} : vector<2x64xbf16>, vector<64x256xbf16>, vector<2x256xf32> -> vector<2x256xf32>
    %781 = arith.truncf %605 : vector<2x64xf32> to vector<2x64xbf16>
    %c3_389 = arith.constant 3 : index
    %c0_390 = arith.constant 0 : index
    %c0_391 = arith.constant 0 : index
    %782 = vector.load %arg2[%c3_389, %c0_390, %c0_391] : memref<6x64x256xbf16, #tpu.memory_space<vmem>>, vector<1x64x256xbf16>
    %783 = vector.shape_cast %782 : vector<1x64x256xbf16> to vector<64x256xbf16>
    %cst_392 = arith.constant dense<0.000000e+00> : vector<2x256xf32>
    %784 = tpu.matmul %781, %783, %cst_392 {dimension_numbers = #tpu.dot_dimension_numbers<[1], [0], [0], [1], [0, 0, 1, 1], [], []>} : vector<2x64xbf16>, vector<64x256xbf16>, vector<2x256xf32> -> vector<2x256xf32>
    %785 = arith.addf %780, %784 : vector<2x256xf32>
    %c3_393 = arith.constant 3 : index
    %c0_394 = arith.constant 0 : index
    %c0_395 = arith.constant 0 : index
    %786 = vector.load %arg3[%c3_393, %c0_394, %c0_395] : memref<6x1x256xf32, #tpu.memory_space<vmem>>, vector<1x1x256xf32>
    %787 = vector.shape_cast %786 : vector<1x1x256xf32> to vector<1x256xf32>
    %788 = vector.broadcast %787 : vector<1x256xf32> to vector<2x256xf32>
    %789 = arith.addf %785, %788 : vector<2x256xf32>
    %790 = arith.negf %789 : vector<2x256xf32>
    %791 = math.exp %790 : vector<2x256xf32>
    %cst_396 = arith.constant 1.000000e+00 : f32
    %792 = vector.broadcast %cst_396 : f32 to vector<2x256xf32>
    %793 = arith.addf %792, %791 : vector<2x256xf32>
    %794 = arith.divf %792, %793 : vector<2x256xf32>
    %795 = vector.extract_strided_slice %794 {offsets = [0, 0], sizes = [2, 64], strides = [1, 1]} : vector<2x256xf32> to vector<2x64xf32>
    %796 = vector.extract_strided_slice %794 {offsets = [0, 64], sizes = [2, 64], strides = [1, 1]} : vector<2x256xf32> to vector<2x64xf32>
    %797 = vector.extract_strided_slice %794 {offsets = [0, 128], sizes = [2, 64], strides = [1, 1]} : vector<2x256xf32> to vector<2x64xf32>
    %cst_397 = arith.constant 2.000000e+00 : f32
    %798 = vector.broadcast %cst_397 : f32 to vector<2x64xf32>
    %799 = arith.mulf %798, %797 : vector<2x64xf32>
    %cst_398 = arith.constant 1.000000e+00 : f32
    %800 = vector.broadcast %cst_398 : f32 to vector<2x64xf32>
    %801 = arith.subf %799, %800 : vector<2x64xf32>
    %802 = vector.extract_strided_slice %794 {offsets = [0, 192], sizes = [2, 64], strides = [1, 1]} : vector<2x256xf32> to vector<2x64xf32>
    %803 = arith.mulf %796, %603 : vector<2x64xf32>
    %804 = arith.mulf %795, %801 : vector<2x64xf32>
    %805 = arith.addf %803, %804 : vector<2x64xf32>
    %806 = math.tanh %805 : vector<2x64xf32>
    %807 = arith.mulf %802, %806 : vector<2x64xf32>
    %808 = arith.truncf %667 : vector<2x64xf32> to vector<2x64xbf16>
    %c2_399 = arith.constant 2 : index
    %c0_400 = arith.constant 0 : index
    %c0_401 = arith.constant 0 : index
    %809 = vector.load %arg1[%c2_399, %c0_400, %c0_401] : memref<6x64x256xbf16, #tpu.memory_space<vmem>>, vector<1x64x256xbf16>
    %810 = vector.shape_cast %809 : vector<1x64x256xbf16> to vector<64x256xbf16>
    %cst_402 = arith.constant dense<0.000000e+00> : vector<2x256xf32>
    %811 = tpu.matmul %808, %810, %cst_402 {dimension_numbers = #tpu.dot_dimension_numbers<[1], [0], [0], [1], [0, 0, 1, 1], [], []>} : vector<2x64xbf16>, vector<64x256xbf16>, vector<2x256xf32> -> vector<2x256xf32>
    %812 = arith.truncf %636 : vector<2x64xf32> to vector<2x64xbf16>
    %c2_403 = arith.constant 2 : index
    %c0_404 = arith.constant 0 : index
    %c0_405 = arith.constant 0 : index
    %813 = vector.load %arg2[%c2_403, %c0_404, %c0_405] : memref<6x64x256xbf16, #tpu.memory_space<vmem>>, vector<1x64x256xbf16>
    %814 = vector.shape_cast %813 : vector<1x64x256xbf16> to vector<64x256xbf16>
    %cst_406 = arith.constant dense<0.000000e+00> : vector<2x256xf32>
    %815 = tpu.matmul %812, %814, %cst_406 {dimension_numbers = #tpu.dot_dimension_numbers<[1], [0], [0], [1], [0, 0, 1, 1], [], []>} : vector<2x64xbf16>, vector<64x256xbf16>, vector<2x256xf32> -> vector<2x256xf32>
    %816 = arith.addf %811, %815 : vector<2x256xf32>
    %c2_407 = arith.constant 2 : index
    %c0_408 = arith.constant 0 : index
    %c0_409 = arith.constant 0 : index
    %817 = vector.load %arg3[%c2_407, %c0_408, %c0_409] : memref<6x1x256xf32, #tpu.memory_space<vmem>>, vector<1x1x256xf32>
    %818 = vector.shape_cast %817 : vector<1x1x256xf32> to vector<1x256xf32>
    %819 = vector.broadcast %818 : vector<1x256xf32> to vector<2x256xf32>
    %820 = arith.addf %816, %819 : vector<2x256xf32>
    %821 = arith.negf %820 : vector<2x256xf32>
    %822 = math.exp %821 : vector<2x256xf32>
    %cst_410 = arith.constant 1.000000e+00 : f32
    %823 = vector.broadcast %cst_410 : f32 to vector<2x256xf32>
    %824 = arith.addf %823, %822 : vector<2x256xf32>
    %825 = arith.divf %823, %824 : vector<2x256xf32>
    %826 = vector.extract_strided_slice %825 {offsets = [0, 0], sizes = [2, 64], strides = [1, 1]} : vector<2x256xf32> to vector<2x64xf32>
    %827 = vector.extract_strided_slice %825 {offsets = [0, 64], sizes = [2, 64], strides = [1, 1]} : vector<2x256xf32> to vector<2x64xf32>
    %828 = vector.extract_strided_slice %825 {offsets = [0, 128], sizes = [2, 64], strides = [1, 1]} : vector<2x256xf32> to vector<2x64xf32>
    %cst_411 = arith.constant 2.000000e+00 : f32
    %829 = vector.broadcast %cst_411 : f32 to vector<2x64xf32>
    %830 = arith.mulf %829, %828 : vector<2x64xf32>
    %cst_412 = arith.constant 1.000000e+00 : f32
    %831 = vector.broadcast %cst_412 : f32 to vector<2x64xf32>
    %832 = arith.subf %830, %831 : vector<2x64xf32>
    %833 = vector.extract_strided_slice %825 {offsets = [0, 192], sizes = [2, 64], strides = [1, 1]} : vector<2x256xf32> to vector<2x64xf32>
    %834 = arith.mulf %827, %634 : vector<2x64xf32>
    %835 = arith.mulf %826, %832 : vector<2x64xf32>
    %836 = arith.addf %834, %835 : vector<2x64xf32>
    %837 = math.tanh %836 : vector<2x64xf32>
    %838 = arith.mulf %833, %837 : vector<2x64xf32>
    %839 = arith.truncf %700 : vector<2x64xf32> to vector<2x64xbf16>
    %c1_413 = arith.constant 1 : index
    %c0_414 = arith.constant 0 : index
    %c0_415 = arith.constant 0 : index
    %840 = vector.load %arg1[%c1_413, %c0_414, %c0_415] : memref<6x64x256xbf16, #tpu.memory_space<vmem>>, vector<1x64x256xbf16>
    %841 = vector.shape_cast %840 : vector<1x64x256xbf16> to vector<64x256xbf16>
    %cst_416 = arith.constant dense<0.000000e+00> : vector<2x256xf32>
    %842 = tpu.matmul %839, %841, %cst_416 {dimension_numbers = #tpu.dot_dimension_numbers<[1], [0], [0], [1], [0, 0, 1, 1], [], []>} : vector<2x64xbf16>, vector<64x256xbf16>, vector<2x256xf32> -> vector<2x256xf32>
    %843 = arith.truncf %667 : vector<2x64xf32> to vector<2x64xbf16>
    %c1_417 = arith.constant 1 : index
    %c0_418 = arith.constant 0 : index
    %c0_419 = arith.constant 0 : index
    %844 = vector.load %arg2[%c1_417, %c0_418, %c0_419] : memref<6x64x256xbf16, #tpu.memory_space<vmem>>, vector<1x64x256xbf16>
    %845 = vector.shape_cast %844 : vector<1x64x256xbf16> to vector<64x256xbf16>
    %cst_420 = arith.constant dense<0.000000e+00> : vector<2x256xf32>
    %846 = tpu.matmul %843, %845, %cst_420 {dimension_numbers = #tpu.dot_dimension_numbers<[1], [0], [0], [1], [0, 0, 1, 1], [], []>} : vector<2x64xbf16>, vector<64x256xbf16>, vector<2x256xf32> -> vector<2x256xf32>
    %847 = arith.addf %842, %846 : vector<2x256xf32>
    %c1_421 = arith.constant 1 : index
    %c0_422 = arith.constant 0 : index
    %c0_423 = arith.constant 0 : index
    %848 = vector.load %arg3[%c1_421, %c0_422, %c0_423] : memref<6x1x256xf32, #tpu.memory_space<vmem>>, vector<1x1x256xf32>
    %849 = vector.shape_cast %848 : vector<1x1x256xf32> to vector<1x256xf32>
    %850 = vector.broadcast %849 : vector<1x256xf32> to vector<2x256xf32>
    %851 = arith.addf %847, %850 : vector<2x256xf32>
    %852 = arith.negf %851 : vector<2x256xf32>
    %853 = math.exp %852 : vector<2x256xf32>
    %cst_424 = arith.constant 1.000000e+00 : f32
    %854 = vector.broadcast %cst_424 : f32 to vector<2x256xf32>
    %855 = arith.addf %854, %853 : vector<2x256xf32>
    %856 = arith.divf %854, %855 : vector<2x256xf32>
    %857 = vector.extract_strided_slice %856 {offsets = [0, 0], sizes = [2, 64], strides = [1, 1]} : vector<2x256xf32> to vector<2x64xf32>
    %858 = vector.extract_strided_slice %856 {offsets = [0, 64], sizes = [2, 64], strides = [1, 1]} : vector<2x256xf32> to vector<2x64xf32>
    %859 = vector.extract_strided_slice %856 {offsets = [0, 128], sizes = [2, 64], strides = [1, 1]} : vector<2x256xf32> to vector<2x64xf32>
    %cst_425 = arith.constant 2.000000e+00 : f32
    %860 = vector.broadcast %cst_425 : f32 to vector<2x64xf32>
    %861 = arith.mulf %860, %859 : vector<2x64xf32>
    %cst_426 = arith.constant 1.000000e+00 : f32
    %862 = vector.broadcast %cst_426 : f32 to vector<2x64xf32>
    %863 = arith.subf %861, %862 : vector<2x64xf32>
    %864 = vector.extract_strided_slice %856 {offsets = [0, 192], sizes = [2, 64], strides = [1, 1]} : vector<2x256xf32> to vector<2x64xf32>
    %865 = arith.mulf %858, %665 : vector<2x64xf32>
    %866 = arith.mulf %857, %863 : vector<2x64xf32>
    %867 = arith.addf %865, %866 : vector<2x64xf32>
    %868 = math.tanh %867 : vector<2x64xf32>
    %869 = arith.mulf %864, %868 : vector<2x64xf32>
    %c6 = arith.constant 6 : index
    %c0_427 = arith.constant 0 : index
    %c0_428 = arith.constant 0 : index
    %870 = vector.load %arg0[%c6, %c0_427, %c0_428] : memref<8x2x64xf32, #tpu.memory_space<vmem>>, vector<1x2x64xf32>
    %871 = vector.shape_cast %870 : vector<1x2x64xf32> to vector<2x64xf32>
    %872 = arith.truncf %871 : vector<2x64xf32> to vector<2x64xbf16>
    %c0_429 = arith.constant 0 : index
    %c0_430 = arith.constant 0 : index
    %c0_431 = arith.constant 0 : index
    %873 = vector.load %arg1[%c0_429, %c0_430, %c0_431] : memref<6x64x256xbf16, #tpu.memory_space<vmem>>, vector<1x64x256xbf16>
    %874 = vector.shape_cast %873 : vector<1x64x256xbf16> to vector<64x256xbf16>
    %cst_432 = arith.constant dense<0.000000e+00> : vector<2x256xf32>
    %875 = tpu.matmul %872, %874, %cst_432 {dimension_numbers = #tpu.dot_dimension_numbers<[1], [0], [0], [1], [0, 0, 1, 1], [], []>} : vector<2x64xbf16>, vector<64x256xbf16>, vector<2x256xf32> -> vector<2x256xf32>
    %876 = arith.truncf %700 : vector<2x64xf32> to vector<2x64xbf16>
    %c0_433 = arith.constant 0 : index
    %c0_434 = arith.constant 0 : index
    %c0_435 = arith.constant 0 : index
    %877 = vector.load %arg2[%c0_433, %c0_434, %c0_435] : memref<6x64x256xbf16, #tpu.memory_space<vmem>>, vector<1x64x256xbf16>
    %878 = vector.shape_cast %877 : vector<1x64x256xbf16> to vector<64x256xbf16>
    %cst_436 = arith.constant dense<0.000000e+00> : vector<2x256xf32>
    %879 = tpu.matmul %876, %878, %cst_436 {dimension_numbers = #tpu.dot_dimension_numbers<[1], [0], [0], [1], [0, 0, 1, 1], [], []>} : vector<2x64xbf16>, vector<64x256xbf16>, vector<2x256xf32> -> vector<2x256xf32>
    %880 = arith.addf %875, %879 : vector<2x256xf32>
    %c0_437 = arith.constant 0 : index
    %c0_438 = arith.constant 0 : index
    %c0_439 = arith.constant 0 : index
    %881 = vector.load %arg3[%c0_437, %c0_438, %c0_439] : memref<6x1x256xf32, #tpu.memory_space<vmem>>, vector<1x1x256xf32>
    %882 = vector.shape_cast %881 : vector<1x1x256xf32> to vector<1x256xf32>
    %883 = vector.broadcast %882 : vector<1x256xf32> to vector<2x256xf32>
    %884 = arith.addf %880, %883 : vector<2x256xf32>
    %885 = arith.negf %884 : vector<2x256xf32>
    %886 = math.exp %885 : vector<2x256xf32>
    %cst_440 = arith.constant 1.000000e+00 : f32
    %887 = vector.broadcast %cst_440 : f32 to vector<2x256xf32>
    %888 = arith.addf %887, %886 : vector<2x256xf32>
    %889 = arith.divf %887, %888 : vector<2x256xf32>
    %890 = vector.extract_strided_slice %889 {offsets = [0, 0], sizes = [2, 64], strides = [1, 1]} : vector<2x256xf32> to vector<2x64xf32>
    %891 = vector.extract_strided_slice %889 {offsets = [0, 64], sizes = [2, 64], strides = [1, 1]} : vector<2x256xf32> to vector<2x64xf32>
    %892 = vector.extract_strided_slice %889 {offsets = [0, 128], sizes = [2, 64], strides = [1, 1]} : vector<2x256xf32> to vector<2x64xf32>
    %cst_441 = arith.constant 2.000000e+00 : f32
    %893 = vector.broadcast %cst_441 : f32 to vector<2x64xf32>
    %894 = arith.mulf %893, %892 : vector<2x64xf32>
    %cst_442 = arith.constant 1.000000e+00 : f32
    %895 = vector.broadcast %cst_442 : f32 to vector<2x64xf32>
    %896 = arith.subf %894, %895 : vector<2x64xf32>
    %897 = vector.extract_strided_slice %889 {offsets = [0, 192], sizes = [2, 64], strides = [1, 1]} : vector<2x256xf32> to vector<2x64xf32>
    %898 = arith.mulf %891, %698 : vector<2x64xf32>
    %899 = arith.mulf %890, %896 : vector<2x64xf32>
    %900 = arith.addf %898, %899 : vector<2x64xf32>
    %901 = math.tanh %900 : vector<2x64xf32>
    %902 = arith.mulf %897, %901 : vector<2x64xf32>
    %903 = arith.truncf %776 : vector<2x64xf32> to vector<2x64xbf16>
    %c5_443 = arith.constant 5 : index
    %c0_444 = arith.constant 0 : index
    %c0_445 = arith.constant 0 : index
    %904 = vector.load %arg1[%c5_443, %c0_444, %c0_445] : memref<6x64x256xbf16, #tpu.memory_space<vmem>>, vector<1x64x256xbf16>
    %905 = vector.shape_cast %904 : vector<1x64x256xbf16> to vector<64x256xbf16>
    %cst_446 = arith.constant dense<0.000000e+00> : vector<2x256xf32>
    %906 = tpu.matmul %903, %905, %cst_446 {dimension_numbers = #tpu.dot_dimension_numbers<[1], [0], [0], [1], [0, 0, 1, 1], [], []>} : vector<2x64xbf16>, vector<64x256xbf16>, vector<2x256xf32> -> vector<2x256xf32>
    %907 = arith.truncf %731 : vector<2x64xf32> to vector<2x64xbf16>
    %c5_447 = arith.constant 5 : index
    %c0_448 = arith.constant 0 : index
    %c0_449 = arith.constant 0 : index
    %908 = vector.load %arg2[%c5_447, %c0_448, %c0_449] : memref<6x64x256xbf16, #tpu.memory_space<vmem>>, vector<1x64x256xbf16>
    %909 = vector.shape_cast %908 : vector<1x64x256xbf16> to vector<64x256xbf16>
    %cst_450 = arith.constant dense<0.000000e+00> : vector<2x256xf32>
    %910 = tpu.matmul %907, %909, %cst_450 {dimension_numbers = #tpu.dot_dimension_numbers<[1], [0], [0], [1], [0, 0, 1, 1], [], []>} : vector<2x64xbf16>, vector<64x256xbf16>, vector<2x256xf32> -> vector<2x256xf32>
    %911 = arith.addf %906, %910 : vector<2x256xf32>
    %c5_451 = arith.constant 5 : index
    %c0_452 = arith.constant 0 : index
    %c0_453 = arith.constant 0 : index
    %912 = vector.load %arg3[%c5_451, %c0_452, %c0_453] : memref<6x1x256xf32, #tpu.memory_space<vmem>>, vector<1x1x256xf32>
    %913 = vector.shape_cast %912 : vector<1x1x256xf32> to vector<1x256xf32>
    %914 = vector.broadcast %913 : vector<1x256xf32> to vector<2x256xf32>
    %915 = arith.addf %911, %914 : vector<2x256xf32>
    %916 = arith.negf %915 : vector<2x256xf32>
    %917 = math.exp %916 : vector<2x256xf32>
    %cst_454 = arith.constant 1.000000e+00 : f32
    %918 = vector.broadcast %cst_454 : f32 to vector<2x256xf32>
    %919 = arith.addf %918, %917 : vector<2x256xf32>
    %920 = arith.divf %918, %919 : vector<2x256xf32>
    %921 = vector.extract_strided_slice %920 {offsets = [0, 0], sizes = [2, 64], strides = [1, 1]} : vector<2x256xf32> to vector<2x64xf32>
    %922 = vector.extract_strided_slice %920 {offsets = [0, 64], sizes = [2, 64], strides = [1, 1]} : vector<2x256xf32> to vector<2x64xf32>
    %923 = vector.extract_strided_slice %920 {offsets = [0, 128], sizes = [2, 64], strides = [1, 1]} : vector<2x256xf32> to vector<2x64xf32>
    %cst_455 = arith.constant 2.000000e+00 : f32
    %924 = vector.broadcast %cst_455 : f32 to vector<2x64xf32>
    %925 = arith.mulf %924, %923 : vector<2x64xf32>
    %cst_456 = arith.constant 1.000000e+00 : f32
    %926 = vector.broadcast %cst_456 : f32 to vector<2x64xf32>
    %927 = arith.subf %925, %926 : vector<2x64xf32>
    %928 = vector.extract_strided_slice %920 {offsets = [0, 192], sizes = [2, 64], strides = [1, 1]} : vector<2x256xf32> to vector<2x64xf32>
    %929 = arith.mulf %922, %729 : vector<2x64xf32>
    %930 = arith.mulf %921, %927 : vector<2x64xf32>
    %931 = arith.addf %929, %930 : vector<2x64xf32>
    %932 = math.tanh %931 : vector<2x64xf32>
    %933 = arith.mulf %928, %932 : vector<2x64xf32>
    %c0_457 = arith.constant 0 : index
    %c0_458 = arith.constant 0 : index
    %934 = vector.load %arg6[%c0_457, %c0_458] : memref<1x64xf32, #tpu.memory_space<vmem>>, vector<1x64xf32>
    %935 = vector.broadcast %934 : vector<1x64xf32> to vector<2x64xf32>
    %936 = arith.mulf %933, %935 : vector<2x64xf32>
    %cst_459 = arith.constant dense<0.000000e+00> : vector<2xf32>
    %937 = vector.multi_reduction <add>, %936, %cst_459 [1] : vector<2x64xf32> to vector<2xf32>
    %938 = vector.shape_cast %937 : vector<2xf32> to vector<2x1xf32>
    %c0_460 = arith.constant 0 : index
    %c0_461 = arith.constant 0 : index
    %939 = vector.load %arg7[%c0_460, %c0_461] : memref<1x1xf32, #tpu.memory_space<vmem>>, vector<1x1xf32>
    %940 = vector.broadcast %939 : vector<1x1xf32> to vector<2x1xf32>
    %941 = arith.addf %938, %940 : vector<2x1xf32>
    %942 = arith.negf %941 : vector<2x1xf32>
    %943 = math.exp %942 : vector<2x1xf32>
    %cst_462 = arith.constant 1.000000e+00 : f32
    %944 = vector.broadcast %cst_462 : f32 to vector<2x1xf32>
    %945 = arith.addf %944, %943 : vector<2x1xf32>
    %946 = arith.divf %944, %945 : vector<2x1xf32>
    %c0_463 = arith.constant 0 : index
    %c2_464 = arith.constant 2 : index
    %947 = vector.load %arg8[%c0_463, %c2_464] : memref<2x8xf32, #tpu.memory_space<vmem>>, vector<2x1xf32>
    tpu.vector_store %arg8[%c0_463, %c2_464], %946 {strides = array<i32>} : memref<2x8xf32, #tpu.memory_space<vmem>>, vector<2x1xf32>,
    %948 = arith.truncf %807 : vector<2x64xf32> to vector<2x64xbf16>
    %c4_465 = arith.constant 4 : index
    %c0_466 = arith.constant 0 : index
    %c0_467 = arith.constant 0 : index
    %949 = vector.load %arg1[%c4_465, %c0_466, %c0_467] : memref<6x64x256xbf16, #tpu.memory_space<vmem>>, vector<1x64x256xbf16>
    %950 = vector.shape_cast %949 : vector<1x64x256xbf16> to vector<64x256xbf16>
    %cst_468 = arith.constant dense<0.000000e+00> : vector<2x256xf32>
    %951 = tpu.matmul %948, %950, %cst_468 {dimension_numbers = #tpu.dot_dimension_numbers<[1], [0], [0], [1], [0, 0, 1, 1], [], []>} : vector<2x64xbf16>, vector<64x256xbf16>, vector<2x256xf32> -> vector<2x256xf32>
    %952 = arith.truncf %776 : vector<2x64xf32> to vector<2x64xbf16>
    %c4_469 = arith.constant 4 : index
    %c0_470 = arith.constant 0 : index
    %c0_471 = arith.constant 0 : index
    %953 = vector.load %arg2[%c4_469, %c0_470, %c0_471] : memref<6x64x256xbf16, #tpu.memory_space<vmem>>, vector<1x64x256xbf16>
    %954 = vector.shape_cast %953 : vector<1x64x256xbf16> to vector<64x256xbf16>
    %cst_472 = arith.constant dense<0.000000e+00> : vector<2x256xf32>
    %955 = tpu.matmul %952, %954, %cst_472 {dimension_numbers = #tpu.dot_dimension_numbers<[1], [0], [0], [1], [0, 0, 1, 1], [], []>} : vector<2x64xbf16>, vector<64x256xbf16>, vector<2x256xf32> -> vector<2x256xf32>
    %956 = arith.addf %951, %955 : vector<2x256xf32>
    %c4_473 = arith.constant 4 : index
    %c0_474 = arith.constant 0 : index
    %c0_475 = arith.constant 0 : index
    %957 = vector.load %arg3[%c4_473, %c0_474, %c0_475] : memref<6x1x256xf32, #tpu.memory_space<vmem>>, vector<1x1x256xf32>
    %958 = vector.shape_cast %957 : vector<1x1x256xf32> to vector<1x256xf32>
    %959 = vector.broadcast %958 : vector<1x256xf32> to vector<2x256xf32>
    %960 = arith.addf %956, %959 : vector<2x256xf32>
    %961 = arith.negf %960 : vector<2x256xf32>
    %962 = math.exp %961 : vector<2x256xf32>
    %cst_476 = arith.constant 1.000000e+00 : f32
    %963 = vector.broadcast %cst_476 : f32 to vector<2x256xf32>
    %964 = arith.addf %963, %962 : vector<2x256xf32>
    %965 = arith.divf %963, %964 : vector<2x256xf32>
    %966 = vector.extract_strided_slice %965 {offsets = [0, 0], sizes = [2, 64], strides = [1, 1]} : vector<2x256xf32> to vector<2x64xf32>
    %967 = vector.extract_strided_slice %965 {offsets = [0, 64], sizes = [2, 64], strides = [1, 1]} : vector<2x256xf32> to vector<2x64xf32>
    %968 = vector.extract_strided_slice %965 {offsets = [0, 128], sizes = [2, 64], strides = [1, 1]} : vector<2x256xf32> to vector<2x64xf32>
    %cst_477 = arith.constant 2.000000e+00 : f32
    %969 = vector.broadcast %cst_477 : f32 to vector<2x64xf32>
    %970 = arith.mulf %969, %968 : vector<2x64xf32>
    %cst_478 = arith.constant 1.000000e+00 : f32
    %971 = vector.broadcast %cst_478 : f32 to vector<2x64xf32>
    %972 = arith.subf %970, %971 : vector<2x64xf32>
    %973 = vector.extract_strided_slice %965 {offsets = [0, 192], sizes = [2, 64], strides = [1, 1]} : vector<2x256xf32> to vector<2x64xf32>
    %974 = arith.mulf %967, %774 : vector<2x64xf32>
    %975 = arith.mulf %966, %972 : vector<2x64xf32>
    %976 = arith.addf %974, %975 : vector<2x64xf32>
    %977 = math.tanh %976 : vector<2x64xf32>
    %978 = arith.mulf %973, %977 : vector<2x64xf32>
    %979 = arith.truncf %838 : vector<2x64xf32> to vector<2x64xbf16>
    %c3_479 = arith.constant 3 : index
    %c0_480 = arith.constant 0 : index
    %c0_481 = arith.constant 0 : index
    %980 = vector.load %arg1[%c3_479, %c0_480, %c0_481] : memref<6x64x256xbf16, #tpu.memory_space<vmem>>, vector<1x64x256xbf16>
    %981 = vector.shape_cast %980 : vector<1x64x256xbf16> to vector<64x256xbf16>
    %cst_482 = arith.constant dense<0.000000e+00> : vector<2x256xf32>
    %982 = tpu.matmul %979, %981, %cst_482 {dimension_numbers = #tpu.dot_dimension_numbers<[1], [0], [0], [1], [0, 0, 1, 1], [], []>} : vector<2x64xbf16>, vector<64x256xbf16>, vector<2x256xf32> -> vector<2x256xf32>
    %983 = arith.truncf %807 : vector<2x64xf32> to vector<2x64xbf16>
    %c3_483 = arith.constant 3 : index
    %c0_484 = arith.constant 0 : index
    %c0_485 = arith.constant 0 : index
    %984 = vector.load %arg2[%c3_483, %c0_484, %c0_485] : memref<6x64x256xbf16, #tpu.memory_space<vmem>>, vector<1x64x256xbf16>
    %985 = vector.shape_cast %984 : vector<1x64x256xbf16> to vector<64x256xbf16>
    %cst_486 = arith.constant dense<0.000000e+00> : vector<2x256xf32>
    %986 = tpu.matmul %983, %985, %cst_486 {dimension_numbers = #tpu.dot_dimension_numbers<[1], [0], [0], [1], [0, 0, 1, 1], [], []>} : vector<2x64xbf16>, vector<64x256xbf16>, vector<2x256xf32> -> vector<2x256xf32>
    %987 = arith.addf %982, %986 : vector<2x256xf32>
    %c3_487 = arith.constant 3 : index
    %c0_488 = arith.constant 0 : index
    %c0_489 = arith.constant 0 : index
    %988 = vector.load %arg3[%c3_487, %c0_488, %c0_489] : memref<6x1x256xf32, #tpu.memory_space<vmem>>, vector<1x1x256xf32>
    %989 = vector.shape_cast %988 : vector<1x1x256xf32> to vector<1x256xf32>
    %990 = vector.broadcast %989 : vector<1x256xf32> to vector<2x256xf32>
    %991 = arith.addf %987, %990 : vector<2x256xf32>
    %992 = arith.negf %991 : vector<2x256xf32>
    %993 = math.exp %992 : vector<2x256xf32>
    %cst_490 = arith.constant 1.000000e+00 : f32
    %994 = vector.broadcast %cst_490 : f32 to vector<2x256xf32>
    %995 = arith.addf %994, %993 : vector<2x256xf32>
    %996 = arith.divf %994, %995 : vector<2x256xf32>
    %997 = vector.extract_strided_slice %996 {offsets = [0, 0], sizes = [2, 64], strides = [1, 1]} : vector<2x256xf32> to vector<2x64xf32>
    %998 = vector.extract_strided_slice %996 {offsets = [0, 64], sizes = [2, 64], strides = [1, 1]} : vector<2x256xf32> to vector<2x64xf32>
    %999 = vector.extract_strided_slice %996 {offsets = [0, 128], sizes = [2, 64], strides = [1, 1]} : vector<2x256xf32> to vector<2x64xf32>
    %cst_491 = arith.constant 2.000000e+00 : f32
    %1000 = vector.broadcast %cst_491 : f32 to vector<2x64xf32>
    %1001 = arith.mulf %1000, %999 : vector<2x64xf32>
    %cst_492 = arith.constant 1.000000e+00 : f32
    %1002 = vector.broadcast %cst_492 : f32 to vector<2x64xf32>
    %1003 = arith.subf %1001, %1002 : vector<2x64xf32>
    %1004 = vector.extract_strided_slice %996 {offsets = [0, 192], sizes = [2, 64], strides = [1, 1]} : vector<2x256xf32> to vector<2x64xf32>
    %1005 = arith.mulf %998, %805 : vector<2x64xf32>
    %1006 = arith.mulf %997, %1003 : vector<2x64xf32>
    %1007 = arith.addf %1005, %1006 : vector<2x64xf32>
    %1008 = math.tanh %1007 : vector<2x64xf32>
    %1009 = arith.mulf %1004, %1008 : vector<2x64xf32>
    %1010 = arith.truncf %869 : vector<2x64xf32> to vector<2x64xbf16>
    %c2_493 = arith.constant 2 : index
    %c0_494 = arith.constant 0 : index
    %c0_495 = arith.constant 0 : index
    %1011 = vector.load %arg1[%c2_493, %c0_494, %c0_495] : memref<6x64x256xbf16, #tpu.memory_space<vmem>>, vector<1x64x256xbf16>
    %1012 = vector.shape_cast %1011 : vector<1x64x256xbf16> to vector<64x256xbf16>
    %cst_496 = arith.constant dense<0.000000e+00> : vector<2x256xf32>
    %1013 = tpu.matmul %1010, %1012, %cst_496 {dimension_numbers = #tpu.dot_dimension_numbers<[1], [0], [0], [1], [0, 0, 1, 1], [], []>} : vector<2x64xbf16>, vector<64x256xbf16>, vector<2x256xf32> -> vector<2x256xf32>
    %1014 = arith.truncf %838 : vector<2x64xf32> to vector<2x64xbf16>
    %c2_497 = arith.constant 2 : index
    %c0_498 = arith.constant 0 : index
    %c0_499 = arith.constant 0 : index
    %1015 = vector.load %arg2[%c2_497, %c0_498, %c0_499] : memref<6x64x256xbf16, #tpu.memory_space<vmem>>, vector<1x64x256xbf16>
    %1016 = vector.shape_cast %1015 : vector<1x64x256xbf16> to vector<64x256xbf16>
    %cst_500 = arith.constant dense<0.000000e+00> : vector<2x256xf32>
    %1017 = tpu.matmul %1014, %1016, %cst_500 {dimension_numbers = #tpu.dot_dimension_numbers<[1], [0], [0], [1], [0, 0, 1, 1], [], []>} : vector<2x64xbf16>, vector<64x256xbf16>, vector<2x256xf32> -> vector<2x256xf32>
    %1018 = arith.addf %1013, %1017 : vector<2x256xf32>
    %c2_501 = arith.constant 2 : index
    %c0_502 = arith.constant 0 : index
    %c0_503 = arith.constant 0 : index
    %1019 = vector.load %arg3[%c2_501, %c0_502, %c0_503] : memref<6x1x256xf32, #tpu.memory_space<vmem>>, vector<1x1x256xf32>
    %1020 = vector.shape_cast %1019 : vector<1x1x256xf32> to vector<1x256xf32>
    %1021 = vector.broadcast %1020 : vector<1x256xf32> to vector<2x256xf32>
    %1022 = arith.addf %1018, %1021 : vector<2x256xf32>
    %1023 = arith.negf %1022 : vector<2x256xf32>
    %1024 = math.exp %1023 : vector<2x256xf32>
    %cst_504 = arith.constant 1.000000e+00 : f32
    %1025 = vector.broadcast %cst_504 : f32 to vector<2x256xf32>
    %1026 = arith.addf %1025, %1024 : vector<2x256xf32>
    %1027 = arith.divf %1025, %1026 : vector<2x256xf32>
    %1028 = vector.extract_strided_slice %1027 {offsets = [0, 0], sizes = [2, 64], strides = [1, 1]} : vector<2x256xf32> to vector<2x64xf32>
    %1029 = vector.extract_strided_slice %1027 {offsets = [0, 64], sizes = [2, 64], strides = [1, 1]} : vector<2x256xf32> to vector<2x64xf32>
    %1030 = vector.extract_strided_slice %1027 {offsets = [0, 128], sizes = [2, 64], strides = [1, 1]} : vector<2x256xf32> to vector<2x64xf32>
    %cst_505 = arith.constant 2.000000e+00 : f32
    %1031 = vector.broadcast %cst_505 : f32 to vector<2x64xf32>
    %1032 = arith.mulf %1031, %1030 : vector<2x64xf32>
    %cst_506 = arith.constant 1.000000e+00 : f32
    %1033 = vector.broadcast %cst_506 : f32 to vector<2x64xf32>
    %1034 = arith.subf %1032, %1033 : vector<2x64xf32>
    %1035 = vector.extract_strided_slice %1027 {offsets = [0, 192], sizes = [2, 64], strides = [1, 1]} : vector<2x256xf32> to vector<2x64xf32>
    %1036 = arith.mulf %1029, %836 : vector<2x64xf32>
    %1037 = arith.mulf %1028, %1034 : vector<2x64xf32>
    %1038 = arith.addf %1036, %1037 : vector<2x64xf32>
    %1039 = math.tanh %1038 : vector<2x64xf32>
    %1040 = arith.mulf %1035, %1039 : vector<2x64xf32>
    %1041 = arith.truncf %902 : vector<2x64xf32> to vector<2x64xbf16>
    %c1_507 = arith.constant 1 : index
    %c0_508 = arith.constant 0 : index
    %c0_509 = arith.constant 0 : index
    %1042 = vector.load %arg1[%c1_507, %c0_508, %c0_509] : memref<6x64x256xbf16, #tpu.memory_space<vmem>>, vector<1x64x256xbf16>
    %1043 = vector.shape_cast %1042 : vector<1x64x256xbf16> to vector<64x256xbf16>
    %cst_510 = arith.constant dense<0.000000e+00> : vector<2x256xf32>
    %1044 = tpu.matmul %1041, %1043, %cst_510 {dimension_numbers = #tpu.dot_dimension_numbers<[1], [0], [0], [1], [0, 0, 1, 1], [], []>} : vector<2x64xbf16>, vector<64x256xbf16>, vector<2x256xf32> -> vector<2x256xf32>
    %1045 = arith.truncf %869 : vector<2x64xf32> to vector<2x64xbf16>
    %c1_511 = arith.constant 1 : index
    %c0_512 = arith.constant 0 : index
    %c0_513 = arith.constant 0 : index
    %1046 = vector.load %arg2[%c1_511, %c0_512, %c0_513] : memref<6x64x256xbf16, #tpu.memory_space<vmem>>, vector<1x64x256xbf16>
    %1047 = vector.shape_cast %1046 : vector<1x64x256xbf16> to vector<64x256xbf16>
    %cst_514 = arith.constant dense<0.000000e+00> : vector<2x256xf32>
    %1048 = tpu.matmul %1045, %1047, %cst_514 {dimension_numbers = #tpu.dot_dimension_numbers<[1], [0], [0], [1], [0, 0, 1, 1], [], []>} : vector<2x64xbf16>, vector<64x256xbf16>, vector<2x256xf32> -> vector<2x256xf32>
    %1049 = arith.addf %1044, %1048 : vector<2x256xf32>
    %c1_515 = arith.constant 1 : index
    %c0_516 = arith.constant 0 : index
    %c0_517 = arith.constant 0 : index
    %1050 = vector.load %arg3[%c1_515, %c0_516, %c0_517] : memref<6x1x256xf32, #tpu.memory_space<vmem>>, vector<1x1x256xf32>
    %1051 = vector.shape_cast %1050 : vector<1x1x256xf32> to vector<1x256xf32>
    %1052 = vector.broadcast %1051 : vector<1x256xf32> to vector<2x256xf32>
    %1053 = arith.addf %1049, %1052 : vector<2x256xf32>
    %1054 = arith.negf %1053 : vector<2x256xf32>
    %1055 = math.exp %1054 : vector<2x256xf32>
    %cst_518 = arith.constant 1.000000e+00 : f32
    %1056 = vector.broadcast %cst_518 : f32 to vector<2x256xf32>
    %1057 = arith.addf %1056, %1055 : vector<2x256xf32>
    %1058 = arith.divf %1056, %1057 : vector<2x256xf32>
    %1059 = vector.extract_strided_slice %1058 {offsets = [0, 0], sizes = [2, 64], strides = [1, 1]} : vector<2x256xf32> to vector<2x64xf32>
    %1060 = vector.extract_strided_slice %1058 {offsets = [0, 64], sizes = [2, 64], strides = [1, 1]} : vector<2x256xf32> to vector<2x64xf32>
    %1061 = vector.extract_strided_slice %1058 {offsets = [0, 128], sizes = [2, 64], strides = [1, 1]} : vector<2x256xf32> to vector<2x64xf32>
    %cst_519 = arith.constant 2.000000e+00 : f32
    %1062 = vector.broadcast %cst_519 : f32 to vector<2x64xf32>
    %1063 = arith.mulf %1062, %1061 : vector<2x64xf32>
    %cst_520 = arith.constant 1.000000e+00 : f32
    %1064 = vector.broadcast %cst_520 : f32 to vector<2x64xf32>
    %1065 = arith.subf %1063, %1064 : vector<2x64xf32>
    %1066 = vector.extract_strided_slice %1058 {offsets = [0, 192], sizes = [2, 64], strides = [1, 1]} : vector<2x256xf32> to vector<2x64xf32>
    %1067 = arith.mulf %1060, %867 : vector<2x64xf32>
    %1068 = arith.mulf %1059, %1065 : vector<2x64xf32>
    %1069 = arith.addf %1067, %1068 : vector<2x64xf32>
    %1070 = math.tanh %1069 : vector<2x64xf32>
    %1071 = arith.mulf %1066, %1070 : vector<2x64xf32>
    %c7 = arith.constant 7 : index
    %c0_521 = arith.constant 0 : index
    %c0_522 = arith.constant 0 : index
    %1072 = vector.load %arg0[%c7, %c0_521, %c0_522] : memref<8x2x64xf32, #tpu.memory_space<vmem>>, vector<1x2x64xf32>
    %1073 = vector.shape_cast %1072 : vector<1x2x64xf32> to vector<2x64xf32>
    %1074 = arith.truncf %1073 : vector<2x64xf32> to vector<2x64xbf16>
    %c0_523 = arith.constant 0 : index
    %c0_524 = arith.constant 0 : index
    %c0_525 = arith.constant 0 : index
    %1075 = vector.load %arg1[%c0_523, %c0_524, %c0_525] : memref<6x64x256xbf16, #tpu.memory_space<vmem>>, vector<1x64x256xbf16>
    %1076 = vector.shape_cast %1075 : vector<1x64x256xbf16> to vector<64x256xbf16>
    %cst_526 = arith.constant dense<0.000000e+00> : vector<2x256xf32>
    %1077 = tpu.matmul %1074, %1076, %cst_526 {dimension_numbers = #tpu.dot_dimension_numbers<[1], [0], [0], [1], [0, 0, 1, 1], [], []>} : vector<2x64xbf16>, vector<64x256xbf16>, vector<2x256xf32> -> vector<2x256xf32>
    %1078 = arith.truncf %902 : vector<2x64xf32> to vector<2x64xbf16>
    %c0_527 = arith.constant 0 : index
    %c0_528 = arith.constant 0 : index
    %c0_529 = arith.constant 0 : index
    %1079 = vector.load %arg2[%c0_527, %c0_528, %c0_529] : memref<6x64x256xbf16, #tpu.memory_space<vmem>>, vector<1x64x256xbf16>
    %1080 = vector.shape_cast %1079 : vector<1x64x256xbf16> to vector<64x256xbf16>
    %cst_530 = arith.constant dense<0.000000e+00> : vector<2x256xf32>
    %1081 = tpu.matmul %1078, %1080, %cst_530 {dimension_numbers = #tpu.dot_dimension_numbers<[1], [0], [0], [1], [0, 0, 1, 1], [], []>} : vector<2x64xbf16>, vector<64x256xbf16>, vector<2x256xf32> -> vector<2x256xf32>
    %1082 = arith.addf %1077, %1081 : vector<2x256xf32>
    %c0_531 = arith.constant 0 : index
    %c0_532 = arith.constant 0 : index
    %c0_533 = arith.constant 0 : index
    %1083 = vector.load %arg3[%c0_531, %c0_532, %c0_533] : memref<6x1x256xf32, #tpu.memory_space<vmem>>, vector<1x1x256xf32>
    %1084 = vector.shape_cast %1083 : vector<1x1x256xf32> to vector<1x256xf32>
    %1085 = vector.broadcast %1084 : vector<1x256xf32> to vector<2x256xf32>
    %1086 = arith.addf %1082, %1085 : vector<2x256xf32>
    %1087 = arith.negf %1086 : vector<2x256xf32>
    %1088 = math.exp %1087 : vector<2x256xf32>
    %cst_534 = arith.constant 1.000000e+00 : f32
    %1089 = vector.broadcast %cst_534 : f32 to vector<2x256xf32>
    %1090 = arith.addf %1089, %1088 : vector<2x256xf32>
    %1091 = arith.divf %1089, %1090 : vector<2x256xf32>
    %1092 = vector.extract_strided_slice %1091 {offsets = [0, 0], sizes = [2, 64], strides = [1, 1]} : vector<2x256xf32> to vector<2x64xf32>
    %1093 = vector.extract_strided_slice %1091 {offsets = [0, 64], sizes = [2, 64], strides = [1, 1]} : vector<2x256xf32> to vector<2x64xf32>
    %1094 = vector.extract_strided_slice %1091 {offsets = [0, 128], sizes = [2, 64], strides = [1, 1]} : vector<2x256xf32> to vector<2x64xf32>
    %cst_535 = arith.constant 2.000000e+00 : f32
    %1095 = vector.broadcast %cst_535 : f32 to vector<2x64xf32>
    %1096 = arith.mulf %1095, %1094 : vector<2x64xf32>
    %cst_536 = arith.constant 1.000000e+00 : f32
    %1097 = vector.broadcast %cst_536 : f32 to vector<2x64xf32>
    %1098 = arith.subf %1096, %1097 : vector<2x64xf32>
    %1099 = vector.extract_strided_slice %1091 {offsets = [0, 192], sizes = [2, 64], strides = [1, 1]} : vector<2x256xf32> to vector<2x64xf32>
    %1100 = arith.mulf %1093, %900 : vector<2x64xf32>
    %1101 = arith.mulf %1092, %1098 : vector<2x64xf32>
    %1102 = arith.addf %1100, %1101 : vector<2x64xf32>
    %1103 = math.tanh %1102 : vector<2x64xf32>
    %1104 = arith.mulf %1099, %1103 : vector<2x64xf32>
    %1105 = arith.truncf %978 : vector<2x64xf32> to vector<2x64xbf16>
    %c5_537 = arith.constant 5 : index
    %c0_538 = arith.constant 0 : index
    %c0_539 = arith.constant 0 : index
    %1106 = vector.load %arg1[%c5_537, %c0_538, %c0_539] : memref<6x64x256xbf16, #tpu.memory_space<vmem>>, vector<1x64x256xbf16>
    %1107 = vector.shape_cast %1106 : vector<1x64x256xbf16> to vector<64x256xbf16>
    %cst_540 = arith.constant dense<0.000000e+00> : vector<2x256xf32>
    %1108 = tpu.matmul %1105, %1107, %cst_540 {dimension_numbers = #tpu.dot_dimension_numbers<[1], [0], [0], [1], [0, 0, 1, 1], [], []>} : vector<2x64xbf16>, vector<64x256xbf16>, vector<2x256xf32> -> vector<2x256xf32>
    %1109 = arith.truncf %933 : vector<2x64xf32> to vector<2x64xbf16>
    %c5_541 = arith.constant 5 : index
    %c0_542 = arith.constant 0 : index
    %c0_543 = arith.constant 0 : index
    %1110 = vector.load %arg2[%c5_541, %c0_542, %c0_543] : memref<6x64x256xbf16, #tpu.memory_space<vmem>>, vector<1x64x256xbf16>
    %1111 = vector.shape_cast %1110 : vector<1x64x256xbf16> to vector<64x256xbf16>
    %cst_544 = arith.constant dense<0.000000e+00> : vector<2x256xf32>
    %1112 = tpu.matmul %1109, %1111, %cst_544 {dimension_numbers = #tpu.dot_dimension_numbers<[1], [0], [0], [1], [0, 0, 1, 1], [], []>} : vector<2x64xbf16>, vector<64x256xbf16>, vector<2x256xf32> -> vector<2x256xf32>
    %1113 = arith.addf %1108, %1112 : vector<2x256xf32>
    %c5_545 = arith.constant 5 : index
    %c0_546 = arith.constant 0 : index
    %c0_547 = arith.constant 0 : index
    %1114 = vector.load %arg3[%c5_545, %c0_546, %c0_547] : memref<6x1x256xf32, #tpu.memory_space<vmem>>, vector<1x1x256xf32>
    %1115 = vector.shape_cast %1114 : vector<1x1x256xf32> to vector<1x256xf32>
    %1116 = vector.broadcast %1115 : vector<1x256xf32> to vector<2x256xf32>
    %1117 = arith.addf %1113, %1116 : vector<2x256xf32>
    %1118 = arith.negf %1117 : vector<2x256xf32>
    %1119 = math.exp %1118 : vector<2x256xf32>
    %cst_548 = arith.constant 1.000000e+00 : f32
    %1120 = vector.broadcast %cst_548 : f32 to vector<2x256xf32>
    %1121 = arith.addf %1120, %1119 : vector<2x256xf32>
    %1122 = arith.divf %1120, %1121 : vector<2x256xf32>
    %1123 = vector.extract_strided_slice %1122 {offsets = [0, 0], sizes = [2, 64], strides = [1, 1]} : vector<2x256xf32> to vector<2x64xf32>
    %1124 = vector.extract_strided_slice %1122 {offsets = [0, 64], sizes = [2, 64], strides = [1, 1]} : vector<2x256xf32> to vector<2x64xf32>
    %1125 = vector.extract_strided_slice %1122 {offsets = [0, 128], sizes = [2, 64], strides = [1, 1]} : vector<2x256xf32> to vector<2x64xf32>
    %cst_549 = arith.constant 2.000000e+00 : f32
    %1126 = vector.broadcast %cst_549 : f32 to vector<2x64xf32>
    %1127 = arith.mulf %1126, %1125 : vector<2x64xf32>
    %cst_550 = arith.constant 1.000000e+00 : f32
    %1128 = vector.broadcast %cst_550 : f32 to vector<2x64xf32>
    %1129 = arith.subf %1127, %1128 : vector<2x64xf32>
    %1130 = vector.extract_strided_slice %1122 {offsets = [0, 192], sizes = [2, 64], strides = [1, 1]} : vector<2x256xf32> to vector<2x64xf32>
    %1131 = arith.mulf %1124, %931 : vector<2x64xf32>
    %1132 = arith.mulf %1123, %1129 : vector<2x64xf32>
    %1133 = arith.addf %1131, %1132 : vector<2x64xf32>
    %1134 = math.tanh %1133 : vector<2x64xf32>
    %1135 = arith.mulf %1130, %1134 : vector<2x64xf32>
    %c0_551 = arith.constant 0 : index
    %c0_552 = arith.constant 0 : index
    %1136 = vector.load %arg6[%c0_551, %c0_552] : memref<1x64xf32, #tpu.memory_space<vmem>>, vector<1x64xf32>
    %1137 = vector.broadcast %1136 : vector<1x64xf32> to vector<2x64xf32>
    %1138 = arith.mulf %1135, %1137 : vector<2x64xf32>
    %cst_553 = arith.constant dense<0.000000e+00> : vector<2xf32>
    %1139 = vector.multi_reduction <add>, %1138, %cst_553 [1] : vector<2x64xf32> to vector<2xf32>
    %1140 = vector.shape_cast %1139 : vector<2xf32> to vector<2x1xf32>
    %c0_554 = arith.constant 0 : index
    %c0_555 = arith.constant 0 : index
    %1141 = vector.load %arg7[%c0_554, %c0_555] : memref<1x1xf32, #tpu.memory_space<vmem>>, vector<1x1xf32>
    %1142 = vector.broadcast %1141 : vector<1x1xf32> to vector<2x1xf32>
    %1143 = arith.addf %1140, %1142 : vector<2x1xf32>
    %1144 = arith.negf %1143 : vector<2x1xf32>
    %1145 = math.exp %1144 : vector<2x1xf32>
    %cst_556 = arith.constant 1.000000e+00 : f32
    %1146 = vector.broadcast %cst_556 : f32 to vector<2x1xf32>
    %1147 = arith.addf %1146, %1145 : vector<2x1xf32>
    %1148 = arith.divf %1146, %1147 : vector<2x1xf32>
    %c0_557 = arith.constant 0 : index
    %c3_558 = arith.constant 3 : index
    %1149 = vector.load %arg8[%c0_557, %c3_558] : memref<2x8xf32, #tpu.memory_space<vmem>>, vector<2x1xf32>
    tpu.vector_store %arg8[%c0_557, %c3_558], %1148 {strides = array<i32>} : memref<2x8xf32, #tpu.memory_space<vmem>>, vector<2x1xf32>,
    %1150 = arith.truncf %1009 : vector<2x64xf32> to vector<2x64xbf16>
    %c4_559 = arith.constant 4 : index
    %c0_560 = arith.constant 0 : index
    %c0_561 = arith.constant 0 : index
    %1151 = vector.load %arg1[%c4_559, %c0_560, %c0_561] : memref<6x64x256xbf16, #tpu.memory_space<vmem>>, vector<1x64x256xbf16>
    %1152 = vector.shape_cast %1151 : vector<1x64x256xbf16> to vector<64x256xbf16>
    %cst_562 = arith.constant dense<0.000000e+00> : vector<2x256xf32>
    %1153 = tpu.matmul %1150, %1152, %cst_562 {dimension_numbers = #tpu.dot_dimension_numbers<[1], [0], [0], [1], [0, 0, 1, 1], [], []>} : vector<2x64xbf16>, vector<64x256xbf16>, vector<2x256xf32> -> vector<2x256xf32>
    %1154 = arith.truncf %978 : vector<2x64xf32> to vector<2x64xbf16>
    %c4_563 = arith.constant 4 : index
    %c0_564 = arith.constant 0 : index
    %c0_565 = arith.constant 0 : index
    %1155 = vector.load %arg2[%c4_563, %c0_564, %c0_565] : memref<6x64x256xbf16, #tpu.memory_space<vmem>>, vector<1x64x256xbf16>
    %1156 = vector.shape_cast %1155 : vector<1x64x256xbf16> to vector<64x256xbf16>
    %cst_566 = arith.constant dense<0.000000e+00> : vector<2x256xf32>
    %1157 = tpu.matmul %1154, %1156, %cst_566 {dimension_numbers = #tpu.dot_dimension_numbers<[1], [0], [0], [1], [0, 0, 1, 1], [], []>} : vector<2x64xbf16>, vector<64x256xbf16>, vector<2x256xf32> -> vector<2x256xf32>
    %1158 = arith.addf %1153, %1157 : vector<2x256xf32>
    %c4_567 = arith.constant 4 : index
    %c0_568 = arith.constant 0 : index
    %c0_569 = arith.constant 0 : index
    %1159 = vector.load %arg3[%c4_567, %c0_568, %c0_569] : memref<6x1x256xf32, #tpu.memory_space<vmem>>, vector<1x1x256xf32>
    %1160 = vector.shape_cast %1159 : vector<1x1x256xf32> to vector<1x256xf32>
    %1161 = vector.broadcast %1160 : vector<1x256xf32> to vector<2x256xf32>
    %1162 = arith.addf %1158, %1161 : vector<2x256xf32>
    %1163 = arith.negf %1162 : vector<2x256xf32>
    %1164 = math.exp %1163 : vector<2x256xf32>
    %cst_570 = arith.constant 1.000000e+00 : f32
    %1165 = vector.broadcast %cst_570 : f32 to vector<2x256xf32>
    %1166 = arith.addf %1165, %1164 : vector<2x256xf32>
    %1167 = arith.divf %1165, %1166 : vector<2x256xf32>
    %1168 = vector.extract_strided_slice %1167 {offsets = [0, 0], sizes = [2, 64], strides = [1, 1]} : vector<2x256xf32> to vector<2x64xf32>
    %1169 = vector.extract_strided_slice %1167 {offsets = [0, 64], sizes = [2, 64], strides = [1, 1]} : vector<2x256xf32> to vector<2x64xf32>
    %1170 = vector.extract_strided_slice %1167 {offsets = [0, 128], sizes = [2, 64], strides = [1, 1]} : vector<2x256xf32> to vector<2x64xf32>
    %cst_571 = arith.constant 2.000000e+00 : f32
    %1171 = vector.broadcast %cst_571 : f32 to vector<2x64xf32>
    %1172 = arith.mulf %1171, %1170 : vector<2x64xf32>
    %cst_572 = arith.constant 1.000000e+00 : f32
    %1173 = vector.broadcast %cst_572 : f32 to vector<2x64xf32>
    %1174 = arith.subf %1172, %1173 : vector<2x64xf32>
    %1175 = vector.extract_strided_slice %1167 {offsets = [0, 192], sizes = [2, 64], strides = [1, 1]} : vector<2x256xf32> to vector<2x64xf32>
    %1176 = arith.mulf %1169, %976 : vector<2x64xf32>
    %1177 = arith.mulf %1168, %1174 : vector<2x64xf32>
    %1178 = arith.addf %1176, %1177 : vector<2x64xf32>
    %1179 = math.tanh %1178 : vector<2x64xf32>
    %1180 = arith.mulf %1175, %1179 : vector<2x64xf32>
    %1181 = arith.truncf %1040 : vector<2x64xf32> to vector<2x64xbf16>
    %c3_573 = arith.constant 3 : index
    %c0_574 = arith.constant 0 : index
    %c0_575 = arith.constant 0 : index
    %1182 = vector.load %arg1[%c3_573, %c0_574, %c0_575] : memref<6x64x256xbf16, #tpu.memory_space<vmem>>, vector<1x64x256xbf16>
    %1183 = vector.shape_cast %1182 : vector<1x64x256xbf16> to vector<64x256xbf16>
    %cst_576 = arith.constant dense<0.000000e+00> : vector<2x256xf32>
    %1184 = tpu.matmul %1181, %1183, %cst_576 {dimension_numbers = #tpu.dot_dimension_numbers<[1], [0], [0], [1], [0, 0, 1, 1], [], []>} : vector<2x64xbf16>, vector<64x256xbf16>, vector<2x256xf32> -> vector<2x256xf32>
    %1185 = arith.truncf %1009 : vector<2x64xf32> to vector<2x64xbf16>
    %c3_577 = arith.constant 3 : index
    %c0_578 = arith.constant 0 : index
    %c0_579 = arith.constant 0 : index
    %1186 = vector.load %arg2[%c3_577, %c0_578, %c0_579] : memref<6x64x256xbf16, #tpu.memory_space<vmem>>, vector<1x64x256xbf16>
    %1187 = vector.shape_cast %1186 : vector<1x64x256xbf16> to vector<64x256xbf16>
    %cst_580 = arith.constant dense<0.000000e+00> : vector<2x256xf32>
    %1188 = tpu.matmul %1185, %1187, %cst_580 {dimension_numbers = #tpu.dot_dimension_numbers<[1], [0], [0], [1], [0, 0, 1, 1], [], []>} : vector<2x64xbf16>, vector<64x256xbf16>, vector<2x256xf32> -> vector<2x256xf32>
    %1189 = arith.addf %1184, %1188 : vector<2x256xf32>
    %c3_581 = arith.constant 3 : index
    %c0_582 = arith.constant 0 : index
    %c0_583 = arith.constant 0 : index
    %1190 = vector.load %arg3[%c3_581, %c0_582, %c0_583] : memref<6x1x256xf32, #tpu.memory_space<vmem>>, vector<1x1x256xf32>
    %1191 = vector.shape_cast %1190 : vector<1x1x256xf32> to vector<1x256xf32>
    %1192 = vector.broadcast %1191 : vector<1x256xf32> to vector<2x256xf32>
    %1193 = arith.addf %1189, %1192 : vector<2x256xf32>
    %1194 = arith.negf %1193 : vector<2x256xf32>
    %1195 = math.exp %1194 : vector<2x256xf32>
    %cst_584 = arith.constant 1.000000e+00 : f32
    %1196 = vector.broadcast %cst_584 : f32 to vector<2x256xf32>
    %1197 = arith.addf %1196, %1195 : vector<2x256xf32>
    %1198 = arith.divf %1196, %1197 : vector<2x256xf32>
    %1199 = vector.extract_strided_slice %1198 {offsets = [0, 0], sizes = [2, 64], strides = [1, 1]} : vector<2x256xf32> to vector<2x64xf32>
    %1200 = vector.extract_strided_slice %1198 {offsets = [0, 64], sizes = [2, 64], strides = [1, 1]} : vector<2x256xf32> to vector<2x64xf32>
    %1201 = vector.extract_strided_slice %1198 {offsets = [0, 128], sizes = [2, 64], strides = [1, 1]} : vector<2x256xf32> to vector<2x64xf32>
    %cst_585 = arith.constant 2.000000e+00 : f32
    %1202 = vector.broadcast %cst_585 : f32 to vector<2x64xf32>
    %1203 = arith.mulf %1202, %1201 : vector<2x64xf32>
    %cst_586 = arith.constant 1.000000e+00 : f32
    %1204 = vector.broadcast %cst_586 : f32 to vector<2x64xf32>
    %1205 = arith.subf %1203, %1204 : vector<2x64xf32>
    %1206 = vector.extract_strided_slice %1198 {offsets = [0, 192], sizes = [2, 64], strides = [1, 1]} : vector<2x256xf32> to vector<2x64xf32>
    %1207 = arith.mulf %1200, %1007 : vector<2x64xf32>
    %1208 = arith.mulf %1199, %1205 : vector<2x64xf32>
    %1209 = arith.addf %1207, %1208 : vector<2x64xf32>
    %1210 = math.tanh %1209 : vector<2x64xf32>
    %1211 = arith.mulf %1206, %1210 : vector<2x64xf32>
    %1212 = arith.truncf %1071 : vector<2x64xf32> to vector<2x64xbf16>
    %c2_587 = arith.constant 2 : index
    %c0_588 = arith.constant 0 : index
    %c0_589 = arith.constant 0 : index
    %1213 = vector.load %arg1[%c2_587, %c0_588, %c0_589] : memref<6x64x256xbf16, #tpu.memory_space<vmem>>, vector<1x64x256xbf16>
    %1214 = vector.shape_cast %1213 : vector<1x64x256xbf16> to vector<64x256xbf16>
    %cst_590 = arith.constant dense<0.000000e+00> : vector<2x256xf32>
    %1215 = tpu.matmul %1212, %1214, %cst_590 {dimension_numbers = #tpu.dot_dimension_numbers<[1], [0], [0], [1], [0, 0, 1, 1], [], []>} : vector<2x64xbf16>, vector<64x256xbf16>, vector<2x256xf32> -> vector<2x256xf32>
    %1216 = arith.truncf %1040 : vector<2x64xf32> to vector<2x64xbf16>
    %c2_591 = arith.constant 2 : index
    %c0_592 = arith.constant 0 : index
    %c0_593 = arith.constant 0 : index
    %1217 = vector.load %arg2[%c2_591, %c0_592, %c0_593] : memref<6x64x256xbf16, #tpu.memory_space<vmem>>, vector<1x64x256xbf16>
    %1218 = vector.shape_cast %1217 : vector<1x64x256xbf16> to vector<64x256xbf16>
    %cst_594 = arith.constant dense<0.000000e+00> : vector<2x256xf32>
    %1219 = tpu.matmul %1216, %1218, %cst_594 {dimension_numbers = #tpu.dot_dimension_numbers<[1], [0], [0], [1], [0, 0, 1, 1], [], []>} : vector<2x64xbf16>, vector<64x256xbf16>, vector<2x256xf32> -> vector<2x256xf32>
    %1220 = arith.addf %1215, %1219 : vector<2x256xf32>
    %c2_595 = arith.constant 2 : index
    %c0_596 = arith.constant 0 : index
    %c0_597 = arith.constant 0 : index
    %1221 = vector.load %arg3[%c2_595, %c0_596, %c0_597] : memref<6x1x256xf32, #tpu.memory_space<vmem>>, vector<1x1x256xf32>
    %1222 = vector.shape_cast %1221 : vector<1x1x256xf32> to vector<1x256xf32>
    %1223 = vector.broadcast %1222 : vector<1x256xf32> to vector<2x256xf32>
    %1224 = arith.addf %1220, %1223 : vector<2x256xf32>
    %1225 = arith.negf %1224 : vector<2x256xf32>
    %1226 = math.exp %1225 : vector<2x256xf32>
    %cst_598 = arith.constant 1.000000e+00 : f32
    %1227 = vector.broadcast %cst_598 : f32 to vector<2x256xf32>
    %1228 = arith.addf %1227, %1226 : vector<2x256xf32>
    %1229 = arith.divf %1227, %1228 : vector<2x256xf32>
    %1230 = vector.extract_strided_slice %1229 {offsets = [0, 0], sizes = [2, 64], strides = [1, 1]} : vector<2x256xf32> to vector<2x64xf32>
    %1231 = vector.extract_strided_slice %1229 {offsets = [0, 64], sizes = [2, 64], strides = [1, 1]} : vector<2x256xf32> to vector<2x64xf32>
    %1232 = vector.extract_strided_slice %1229 {offsets = [0, 128], sizes = [2, 64], strides = [1, 1]} : vector<2x256xf32> to vector<2x64xf32>
    %cst_599 = arith.constant 2.000000e+00 : f32
    %1233 = vector.broadcast %cst_599 : f32 to vector<2x64xf32>
    %1234 = arith.mulf %1233, %1232 : vector<2x64xf32>
    %cst_600 = arith.constant 1.000000e+00 : f32
    %1235 = vector.broadcast %cst_600 : f32 to vector<2x64xf32>
    %1236 = arith.subf %1234, %1235 : vector<2x64xf32>
    %1237 = vector.extract_strided_slice %1229 {offsets = [0, 192], sizes = [2, 64], strides = [1, 1]} : vector<2x256xf32> to vector<2x64xf32>
    %1238 = arith.mulf %1231, %1038 : vector<2x64xf32>
    %1239 = arith.mulf %1230, %1236 : vector<2x64xf32>
    %1240 = arith.addf %1238, %1239 : vector<2x64xf32>
    %1241 = math.tanh %1240 : vector<2x64xf32>
    %1242 = arith.mulf %1237, %1241 : vector<2x64xf32>
    %1243 = arith.truncf %1104 : vector<2x64xf32> to vector<2x64xbf16>
    %c1_601 = arith.constant 1 : index
    %c0_602 = arith.constant 0 : index
    %c0_603 = arith.constant 0 : index
    %1244 = vector.load %arg1[%c1_601, %c0_602, %c0_603] : memref<6x64x256xbf16, #tpu.memory_space<vmem>>, vector<1x64x256xbf16>
    %1245 = vector.shape_cast %1244 : vector<1x64x256xbf16> to vector<64x256xbf16>
    %cst_604 = arith.constant dense<0.000000e+00> : vector<2x256xf32>
    %1246 = tpu.matmul %1243, %1245, %cst_604 {dimension_numbers = #tpu.dot_dimension_numbers<[1], [0], [0], [1], [0, 0, 1, 1], [], []>} : vector<2x64xbf16>, vector<64x256xbf16>, vector<2x256xf32> -> vector<2x256xf32>
    %1247 = arith.truncf %1071 : vector<2x64xf32> to vector<2x64xbf16>
    %c1_605 = arith.constant 1 : index
    %c0_606 = arith.constant 0 : index
    %c0_607 = arith.constant 0 : index
    %1248 = vector.load %arg2[%c1_605, %c0_606, %c0_607] : memref<6x64x256xbf16, #tpu.memory_space<vmem>>, vector<1x64x256xbf16>
    %1249 = vector.shape_cast %1248 : vector<1x64x256xbf16> to vector<64x256xbf16>
    %cst_608 = arith.constant dense<0.000000e+00> : vector<2x256xf32>
    %1250 = tpu.matmul %1247, %1249, %cst_608 {dimension_numbers = #tpu.dot_dimension_numbers<[1], [0], [0], [1], [0, 0, 1, 1], [], []>} : vector<2x64xbf16>, vector<64x256xbf16>, vector<2x256xf32> -> vector<2x256xf32>
    %1251 = arith.addf %1246, %1250 : vector<2x256xf32>
    %c1_609 = arith.constant 1 : index
    %c0_610 = arith.constant 0 : index
    %c0_611 = arith.constant 0 : index
    %1252 = vector.load %arg3[%c1_609, %c0_610, %c0_611] : memref<6x1x256xf32, #tpu.memory_space<vmem>>, vector<1x1x256xf32>
    %1253 = vector.shape_cast %1252 : vector<1x1x256xf32> to vector<1x256xf32>
    %1254 = vector.broadcast %1253 : vector<1x256xf32> to vector<2x256xf32>
    %1255 = arith.addf %1251, %1254 : vector<2x256xf32>
    %1256 = arith.negf %1255 : vector<2x256xf32>
    %1257 = math.exp %1256 : vector<2x256xf32>
    %cst_612 = arith.constant 1.000000e+00 : f32
    %1258 = vector.broadcast %cst_612 : f32 to vector<2x256xf32>
    %1259 = arith.addf %1258, %1257 : vector<2x256xf32>
    %1260 = arith.divf %1258, %1259 : vector<2x256xf32>
    %1261 = vector.extract_strided_slice %1260 {offsets = [0, 0], sizes = [2, 64], strides = [1, 1]} : vector<2x256xf32> to vector<2x64xf32>
    %1262 = vector.extract_strided_slice %1260 {offsets = [0, 64], sizes = [2, 64], strides = [1, 1]} : vector<2x256xf32> to vector<2x64xf32>
    %1263 = vector.extract_strided_slice %1260 {offsets = [0, 128], sizes = [2, 64], strides = [1, 1]} : vector<2x256xf32> to vector<2x64xf32>
    %cst_613 = arith.constant 2.000000e+00 : f32
    %1264 = vector.broadcast %cst_613 : f32 to vector<2x64xf32>
    %1265 = arith.mulf %1264, %1263 : vector<2x64xf32>
    %cst_614 = arith.constant 1.000000e+00 : f32
    %1266 = vector.broadcast %cst_614 : f32 to vector<2x64xf32>
    %1267 = arith.subf %1265, %1266 : vector<2x64xf32>
    %1268 = vector.extract_strided_slice %1260 {offsets = [0, 192], sizes = [2, 64], strides = [1, 1]} : vector<2x256xf32> to vector<2x64xf32>
    %1269 = arith.mulf %1262, %1069 : vector<2x64xf32>
    %1270 = arith.mulf %1261, %1267 : vector<2x64xf32>
    %1271 = arith.addf %1269, %1270 : vector<2x64xf32>
    %1272 = math.tanh %1271 : vector<2x64xf32>
    %1273 = arith.mulf %1268, %1272 : vector<2x64xf32>
    %1274 = arith.truncf %1180 : vector<2x64xf32> to vector<2x64xbf16>
    %c5_615 = arith.constant 5 : index
    %c0_616 = arith.constant 0 : index
    %c0_617 = arith.constant 0 : index
    %1275 = vector.load %arg1[%c5_615, %c0_616, %c0_617] : memref<6x64x256xbf16, #tpu.memory_space<vmem>>, vector<1x64x256xbf16>
    %1276 = vector.shape_cast %1275 : vector<1x64x256xbf16> to vector<64x256xbf16>
    %cst_618 = arith.constant dense<0.000000e+00> : vector<2x256xf32>
    %1277 = tpu.matmul %1274, %1276, %cst_618 {dimension_numbers = #tpu.dot_dimension_numbers<[1], [0], [0], [1], [0, 0, 1, 1], [], []>} : vector<2x64xbf16>, vector<64x256xbf16>, vector<2x256xf32> -> vector<2x256xf32>
    %1278 = arith.truncf %1135 : vector<2x64xf32> to vector<2x64xbf16>
    %c5_619 = arith.constant 5 : index
    %c0_620 = arith.constant 0 : index
    %c0_621 = arith.constant 0 : index
    %1279 = vector.load %arg2[%c5_619, %c0_620, %c0_621] : memref<6x64x256xbf16, #tpu.memory_space<vmem>>, vector<1x64x256xbf16>
    %1280 = vector.shape_cast %1279 : vector<1x64x256xbf16> to vector<64x256xbf16>
    %cst_622 = arith.constant dense<0.000000e+00> : vector<2x256xf32>
    %1281 = tpu.matmul %1278, %1280, %cst_622 {dimension_numbers = #tpu.dot_dimension_numbers<[1], [0], [0], [1], [0, 0, 1, 1], [], []>} : vector<2x64xbf16>, vector<64x256xbf16>, vector<2x256xf32> -> vector<2x256xf32>
    %1282 = arith.addf %1277, %1281 : vector<2x256xf32>
    %c5_623 = arith.constant 5 : index
    %c0_624 = arith.constant 0 : index
    %c0_625 = arith.constant 0 : index
    %1283 = vector.load %arg3[%c5_623, %c0_624, %c0_625] : memref<6x1x256xf32, #tpu.memory_space<vmem>>, vector<1x1x256xf32>
    %1284 = vector.shape_cast %1283 : vector<1x1x256xf32> to vector<1x256xf32>
    %1285 = vector.broadcast %1284 : vector<1x256xf32> to vector<2x256xf32>
    %1286 = arith.addf %1282, %1285 : vector<2x256xf32>
    %1287 = arith.negf %1286 : vector<2x256xf32>
    %1288 = math.exp %1287 : vector<2x256xf32>
    %cst_626 = arith.constant 1.000000e+00 : f32
    %1289 = vector.broadcast %cst_626 : f32 to vector<2x256xf32>
    %1290 = arith.addf %1289, %1288 : vector<2x256xf32>
    %1291 = arith.divf %1289, %1290 : vector<2x256xf32>
    %1292 = vector.extract_strided_slice %1291 {offsets = [0, 0], sizes = [2, 64], strides = [1, 1]} : vector<2x256xf32> to vector<2x64xf32>
    %1293 = vector.extract_strided_slice %1291 {offsets = [0, 64], sizes = [2, 64], strides = [1, 1]} : vector<2x256xf32> to vector<2x64xf32>
    %1294 = vector.extract_strided_slice %1291 {offsets = [0, 128], sizes = [2, 64], strides = [1, 1]} : vector<2x256xf32> to vector<2x64xf32>
    %cst_627 = arith.constant 2.000000e+00 : f32
    %1295 = vector.broadcast %cst_627 : f32 to vector<2x64xf32>
    %1296 = arith.mulf %1295, %1294 : vector<2x64xf32>
    %cst_628 = arith.constant 1.000000e+00 : f32
    %1297 = vector.broadcast %cst_628 : f32 to vector<2x64xf32>
    %1298 = arith.subf %1296, %1297 : vector<2x64xf32>
    %1299 = vector.extract_strided_slice %1291 {offsets = [0, 192], sizes = [2, 64], strides = [1, 1]} : vector<2x256xf32> to vector<2x64xf32>
    %1300 = arith.mulf %1293, %1133 : vector<2x64xf32>
    %1301 = arith.mulf %1292, %1298 : vector<2x64xf32>
    %1302 = arith.addf %1300, %1301 : vector<2x64xf32>
    %1303 = math.tanh %1302 : vector<2x64xf32>
    %1304 = arith.mulf %1299, %1303 : vector<2x64xf32>
    %c0_629 = arith.constant 0 : index
    %c0_630 = arith.constant 0 : index
    %1305 = vector.load %arg6[%c0_629, %c0_630] : memref<1x64xf32, #tpu.memory_space<vmem>>, vector<1x64xf32>
    %1306 = vector.broadcast %1305 : vector<1x64xf32> to vector<2x64xf32>
    %1307 = arith.mulf %1304, %1306 : vector<2x64xf32>
    %cst_631 = arith.constant dense<0.000000e+00> : vector<2xf32>
    %1308 = vector.multi_reduction <add>, %1307, %cst_631 [1] : vector<2x64xf32> to vector<2xf32>
    %1309 = vector.shape_cast %1308 : vector<2xf32> to vector<2x1xf32>
    %c0_632 = arith.constant 0 : index
    %c0_633 = arith.constant 0 : index
    %1310 = vector.load %arg7[%c0_632, %c0_633] : memref<1x1xf32, #tpu.memory_space<vmem>>, vector<1x1xf32>
    %1311 = vector.broadcast %1310 : vector<1x1xf32> to vector<2x1xf32>
    %1312 = arith.addf %1309, %1311 : vector<2x1xf32>
    %1313 = arith.negf %1312 : vector<2x1xf32>
    %1314 = math.exp %1313 : vector<2x1xf32>
    %cst_634 = arith.constant 1.000000e+00 : f32
    %1315 = vector.broadcast %cst_634 : f32 to vector<2x1xf32>
    %1316 = arith.addf %1315, %1314 : vector<2x1xf32>
    %1317 = arith.divf %1315, %1316 : vector<2x1xf32>
    %c0_635 = arith.constant 0 : index
    %c4_636 = arith.constant 4 : index
    %1318 = vector.load %arg8[%c0_635, %c4_636] : memref<2x8xf32, #tpu.memory_space<vmem>>, vector<2x1xf32>
    tpu.vector_store %arg8[%c0_635, %c4_636], %1317 {strides = array<i32>} : memref<2x8xf32, #tpu.memory_space<vmem>>, vector<2x1xf32>,
    %1319 = arith.truncf %1211 : vector<2x64xf32> to vector<2x64xbf16>
    %c4_637 = arith.constant 4 : index
    %c0_638 = arith.constant 0 : index
    %c0_639 = arith.constant 0 : index
    %1320 = vector.load %arg1[%c4_637, %c0_638, %c0_639] : memref<6x64x256xbf16, #tpu.memory_space<vmem>>, vector<1x64x256xbf16>
    %1321 = vector.shape_cast %1320 : vector<1x64x256xbf16> to vector<64x256xbf16>
    %cst_640 = arith.constant dense<0.000000e+00> : vector<2x256xf32>
    %1322 = tpu.matmul %1319, %1321, %cst_640 {dimension_numbers = #tpu.dot_dimension_numbers<[1], [0], [0], [1], [0, 0, 1, 1], [], []>} : vector<2x64xbf16>, vector<64x256xbf16>, vector<2x256xf32> -> vector<2x256xf32>
    %1323 = arith.truncf %1180 : vector<2x64xf32> to vector<2x64xbf16>
    %c4_641 = arith.constant 4 : index
    %c0_642 = arith.constant 0 : index
    %c0_643 = arith.constant 0 : index
    %1324 = vector.load %arg2[%c4_641, %c0_642, %c0_643] : memref<6x64x256xbf16, #tpu.memory_space<vmem>>, vector<1x64x256xbf16>
    %1325 = vector.shape_cast %1324 : vector<1x64x256xbf16> to vector<64x256xbf16>
    %cst_644 = arith.constant dense<0.000000e+00> : vector<2x256xf32>
    %1326 = tpu.matmul %1323, %1325, %cst_644 {dimension_numbers = #tpu.dot_dimension_numbers<[1], [0], [0], [1], [0, 0, 1, 1], [], []>} : vector<2x64xbf16>, vector<64x256xbf16>, vector<2x256xf32> -> vector<2x256xf32>
    %1327 = arith.addf %1322, %1326 : vector<2x256xf32>
    %c4_645 = arith.constant 4 : index
    %c0_646 = arith.constant 0 : index
    %c0_647 = arith.constant 0 : index
    %1328 = vector.load %arg3[%c4_645, %c0_646, %c0_647] : memref<6x1x256xf32, #tpu.memory_space<vmem>>, vector<1x1x256xf32>
    %1329 = vector.shape_cast %1328 : vector<1x1x256xf32> to vector<1x256xf32>
    %1330 = vector.broadcast %1329 : vector<1x256xf32> to vector<2x256xf32>
    %1331 = arith.addf %1327, %1330 : vector<2x256xf32>
    %1332 = arith.negf %1331 : vector<2x256xf32>
    %1333 = math.exp %1332 : vector<2x256xf32>
    %cst_648 = arith.constant 1.000000e+00 : f32
    %1334 = vector.broadcast %cst_648 : f32 to vector<2x256xf32>
    %1335 = arith.addf %1334, %1333 : vector<2x256xf32>
    %1336 = arith.divf %1334, %1335 : vector<2x256xf32>
    %1337 = vector.extract_strided_slice %1336 {offsets = [0, 0], sizes = [2, 64], strides = [1, 1]} : vector<2x256xf32> to vector<2x64xf32>
    %1338 = vector.extract_strided_slice %1336 {offsets = [0, 64], sizes = [2, 64], strides = [1, 1]} : vector<2x256xf32> to vector<2x64xf32>
    %1339 = vector.extract_strided_slice %1336 {offsets = [0, 128], sizes = [2, 64], strides = [1, 1]} : vector<2x256xf32> to vector<2x64xf32>
    %cst_649 = arith.constant 2.000000e+00 : f32
    %1340 = vector.broadcast %cst_649 : f32 to vector<2x64xf32>
    %1341 = arith.mulf %1340, %1339 : vector<2x64xf32>
    %cst_650 = arith.constant 1.000000e+00 : f32
    %1342 = vector.broadcast %cst_650 : f32 to vector<2x64xf32>
    %1343 = arith.subf %1341, %1342 : vector<2x64xf32>
    %1344 = vector.extract_strided_slice %1336 {offsets = [0, 192], sizes = [2, 64], strides = [1, 1]} : vector<2x256xf32> to vector<2x64xf32>
    %1345 = arith.mulf %1338, %1178 : vector<2x64xf32>
    %1346 = arith.mulf %1337, %1343 : vector<2x64xf32>
    %1347 = arith.addf %1345, %1346 : vector<2x64xf32>
    %1348 = math.tanh %1347 : vector<2x64xf32>
    %1349 = arith.mulf %1344, %1348 : vector<2x64xf32>
    %1350 = arith.truncf %1242 : vector<2x64xf32> to vector<2x64xbf16>
    %c3_651 = arith.constant 3 : index
    %c0_652 = arith.constant 0 : index
    %c0_653 = arith.constant 0 : index
    %1351 = vector.load %arg1[%c3_651, %c0_652, %c0_653] : memref<6x64x256xbf16, #tpu.memory_space<vmem>>, vector<1x64x256xbf16>
    %1352 = vector.shape_cast %1351 : vector<1x64x256xbf16> to vector<64x256xbf16>
    %cst_654 = arith.constant dense<0.000000e+00> : vector<2x256xf32>
    %1353 = tpu.matmul %1350, %1352, %cst_654 {dimension_numbers = #tpu.dot_dimension_numbers<[1], [0], [0], [1], [0, 0, 1, 1], [], []>} : vector<2x64xbf16>, vector<64x256xbf16>, vector<2x256xf32> -> vector<2x256xf32>
    %1354 = arith.truncf %1211 : vector<2x64xf32> to vector<2x64xbf16>
    %c3_655 = arith.constant 3 : index
    %c0_656 = arith.constant 0 : index
    %c0_657 = arith.constant 0 : index
    %1355 = vector.load %arg2[%c3_655, %c0_656, %c0_657] : memref<6x64x256xbf16, #tpu.memory_space<vmem>>, vector<1x64x256xbf16>
    %1356 = vector.shape_cast %1355 : vector<1x64x256xbf16> to vector<64x256xbf16>
    %cst_658 = arith.constant dense<0.000000e+00> : vector<2x256xf32>
    %1357 = tpu.matmul %1354, %1356, %cst_658 {dimension_numbers = #tpu.dot_dimension_numbers<[1], [0], [0], [1], [0, 0, 1, 1], [], []>} : vector<2x64xbf16>, vector<64x256xbf16>, vector<2x256xf32> -> vector<2x256xf32>
    %1358 = arith.addf %1353, %1357 : vector<2x256xf32>
    %c3_659 = arith.constant 3 : index
    %c0_660 = arith.constant 0 : index
    %c0_661 = arith.constant 0 : index
    %1359 = vector.load %arg3[%c3_659, %c0_660, %c0_661] : memref<6x1x256xf32, #tpu.memory_space<vmem>>, vector<1x1x256xf32>
    %1360 = vector.shape_cast %1359 : vector<1x1x256xf32> to vector<1x256xf32>
    %1361 = vector.broadcast %1360 : vector<1x256xf32> to vector<2x256xf32>
    %1362 = arith.addf %1358, %1361 : vector<2x256xf32>
    %1363 = arith.negf %1362 : vector<2x256xf32>
    %1364 = math.exp %1363 : vector<2x256xf32>
    %cst_662 = arith.constant 1.000000e+00 : f32
    %1365 = vector.broadcast %cst_662 : f32 to vector<2x256xf32>
    %1366 = arith.addf %1365, %1364 : vector<2x256xf32>
    %1367 = arith.divf %1365, %1366 : vector<2x256xf32>
    %1368 = vector.extract_strided_slice %1367 {offsets = [0, 0], sizes = [2, 64], strides = [1, 1]} : vector<2x256xf32> to vector<2x64xf32>
    %1369 = vector.extract_strided_slice %1367 {offsets = [0, 64], sizes = [2, 64], strides = [1, 1]} : vector<2x256xf32> to vector<2x64xf32>
    %1370 = vector.extract_strided_slice %1367 {offsets = [0, 128], sizes = [2, 64], strides = [1, 1]} : vector<2x256xf32> to vector<2x64xf32>
    %cst_663 = arith.constant 2.000000e+00 : f32
    %1371 = vector.broadcast %cst_663 : f32 to vector<2x64xf32>
    %1372 = arith.mulf %1371, %1370 : vector<2x64xf32>
    %cst_664 = arith.constant 1.000000e+00 : f32
    %1373 = vector.broadcast %cst_664 : f32 to vector<2x64xf32>
    %1374 = arith.subf %1372, %1373 : vector<2x64xf32>
    %1375 = vector.extract_strided_slice %1367 {offsets = [0, 192], sizes = [2, 64], strides = [1, 1]} : vector<2x256xf32> to vector<2x64xf32>
    %1376 = arith.mulf %1369, %1209 : vector<2x64xf32>
    %1377 = arith.mulf %1368, %1374 : vector<2x64xf32>
    %1378 = arith.addf %1376, %1377 : vector<2x64xf32>
    %1379 = math.tanh %1378 : vector<2x64xf32>
    %1380 = arith.mulf %1375, %1379 : vector<2x64xf32>
    %1381 = arith.truncf %1273 : vector<2x64xf32> to vector<2x64xbf16>
    %c2_665 = arith.constant 2 : index
    %c0_666 = arith.constant 0 : index
    %c0_667 = arith.constant 0 : index
    %1382 = vector.load %arg1[%c2_665, %c0_666, %c0_667] : memref<6x64x256xbf16, #tpu.memory_space<vmem>>, vector<1x64x256xbf16>
    %1383 = vector.shape_cast %1382 : vector<1x64x256xbf16> to vector<64x256xbf16>
    %cst_668 = arith.constant dense<0.000000e+00> : vector<2x256xf32>
    %1384 = tpu.matmul %1381, %1383, %cst_668 {dimension_numbers = #tpu.dot_dimension_numbers<[1], [0], [0], [1], [0, 0, 1, 1], [], []>} : vector<2x64xbf16>, vector<64x256xbf16>, vector<2x256xf32> -> vector<2x256xf32>
    %1385 = arith.truncf %1242 : vector<2x64xf32> to vector<2x64xbf16>
    %c2_669 = arith.constant 2 : index
    %c0_670 = arith.constant 0 : index
    %c0_671 = arith.constant 0 : index
    %1386 = vector.load %arg2[%c2_669, %c0_670, %c0_671] : memref<6x64x256xbf16, #tpu.memory_space<vmem>>, vector<1x64x256xbf16>
    %1387 = vector.shape_cast %1386 : vector<1x64x256xbf16> to vector<64x256xbf16>
    %cst_672 = arith.constant dense<0.000000e+00> : vector<2x256xf32>
    %1388 = tpu.matmul %1385, %1387, %cst_672 {dimension_numbers = #tpu.dot_dimension_numbers<[1], [0], [0], [1], [0, 0, 1, 1], [], []>} : vector<2x64xbf16>, vector<64x256xbf16>, vector<2x256xf32> -> vector<2x256xf32>
    %1389 = arith.addf %1384, %1388 : vector<2x256xf32>
    %c2_673 = arith.constant 2 : index
    %c0_674 = arith.constant 0 : index
    %c0_675 = arith.constant 0 : index
    %1390 = vector.load %arg3[%c2_673, %c0_674, %c0_675] : memref<6x1x256xf32, #tpu.memory_space<vmem>>, vector<1x1x256xf32>
    %1391 = vector.shape_cast %1390 : vector<1x1x256xf32> to vector<1x256xf32>
    %1392 = vector.broadcast %1391 : vector<1x256xf32> to vector<2x256xf32>
    %1393 = arith.addf %1389, %1392 : vector<2x256xf32>
    %1394 = arith.negf %1393 : vector<2x256xf32>
    %1395 = math.exp %1394 : vector<2x256xf32>
    %cst_676 = arith.constant 1.000000e+00 : f32
    %1396 = vector.broadcast %cst_676 : f32 to vector<2x256xf32>
    %1397 = arith.addf %1396, %1395 : vector<2x256xf32>
    %1398 = arith.divf %1396, %1397 : vector<2x256xf32>
    %1399 = vector.extract_strided_slice %1398 {offsets = [0, 0], sizes = [2, 64], strides = [1, 1]} : vector<2x256xf32> to vector<2x64xf32>
    %1400 = vector.extract_strided_slice %1398 {offsets = [0, 64], sizes = [2, 64], strides = [1, 1]} : vector<2x256xf32> to vector<2x64xf32>
    %1401 = vector.extract_strided_slice %1398 {offsets = [0, 128], sizes = [2, 64], strides = [1, 1]} : vector<2x256xf32> to vector<2x64xf32>
    %cst_677 = arith.constant 2.000000e+00 : f32
    %1402 = vector.broadcast %cst_677 : f32 to vector<2x64xf32>
    %1403 = arith.mulf %1402, %1401 : vector<2x64xf32>
    %cst_678 = arith.constant 1.000000e+00 : f32
    %1404 = vector.broadcast %cst_678 : f32 to vector<2x64xf32>
    %1405 = arith.subf %1403, %1404 : vector<2x64xf32>
    %1406 = vector.extract_strided_slice %1398 {offsets = [0, 192], sizes = [2, 64], strides = [1, 1]} : vector<2x256xf32> to vector<2x64xf32>
    %1407 = arith.mulf %1400, %1240 : vector<2x64xf32>
    %1408 = arith.mulf %1399, %1405 : vector<2x64xf32>
    %1409 = arith.addf %1407, %1408 : vector<2x64xf32>
    %1410 = math.tanh %1409 : vector<2x64xf32>
    %1411 = arith.mulf %1406, %1410 : vector<2x64xf32>
    %1412 = arith.truncf %1349 : vector<2x64xf32> to vector<2x64xbf16>
    %c5_679 = arith.constant 5 : index
    %c0_680 = arith.constant 0 : index
    %c0_681 = arith.constant 0 : index
    %1413 = vector.load %arg1[%c5_679, %c0_680, %c0_681] : memref<6x64x256xbf16, #tpu.memory_space<vmem>>, vector<1x64x256xbf16>
    %1414 = vector.shape_cast %1413 : vector<1x64x256xbf16> to vector<64x256xbf16>
    %cst_682 = arith.constant dense<0.000000e+00> : vector<2x256xf32>
    %1415 = tpu.matmul %1412, %1414, %cst_682 {dimension_numbers = #tpu.dot_dimension_numbers<[1], [0], [0], [1], [0, 0, 1, 1], [], []>} : vector<2x64xbf16>, vector<64x256xbf16>, vector<2x256xf32> -> vector<2x256xf32>
    %1416 = arith.truncf %1304 : vector<2x64xf32> to vector<2x64xbf16>
    %c5_683 = arith.constant 5 : index
    %c0_684 = arith.constant 0 : index
    %c0_685 = arith.constant 0 : index
    %1417 = vector.load %arg2[%c5_683, %c0_684, %c0_685] : memref<6x64x256xbf16, #tpu.memory_space<vmem>>, vector<1x64x256xbf16>
    %1418 = vector.shape_cast %1417 : vector<1x64x256xbf16> to vector<64x256xbf16>
    %cst_686 = arith.constant dense<0.000000e+00> : vector<2x256xf32>
    %1419 = tpu.matmul %1416, %1418, %cst_686 {dimension_numbers = #tpu.dot_dimension_numbers<[1], [0], [0], [1], [0, 0, 1, 1], [], []>} : vector<2x64xbf16>, vector<64x256xbf16>, vector<2x256xf32> -> vector<2x256xf32>
    %1420 = arith.addf %1415, %1419 : vector<2x256xf32>
    %c5_687 = arith.constant 5 : index
    %c0_688 = arith.constant 0 : index
    %c0_689 = arith.constant 0 : index
    %1421 = vector.load %arg3[%c5_687, %c0_688, %c0_689] : memref<6x1x256xf32, #tpu.memory_space<vmem>>, vector<1x1x256xf32>
    %1422 = vector.shape_cast %1421 : vector<1x1x256xf32> to vector<1x256xf32>
    %1423 = vector.broadcast %1422 : vector<1x256xf32> to vector<2x256xf32>
    %1424 = arith.addf %1420, %1423 : vector<2x256xf32>
    %1425 = arith.negf %1424 : vector<2x256xf32>
    %1426 = math.exp %1425 : vector<2x256xf32>
    %cst_690 = arith.constant 1.000000e+00 : f32
    %1427 = vector.broadcast %cst_690 : f32 to vector<2x256xf32>
    %1428 = arith.addf %1427, %1426 : vector<2x256xf32>
    %1429 = arith.divf %1427, %1428 : vector<2x256xf32>
    %1430 = vector.extract_strided_slice %1429 {offsets = [0, 0], sizes = [2, 64], strides = [1, 1]} : vector<2x256xf32> to vector<2x64xf32>
    %1431 = vector.extract_strided_slice %1429 {offsets = [0, 64], sizes = [2, 64], strides = [1, 1]} : vector<2x256xf32> to vector<2x64xf32>
    %1432 = vector.extract_strided_slice %1429 {offsets = [0, 128], sizes = [2, 64], strides = [1, 1]} : vector<2x256xf32> to vector<2x64xf32>
    %cst_691 = arith.constant 2.000000e+00 : f32
    %1433 = vector.broadcast %cst_691 : f32 to vector<2x64xf32>
    %1434 = arith.mulf %1433, %1432 : vector<2x64xf32>
    %cst_692 = arith.constant 1.000000e+00 : f32
    %1435 = vector.broadcast %cst_692 : f32 to vector<2x64xf32>
    %1436 = arith.subf %1434, %1435 : vector<2x64xf32>
    %1437 = vector.extract_strided_slice %1429 {offsets = [0, 192], sizes = [2, 64], strides = [1, 1]} : vector<2x256xf32> to vector<2x64xf32>
    %1438 = arith.mulf %1431, %1302 : vector<2x64xf32>
    %1439 = arith.mulf %1430, %1436 : vector<2x64xf32>
    %1440 = arith.addf %1438, %1439 : vector<2x64xf32>
    %1441 = math.tanh %1440 : vector<2x64xf32>
    %1442 = arith.mulf %1437, %1441 : vector<2x64xf32>
    %c0_693 = arith.constant 0 : index
    %c0_694 = arith.constant 0 : index
    %1443 = vector.load %arg6[%c0_693, %c0_694] : memref<1x64xf32, #tpu.memory_space<vmem>>, vector<1x64xf32>
    %1444 = vector.broadcast %1443 : vector<1x64xf32> to vector<2x64xf32>
    %1445 = arith.mulf %1442, %1444 : vector<2x64xf32>
    %cst_695 = arith.constant dense<0.000000e+00> : vector<2xf32>
    %1446 = vector.multi_reduction <add>, %1445, %cst_695 [1] : vector<2x64xf32> to vector<2xf32>
    %1447 = vector.shape_cast %1446 : vector<2xf32> to vector<2x1xf32>
    %c0_696 = arith.constant 0 : index
    %c0_697 = arith.constant 0 : index
    %1448 = vector.load %arg7[%c0_696, %c0_697] : memref<1x1xf32, #tpu.memory_space<vmem>>, vector<1x1xf32>
    %1449 = vector.broadcast %1448 : vector<1x1xf32> to vector<2x1xf32>
    %1450 = arith.addf %1447, %1449 : vector<2x1xf32>
    %1451 = arith.negf %1450 : vector<2x1xf32>
    %1452 = math.exp %1451 : vector<2x1xf32>
    %cst_698 = arith.constant 1.000000e+00 : f32
    %1453 = vector.broadcast %cst_698 : f32 to vector<2x1xf32>
    %1454 = arith.addf %1453, %1452 : vector<2x1xf32>
    %1455 = arith.divf %1453, %1454 : vector<2x1xf32>
    %c0_699 = arith.constant 0 : index
    %c5_700 = arith.constant 5 : index
    %1456 = vector.load %arg8[%c0_699, %c5_700] : memref<2x8xf32, #tpu.memory_space<vmem>>, vector<2x1xf32>
    tpu.vector_store %arg8[%c0_699, %c5_700], %1455 {strides = array<i32>} : memref<2x8xf32, #tpu.memory_space<vmem>>, vector<2x1xf32>,
    %1457 = arith.truncf %1380 : vector<2x64xf32> to vector<2x64xbf16>
    %c4_701 = arith.constant 4 : index
    %c0_702 = arith.constant 0 : index
    %c0_703 = arith.constant 0 : index
    %1458 = vector.load %arg1[%c4_701, %c0_702, %c0_703] : memref<6x64x256xbf16, #tpu.memory_space<vmem>>, vector<1x64x256xbf16>
    %1459 = vector.shape_cast %1458 : vector<1x64x256xbf16> to vector<64x256xbf16>
    %cst_704 = arith.constant dense<0.000000e+00> : vector<2x256xf32>
    %1460 = tpu.matmul %1457, %1459, %cst_704 {dimension_numbers = #tpu.dot_dimension_numbers<[1], [0], [0], [1], [0, 0, 1, 1], [], []>} : vector<2x64xbf16>, vector<64x256xbf16>, vector<2x256xf32> -> vector<2x256xf32>
    %1461 = arith.truncf %1349 : vector<2x64xf32> to vector<2x64xbf16>
    %c4_705 = arith.constant 4 : index
    %c0_706 = arith.constant 0 : index
    %c0_707 = arith.constant 0 : index
    %1462 = vector.load %arg2[%c4_705, %c0_706, %c0_707] : memref<6x64x256xbf16, #tpu.memory_space<vmem>>, vector<1x64x256xbf16>
    %1463 = vector.shape_cast %1462 : vector<1x64x256xbf16> to vector<64x256xbf16>
    %cst_708 = arith.constant dense<0.000000e+00> : vector<2x256xf32>
    %1464 = tpu.matmul %1461, %1463, %cst_708 {dimension_numbers = #tpu.dot_dimension_numbers<[1], [0], [0], [1], [0, 0, 1, 1], [], []>} : vector<2x64xbf16>, vector<64x256xbf16>, vector<2x256xf32> -> vector<2x256xf32>
    %1465 = arith.addf %1460, %1464 : vector<2x256xf32>
    %c4_709 = arith.constant 4 : index
    %c0_710 = arith.constant 0 : index
    %c0_711 = arith.constant 0 : index
    %1466 = vector.load %arg3[%c4_709, %c0_710, %c0_711] : memref<6x1x256xf32, #tpu.memory_space<vmem>>, vector<1x1x256xf32>
    %1467 = vector.shape_cast %1466 : vector<1x1x256xf32> to vector<1x256xf32>
    %1468 = vector.broadcast %1467 : vector<1x256xf32> to vector<2x256xf32>
    %1469 = arith.addf %1465, %1468 : vector<2x256xf32>
    %1470 = arith.negf %1469 : vector<2x256xf32>
    %1471 = math.exp %1470 : vector<2x256xf32>
    %cst_712 = arith.constant 1.000000e+00 : f32
    %1472 = vector.broadcast %cst_712 : f32 to vector<2x256xf32>
    %1473 = arith.addf %1472, %1471 : vector<2x256xf32>
    %1474 = arith.divf %1472, %1473 : vector<2x256xf32>
    %1475 = vector.extract_strided_slice %1474 {offsets = [0, 0], sizes = [2, 64], strides = [1, 1]} : vector<2x256xf32> to vector<2x64xf32>
    %1476 = vector.extract_strided_slice %1474 {offsets = [0, 64], sizes = [2, 64], strides = [1, 1]} : vector<2x256xf32> to vector<2x64xf32>
    %1477 = vector.extract_strided_slice %1474 {offsets = [0, 128], sizes = [2, 64], strides = [1, 1]} : vector<2x256xf32> to vector<2x64xf32>
    %cst_713 = arith.constant 2.000000e+00 : f32
    %1478 = vector.broadcast %cst_713 : f32 to vector<2x64xf32>
    %1479 = arith.mulf %1478, %1477 : vector<2x64xf32>
    %cst_714 = arith.constant 1.000000e+00 : f32
    %1480 = vector.broadcast %cst_714 : f32 to vector<2x64xf32>
    %1481 = arith.subf %1479, %1480 : vector<2x64xf32>
    %1482 = vector.extract_strided_slice %1474 {offsets = [0, 192], sizes = [2, 64], strides = [1, 1]} : vector<2x256xf32> to vector<2x64xf32>
    %1483 = arith.mulf %1476, %1347 : vector<2x64xf32>
    %1484 = arith.mulf %1475, %1481 : vector<2x64xf32>
    %1485 = arith.addf %1483, %1484 : vector<2x64xf32>
    %1486 = math.tanh %1485 : vector<2x64xf32>
    %1487 = arith.mulf %1482, %1486 : vector<2x64xf32>
    %1488 = arith.truncf %1411 : vector<2x64xf32> to vector<2x64xbf16>
    %c3_715 = arith.constant 3 : index
    %c0_716 = arith.constant 0 : index
    %c0_717 = arith.constant 0 : index
    %1489 = vector.load %arg1[%c3_715, %c0_716, %c0_717] : memref<6x64x256xbf16, #tpu.memory_space<vmem>>, vector<1x64x256xbf16>
    %1490 = vector.shape_cast %1489 : vector<1x64x256xbf16> to vector<64x256xbf16>
    %cst_718 = arith.constant dense<0.000000e+00> : vector<2x256xf32>
    %1491 = tpu.matmul %1488, %1490, %cst_718 {dimension_numbers = #tpu.dot_dimension_numbers<[1], [0], [0], [1], [0, 0, 1, 1], [], []>} : vector<2x64xbf16>, vector<64x256xbf16>, vector<2x256xf32> -> vector<2x256xf32>
    %1492 = arith.truncf %1380 : vector<2x64xf32> to vector<2x64xbf16>
    %c3_719 = arith.constant 3 : index
    %c0_720 = arith.constant 0 : index
    %c0_721 = arith.constant 0 : index
    %1493 = vector.load %arg2[%c3_719, %c0_720, %c0_721] : memref<6x64x256xbf16, #tpu.memory_space<vmem>>, vector<1x64x256xbf16>
    %1494 = vector.shape_cast %1493 : vector<1x64x256xbf16> to vector<64x256xbf16>
    %cst_722 = arith.constant dense<0.000000e+00> : vector<2x256xf32>
    %1495 = tpu.matmul %1492, %1494, %cst_722 {dimension_numbers = #tpu.dot_dimension_numbers<[1], [0], [0], [1], [0, 0, 1, 1], [], []>} : vector<2x64xbf16>, vector<64x256xbf16>, vector<2x256xf32> -> vector<2x256xf32>
    %1496 = arith.addf %1491, %1495 : vector<2x256xf32>
    %c3_723 = arith.constant 3 : index
    %c0_724 = arith.constant 0 : index
    %c0_725 = arith.constant 0 : index
    %1497 = vector.load %arg3[%c3_723, %c0_724, %c0_725] : memref<6x1x256xf32, #tpu.memory_space<vmem>>, vector<1x1x256xf32>
    %1498 = vector.shape_cast %1497 : vector<1x1x256xf32> to vector<1x256xf32>
    %1499 = vector.broadcast %1498 : vector<1x256xf32> to vector<2x256xf32>
    %1500 = arith.addf %1496, %1499 : vector<2x256xf32>
    %1501 = arith.negf %1500 : vector<2x256xf32>
    %1502 = math.exp %1501 : vector<2x256xf32>
    %cst_726 = arith.constant 1.000000e+00 : f32
    %1503 = vector.broadcast %cst_726 : f32 to vector<2x256xf32>
    %1504 = arith.addf %1503, %1502 : vector<2x256xf32>
    %1505 = arith.divf %1503, %1504 : vector<2x256xf32>
    %1506 = vector.extract_strided_slice %1505 {offsets = [0, 0], sizes = [2, 64], strides = [1, 1]} : vector<2x256xf32> to vector<2x64xf32>
    %1507 = vector.extract_strided_slice %1505 {offsets = [0, 64], sizes = [2, 64], strides = [1, 1]} : vector<2x256xf32> to vector<2x64xf32>
    %1508 = vector.extract_strided_slice %1505 {offsets = [0, 128], sizes = [2, 64], strides = [1, 1]} : vector<2x256xf32> to vector<2x64xf32>
    %cst_727 = arith.constant 2.000000e+00 : f32
    %1509 = vector.broadcast %cst_727 : f32 to vector<2x64xf32>
    %1510 = arith.mulf %1509, %1508 : vector<2x64xf32>
    %cst_728 = arith.constant 1.000000e+00 : f32
    %1511 = vector.broadcast %cst_728 : f32 to vector<2x64xf32>
    %1512 = arith.subf %1510, %1511 : vector<2x64xf32>
    %1513 = vector.extract_strided_slice %1505 {offsets = [0, 192], sizes = [2, 64], strides = [1, 1]} : vector<2x256xf32> to vector<2x64xf32>
    %1514 = arith.mulf %1507, %1378 : vector<2x64xf32>
    %1515 = arith.mulf %1506, %1512 : vector<2x64xf32>
    %1516 = arith.addf %1514, %1515 : vector<2x64xf32>
    %1517 = math.tanh %1516 : vector<2x64xf32>
    %1518 = arith.mulf %1513, %1517 : vector<2x64xf32>
    %1519 = arith.truncf %1487 : vector<2x64xf32> to vector<2x64xbf16>
    %c5_729 = arith.constant 5 : index
    %c0_730 = arith.constant 0 : index
    %c0_731 = arith.constant 0 : index
    %1520 = vector.load %arg1[%c5_729, %c0_730, %c0_731] : memref<6x64x256xbf16, #tpu.memory_space<vmem>>, vector<1x64x256xbf16>
    %1521 = vector.shape_cast %1520 : vector<1x64x256xbf16> to vector<64x256xbf16>
    %cst_732 = arith.constant dense<0.000000e+00> : vector<2x256xf32>
    %1522 = tpu.matmul %1519, %1521, %cst_732 {dimension_numbers = #tpu.dot_dimension_numbers<[1], [0], [0], [1], [0, 0, 1, 1], [], []>} : vector<2x64xbf16>, vector<64x256xbf16>, vector<2x256xf32> -> vector<2x256xf32>
    %1523 = arith.truncf %1442 : vector<2x64xf32> to vector<2x64xbf16>
    %c5_733 = arith.constant 5 : index
    %c0_734 = arith.constant 0 : index
    %c0_735 = arith.constant 0 : index
    %1524 = vector.load %arg2[%c5_733, %c0_734, %c0_735] : memref<6x64x256xbf16, #tpu.memory_space<vmem>>, vector<1x64x256xbf16>
    %1525 = vector.shape_cast %1524 : vector<1x64x256xbf16> to vector<64x256xbf16>
    %cst_736 = arith.constant dense<0.000000e+00> : vector<2x256xf32>
    %1526 = tpu.matmul %1523, %1525, %cst_736 {dimension_numbers = #tpu.dot_dimension_numbers<[1], [0], [0], [1], [0, 0, 1, 1], [], []>} : vector<2x64xbf16>, vector<64x256xbf16>, vector<2x256xf32> -> vector<2x256xf32>
    %1527 = arith.addf %1522, %1526 : vector<2x256xf32>
    %c5_737 = arith.constant 5 : index
    %c0_738 = arith.constant 0 : index
    %c0_739 = arith.constant 0 : index
    %1528 = vector.load %arg3[%c5_737, %c0_738, %c0_739] : memref<6x1x256xf32, #tpu.memory_space<vmem>>, vector<1x1x256xf32>
    %1529 = vector.shape_cast %1528 : vector<1x1x256xf32> to vector<1x256xf32>
    %1530 = vector.broadcast %1529 : vector<1x256xf32> to vector<2x256xf32>
    %1531 = arith.addf %1527, %1530 : vector<2x256xf32>
    %1532 = arith.negf %1531 : vector<2x256xf32>
    %1533 = math.exp %1532 : vector<2x256xf32>
    %cst_740 = arith.constant 1.000000e+00 : f32
    %1534 = vector.broadcast %cst_740 : f32 to vector<2x256xf32>
    %1535 = arith.addf %1534, %1533 : vector<2x256xf32>
    %1536 = arith.divf %1534, %1535 : vector<2x256xf32>
    %1537 = vector.extract_strided_slice %1536 {offsets = [0, 0], sizes = [2, 64], strides = [1, 1]} : vector<2x256xf32> to vector<2x64xf32>
    %1538 = vector.extract_strided_slice %1536 {offsets = [0, 64], sizes = [2, 64], strides = [1, 1]} : vector<2x256xf32> to vector<2x64xf32>
    %1539 = vector.extract_strided_slice %1536 {offsets = [0, 128], sizes = [2, 64], strides = [1, 1]} : vector<2x256xf32> to vector<2x64xf32>
    %cst_741 = arith.constant 2.000000e+00 : f32
    %1540 = vector.broadcast %cst_741 : f32 to vector<2x64xf32>
    %1541 = arith.mulf %1540, %1539 : vector<2x64xf32>
    %cst_742 = arith.constant 1.000000e+00 : f32
    %1542 = vector.broadcast %cst_742 : f32 to vector<2x64xf32>
    %1543 = arith.subf %1541, %1542 : vector<2x64xf32>
    %1544 = vector.extract_strided_slice %1536 {offsets = [0, 192], sizes = [2, 64], strides = [1, 1]} : vector<2x256xf32> to vector<2x64xf32>
    %1545 = arith.mulf %1538, %1440 : vector<2x64xf32>
    %1546 = arith.mulf %1537, %1543 : vector<2x64xf32>
    %1547 = arith.addf %1545, %1546 : vector<2x64xf32>
    %1548 = math.tanh %1547 : vector<2x64xf32>
    %1549 = arith.mulf %1544, %1548 : vector<2x64xf32>
    %c0_743 = arith.constant 0 : index
    %c0_744 = arith.constant 0 : index
    %1550 = vector.load %arg6[%c0_743, %c0_744] : memref<1x64xf32, #tpu.memory_space<vmem>>, vector<1x64xf32>
    %1551 = vector.broadcast %1550 : vector<1x64xf32> to vector<2x64xf32>
    %1552 = arith.mulf %1549, %1551 : vector<2x64xf32>
    %cst_745 = arith.constant dense<0.000000e+00> : vector<2xf32>
    %1553 = vector.multi_reduction <add>, %1552, %cst_745 [1] : vector<2x64xf32> to vector<2xf32>
    %1554 = vector.shape_cast %1553 : vector<2xf32> to vector<2x1xf32>
    %c0_746 = arith.constant 0 : index
    %c0_747 = arith.constant 0 : index
    %1555 = vector.load %arg7[%c0_746, %c0_747] : memref<1x1xf32, #tpu.memory_space<vmem>>, vector<1x1xf32>
    %1556 = vector.broadcast %1555 : vector<1x1xf32> to vector<2x1xf32>
    %1557 = arith.addf %1554, %1556 : vector<2x1xf32>
    %1558 = arith.negf %1557 : vector<2x1xf32>
    %1559 = math.exp %1558 : vector<2x1xf32>
    %cst_748 = arith.constant 1.000000e+00 : f32
    %1560 = vector.broadcast %cst_748 : f32 to vector<2x1xf32>
    %1561 = arith.addf %1560, %1559 : vector<2x1xf32>
    %1562 = arith.divf %1560, %1561 : vector<2x1xf32>
    %c0_749 = arith.constant 0 : index
    %c6_750 = arith.constant 6 : index
    %1563 = vector.load %arg8[%c0_749, %c6_750] : memref<2x8xf32, #tpu.memory_space<vmem>>, vector<2x1xf32>
    tpu.vector_store %arg8[%c0_749, %c6_750], %1562 {strides = array<i32>} : memref<2x8xf32, #tpu.memory_space<vmem>>, vector<2x1xf32>,
    %1564 = arith.truncf %1518 : vector<2x64xf32> to vector<2x64xbf16>
    %c4_751 = arith.constant 4 : index
    %c0_752 = arith.constant 0 : index
    %c0_753 = arith.constant 0 : index
    %1565 = vector.load %arg1[%c4_751, %c0_752, %c0_753] : memref<6x64x256xbf16, #tpu.memory_space<vmem>>, vector<1x64x256xbf16>
    %1566 = vector.shape_cast %1565 : vector<1x64x256xbf16> to vector<64x256xbf16>
    %cst_754 = arith.constant dense<0.000000e+00> : vector<2x256xf32>
    %1567 = tpu.matmul %1564, %1566, %cst_754 {dimension_numbers = #tpu.dot_dimension_numbers<[1], [0], [0], [1], [0, 0, 1, 1], [], []>} : vector<2x64xbf16>, vector<64x256xbf16>, vector<2x256xf32> -> vector<2x256xf32>
    %1568 = arith.truncf %1487 : vector<2x64xf32> to vector<2x64xbf16>
    %c4_755 = arith.constant 4 : index
    %c0_756 = arith.constant 0 : index
    %c0_757 = arith.constant 0 : index
    %1569 = vector.load %arg2[%c4_755, %c0_756, %c0_757] : memref<6x64x256xbf16, #tpu.memory_space<vmem>>, vector<1x64x256xbf16>
    %1570 = vector.shape_cast %1569 : vector<1x64x256xbf16> to vector<64x256xbf16>
    %cst_758 = arith.constant dense<0.000000e+00> : vector<2x256xf32>
    %1571 = tpu.matmul %1568, %1570, %cst_758 {dimension_numbers = #tpu.dot_dimension_numbers<[1], [0], [0], [1], [0, 0, 1, 1], [], []>} : vector<2x64xbf16>, vector<64x256xbf16>, vector<2x256xf32> -> vector<2x256xf32>
    %1572 = arith.addf %1567, %1571 : vector<2x256xf32>
    %c4_759 = arith.constant 4 : index
    %c0_760 = arith.constant 0 : index
    %c0_761 = arith.constant 0 : index
    %1573 = vector.load %arg3[%c4_759, %c0_760, %c0_761] : memref<6x1x256xf32, #tpu.memory_space<vmem>>, vector<1x1x256xf32>
    %1574 = vector.shape_cast %1573 : vector<1x1x256xf32> to vector<1x256xf32>
    %1575 = vector.broadcast %1574 : vector<1x256xf32> to vector<2x256xf32>
    %1576 = arith.addf %1572, %1575 : vector<2x256xf32>
    %1577 = arith.negf %1576 : vector<2x256xf32>
    %1578 = math.exp %1577 : vector<2x256xf32>
    %cst_762 = arith.constant 1.000000e+00 : f32
    %1579 = vector.broadcast %cst_762 : f32 to vector<2x256xf32>
    %1580 = arith.addf %1579, %1578 : vector<2x256xf32>
    %1581 = arith.divf %1579, %1580 : vector<2x256xf32>
    %1582 = vector.extract_strided_slice %1581 {offsets = [0, 0], sizes = [2, 64], strides = [1, 1]} : vector<2x256xf32> to vector<2x64xf32>
    %1583 = vector.extract_strided_slice %1581 {offsets = [0, 64], sizes = [2, 64], strides = [1, 1]} : vector<2x256xf32> to vector<2x64xf32>
    %1584 = vector.extract_strided_slice %1581 {offsets = [0, 128], sizes = [2, 64], strides = [1, 1]} : vector<2x256xf32> to vector<2x64xf32>
    %cst_763 = arith.constant 2.000000e+00 : f32
    %1585 = vector.broadcast %cst_763 : f32 to vector<2x64xf32>
    %1586 = arith.mulf %1585, %1584 : vector<2x64xf32>
    %cst_764 = arith.constant 1.000000e+00 : f32
    %1587 = vector.broadcast %cst_764 : f32 to vector<2x64xf32>
    %1588 = arith.subf %1586, %1587 : vector<2x64xf32>
    %1589 = vector.extract_strided_slice %1581 {offsets = [0, 192], sizes = [2, 64], strides = [1, 1]} : vector<2x256xf32> to vector<2x64xf32>
    %1590 = arith.mulf %1583, %1485 : vector<2x64xf32>
    %1591 = arith.mulf %1582, %1588 : vector<2x64xf32>
    %1592 = arith.addf %1590, %1591 : vector<2x64xf32>
    %1593 = math.tanh %1592 : vector<2x64xf32>
    %1594 = arith.mulf %1589, %1593 : vector<2x64xf32>
    %1595 = arith.truncf %1594 : vector<2x64xf32> to vector<2x64xbf16>
    %c5_765 = arith.constant 5 : index
    %c0_766 = arith.constant 0 : index
    %c0_767 = arith.constant 0 : index
    %1596 = vector.load %arg1[%c5_765, %c0_766, %c0_767] : memref<6x64x256xbf16, #tpu.memory_space<vmem>>, vector<1x64x256xbf16>
    %1597 = vector.shape_cast %1596 : vector<1x64x256xbf16> to vector<64x256xbf16>
    %cst_768 = arith.constant dense<0.000000e+00> : vector<2x256xf32>
    %1598 = tpu.matmul %1595, %1597, %cst_768 {dimension_numbers = #tpu.dot_dimension_numbers<[1], [0], [0], [1], [0, 0, 1, 1], [], []>} : vector<2x64xbf16>, vector<64x256xbf16>, vector<2x256xf32> -> vector<2x256xf32>
    %1599 = arith.truncf %1549 : vector<2x64xf32> to vector<2x64xbf16>
    %c5_769 = arith.constant 5 : index
    %c0_770 = arith.constant 0 : index
    %c0_771 = arith.constant 0 : index
    %1600 = vector.load %arg2[%c5_769, %c0_770, %c0_771] : memref<6x64x256xbf16, #tpu.memory_space<vmem>>, vector<1x64x256xbf16>
    %1601 = vector.shape_cast %1600 : vector<1x64x256xbf16> to vector<64x256xbf16>
    %cst_772 = arith.constant dense<0.000000e+00> : vector<2x256xf32>
    %1602 = tpu.matmul %1599, %1601, %cst_772 {dimension_numbers = #tpu.dot_dimension_numbers<[1], [0], [0], [1], [0, 0, 1, 1], [], []>} : vector<2x64xbf16>, vector<64x256xbf16>, vector<2x256xf32> -> vector<2x256xf32>
    %1603 = arith.addf %1598, %1602 : vector<2x256xf32>
    %c5_773 = arith.constant 5 : index
    %c0_774 = arith.constant 0 : index
    %c0_775 = arith.constant 0 : index
    %1604 = vector.load %arg3[%c5_773, %c0_774, %c0_775] : memref<6x1x256xf32, #tpu.memory_space<vmem>>, vector<1x1x256xf32>
    %1605 = vector.shape_cast %1604 : vector<1x1x256xf32> to vector<1x256xf32>
    %1606 = vector.broadcast %1605 : vector<1x256xf32> to vector<2x256xf32>
    %1607 = arith.addf %1603, %1606 : vector<2x256xf32>
    %1608 = arith.negf %1607 : vector<2x256xf32>
    %1609 = math.exp %1608 : vector<2x256xf32>
    %cst_776 = arith.constant 1.000000e+00 : f32
    %1610 = vector.broadcast %cst_776 : f32 to vector<2x256xf32>
    %1611 = arith.addf %1610, %1609 : vector<2x256xf32>
    %1612 = arith.divf %1610, %1611 : vector<2x256xf32>
    %1613 = vector.extract_strided_slice %1612 {offsets = [0, 0], sizes = [2, 64], strides = [1, 1]} : vector<2x256xf32> to vector<2x64xf32>
    %1614 = vector.extract_strided_slice %1612 {offsets = [0, 64], sizes = [2, 64], strides = [1, 1]} : vector<2x256xf32> to vector<2x64xf32>
    %1615 = vector.extract_strided_slice %1612 {offsets = [0, 128], sizes = [2, 64], strides = [1, 1]} : vector<2x256xf32> to vector<2x64xf32>
    %cst_777 = arith.constant 2.000000e+00 : f32
    %1616 = vector.broadcast %cst_777 : f32 to vector<2x64xf32>
    %1617 = arith.mulf %1616, %1615 : vector<2x64xf32>
    %cst_778 = arith.constant 1.000000e+00 : f32
    %1618 = vector.broadcast %cst_778 : f32 to vector<2x64xf32>
    %1619 = arith.subf %1617, %1618 : vector<2x64xf32>
    %1620 = vector.extract_strided_slice %1612 {offsets = [0, 192], sizes = [2, 64], strides = [1, 1]} : vector<2x256xf32> to vector<2x64xf32>
    %1621 = arith.mulf %1614, %1547 : vector<2x64xf32>
    %1622 = arith.mulf %1613, %1619 : vector<2x64xf32>
    %1623 = arith.addf %1621, %1622 : vector<2x64xf32>
    %1624 = math.tanh %1623 : vector<2x64xf32>
    %1625 = arith.mulf %1620, %1624 : vector<2x64xf32>
    %c0_779 = arith.constant 0 : index
    %c0_780 = arith.constant 0 : index
    %1626 = vector.load %arg6[%c0_779, %c0_780] : memref<1x64xf32, #tpu.memory_space<vmem>>, vector<1x64xf32>
    %1627 = vector.broadcast %1626 : vector<1x64xf32> to vector<2x64xf32>
    %1628 = arith.mulf %1625, %1627 : vector<2x64xf32>
    %cst_781 = arith.constant dense<0.000000e+00> : vector<2xf32>
    %1629 = vector.multi_reduction <add>, %1628, %cst_781 [1] : vector<2x64xf32> to vector<2xf32>
    %1630 = vector.shape_cast %1629 : vector<2xf32> to vector<2x1xf32>
    %c0_782 = arith.constant 0 : index
    %c0_783 = arith.constant 0 : index
    %1631 = vector.load %arg7[%c0_782, %c0_783] : memref<1x1xf32, #tpu.memory_space<vmem>>, vector<1x1xf32>
    %1632 = vector.broadcast %1631 : vector<1x1xf32> to vector<2x1xf32>
    %1633 = arith.addf %1630, %1632 : vector<2x1xf32>
    %1634 = arith.negf %1633 : vector<2x1xf32>
    %1635 = math.exp %1634 : vector<2x1xf32>
    %cst_784 = arith.constant 1.000000e+00 : f32
    %1636 = vector.broadcast %cst_784 : f32 to vector<2x1xf32>
    %1637 = arith.addf %1636, %1635 : vector<2x1xf32>
    %1638 = arith.divf %1636, %1637 : vector<2x1xf32>
    %c0_785 = arith.constant 0 : index
    %c7_786 = arith.constant 7 : index
    %1639 = vector.load %arg8[%c0_785, %c7_786] : memref<2x8xf32, #tpu.memory_space<vmem>>, vector<2x1xf32>
    tpu.vector_store %arg8[%c0_785, %c7_786], %1638 {strides = array<i32>} : memref<2x8xf32, #tpu.memory_space<vmem>>, vector<2x1xf32>,
    return
  }
}

</mosaic_0001>

<bundles_post_ra>
// kernel: toy_model_forward.1
= control target key start
LH: loop header
LB: loop body
LE: loop exit
PB: predicated region body
PF: predicated region fallthrough
CT: control target
= control target key end

     0   :  { %s14371_s0 = inlined_call_operand.vmem [shape: f32[8,2,64], index: 0, kind: input, shape index: {}]   ;;  %s14372_s1 = inlined_call_operand.hbm [shape: bf16[6,64,256], index: 1, kind: input, shape index: {}]   ;;  %s14373_s2 = inlined_call_operand.hbm [shape: bf16[6,64,256], index: 2, kind: input, shape index: {}]   ;;  %s14374_s3 = inlined_call_operand.vmem [shape: f32[6,1,256], index: 3, kind: input, shape index: {}]   ;;  %s14375_s4 = inlined_call_operand.vmem [shape: f32[6,2,64], index: 4, kind: input, shape index: {}]   ;;  %s14376_s5 = inlined_call_operand.vmem [shape: f32[6,2,64], index: 5, kind: input, shape index: {}]   ;;  %s14377_s6 = inlined_call_operand.vmem [shape: f32[1,64], index: 6, kind: input, shape index: {}]   ;;  %s14378_s7 = inlined_call_operand.<no memory space> [shape: f32[1,1], index: 7, kind: input, shape index: {}]   ;;  %s14379_s8 = inlined_call_operand.hbm [shape: f32[2,8], index: 8, kind: output, shape index: {}]  }
   0x1   :  { %v13_v0 = vstv %s14378_s7 }
   0x2   :  { %14 = vst [vmem:[#allocation2] sm:$0x1] %v13_v0 }
   0x3   :  { %15 = vsyncpa [#allocation4], 0 }
   0x4   :  { %16 = vsyncpa [#allocation7], 0 }
   0x5   :  { %17 = vsyncpa [#allocation5], 0  ;;  %s12368_s29 = smov [#allocation3]   ;;  %s12296_s11 = scalar_lea.hbm %s14372_s1, 6144 }
   0x6   :  { %s25_s30 = sshll.u32 %s12368_s29, 4  ;;  %p12297_p0 = scmp.ne.s32.totalorder %s14372_s1, %s12296_s11  ;;  %s26_s30 = int_to_ptr.vmem [resolvable:$true] %s25_s30 }
   0x7   :  { %p12300_p1 = scmp.lt.u32.totalorder %s12296_s11, %s14372_s1 }
   0x9   :  { %p12302_p2 = pnand %p12300_p1, %p12297_p0 }
   0xb   :  { %12305 = shalt.err (!%p12302_p2)
}
   0xc   :  { %s12306_s7 = scalar_lea.vmem %s26_s30, 6144  ;;  %p12311_p4 = scmp.lt.s32.totalorder %s26_s30, %s26_s30 }
   0xd   :  { %p12307_p3 = scmp.ne.s32.totalorder %s26_s30, %s12306_s7  ;;  %p12312_p5 = scmp.lt.s32.totalorder %s12306_s7, %s12306_s7 }
   0xf   :  { %p12313_p6 = por %p12312_p5, %p12311_p4 }
  0x11   :  { %p12314_p7 = pnand %p12313_p6, %p12307_p3 }
  0x13   :  { %12317 = shalt.err (!%p12314_p7)
}
  0x14   :  { %s12369_s16 = smov 128   ;;  %s12370_s17 = smov 8  }
  0x15   :  { %31 = dma.hbm_to_vmem [thread:$0]  %s14372_s1, 6144, %s26_s30, [#allocation4], %s12369_s16, %s12369_s16, %s12370_s17  }
  0x16   :  { %s12371_s20 = smov [#allocation6]   ;;  %s12318_s24 = scalar_lea.hbm %s14373_s2, 6144 }
  0x17   :  { %s37_s21 = sshll.u32 %s12371_s20, 4  ;;  %p12319_p8 = scmp.ne.s32.totalorder %s14373_s2, %s12318_s24  ;;  %s38_s21 = int_to_ptr.vmem [resolvable:$true] %s37_s21 }
  0x18   :  { %p12322_p9 = scmp.lt.u32.totalorder %s12318_s24, %s14373_s2 }
  0x1a   :  { %p12324_p10 = pnand %p12322_p9, %p12319_p8 }
  0x1c   :  { %12327 = shalt.err (!%p12324_p10)
}
  0x1d   :  { %s12328_s29 = scalar_lea.vmem %s38_s21, 6144  ;;  %p12333_p12 = scmp.lt.s32.totalorder %s38_s21, %s38_s21 }
  0x1e   :  { %p12329_p11 = scmp.ne.s32.totalorder %s38_s21, %s12328_s29  ;;  %p12334_p13 = scmp.lt.s32.totalorder %s12328_s29, %s12328_s29 }
  0x20   :  { %p12335_p0 = por %p12334_p13, %p12333_p12 }
  0x22   :  { %p12336_p1 = pnand %p12335_p0, %p12329_p11 }
  0x24   :  { %12339 = shalt.err (!%p12336_p1)
}
  0x25   :  { %43 = dma.hbm_to_vmem [thread:$0]  %s14373_s2, 6144, %s38_s21, [#allocation7], %s12369_s16, %s12369_s16, %s12370_s17  }
  0x26   :  { %12362 = dma.done.wait [#allocation4], 6144  }
  0x27   :  { %12363 = vsyncadd [#allocation4], 4294961152 }
  0x28   :  { %12364 = dma.done.wait [#allocation7], 6144  }
  0x29   :  { %12365 = vsyncadd [#allocation7], 4294961152  ;;  %v14380_v1 = vmov 0   ;;  %v11009_v2 = vld [vmem:[#allocation6 + $0x4] ss:$8 sps:$4 sm:$0xff]   ;;  %s12373_s14 = smov 64   ;;  %v273_v23 = vlaneseq }
  0x2a   :  { %178 = vmatprep.mubr.bf16.mxu0 %v14380_v1  ;;  %262 = vmatprep.mubr.bf16.mxu1 %v14380_v1  ;;  %v11011_v3 = vld [vmem:[#allocation3 + $0x4] ss:$8 sps:$4 sm:$0xff]   ;;  %v11013_v4 = vld [vmem:[#allocation6] ss:$8 sps:$4 sm:$0xff]   ;;  %v11015_v6 = vld [vmem:[#allocation6 + $0x14] ss:$8 sps:$4 sm:$0xff]  }
  0x2b   :  { %146 = vmatprep.subr.bf16.mxu0 %v11009_v2  ;;  %v11014_v5 = vld [vmem:[#allocation3] ss:$8 sps:$4 sm:$0xff]   ;;  %230 = vmatprep.subr.bf16.mxu1 %v11011_v3  ;;  %v11017_v7 = vld [vmem:[#allocation3 + $0x14] ss:$8 sps:$4 sm:$0xff]   ;;  %v11019_v8 = vld [vmem:[#allocation6 + $0x10] ss:$8 sps:$4 sm:$0xff]  }
  0x2c   :  { %147 = vmatpush1.bf16.msra.mxu0 %v11013_v4  ;;  %231 = vmatpush1.bf16.msra.mxu1 %v11014_v5  ;;  %v11020_v9 = vld [vmem:[#allocation3 + $0x10] ss:$8 sps:$4 sm:$0xff]   ;;  %v11021_v10 = vld [vmem:[#allocation6 + $0x24] ss:$8 sps:$4 sm:$0xff]   ;;  %v11025_v12 = vld [vmem:[#allocation6 + $0x20] ss:$8 sps:$4 sm:$0xff]  }
  0x2d   :  { %148 = vmatprep.subr.bf16.mxu0 %v11015_v6  ;;  %232 = vmatprep.subr.bf16.mxu1 %v11017_v7  ;;  %v11023_v11 = vld [vmem:[#allocation3 + $0x24] ss:$8 sps:$4 sm:$0xff]   ;;  %v11026_v13 = vld [vmem:[#allocation3 + $0x20] ss:$8 sps:$4 sm:$0xff]   ;;  %v11027_v14 = vld [vmem:[#allocation6 + $0x34] ss:$8 sps:$4 sm:$0xff]  }
  0x2e   :  { %v11029_v15 = vld [vmem:[#allocation3 + $0x34] ss:$8 sps:$4 sm:$0xff]   ;;  %v11031_v16 = vld [vmem:[#allocation6 + $0x30] ss:$8 sps:$4 sm:$0xff]   ;;  %vm142_vm0 = vcmask 523264   ;;  %v274_v24 = vshrl.u32 %v273_v23, 7 }
  0x2f   :  { %v11032_v17 = vld [vmem:[#allocation3 + $0x30] ss:$8 sps:$4 sm:$0xff]   ;;  %v61_v18 = vld [vmem:[%s14375_s4] sm:$0x3]  ;;  %v12489_v53 = vld [vmem:[#allocation6 + $0x44] ss:$8 sps:$4 sm:$0xff]  }
  0x30   :  { %149 = vmatpush1.bf16.msra.mxu0 %v11019_v8  ;;  %233 = vmatpush1.bf16.msra.mxu1 %v11020_v9  ;;  %v83_v19 = vld [vmem:[%s14371_s0] sm:$0x3]  ;;  %v93_v21 = vpack.c.bf16 %v61_v18, %v61_v18  ;;  %v12470_v25 = vsub.s32 0, %v274_v24  ;;  %v12475_v27 = vsub.s32 1, %v274_v24  ;;  %v12496_v56 = vld [vmem:[#allocation3 + $0x44] ss:$8 sps:$4 sm:$0xff]  }
  0x31   :  { %150 = vmatprep.subr.bf16.mxu0 %v11021_v10  ;;  %234 = vmatprep.subr.bf16.mxu1 %v11023_v11  ;;  %v72_v20 = vld [vmem:[%s14376_s5] sm:$0x3]  ;;  %v84_v22 = vpack.c.bf16 %v83_v19, %v83_v19  ;;  %14429 = vst [vmem:[#allocation14_spill] sm:$0xff] %v12496_v56  ;;  %v12499_v57 = vld [vmem:[#allocation6 + $0x50] ss:$8 sps:$4 sm:$0xff]   ;;  %vm2627_vm1 = vcmask 517120  }
  0x32   :  { %300 = vrot.lane.b32.xlu0 %v72_v20, %s12373_s14  ;;  %14427 = vst [vmem:[#allocation12_spill] sm:$0xff] %v12470_v25  ;;  %v271_v26 = vld [vmem:[%s14374_s3] sm:$0x3]  ;;  %14428 = vst [vmem:[#allocation13_spill] sm:$0xff] %v12475_v27  ;;  %v12506_v60 = vld [vmem:[#allocation6 + $0x64] ss:$8 sps:$4 sm:$0xff]  }
  0x33   :  { %v12478_v28 = vrot.slane %v271_v26, %v12470_v25  ;;  %v12481_v31 = vrot.slane %v271_v26, %v12475_v27  ;;  %v12491_v54 = vld [vmem:[#allocation6 + $0x40] ss:$8 sps:$4 sm:$0xff]   ;;  %v12493_v55 = vld [vmem:[#allocation6 + $0x54] ss:$8 sps:$4 sm:$0xff]   ;;  %v12510_v61 = vld [vmem:[#allocation3 + $0x50] ss:$8 sps:$4 sm:$0xff]  }
  0x34   :  { %151 = vmatpush1.bf16.msra.mxu0 %v11025_v12  ;;  %235 = vmatpush1.bf16.msra.mxu1 %v11026_v13  ;;  %v12501_v58 = vld [vmem:[#allocation3 + $0x40] ss:$8 sps:$4 sm:$0xff]   ;;  %v12503_v59 = vld [vmem:[#allocation3 + $0x54] ss:$8 sps:$4 sm:$0xff]   ;;  %v12513_v62 = vld [vmem:[#allocation3 + $0x64] ss:$8 sps:$4 sm:$0xff]  }
  0x35   :  { %152 = vmatprep.subr.bf16.mxu0 %v11027_v14  ;;  %236 = vmatprep.subr.bf16.mxu1 %v11029_v15  ;;  %v12516_v63 = vld [vmem:[#allocation6 + $0x60] ss:$8 sps:$4 sm:$0xff]   ;;  %v12519_v0 = vld [vmem:[#allocation6 + $0x74] ss:$8 sps:$4 sm:$0xff]   ;;  %v12528_v4 = vld [vmem:[#allocation6 + $0x70] ss:$8 sps:$4 sm:$0xff]  }
  0x36   :  { %14430 = vst [vmem:[#allocation15_spill] sm:$0xff] %v12516_v63  ;;  %v12522_v2 = vld [vmem:[#allocation3 + $0x60] ss:$8 sps:$4 sm:$0xff]   ;;  %v12525_v3 = vld [vmem:[#allocation3 + $0x74] ss:$8 sps:$4 sm:$0xff]   ;;  %vm2645_vm2 = vcmask 1024  }
  0x37   :  { %v10072_v5 = vld [vmem:[%s14375_s4 + $0x2] sm:$0x3]  ;;  %v12535_v6 = vld [vmem:[#allocation3 + $0x70] ss:$8 sps:$4 sm:$0xff]   ;;  %v12539_v8 = vld [vmem:[#allocation6 + $0x4] ss:$8 sps:$4 sm:$0xff]  }
  0x38   :  { %153 = vmatpush1.bf16.msra.mxu0 %v11031_v16  ;;  %237 = vmatpush1.bf16.msra.mxu1 %v11032_v17  ;;  %v322_v7 = vpack.c.bf16 %v10072_v5, %v10072_v5  ;;  %14431 = vst [vmem:[#allocation16_spill] sm:$0xff] %v12539_v8  ;;  %v12544_v9 = vld [vmem:[#allocation3 + $0x4] ss:$8 sps:$4 sm:$0xff]   ;;  %v12547_v10 = vld [vmem:[#allocation6] ss:$8 sps:$4 sm:$0xff]   ;;  %s12376_s21 = smov 4  }
  0x39   :  { %375 = vmatprep.subr.bf16.mxu0 %v12489_v53  ;;  %462 = vmatprep.subr.bf16.mxu1 %v12496_v56  ;;  %14432 = vst [vmem:[#allocation17_spill] sm:$0xff] %v12544_v9  ;;  %v12551_v11 = vld [vmem:[#allocation6 + $0x14] ss:$8 sps:$4 sm:$0xff]   ;;  %v12554_v12 = vld [vmem:[#allocation6 + $0x10] ss:$8 sps:$4 sm:$0xff]   ;;  %s12377_s22 = smov 5  }
  0x3a   :  { %v12557_v13 = vld [vmem:[#allocation6 + $0x24] ss:$8 sps:$4 sm:$0xff]   ;;  %v12560_v14 = vld [vmem:[#allocation6 + $0x20] ss:$8 sps:$4 sm:$0xff]   ;;  %v12563_v15 = vld [vmem:[#allocation6 + $0x34] ss:$8 sps:$4 sm:$0xff]  }
  0x3b   :  { %10090 = vmatmul.mubr.msk.bf16.vlgmr.msra.gmra.mrb[0].mxu0 %vm142_vm0, %v93_v21  ;;  %10099 = vmatmul.mubr.msk.bf16.vlgmr.msra.gmra.mrb[0].mxu1 %vm142_vm0, %v84_v22  ;;  %v12566_v16 = vld [vmem:[#allocation6 + $0x30] ss:$8 sps:$4 sm:$0xff]   ;;  %v10077_v24 = vld [vmem:[%s14376_s5 + $0x2] sm:$0x3]  ;;  %s12378_s23 = smov 7   ;;  %vm4020_vm3 = vcmask 9224  }
  0x3c   :  { %407 = vmatprep.mubr.bf16.mxu0 %v14380_v1  ;;  %494 = vmatprep.mubr.bf16.mxu1 %v14380_v1  ;;  %s12379_s24 = smov 2   ;;  %s12380_s25 = smov 6   ;;  %vm5395_vm4 = vcmask 17424   ;;  %vm6770_vm5 = vcmask 25624   ;;  %vm7924_vm6 = vcmask 33824   ;;  %vm8856_vm7 = vcmask 42024  }
  0x3d   :  { %376 = vmatpush1.bf16.msra.mxu0 %v12491_v54  ;;  %463 = vmatpush1.bf16.msra.mxu1 %v12501_v58  ;;  %vm9566_vm8 = vcmask 50224   ;;  %vm10054_vm9 = vcmask 58424  }
  0x3e   :  { %377 = vmatprep.subr.bf16.mxu0 %v12493_v55  ;;  %464 = vmatprep.subr.bf16.mxu1 %v12503_v59 }
  0x41   :  { %378 = vmatpush1.bf16.msra.mxu0 %v12499_v57  ;;  %465 = vmatpush1.bf16.msra.mxu1 %v12510_v61 }
  0x42   :  { %379 = vmatprep.subr.bf16.mxu0 %v12506_v60  ;;  %466 = vmatprep.subr.bf16.mxu1 %v12513_v62 }
  0x45   :  { %380 = vmatpush1.bf16.msra.mxu0 %v12516_v63  ;;  %467 = vmatpush1.bf16.msra.mxu1 %v12522_v2 }
  0x46   :  { %381 = vmatprep.subr.bf16.mxu0 %v12519_v0  ;;  %468 = vmatprep.subr.bf16.mxu1 %v12525_v3 }
  0x49   :  { %382 = vmatpush1.bf16.msra.mxu0 %v12528_v4  ;;  %469 = vmatpush1.bf16.msra.mxu1 %v12535_v6 }
  0x4a   :  { %548 = vmatprep.subr.bf16.mxu0 %v12539_v8  ;;  %592 = vmatprep.subr.bf16.mxu1 %v12544_v9 }
  0x4c   :  { %10111 = vmatmul.mubr.msk.bf16.vlgmr.msra.gmra.mrb[4].mxu0 %vm142_vm0, %v322_v7 }
  0x4d   :  { %549 = vmatpush1.bf16.msra.mxu0 %v12547_v10  ;;  %580 = vmatprep.mubr.bf16.mxu0 %v14380_v1 }
  0x4e   :  { %550 = vmatprep.subr.bf16.mxu0 %v12551_v11 }
  0x51   :  { %551 = vmatpush1.bf16.msra.mxu0 %v12554_v12 }
  0x52   :  { %552 = vmatprep.subr.bf16.mxu0 %v12557_v13 }
  0x55   :  { %553 = vmatpush1.bf16.msra.mxu0 %v12560_v14 }
  0x56   :  { %554 = vmatprep.subr.bf16.mxu0 %v12563_v15 }
  0x59   :  { %555 = vmatpush1.bf16.msra.mxu0 %v12566_v16 }
  0xa4   :  { %v301_v17 = vpop.permute.xlu0 %300 }
 0x10e   :  { %v180_v29 = vpop.f32.mrb[0].mxu0  ;;  %v264_v30 = vpop.f32.mrb[0].mxu1 }
 0x10f   :  { %v265_v32 = vadd.f32 %v264_v30, %v180_v29  ;;  %v182_v33 = vpop.f32.mrb[1].mxu0  ;;  %v266_v34 = vpop.f32.mrb[1].mxu1 }
 0x110   :  { %v267_v35 = vadd.f32 %v266_v34, %v182_v33  ;;  %v184_v36 = vpop.f32.mrb[2].mxu0  ;;  %v268_v37 = vpop.f32.mrb[2].mxu1  ;;  %v12580_v34 = vld [vmem:[#allocation3] ss:$8 sps:$4 sm:$0xff]  }
 0x111   :  { %v283_v38 = vadd.f32 %v12478_v28, %v265_v32  ;;  %v185_v39 = vpop.f32.mrb[3].mxu0  ;;  %v269_v40 = vpop.f32.mrb[3].mxu1  ;;  %14433 = vst [vmem:[#allocation18_spill] sm:$0xff] %v12580_v34  ;;  %v12588_v36 = vld [vmem:[#allocation3 + $0x10] ss:$8 sps:$4 sm:$0xff]  }
 0x112   :  { %v284_v41 = vadd.f32 %v12481_v31, %v267_v35  ;;  %v12584_v35 = vld [vmem:[#allocation3 + $0x14] ss:$8 sps:$4 sm:$0xff]   ;;  %14435 = vst [vmem:[#allocation20_spill] sm:$0xff] %v12588_v36  ;;  %v12591_v37 = vld [vmem:[#allocation3 + $0x24] ss:$8 sps:$4 sm:$0xff]  }
 0x113   :  { %v10100_v42 = vmul.f32 -1.442695, %v283_v38  ;;  %14434 = vst [vmem:[#allocation19_spill] sm:$0xff] %v12584_v35  ;;  %14436 = vst [vmem:[#allocation21_spill] sm:$0xff] %v12591_v37  ;;  %v12594_v38 = vld [vmem:[#allocation3 + $0x20] ss:$8 sps:$4 sm:$0xff]  }
 0x114   :  { %v10101_v43 = vmul.f32 -1.442695, %v284_v41  ;;  %14437 = vst [vmem:[#allocation22_spill] sm:$0xff] %v12594_v38  ;;  %v10125_v39 = vld [vmem:[%s14371_s0 + $0x2] sm:$0x3] }
 0x115   :  { %11723 = vpow2.f32 %v10100_v42  ;;  %v12600_v40 = vld [vmem:[#allocation3 + $0x34] ss:$8 sps:$4 sm:$0xff]   ;;  %v547_v41 = vpack.c.bf16 %v10125_v39, %v10125_v39  ;;  %v12603_v42 = vld [vmem:[#allocation3 + $0x30] ss:$8 sps:$4 sm:$0xff]  }
 0x116   :  { %11725 = vpow2.f32 %v10101_v43  ;;  %14438 = vst [vmem:[#allocation23_spill] sm:$0xff] %v12600_v40  ;;  %14439 = vst [vmem:[#allocation24_spill] sm:$0xff] %v12603_v42  ;;  %v10121_v43 = vld [vmem:[%s14374_s3 + $0x2] sm:$0x3] }
 0x11f   :  { %v11724_v44 = vpop.eup %11723  ;;  %v409_v26 = vpop.f32.mrb[4].mxu0 }
 0x120   :  { %v11726_v45 = vpop.eup %11725  ;;  %v291_v47 = vadd.f32 1.0, %v11724_v44  ;;  %v411_v29 = vpop.f32.mrb[5].mxu0  ;;  %v12612_v44 = vrot.slane %v10121_v43, %v12470_v25 }
 0x121   :  { %v292_v46 = vadd.f32 1.0, %v11726_v45  ;;  %v413_v30 = vpop.f32.mrb[6].mxu0 }
 0x122   :  { %v414_v32 = vpop.f32.mrb[7].mxu0 }
 0x123   :  { %11727 = vrcp.f32 %v292_v46 }
 0x124   :  { %11729 = vrcp.f32 %v291_v47  ;;  %v12615_v47 = vrot.slane %v10121_v43, %v12475_v27 }
 0x12d   :  { %v12485_v48 = vpop.eup %11727 }
 0x12e   :  { %v297_v49 = vmul.f32 2.0, %v12485_v48  ;;  %v11730_v51 = vpop.eup %11729 }
 0x12f   :  { %v303_v18 = vmul.f32 %v11730_v51, %v301_v17 }
 0x130   :  { %v10102_v50 = vadd.f32 -1.0, %v297_v49 }
 0x132   :  { %v304_v52 = vmul.f32 %v11730_v51, %v10102_v50 }
 0x134   :  { %306 = vrot.lane.b32.xlu0 %v304_v52, %s12373_s14 }
 0x1a6   :  { %v307_v19 = vpop.permute.xlu0 %306 }
 0x1a7   :  { %v12569_v20 = vadd.f32 %v307_v19, %v303_v18 }
 0x1a9   :  { %11731 = vtanh.f32 %v12569_v20 }
 0x1b3   :  { %v11732_v21 = vpop.eup %11731 }
 0x1b4   :  { %v311_v22 = vmul.f32 %v11732_v21, %v12485_v48 }
 0x1b6   :  { %v312_v23 = vpack.c.bf16 %v311_v22, %v311_v22 }
 0x1b8   :  { %417 = vrot.lane.b32.xlu1 %v312_v23, %s12373_s14 }
 0x1bc   :  { %533 = vrot.lane.b32.xlu1 %v10077_v24, %s12373_s14 }
 0x22a   :  { %v418_v33 = vpop.permute.xlu1 %417 }
 0x22b   :  { %10120 = vmatmul.mubr.msk.bf16.vlgmr.msra.gmra.mrb[4].mxu1 %vm142_vm0, %v418_v33  ;;  %10126 = vmatmul.mubr.msk.bf16.vlgmr.msra.gmra.mrb[8].mxu0 %vm142_vm0, %v418_v33 }
 0x22c   :  { %593 = vmatpush1.bf16.msra.mxu1 %v12580_v34  ;;  %624 = vmatprep.mubr.bf16.mxu1 %v14380_v1 }
 0x22d   :  { %594 = vmatprep.subr.bf16.mxu1 %v12584_v35  ;;  %753 = vmatprep.mubr.bf16.mxu0 %v14380_v1 }
 0x230   :  { %595 = vmatpush1.bf16.msra.mxu1 %v12588_v36 }
 0x231   :  { %596 = vmatprep.subr.bf16.mxu1 %v12591_v37 }
 0x234   :  { %597 = vmatpush1.bf16.msra.mxu1 %v12594_v38 }
 0x235   :  { %598 = vmatprep.subr.bf16.mxu1 %v12600_v40 }
 0x238   :  { %599 = vmatpush1.bf16.msra.mxu1 %v12603_v42 }
 0x23b   :  { %10127 = vmatmul.mubr.msk.bf16.vlgmr.msra.gmra.mrb[8].mxu1 %vm142_vm0, %v547_v41 }
 0x23c   :  { %840 = vmatprep.mubr.bf16.mxu1 %v14380_v1 }
 0x2fe   :  { %v496_v45 = vpop.f32.mrb[4].mxu1  ;;  %v582_v46 = vpop.f32.mrb[8].mxu0 }
 0x2ff   :  { %v497_v48 = vadd.f32 %v496_v45, %v409_v26  ;;  %v498_v49 = vpop.f32.mrb[5].mxu1  ;;  %v584_v50 = vpop.f32.mrb[9].mxu0 }
 0x300   :  { %v499_v51 = vadd.f32 %v498_v49, %v411_v29  ;;  %v500_v52 = vpop.f32.mrb[6].mxu1  ;;  %v586_v5 = vpop.f32.mrb[10].mxu0 }
 0x301   :  { %v516_v7 = vadd.f32 %v12612_v44, %v497_v48  ;;  %v501_v17 = vpop.f32.mrb[7].mxu1  ;;  %v587_v18 = vpop.f32.mrb[11].mxu0 }
 0x302   :  { %v517_v19 = vadd.f32 %v12615_v47, %v499_v51 }
 0x303   :  { %v10122_v21 = vmul.f32 -1.442695, %v516_v7 }
 0x304   :  { %v10123_v22 = vmul.f32 -1.442695, %v517_v19 }
 0x305   :  { %11733 = vpow2.f32 %v10122_v21 }
 0x306   :  { %11735 = vpow2.f32 %v10123_v22 }
 0x30e   :  { %v626_v23 = vpop.f32.mrb[8].mxu1 }
 0x30f   :  { %v11734_v24 = vpop.eup %11733  ;;  %v627_v30 = vadd.f32 %v626_v23, %v582_v46  ;;  %v628_v32 = vpop.f32.mrb[9].mxu1 }
 0x310   :  { %v11736_v26 = vpop.eup %11735  ;;  %v629_v33 = vadd.f32 %v628_v32, %v584_v50  ;;  %v630_v39 = vpop.f32.mrb[10].mxu1  ;;  %v524_v48 = vadd.f32 1.0, %v11734_v24 }
 0x311   :  { %v525_v29 = vadd.f32 1.0, %v11736_v26  ;;  %v633_v41 = vadd.f32 %v627_v30, %v12478_v28  ;;  %v631_v43 = vpop.f32.mrb[11].mxu1  ;;  %v12629_v26 = vld [vmem:[#allocation6 + $0x80] ss:$8 sps:$4 sm:$0xff]   ;;  %v12633_v39 = vld [vmem:[#allocation6 + $0x94] ss:$8 sps:$4 sm:$0xff]  }
 0x312   :  { %v634_v45 = vadd.f32 %v629_v33, %v12481_v31  ;;  %v12631_v33 = vld [vmem:[#allocation6 + $0x84] ss:$8 sps:$4 sm:$0xff]  }
 0x313   :  { %11737 = vrcp.f32 %v525_v29  ;;  %v10128_v49 = vmul.f32 -1.442695, %v633_v41  ;;  %721 = vmatprep.subr.bf16.mxu0 %v12631_v33  ;;  %v12636_v29 = vld [vmem:[#allocation3 + $0x80] ss:$8 sps:$4 sm:$0xff]   ;;  %v12639_v41 = vld [vmem:[#allocation6 + $0x90] ss:$8 sps:$4 sm:$0xff]  }
 0x314   :  { %v10129_v51 = vmul.f32 -1.442695, %v634_v45  ;;  %722 = vmatpush1.bf16.msra.mxu0 %v12629_v26  ;;  %v12641_v43 = vld [vmem:[#allocation3 + $0x84] ss:$8 sps:$4 sm:$0xff]  }
 0x315   :  { %11739 = vpow2.f32 %v10128_v49  ;;  %723 = vmatprep.subr.bf16.mxu0 %v12633_v39  ;;  %v12644_v45 = vld [vmem:[#allocation6 + $0xa4] ss:$8 sps:$4 sm:$0xff]   ;;  %808 = vmatprep.subr.bf16.mxu1 %v12641_v43  ;;  %v12650_v49 = vld [vmem:[#allocation3 + $0x90] ss:$8 sps:$4 sm:$0xff]  }
 0x316   :  { %11741 = vpow2.f32 %v10129_v51  ;;  %809 = vmatpush1.bf16.msra.mxu1 %v12636_v29  ;;  %v12653_v51 = vld [vmem:[#allocation6 + $0xa0] ss:$8 sps:$4 sm:$0xff]  }
 0x317   :  { %11743 = vrcp.f32 %v524_v48  ;;  %v12646_v48 = vld [vmem:[#allocation3 + $0x94] ss:$8 sps:$4 sm:$0xff]  }
 0x318   :  { %724 = vmatpush1.bf16.msra.mxu0 %v12639_v41  ;;  %810 = vmatprep.subr.bf16.mxu1 %v12646_v48 }
 0x319   :  { %725 = vmatprep.subr.bf16.mxu0 %v12644_v45 }
 0x31a   :  { %811 = vmatpush1.bf16.msra.mxu1 %v12650_v49 }
 0x31c   :  { %726 = vmatpush1.bf16.msra.mxu0 %v12653_v51 }
 0x31d   :  { %v12621_v52 = vpop.eup %11737 }
 0x31e   :  { %v530_v46 = vmul.f32 2.0, %v12621_v52 }
 0x31f   :  { %v11740_v5 = vpop.eup %11739 }
 0x320   :  { %v11742_v50 = vpop.eup %11741  ;;  %v10124_v7 = vadd.f32 -1.0, %v530_v46  ;;  %v641_v21 = vadd.f32 1.0, %v11740_v5  ;;  %v12656_v46 = vld [vmem:[#allocation3 + $0xa4] ss:$8 sps:$4 sm:$0xff]   ;;  %v12659_v5 = vld [vmem:[#allocation6 + $0xb4] ss:$8 sps:$4 sm:$0xff]  }
 0x321   :  { %v11744_v17 = vpop.eup %11743  ;;  %v642_v18 = vadd.f32 1.0, %v11742_v50  ;;  %14440 = vst [vmem:[#allocation25_spill] sm:$0xff] %v12659_v5  ;;  %v12662_v50 = vld [vmem:[#allocation3 + $0xa0] ss:$8 sps:$4 sm:$0xff]   ;;  %812 = vmatprep.subr.bf16.mxu1 %v12656_v46  ;;  %727 = vmatprep.subr.bf16.mxu0 %v12659_v5 }
 0x322   :  { %v537_v19 = vmul.f32 %v11744_v17, %v10124_v7  ;;  %14441 = vst [vmem:[#allocation26_spill] sm:$0xff] %v12662_v50  ;;  %v12665_v7 = vld [vmem:[#allocation6 + $0xb0] ss:$8 sps:$4 sm:$0xff]   ;;  %813 = vmatpush1.bf16.msra.mxu1 %v12662_v50 }
 0x323   :  { %11745 = vrcp.f32 %v642_v18  ;;  %v10073_v18 = vld [vmem:[%s14375_s4 + $0x4] sm:$0x3]  ;;  %728 = vmatpush1.bf16.msra.mxu0 %v12665_v7 }
 0x324   :  { %539 = vrot.lane.b32.xlu0 %v537_v19, %s12373_s14  ;;  %11747 = vrcp.f32 %v641_v21  ;;  %v12671_v19 = vld [vmem:[#allocation3 + $0xb4] ss:$8 sps:$4 sm:$0xff]   ;;  %v668_v21 = vpack.c.bf16 %v10073_v18, %v10073_v18  ;;  %892 = vmatprep.subr.bf16.mxu0 %v12489_v53 }
 0x325   :  { %14442 = vst [vmem:[#allocation27_spill] sm:$0xff] %v12671_v19  ;;  %814 = vmatprep.subr.bf16.mxu1 %v12671_v19 }
 0x326   :  { %10139 = vmatmul.mubr.msk.bf16.vlgmr.msra.gmra.mrb[12].mxu0 %vm142_vm0, %v668_v21 }
 0x327   :  { %893 = vmatpush1.bf16.msra.mxu0 %v12491_v54  ;;  %924 = vmatprep.mubr.bf16.mxu0 %v14380_v1 }
 0x328   :  { %894 = vmatprep.subr.bf16.mxu0 %v12493_v55 }
 0x32b   :  { %895 = vmatpush1.bf16.msra.mxu0 %v12499_v57 }
 0x32c   :  { %896 = vmatprep.subr.bf16.mxu0 %v12506_v60 }
 0x32d   :  { %v12625_v22 = vpop.eup %11745 }
 0x32e   :  { %v647_v23 = vmul.f32 2.0, %v12625_v22  ;;  %v11748_v30 = vpop.eup %11747 }
 0x32f   :  { %897 = vmatpush1.bf16.msra.mxu0 %v12516_v63 }
 0x330   :  { %v10130_v24 = vadd.f32 -1.0, %v647_v23  ;;  %v12675_v23 = vld [vmem:[#allocation3 + $0xb0] ss:$8 sps:$4 sm:$0xff]   ;;  %898 = vmatprep.subr.bf16.mxu0 %v12519_v0 }
 0x331   :  { %14443 = vst [vmem:[#allocation28_spill] sm:$0xff] %v12675_v23  ;;  %815 = vmatpush1.bf16.msra.mxu1 %v12675_v23  ;;  %v649_v23 = vmul.f32 %v11748_v30, %v12569_v20 }
 0x332   :  { %v650_v32 = vmul.f32 %v11748_v30, %v10130_v24  ;;  %939 = vmatprep.subr.bf16.mxu1 %v12496_v56  ;;  %v534_v24 = vpop.permute.xlu1 %533 }
 0x333   :  { %899 = vmatpush1.bf16.msra.mxu0 %v12528_v4 }
 0x334   :  { %652 = vrot.lane.b32.xlu1 %v650_v32, %s12373_s14  ;;  %1008 = vmatprep.subr.bf16.mxu0 %v12539_v8  ;;  %v536_v32 = vmul.f32 %v11744_v17, %v534_v24 }
 0x396   :  { %v540_v18 = vpop.permute.xlu0 %539 }
 0x397   :  { %v12692_v21 = vadd.f32 %v540_v18, %v536_v32  ;;  %v10149_v32 = vld [vmem:[%s14374_s3 + $0x4] sm:$0x3] }
 0x398   :  { %v12746_v18 = vrot.slane %v10149_v32, %v12470_v25 }
 0x399   :  { %11749 = vtanh.f32 %v12692_v21 }
 0x3a3   :  { %v11750_v1 = vpop.eup %11749 }
 0x3a4   :  { %v544_v56 = vmul.f32 %v11750_v1, %v12621_v52  ;;  %v10078_v1 = vld [vmem:[%s14376_s5 + $0x4] sm:$0x3] }
 0x3a6   :  { %v653_v19 = vpop.permute.xlu1 %652  ;;  %v658_v63 = vpack.c.bf16 %v544_v56, %v544_v56 }
 0x3a7   :  { %v12697_v50 = vadd.f32 %v653_v19, %v649_v23  ;;  %v10158_v19 = vld [vmem:[%s14371_s0 + $0x4] sm:$0x3] }
 0x3a8   :  { %763 = vrot.lane.b32.xlu0 %v658_v63, %s12373_s14  ;;  %v14444_v63 = vmov 0   ;;  %v1007_v23 = vpack.c.bf16 %v10158_v19, %v10158_v19 }
 0x3a9   :  { %11751 = vtanh.f32 %v12697_v50 }
 0x3ac   :  { %879 = vrot.lane.b32.xlu0 %v10078_v1, %s12373_s14  ;;  %v12749_v1 = vrot.slane %v10149_v32, %v12475_v27 }
 0x3b3   :  { %v11752_v8 = vpop.eup %11751 }
 0x3b4   :  { %v657_v17 = vmul.f32 %v11752_v8, %v12625_v22 }
 0x3b6   :  { %v891_v24 = vpack.c.bf16 %v657_v17, %v657_v17 }
 0x3b8   :  { %934 = vrot.lane.b32.xlu1 %v891_v24, %s12373_s14 }
 0x3f9   :  { %v755_v56 = vpop.f32.mrb[12].mxu0 }
 0x3fa   :  { %v757_v8 = vpop.f32.mrb[13].mxu0 }
 0x3fb   :  { %v759_v52 = vpop.f32.mrb[14].mxu0 }
 0x3fc   :  { %v760_v22 = vpop.f32.mrb[15].mxu0 }
 0x41a   :  { %v764_v20 = vpop.permute.xlu0 %763 }
 0x41b   :  { %10148 = vmatmul.mubr.msk.bf16.vlgmr.msra.gmra.mrb[12].mxu1 %vm142_vm0, %v764_v20  ;;  %10153 = vmatmul.mubr.msk.bf16.vlgmr.msra.gmra.mrb[16].mxu0 %vm142_vm0, %v764_v20 }
 0x41c   :  { %940 = vmatpush1.bf16.msra.mxu1 %v12501_v58  ;;  %1009 = vmatpush1.bf16.msra.mxu0 %v12547_v10 }
 0x41d   :  { %941 = vmatprep.subr.bf16.mxu1 %v12503_v59  ;;  %1010 = vmatprep.subr.bf16.mxu0 %v12551_v11 }
 0x41e   :  { %971 = vmatprep.mubr.bf16.mxu1 %v14444_v63  ;;  %1040 = vmatprep.mubr.bf16.mxu0 %v14444_v63 }
 0x420   :  { %942 = vmatpush1.bf16.msra.mxu1 %v12510_v61  ;;  %1011 = vmatpush1.bf16.msra.mxu0 %v12554_v12 }
 0x421   :  { %943 = vmatprep.subr.bf16.mxu1 %v12513_v62  ;;  %1012 = vmatprep.subr.bf16.mxu0 %v12557_v13 }
 0x424   :  { %944 = vmatpush1.bf16.msra.mxu1 %v12522_v2  ;;  %1013 = vmatpush1.bf16.msra.mxu0 %v12560_v14 }
 0x425   :  { %945 = vmatprep.subr.bf16.mxu1 %v12525_v3  ;;  %1014 = vmatprep.subr.bf16.mxu0 %v12563_v15 }
 0x428   :  { %946 = vmatpush1.bf16.msra.mxu1 %v12535_v6  ;;  %1015 = vmatpush1.bf16.msra.mxu0 %v12566_v16 }
 0x429   :  { %1052 = vmatprep.subr.bf16.mxu1 %v12544_v9 }
 0x42a   :  { %v935_v30 = vpop.permute.xlu1 %934 }
 0x42b   :  { %10154 = vmatmul.mubr.msk.bf16.vlgmr.msra.gmra.mrb[16].mxu1 %vm142_vm0, %v935_v30  ;;  %10159 = vmatmul.mubr.msk.bf16.vlgmr.msra.gmra.mrb[20].mxu0 %vm142_vm0, %v935_v30 }
 0x42c   :  { %1053 = vmatpush1.bf16.msra.mxu1 %v12580_v34  ;;  %1084 = vmatprep.mubr.bf16.mxu1 %v14444_v63 }
 0x42d   :  { %1054 = vmatprep.subr.bf16.mxu1 %v12584_v35  ;;  %1213 = vmatprep.mubr.bf16.mxu0 %v14444_v63 }
 0x430   :  { %1055 = vmatpush1.bf16.msra.mxu1 %v12588_v36 }
 0x431   :  { %1056 = vmatprep.subr.bf16.mxu1 %v12591_v37 }
 0x434   :  { %1057 = vmatpush1.bf16.msra.mxu1 %v12594_v38 }
 0x435   :  { %1058 = vmatprep.subr.bf16.mxu1 %v12600_v40 }
 0x438   :  { %1059 = vmatpush1.bf16.msra.mxu1 %v12603_v42 }
 0x43b   :  { %10160 = vmatmul.mubr.msk.bf16.vlgmr.msra.gmra.mrb[20].mxu1 %vm142_vm0, %v1007_v23 }
 0x43c   :  { %1300 = vmatprep.mubr.bf16.mxu1 %v14444_v63 }
 0x4ee   :  { %v842_v17 = vpop.f32.mrb[12].mxu1  ;;  %v926_v24 = vpop.f32.mrb[16].mxu0 }
 0x4ef   :  { %v843_v20 = vadd.f32 %v842_v17, %v755_v56  ;;  %v844_v52 = vpop.f32.mrb[13].mxu1  ;;  %v928_v22 = vpop.f32.mrb[17].mxu0 }
 0x4f0   :  { %v845_v30 = vadd.f32 %v844_v52, %v757_v8  ;;  %v846_v19 = vpop.f32.mrb[14].mxu1  ;;  %v930_v23 = vpop.f32.mrb[18].mxu0 }
 0x4f1   :  { %v862_v42 = vadd.f32 %v12746_v18, %v843_v20  ;;  %v847_v40 = vpop.f32.mrb[15].mxu1  ;;  %v931_v38 = vpop.f32.mrb[19].mxu0 }
 0x4f2   :  { %v863_v37 = vadd.f32 %v12749_v1, %v845_v30 }
 0x4f3   :  { %v10150_v36 = vmul.f32 -1.442695, %v862_v42 }
 0x4f4   :  { %v10151_v25 = vmul.f32 -1.442695, %v863_v37 }
 0x4f5   :  { %11753 = vpow2.f32 %v10150_v36 }
 0x4f6   :  { %11755 = vpow2.f32 %v10151_v25 }
 0x4fe   :  { %v973_v35 = vpop.f32.mrb[16].mxu1  ;;  %v1042_v34 = vpop.f32.mrb[20].mxu0 }
 0x4ff   :  { %v11754_v32 = vpop.eup %11753  ;;  %v974_v27 = vadd.f32 %v973_v35, %v926_v24  ;;  %v975_v56 = vpop.f32.mrb[17].mxu1 }
 0x500   :  { %v1044_v17 = vpop.f32.mrb[21].mxu0  ;;  %v11756_v9 = vpop.eup %11755  ;;  %v976_v8 = vadd.f32 %v975_v56, %v928_v22  ;;  %v870_v37 = vadd.f32 1.0, %v11754_v32 }
 0x501   :  { %v977_v52 = vpop.f32.mrb[18].mxu1  ;;  %v1046_v19 = vpop.f32.mrb[22].mxu0  ;;  %v871_v23 = vadd.f32 1.0, %v11756_v9  ;;  %v980_v40 = vadd.f32 %v974_v27, %v12612_v44 }
 0x502   :  { %v978_v38 = vpop.f32.mrb[19].mxu1  ;;  %v1047_v20 = vpop.f32.mrb[23].mxu0  ;;  %v981_v42 = vadd.f32 %v976_v8, %v12615_v47 }
 0x503   :  { %11757 = vrcp.f32 %v871_v23  ;;  %v10155_v25 = vmul.f32 -1.442695, %v980_v40 }
 0x504   :  { %v10156_v36 = vmul.f32 -1.442695, %v981_v42 }
 0x505   :  { %11759 = vpow2.f32 %v10155_v25 }
 0x506   :  { %11761 = vpow2.f32 %v10156_v36 }
 0x507   :  { %11763 = vrcp.f32 %v870_v37 }
 0x50d   :  { %v12755_v35 = vpop.eup %11757 }
 0x50e   :  { %v1086_v24 = vpop.f32.mrb[20].mxu1  ;;  %v876_v22 = vmul.f32 2.0, %v12755_v35 }
 0x50f   :  { %v11760_v30 = vpop.eup %11759  ;;  %v1087_v9 = vadd.f32 %v1086_v24, %v1042_v34  ;;  %v1088_v56 = vpop.f32.mrb[21].mxu1 }
 0x510   :  { %v11762_v27 = vpop.eup %11761  ;;  %v1089_v52 = vadd.f32 %v1088_v56, %v1044_v17  ;;  %v1090_v19 = vpop.f32.mrb[22].mxu1  ;;  %v10152_v38 = vadd.f32 -1.0, %v876_v22  ;;  %v988_v37 = vadd.f32 1.0, %v11760_v30 }
 0x511   :  { %v12758_v8 = vpop.eup %11763  ;;  %v989_v32 = vadd.f32 1.0, %v11762_v27  ;;  %v1093_v23 = vadd.f32 %v1087_v9, %v12478_v28  ;;  %v1091_v40 = vpop.f32.mrb[23].mxu1 }
 0x512   :  { %v1094_v20 = vadd.f32 %v1089_v52, %v12481_v31  ;;  %v883_v42 = vmul.f32 %v12758_v8, %v10152_v38 }
 0x513   :  { %11765 = vrcp.f32 %v989_v32  ;;  %v10161_v25 = vmul.f32 -1.442695, %v1093_v23 }
 0x514   :  { %v10162_v36 = vmul.f32 -1.442695, %v1094_v20  ;;  %885 = vrot.lane.b32.xlu1 %v883_v42, %s12373_s14  ;;  %v12778_v20 = vld [vmem:[#allocation6 + $0xc0] ss:$8 sps:$4 sm:$0xff]   ;;  %v12780_v42 = vld [vmem:[#allocation6 + $0xc4] ss:$8 sps:$4 sm:$0xff]  }
 0x515   :  { %11767 = vpow2.f32 %v10161_v25  ;;  %1181 = vmatprep.subr.bf16.mxu0 %v12780_v42  ;;  %v12785_v25 = vld [vmem:[#allocation3 + $0xc0] ss:$8 sps:$4 sm:$0xff]  }
 0x516   :  { %11769 = vpow2.f32 %v10162_v36  ;;  %14445 = vst [vmem:[#allocation29_spill] sm:$0xff] %v12785_v25  ;;  %1182 = vmatpush1.bf16.msra.mxu0 %v12778_v20  ;;  %v12788_v36 = vld [vmem:[#allocation6 + $0xd0] ss:$8 sps:$4 sm:$0xff]  }
 0x517   :  { %11771 = vrcp.f32 %v988_v37  ;;  %v12782_v37 = vld [vmem:[#allocation6 + $0xd4] ss:$8 sps:$4 sm:$0xff]  }
 0x518   :  { %1183 = vmatprep.subr.bf16.mxu0 %v12782_v37 }
 0x51a   :  { %1184 = vmatpush1.bf16.msra.mxu0 %v12788_v36 }
 0x51d   :  { %v12764_v34 = vpop.eup %11765 }
 0x51e   :  { %v994_v17 = vmul.f32 2.0, %v12764_v34 }
 0x51f   :  { %v11768_v24 = vpop.eup %11767 }
 0x520   :  { %v11770_v22 = vpop.eup %11769  ;;  %v10157_v9 = vadd.f32 -1.0, %v994_v17  ;;  %v1101_v52 = vadd.f32 1.0, %v11768_v24  ;;  %v12790_v17 = vld [vmem:[#allocation3 + $0xc4] ss:$8 sps:$4 sm:$0xff]  }
 0x521   :  { %v12767_v56 = vpop.eup %11771  ;;  %v1102_v27 = vadd.f32 1.0, %v11770_v22  ;;  %v12793_v24 = vld [vmem:[#allocation6 + $0xe4] ss:$8 sps:$4 sm:$0xff]   ;;  %v12795_v22 = vld [vmem:[#allocation3 + $0xd4] ss:$8 sps:$4 sm:$0xff]   ;;  %1268 = vmatprep.subr.bf16.mxu1 %v12790_v17 }
 0x522   :  { %v997_v30 = vmul.f32 %v12767_v56, %v10157_v9  ;;  %14446 = vst [vmem:[#allocation30_spill] sm:$0xff] %v12795_v22  ;;  %1269 = vmatpush1.bf16.msra.mxu1 %v12785_v25  ;;  %v12799_v9 = vld [vmem:[#allocation3 + $0xd0] ss:$8 sps:$4 sm:$0xff]   ;;  %1185 = vmatprep.subr.bf16.mxu0 %v12793_v24 }
 0x523   :  { %11773 = vrcp.f32 %v1102_v27  ;;  %14447 = vst [vmem:[#allocation31_spill] sm:$0xff] %v12799_v9  ;;  %v12802_v27 = vld [vmem:[#allocation6 + $0xe0] ss:$8 sps:$4 sm:$0xff]   ;;  %1270 = vmatprep.subr.bf16.mxu1 %v12795_v22  ;;  %v12820_v22 = vld [vmem:[#allocation3 + $0xf4] ss:$8 sps:$4 sm:$0xff]  }
 0x524   :  { %999 = vrot.lane.b32.xlu0 %v997_v30, %s12373_s14  ;;  %11775 = vrcp.f32 %v1101_v52  ;;  %v12805_v30 = vld [vmem:[#allocation3 + $0xe4] ss:$8 sps:$4 sm:$0xff]   ;;  %v12808_v52 = vld [vmem:[#allocation6 + $0xf4] ss:$8 sps:$4 sm:$0xff]   ;;  %1186 = vmatpush1.bf16.msra.mxu0 %v12802_v27 }
 0x525   :  { %1187 = vmatprep.subr.bf16.mxu0 %v12808_v52 }
 0x526   :  { %1271 = vmatpush1.bf16.msra.mxu1 %v12799_v9  ;;  %v12824_v9 = vld [vmem:[#allocation3 + $0xf0] ss:$8 sps:$4 sm:$0xff]  }
 0x527   :  { %1272 = vmatprep.subr.bf16.mxu1 %v12805_v30  ;;  %14448 = vst [vmem:[#allocation32_spill] sm:$0xff] %v12824_v9 }
 0x52d   :  { %v12771_v19 = vpop.eup %11773 }
 0x52e   :  { %v1107_v38 = vmul.f32 2.0, %v12771_v19  ;;  %v12774_v23 = vpop.eup %11775 }
 0x530   :  { %v10163_v32 = vadd.f32 -1.0, %v1107_v38  ;;  %v12811_v38 = vld [vmem:[#allocation3 + $0xe0] ss:$8 sps:$4 sm:$0xff]  }
 0x531   :  { %1273 = vmatpush1.bf16.msra.mxu1 %v12811_v38 }
 0x532   :  { %v1110_v40 = vmul.f32 %v12774_v23, %v10163_v32  ;;  %v12814_v32 = vld [vmem:[#allocation6 + $0xf0] ss:$8 sps:$4 sm:$0xff]   ;;  %1274 = vmatprep.subr.bf16.mxu1 %v12820_v22 }
 0x533   :  { %1188 = vmatpush1.bf16.msra.mxu0 %v12814_v32 }
 0x534   :  { %1112 = vrot.lane.b32.xlu1 %v1110_v40, %s12373_s14  ;;  %v10074_v40 = vld [vmem:[%s14375_s4 + $0x6] sm:$0x3]  ;;  %1352 = vmatprep.subr.bf16.mxu0 %v12631_v33 }
 0x535   :  { %v1128_v25 = vpack.c.bf16 %v10074_v40, %v10074_v40  ;;  %1275 = vmatpush1.bf16.msra.mxu1 %v12824_v9 }
 0x536   :  { %1399 = vmatprep.subr.bf16.mxu1 %v12641_v43  ;;  %v996_v43 = vmul.f32 %v12767_v56, %v12692_v21 }
 0x537   :  { %10172 = vmatmul.mubr.msk.bf16.vlgmr.msra.gmra.mrb[24].mxu0 %vm142_vm0, %v1128_v25  ;;  %v880_v25 = vpop.permute.xlu0 %879 }
 0x538   :  { %1353 = vmatpush1.bf16.msra.mxu0 %v12629_v26  ;;  %1384 = vmatprep.mubr.bf16.mxu0 %v14444_v63  ;;  %v882_v26 = vmul.f32 %v12758_v8, %v880_v25  ;;  %v1109_v25 = vmul.f32 %v12774_v23, %v12697_v50 }
 0x539   :  { %1354 = vmatprep.subr.bf16.mxu0 %v12633_v39 }
 0x53c   :  { %1355 = vmatpush1.bf16.msra.mxu0 %v12639_v41 }
 0x53d   :  { %1356 = vmatprep.subr.bf16.mxu0 %v12644_v45 }
 0x540   :  { %1357 = vmatpush1.bf16.msra.mxu0 %v12653_v51 }
 0x541   :  { %1358 = vmatprep.subr.bf16.mxu0 %v12659_v5 }
 0x544   :  { %1359 = vmatpush1.bf16.msra.mxu0 %v12665_v7 }
 0x545   :  { %1466 = vmatprep.subr.bf16.mxu0 %v12489_v53 }
 0x586   :  { %v886_v40 = vpop.permute.xlu1 %885 }
 0x587   :  { %v12842_v9 = vadd.f32 %v886_v40, %v882_v26 }
 0x589   :  { %11777 = vtanh.f32 %v12842_v9 }
 0x593   :  { %v11778_v39 = vpop.eup %11777 }
 0x594   :  { %v890_v41 = vmul.f32 %v11778_v39, %v12755_v35 }
 0x596   :  { %v1000_v45 = vpop.permute.xlu0 %999  ;;  %v1118_v51 = vpack.c.bf16 %v890_v41, %v890_v41 }
 0x597   :  { %v12848_v5 = vadd.f32 %v1000_v45, %v996_v43  ;;  %v14464_v43 = vld [vmem:[#allocation13_spill] sm:$0xff] }
 0x598   :  { %1223 = vrot.lane.b32.xlu0 %v1118_v51, %s12373_s14 }
 0x599   :  { %11779 = vtanh.f32 %v12848_v5 }
 0x5a3   :  { %v11780_v53 = vpop.eup %11779 }
 0x5a4   :  { %v1004_v8 = vmul.f32 %v11780_v53, %v12764_v34  ;;  %v10079_v34 = vld [vmem:[%s14376_s5 + $0x6] sm:$0x3] }
 0x5a6   :  { %v1113_v26 = vpop.permute.xlu1 %1112  ;;  %v1351_v40 = vpack.c.bf16 %v1004_v8, %v1004_v8 }
 0x5a7   :  { %v12855_v35 = vadd.f32 %v1113_v26, %v1109_v25 }
 0x5a8   :  { %1394 = vrot.lane.b32.xlu1 %v1351_v40, %s12373_s14 }
 0x5a9   :  { %11781 = vtanh.f32 %v12855_v35 }
 0x5ac   :  { %1339 = vrot.lane.b32.xlu1 %v10079_v34, %s12373_s14 }
 0x5b3   :  { %v11782_v21 = vpop.eup %11781 }
 0x5b4   :  { %v1117_v56 = vmul.f32 %v11782_v21, %v12771_v19  ;;  %v14449_v19 = vld [vmem:[#allocation26_spill] sm:$0xff] }
 0x5b6   :  { %v1465_v39 = vpack.c.bf16 %v1117_v56, %v1117_v56 }
 0x5b8   :  { %1508 = vrot.lane.b32.xlu0 %v1465_v39, %s12373_s14 }
 0x60a   :  { %v1224_v50 = vpop.permute.xlu0 %1223 }
 0x60b   :  { %10181 = vmatmul.mubr.msk.bf16.vlgmr.msra.gmra.mrb[24].mxu1 %vm142_vm0, %v1224_v50  ;;  %10186 = vmatmul.mubr.msk.bf16.vlgmr.msra.gmra.mrb[28].mxu0 %vm142_vm0, %v1224_v50 }
 0x60c   :  { %1400 = vmatpush1.bf16.msra.mxu1 %v12636_v29  ;;  %1467 = vmatpush1.bf16.msra.mxu0 %v12491_v54  ;;  %v14450_v29 = vld [vmem:[#allocation15_spill] sm:$0xff] }
 0x60d   :  { %1401 = vmatprep.subr.bf16.mxu1 %v12646_v48  ;;  %1468 = vmatprep.subr.bf16.mxu0 %v12493_v55  ;;  %v14451_v54 = vld [vmem:[#allocation27_spill] sm:$0xff]  ;;  %v14452_v55 = vld [vmem:[#allocation28_spill] sm:$0xff]  ;;  %v14453_v48 = vld [vmem:[#allocation14_spill] sm:$0xff] }
 0x60e   :  { %1431 = vmatprep.mubr.bf16.mxu1 %v14444_v63  ;;  %1498 = vmatprep.mubr.bf16.mxu0 %v14444_v63 }
 0x610   :  { %1402 = vmatpush1.bf16.msra.mxu1 %v12650_v49  ;;  %1469 = vmatpush1.bf16.msra.mxu0 %v12499_v57  ;;  %v14454_v49 = vld [vmem:[#allocation16_spill] sm:$0xff] }
 0x611   :  { %1403 = vmatprep.subr.bf16.mxu1 %v12656_v46  ;;  %1470 = vmatprep.subr.bf16.mxu0 %v12506_v60  ;;  %v1215_v60 = vpop.f32.mrb[24].mxu0 }
 0x614   :  { %1404 = vmatpush1.bf16.msra.mxu1 %v14449_v19  ;;  %1471 = vmatpush1.bf16.msra.mxu0 %v14450_v29 }
 0x615   :  { %1405 = vmatprep.subr.bf16.mxu1 %v14451_v54  ;;  %1472 = vmatprep.subr.bf16.mxu0 %v12519_v0  ;;  %v1217_v0 = vpop.f32.mrb[25].mxu0 }
 0x618   :  { %1406 = vmatpush1.bf16.msra.mxu1 %v14452_v55  ;;  %1473 = vmatpush1.bf16.msra.mxu0 %v12528_v4  ;;  %v1219_v4 = vpop.f32.mrb[26].mxu0 }
 0x619   :  { %1513 = vmatprep.subr.bf16.mxu1 %v14453_v48  ;;  %1582 = vmatprep.subr.bf16.mxu0 %v14454_v49  ;;  %v1220_v46 = vpop.f32.mrb[27].mxu0 }
 0x61a   :  { %v1395_v57 = vpop.permute.xlu1 %1394 }
 0x61b   :  { %10187 = vmatmul.mubr.msk.bf16.vlgmr.msra.gmra.mrb[28].mxu1 %vm142_vm0, %v1395_v57  ;;  %10191 = vmatmul.mubr.msk.bf16.vlgmr.msra.gmra.mrb[32].mxu0 %vm142_vm0, %v1395_v57 }
 0x61c   :  { %1514 = vmatpush1.bf16.msra.mxu1 %v12501_v58  ;;  %1583 = vmatpush1.bf16.msra.mxu0 %v12547_v10  ;;  %v14455_v58 = vld [vmem:[#allocation17_spill] sm:$0xff]  ;;  %v10196_v10 = vld [vmem:[%s14371_s0 + $0x6] sm:$0x3] }
 0x61d   :  { %1515 = vmatprep.subr.bf16.mxu1 %v12503_v59  ;;  %1584 = vmatprep.subr.bf16.mxu0 %v12551_v11  ;;  %v14461_v11 = vld [vmem:[#allocation23_spill] sm:$0xff] }
 0x61e   :  { %1545 = vmatprep.mubr.bf16.mxu1 %v14444_v63  ;;  %1614 = vmatprep.mubr.bf16.mxu0 %v14444_v63 }
 0x620   :  { %1516 = vmatpush1.bf16.msra.mxu1 %v12510_v61  ;;  %1585 = vmatpush1.bf16.msra.mxu0 %v12554_v12  ;;  %v14456_v61 = vld [vmem:[#allocation18_spill] sm:$0xff]  ;;  %v1581_v12 = vpack.c.bf16 %v10196_v10, %v10196_v10 }
 0x621   :  { %1517 = vmatprep.subr.bf16.mxu1 %v12513_v62  ;;  %1586 = vmatprep.subr.bf16.mxu0 %v12557_v13  ;;  %v14457_v62 = vld [vmem:[#allocation19_spill] sm:$0xff]  ;;  %v14462_v13 = vld [vmem:[#allocation24_spill] sm:$0xff] }
 0x624   :  { %1518 = vmatpush1.bf16.msra.mxu1 %v12522_v2  ;;  %1587 = vmatpush1.bf16.msra.mxu0 %v12560_v14  ;;  %v14458_v2 = vld [vmem:[#allocation20_spill] sm:$0xff] }
 0x625   :  { %1519 = vmatprep.subr.bf16.mxu1 %v12525_v3  ;;  %1588 = vmatprep.subr.bf16.mxu0 %v12563_v15  ;;  %v14459_v3 = vld [vmem:[#allocation21_spill] sm:$0xff]  ;;  %v10182_v14 = vld [vmem:[%s14374_s3 + $0x6] sm:$0x3] }
 0x626   :  { %v14463_v15 = vld [vmem:[#allocation12_spill] sm:$0xff]  ;;  %v12927_v45 = vrot.slane %v10182_v14, %v14464_v43 }
 0x628   :  { %1520 = vmatpush1.bf16.msra.mxu1 %v12535_v6  ;;  %1589 = vmatpush1.bf16.msra.mxu0 %v12566_v16  ;;  %v14460_v6 = vld [vmem:[#allocation22_spill] sm:$0xff]  ;;  %v12924_v16 = vrot.slane %v10182_v14, %v14463_v15 }
 0x629   :  { %1626 = vmatprep.subr.bf16.mxu1 %v14455_v58 }
 0x62a   :  { %v1509_v59 = vpop.permute.xlu0 %1508 }
 0x62b   :  { %10192 = vmatmul.mubr.msk.bf16.vlgmr.msra.gmra.mrb[32].mxu1 %vm142_vm0, %v1509_v59  ;;  %10197 = vmatmul.mubr.msk.bf16.vlgmr.msra.gmra.mrb[36].mxu0 %vm142_vm0, %v1509_v59 }
 0x62c   :  { %1627 = vmatpush1.bf16.msra.mxu1 %v14456_v61  ;;  %1658 = vmatprep.mubr.bf16.mxu1 %v14444_v63 }
 0x62d   :  { %1628 = vmatprep.subr.bf16.mxu1 %v14457_v62  ;;  %1787 = vmatprep.mubr.bf16.mxu0 %v14444_v63 }
 0x630   :  { %1629 = vmatpush1.bf16.msra.mxu1 %v14458_v2 }
 0x631   :  { %1630 = vmatprep.subr.bf16.mxu1 %v14459_v3 }
 0x634   :  { %1631 = vmatpush1.bf16.msra.mxu1 %v14460_v6 }
 0x635   :  { %1632 = vmatprep.subr.bf16.mxu1 %v14461_v11 }
 0x638   :  { %1633 = vmatpush1.bf16.msra.mxu1 %v14462_v13 }
 0x63b   :  { %10198 = vmatmul.mubr.msk.bf16.vlgmr.msra.gmra.mrb[36].mxu1 %vm142_vm0, %v1581_v12 }
 0x63c   :  { %1874 = vmatprep.mubr.bf16.mxu1 %v14444_v63 }
 0x6de   :  { %v1302_v23 = vpop.f32.mrb[24].mxu1  ;;  %v1386_v41 = vpop.f32.mrb[28].mxu0 }
 0x6df   :  { %v1303_v51 = vadd.f32 %v1302_v23, %v1215_v60  ;;  %v1304_v53 = vpop.f32.mrb[25].mxu1  ;;  %v1388_v8 = vpop.f32.mrb[29].mxu0 }
 0x6e0   :  { %v1305_v25 = vadd.f32 %v1304_v53, %v1217_v0  ;;  %v1306_v26 = vpop.f32.mrb[26].mxu1  ;;  %v1390_v40 = vpop.f32.mrb[30].mxu0 }
 0x6e1   :  { %v1322_v21 = vadd.f32 %v12924_v16, %v1303_v51  ;;  %v1307_v56 = vpop.f32.mrb[27].mxu1  ;;  %v1391_v39 = vpop.f32.mrb[31].mxu0 }
 0x6e2   :  { %v1323_v34 = vadd.f32 %v12927_v45, %v1305_v25 }
 0x6e3   :  { %v10183_v50 = vmul.f32 -1.442695, %v1322_v21 }
 0x6e4   :  { %v10184_v19 = vmul.f32 -1.442695, %v1323_v34 }
 0x6e5   :  { %11783 = vpow2.f32 %v10183_v50 }
 0x6e6   :  { %11785 = vpow2.f32 %v10184_v19 }
 0x6ee   :  { %v1433_v29 = vpop.f32.mrb[28].mxu1  ;;  %v1500_v54 = vpop.f32.mrb[32].mxu0 }
 0x6ef   :  { %v11784_v55 = vpop.eup %11783  ;;  %v1434_v48 = vadd.f32 %v1433_v29, %v1386_v41  ;;  %v1435_v49 = vpop.f32.mrb[29].mxu1 }
 0x6f0   :  { %v1502_v57 = vpop.f32.mrb[33].mxu0  ;;  %v11786_v60 = vpop.eup %11785  ;;  %v1436_v0 = vadd.f32 %v1435_v49, %v1388_v8  ;;  %v1330_v3 = vadd.f32 1.0, %v11784_v55 }
 0x6f1   :  { %v1437_v4 = vpop.f32.mrb[30].mxu1  ;;  %v1504_v46 = vpop.f32.mrb[34].mxu0  ;;  %v1331_v58 = vadd.f32 1.0, %v11786_v60  ;;  %v1440_v59 = vadd.f32 %v1434_v48, %v12746_v18 }
 0x6f2   :  { %v1438_v61 = vpop.f32.mrb[31].mxu1  ;;  %v1505_v62 = vpop.f32.mrb[35].mxu0  ;;  %v1441_v2 = vadd.f32 %v1436_v0, %v12749_v1 }
 0x6f3   :  { %11787 = vrcp.f32 %v1331_v58  ;;  %v10188_v6 = vmul.f32 -1.442695, %v1440_v59 }
 0x6f4   :  { %v10189_v10 = vmul.f32 -1.442695, %v1441_v2 }
 0x6f5   :  { %11789 = vpow2.f32 %v10188_v6 }
 0x6f6   :  { %11791 = vpow2.f32 %v10189_v10 }
 0x6f7   :  { %11793 = vrcp.f32 %v1330_v3 }
 0x6fd   :  { %v12933_v11 = vpop.eup %11787 }
 0x6fe   :  { %v1547_v12 = vpop.f32.mrb[32].mxu1  ;;  %v1616_v13 = vpop.f32.mrb[36].mxu0  ;;  %v1336_v14 = vmul.f32 2.0, %v12933_v11 }
 0x6ff   :  { %v11790_v23 = vpop.eup %11789  ;;  %v1548_v41 = vadd.f32 %v1547_v12, %v1500_v54  ;;  %v1549_v51 = vpop.f32.mrb[33].mxu1 }
 0x700   :  { %v1618_v53 = vpop.f32.mrb[37].mxu0  ;;  %v11792_v8 = vpop.eup %11791  ;;  %v1550_v25 = vadd.f32 %v1549_v51, %v1502_v57  ;;  %v10185_v21 = vadd.f32 -1.0, %v1336_v14  ;;  %v1448_v48 = vadd.f32 1.0, %v11790_v23 }
 0x701   :  { %v1551_v26 = vpop.f32.mrb[34].mxu1  ;;  %v1620_v40 = vpop.f32.mrb[38].mxu0  ;;  %v1449_v39 = vadd.f32 1.0, %v11792_v8  ;;  %v1554_v34 = vadd.f32 %v1548_v41, %v12612_v44 }
 0x702   :  { %v12936_v56 = vpop.eup %11793  ;;  %v1552_v50 = vpop.f32.mrb[35].mxu1  ;;  %v1555_v29 = vadd.f32 %v1550_v25, %v12615_v47 }
 0x703   :  { %v1621_v19 = vpop.f32.mrb[39].mxu0  ;;  %v1343_v55 = vmul.f32 %v12936_v56, %v10185_v21  ;;  %11795 = vrcp.f32 %v1449_v39  ;;  %v10193_v54 = vmul.f32 -1.442695, %v1554_v34 }
 0x704   :  { %v10194_v49 = vmul.f32 -1.442695, %v1555_v29 }
 0x705   :  { %1345 = vrot.lane.b32.xlu0 %v1343_v55, %s12373_s14  ;;  %11797 = vpow2.f32 %v10193_v54 }
 0x706   :  { %11799 = vpow2.f32 %v10194_v49  ;;  %v12965_v49 = vld [vmem:[#allocation6 + $0x100] ss:$8 sps:$4 sm:$0xff]  }
 0x707   :  { %11801 = vrcp.f32 %v1448_v48 }
 0x70d   :  { %v12942_v57 = vpop.eup %11795 }
 0x70e   :  { %v1660_v60 = vpop.f32.mrb[36].mxu1  ;;  %v1454_v0 = vmul.f32 2.0, %v12942_v57 }
 0x70f   :  { %v11798_v4 = vpop.eup %11797  ;;  %v1661_v46 = vadd.f32 %v1660_v60, %v1616_v13  ;;  %v1662_v58 = vpop.f32.mrb[37].mxu1  ;;  %v12967_v60 = vld [vmem:[#allocation6 + $0x104] ss:$8 sps:$4 sm:$0xff]  }
 0x710   :  { %v11800_v59 = vpop.eup %11799  ;;  %v1663_v61 = vadd.f32 %v1662_v58, %v1618_v53  ;;  %v1664_v62 = vpop.f32.mrb[38].mxu1  ;;  %v10190_v2 = vadd.f32 -1.0, %v1454_v0  ;;  %v1562_v41 = vadd.f32 1.0, %v11798_v4  ;;  %v12969_v0 = vld [vmem:[#allocation6 + $0x114] ss:$8 sps:$4 sm:$0xff]   ;;  %1755 = vmatprep.subr.bf16.mxu0 %v12967_v60 }
 0x711   :  { %v12945_v3 = vpop.eup %11801  ;;  %v1563_v6 = vadd.f32 1.0, %v11800_v59  ;;  %v1667_v10 = vadd.f32 %v1661_v46, %v12478_v28  ;;  %v1665_v12 = vpop.f32.mrb[39].mxu1  ;;  %v12972_v4 = vld [vmem:[#allocation3 + $0x100] ss:$8 sps:$4 sm:$0xff]   ;;  %1756 = vmatpush1.bf16.msra.mxu0 %v12965_v49  ;;  %v12975_v46 = vld [vmem:[#allocation6 + $0x110] ss:$8 sps:$4 sm:$0xff]  }
 0x712   :  { %v1668_v14 = vadd.f32 %v1663_v61, %v12481_v31  ;;  %v1457_v23 = vmul.f32 %v12945_v3, %v10190_v2  ;;  %v12977_v58 = vld [vmem:[#allocation3 + $0x104] ss:$8 sps:$4 sm:$0xff]   ;;  %1757 = vmatprep.subr.bf16.mxu0 %v12969_v0  ;;  %v12982_v61 = vld [vmem:[#allocation3 + $0x114] ss:$8 sps:$4 sm:$0xff]   ;;  %v12986_v62 = vld [vmem:[#allocation3 + $0x110] ss:$8 sps:$4 sm:$0xff]  }
 0x713   :  { %11803 = vrcp.f32 %v1563_v6  ;;  %v10199_v51 = vmul.f32 -1.442695, %v1667_v10  ;;  %v12980_v59 = vld [vmem:[#allocation6 + $0x124] ss:$8 sps:$4 sm:$0xff]   ;;  %1842 = vmatprep.subr.bf16.mxu1 %v12977_v58  ;;  %v12989_v2 = vld [vmem:[#allocation6 + $0x120] ss:$8 sps:$4 sm:$0xff]  }
 0x714   :  { %v10200_v8 = vmul.f32 -1.442695, %v1668_v14  ;;  %1459 = vrot.lane.b32.xlu1 %v1457_v23, %s12373_s14  ;;  %1843 = vmatpush1.bf16.msra.mxu1 %v12972_v4  ;;  %v12992_v6 = vld [vmem:[#allocation3 + $0x124] ss:$8 sps:$4 sm:$0xff]   ;;  %v12995_v10 = vld [vmem:[#allocation6 + $0x134] ss:$8 sps:$4 sm:$0xff]  }
 0x715   :  { %11805 = vpow2.f32 %v10199_v51  ;;  %1758 = vmatpush1.bf16.msra.mxu0 %v12975_v46  ;;  %1844 = vmatprep.subr.bf16.mxu1 %v12982_v61  ;;  %v12998_v12 = vld [vmem:[#allocation3 + $0x120] ss:$8 sps:$4 sm:$0xff]   ;;  %v13001_v14 = vld [vmem:[#allocation6 + $0x130] ss:$8 sps:$4 sm:$0xff]  }
 0x716   :  { %11807 = vpow2.f32 %v10200_v8  ;;  %1759 = vmatprep.subr.bf16.mxu0 %v12980_v59  ;;  %v10075_v23 = vld [vmem:[%s14375_s4 + $0x8] sm:$0x3]  ;;  %v13011_v8 = vld [vmem:[#allocation3 + $0x130] ss:$8 sps:$4 sm:$0xff]  }
 0x717   :  { %11809 = vrcp.f32 %v1562_v41  ;;  %v13007_v41 = vld [vmem:[#allocation3 + $0x134] ss:$8 sps:$4 sm:$0xff]   ;;  %v1702_v51 = vpack.c.bf16 %v10075_v23, %v10075_v23 }
 0x718   :  { %1845 = vmatpush1.bf16.msra.mxu1 %v12986_v62  ;;  %v14467_v23 = vld [vmem:[#allocation31_spill] sm:$0xff] }
 0x719   :  { %1760 = vmatpush1.bf16.msra.mxu0 %v12989_v2  ;;  %1846 = vmatprep.subr.bf16.mxu1 %v12992_v6 }
 0x71a   :  { %1761 = vmatprep.subr.bf16.mxu0 %v12995_v10 }
 0x71c   :  { %1847 = vmatpush1.bf16.msra.mxu1 %v12998_v12 }
 0x71d   :  { %v12951_v13 = vpop.eup %11803  ;;  %1762 = vmatpush1.bf16.msra.mxu0 %v13001_v14  ;;  %1848 = vmatprep.subr.bf16.mxu1 %v13007_v41 }
 0x71e   :  { %v1568_v53 = vmul.f32 2.0, %v12951_v13  ;;  %1926 = vmatprep.subr.bf16.mxu0 %v12780_v42  ;;  %v1340_v42 = vpop.permute.xlu1 %1339 }
 0x71f   :  { %v11806_v25 = vpop.eup %11805 }
 0x720   :  { %v11808_v26 = vpop.eup %11807  ;;  %v10195_v40 = vadd.f32 -1.0, %v1568_v53  ;;  %v1675_v50 = vadd.f32 1.0, %v11806_v25  ;;  %10210 = vmatmul.mubr.msk.bf16.vlgmr.msra.gmra.mrb[40].mxu0 %vm142_vm0, %v1702_v51  ;;  %1849 = vmatpush1.bf16.msra.mxu1 %v13011_v8  ;;  %v12253_v51 = vld [vmem:[#allocation6 + $0x90] ss:$8 sps:$4 sm:$0xff]  }
 0x721   :  { %v12954_v21 = vpop.eup %11809  ;;  %v1676_v39 = vadd.f32 1.0, %v11808_v26  ;;  %1927 = vmatpush1.bf16.msra.mxu0 %v12778_v20  ;;  %1958 = vmatprep.mubr.bf16.mxu0 %v14444_v63  ;;  %v1342_v20 = vmul.f32 %v12936_v56, %v1340_v42  ;;  %v12254_v42 = vld [vmem:[#allocation6 + $0xa4] ss:$8 sps:$4 sm:$0xff]  }
 0x722   :  { %v1571_v34 = vmul.f32 %v12954_v21, %v10195_v40  ;;  %1928 = vmatprep.subr.bf16.mxu0 %v12782_v37  ;;  %1973 = vmatprep.subr.bf16.mxu1 %v12790_v17  ;;  %v1456_v17 = vmul.f32 %v12945_v3, %v12842_v9  ;;  %v1570_v56 = vmul.f32 %v12954_v21, %v12848_v5 }
 0x723   :  { %11811 = vrcp.f32 %v1676_v39 }
 0x724   :  { %1573 = vrot.lane.b32.xlu0 %v1571_v34, %s12373_s14  ;;  %11813 = vrcp.f32 %v1675_v50 }
 0x725   :  { %1929 = vmatpush1.bf16.msra.mxu0 %v12788_v36 }
 0x726   :  { %1930 = vmatprep.subr.bf16.mxu0 %v12793_v24 }
 0x729   :  { %1931 = vmatpush1.bf16.msra.mxu0 %v12802_v27 }
 0x72a   :  { %1932 = vmatprep.subr.bf16.mxu0 %v12808_v52 }
 0x72d   :  { %v12958_v19 = vpop.eup %11811  ;;  %1933 = vmatpush1.bf16.msra.mxu0 %v12814_v32 }
 0x72e   :  { %v1681_v29 = vmul.f32 2.0, %v12958_v19  ;;  %v12961_v48 = vpop.eup %11813  ;;  %2040 = vmatprep.subr.bf16.mxu0 %v12631_v33 }
 0x72f   :  { %v1683_v39 = vmul.f32 %v12961_v48, %v12855_v35 }
 0x730   :  { %v10201_v55 = vadd.f32 -1.0, %v1681_v29 }
 0x732   :  { %v1684_v54 = vmul.f32 %v12961_v48, %v10201_v55  ;;  %v14465_v55 = vld [vmem:[#allocation29_spill] sm:$0xff] }
 0x733   :  { %v12251_v48 = vld [vmem:[#allocation6 + $0x80] ss:$8 sps:$4 sm:$0xff]  }
 0x734   :  { %1686 = vrot.lane.b32.xlu1 %v1684_v54, %s12373_s14  ;;  %v14466_v54 = vld [vmem:[#allocation30_spill] sm:$0xff] }
 0x777   :  { %v1346_v53 = vpop.permute.xlu0 %1345 }
 0x778   :  { %v13029_v25 = vadd.f32 %v1346_v53, %v1342_v20  ;;  %v12255_v20 = vld [vmem:[#allocation6 + $0xa0] ss:$8 sps:$4 sm:$0xff]  }
 0x779   :  { %v14468_v53 = vld [vmem:[#allocation25_spill] sm:$0xff] }
 0x77a   :  { %11815 = vtanh.f32 %v13029_v25 }
 0x784   :  { %v11816_v37 = vpop.eup %11815 }
 0x785   :  { %v1350_v36 = vmul.f32 %v11816_v37, %v12933_v11  ;;  %v14469_v37 = vld [vmem:[#allocation32_spill] sm:$0xff] }
 0x786   :  { %v1460_v24 = vpop.permute.xlu1 %1459 }
 0x787   :  { %v1692_v27 = vpack.c.bf16 %v1350_v36, %v1350_v36  ;;  %v13035_v52 = vadd.f32 %v1460_v24, %v1456_v17  ;;  %v12256_v36 = vld [vmem:[#allocation3 + $0x84] ss:$8 sps:$4 sm:$0xff]  }
 0x788   :  { %v12257_v17 = vld [vmem:[#allocation6 + $0x44] ss:$8 sps:$4 sm:$0xff]  }
 0x789   :  { %1797 = vrot.lane.b32.xlu0 %v1692_v27, %s12373_s14  ;;  %11817 = vtanh.f32 %v13035_v52  ;;  %v12261_v27 = vld [vmem:[#allocation6 + $0x54] ss:$8 sps:$4 sm:$0xff]  }
 0x793   :  { %v11818_v33 = vpop.eup %11817 }
 0x794   :  { %v1464_v32 = vmul.f32 %v11818_v33, %v12942_v57  ;;  %v12263_v33 = vld [vmem:[#allocation6 + $0x50] ss:$8 sps:$4 sm:$0xff]  }
 0x796   :  { %v1574_v26 = vpop.permute.xlu0 %1573  ;;  %v1925_v40 = vpack.c.bf16 %v1464_v32, %v1464_v32  ;;  %v12264_v32 = vld [vmem:[#allocation3 + $0xa4] ss:$8 sps:$4 sm:$0xff]  }
 0x797   :  { %v13042_v11 = vadd.f32 %v1574_v26, %v1570_v56  ;;  %v12265_v56 = vld [vmem:[#allocation6 + $0x64] ss:$8 sps:$4 sm:$0xff]   ;;  %v12266_v26 = vld [vmem:[#allocation3 + $0xa0] ss:$8 sps:$4 sm:$0xff]  }
 0x798   :  { %1968 = vrot.lane.b32.xlu1 %v1925_v40, %s12373_s14  ;;  %v12267_v40 = vld [vmem:[#allocation6 + $0x60] ss:$8 sps:$4 sm:$0xff]  }
 0x799   :  { %11819 = vtanh.f32 %v13042_v11 }
 0x7a3   :  { %v11820_v9 = vpop.eup %11819 }
 0x7a4   :  { %v1578_v3 = vmul.f32 %v11820_v9, %v12951_v13  ;;  %v10080_v13 = vld [vmem:[%s14376_s5 + $0x8] sm:$0x3]  ;;  %v12268_v9 = vld [vmem:[#allocation3 + $0xb4] ss:$8 sps:$4 sm:$0xff]  }
 0x7a6   :  { %v1687_v34 = vpop.permute.xlu1 %1686  ;;  %v2039_v50 = vpack.c.bf16 %v1578_v3, %v1578_v3  ;;  %v12269_v3 = vld [vmem:[#allocation6 + $0x74] ss:$8 sps:$4 sm:$0xff]  }
 0x7a7   :  { %v13049_v57 = vadd.f32 %v1687_v34, %v1683_v39  ;;  %v12270_v39 = vld [vmem:[#allocation3 + $0xb0] ss:$8 sps:$4 sm:$0xff]  }
 0x7a8   :  { %2082 = vrot.lane.b32.xlu0 %v2039_v50, %s12373_s14  ;;  %v12271_v34 = vld [vmem:[#allocation6 + $0x70] ss:$8 sps:$4 sm:$0xff]   ;;  %v12272_v50 = vld [vmem:[#allocation3 + $0x44] ss:$8 sps:$4 sm:$0xff]  }
 0x7a9   :  { %11821 = vtanh.f32 %v13049_v57 }
 0x7ac   :  { %1913 = vrot.lane.b32.xlu0 %v10080_v13, %s12373_s14  ;;  %v12275_v13 = vld [vmem:[#allocation6] ss:$8 sps:$4 sm:$0xff]  }
 0x7b3   :  { %v11822_v5 = vpop.eup %11821 }
 0x7b4   :  { %v1691_v21 = vmul.f32 %v11822_v5, %v12958_v19  ;;  %v12252_v19 = vld [vmem:[#allocation6 + $0x94] ss:$8 sps:$4 sm:$0xff]   ;;  %v12273_v5 = vld [vmem:[#allocation6 + $0x4] ss:$8 sps:$4 sm:$0xff]  }
 0x7b6   :  { %v2153_v29 = vpack.c.bf16 %v1691_v21, %v1691_v21 }
 0x7b8   :  { %2196 = vrot.lane.b32.xlu1 %v2153_v29, %s12373_s14  ;;  %v12274_v29 = vld [vmem:[#allocation3 + $0x40] ss:$8 sps:$4 sm:$0xff]  }
 0x7fb   :  { %v1798_v35 = vpop.permute.xlu0 %1797 }
 0x7fc   :  { %10219 = vmatmul.mubr.msk.bf16.vlgmr.msra.gmra.mrb[40].mxu1 %vm142_vm0, %v1798_v35  ;;  %10224 = vmatmul.mubr.msk.bf16.vlgmr.msra.gmra.mrb[44].mxu0 %vm142_vm0, %v1798_v35  ;;  %v12276_v35 = vld [vmem:[#allocation3 + $0x54] ss:$8 sps:$4 sm:$0xff]  }
 0x7fd   :  { %1974 = vmatpush1.bf16.msra.mxu1 %v14465_v55  ;;  %2041 = vmatpush1.bf16.msra.mxu0 %v12251_v48  ;;  %v12277_v55 = vld [vmem:[#allocation6 + $0x14] ss:$8 sps:$4 sm:$0xff]   ;;  %v1789_v48 = vpop.f32.mrb[40].mxu0 }
 0x7fe   :  { %1975 = vmatprep.subr.bf16.mxu1 %v14466_v54  ;;  %2042 = vmatprep.subr.bf16.mxu0 %v12252_v19  ;;  %v1791_v54 = vpop.f32.mrb[41].mxu0 }
 0x7ff   :  { %2005 = vmatprep.mubr.bf16.mxu1 %v14444_v63  ;;  %2072 = vmatprep.mubr.bf16.mxu0 %v14444_v63  ;;  %v1793_v19 = vpop.f32.mrb[42].mxu0 }
 0x801   :  { %1976 = vmatpush1.bf16.msra.mxu1 %v14467_v23  ;;  %2043 = vmatpush1.bf16.msra.mxu0 %v12253_v51  ;;  %v12278_v23 = vld [vmem:[#allocation3 + $0x50] ss:$8 sps:$4 sm:$0xff]  }
 0x802   :  { %1977 = vmatprep.subr.bf16.mxu1 %v12805_v30  ;;  %2044 = vmatprep.subr.bf16.mxu0 %v12254_v42  ;;  %v12258_v30 = vld [vmem:[#allocation3 + $0x80] ss:$8 sps:$4 sm:$0xff]   ;;  %v12279_v51 = vld [vmem:[#allocation6 + $0x10] ss:$8 sps:$4 sm:$0xff]   ;;  %v1794_v42 = vpop.f32.mrb[43].mxu0 }
 0x805   :  { %1978 = vmatpush1.bf16.msra.mxu1 %v12811_v38  ;;  %2045 = vmatpush1.bf16.msra.mxu0 %v12255_v20  ;;  %v12259_v38 = vld [vmem:[#allocation6 + $0x40] ss:$8 sps:$4 sm:$0xff]   ;;  %v12280_v20 = vld [vmem:[#allocation3 + $0x64] ss:$8 sps:$4 sm:$0xff]  }
 0x806   :  { %1979 = vmatprep.subr.bf16.mxu1 %v12820_v22  ;;  %2046 = vmatprep.subr.bf16.mxu0 %v14468_v53  ;;  %v12260_v22 = vld [vmem:[#allocation3 + $0x94] ss:$8 sps:$4 sm:$0xff]   ;;  %v12281_v53 = vld [vmem:[#allocation6 + $0x24] ss:$8 sps:$4 sm:$0xff]  }
 0x809   :  { %1980 = vmatpush1.bf16.msra.mxu1 %v14469_v37  ;;  %2047 = vmatpush1.bf16.msra.mxu0 %v12665_v7  ;;  %v12262_v7 = vld [vmem:[#allocation3 + $0x90] ss:$8 sps:$4 sm:$0xff]   ;;  %v12282_v37 = vld [vmem:[#allocation3 + $0x60] ss:$8 sps:$4 sm:$0xff]  }
 0x80a   :  { %2087 = vmatprep.subr.bf16.mxu1 %v12256_v36  ;;  %2154 = vmatprep.subr.bf16.mxu0 %v12257_v17  ;;  %v1969_v24 = vpop.permute.xlu1 %1968  ;;  %v12283_v36 = vld [vmem:[#allocation6 + $0x20] ss:$8 sps:$4 sm:$0xff]   ;;  %v12284_v17 = vld [vmem:[#allocation3 + $0x74] ss:$8 sps:$4 sm:$0xff]  }
 0x80c   :  { %10225 = vmatmul.mubr.msk.bf16.vlgmr.msra.gmra.mrb[44].mxu1 %vm142_vm0, %v1969_v24  ;;  %10229 = vmatmul.mubr.msk.bf16.vlgmr.msra.gmra.mrb[48].mxu0 %vm142_vm0, %v1969_v24  ;;  %v12285_v24 = vld [vmem:[#allocation6 + $0x34] ss:$8 sps:$4 sm:$0xff]  }
 0x80d   :  { %2088 = vmatpush1.bf16.msra.mxu1 %v12258_v30  ;;  %2155 = vmatpush1.bf16.msra.mxu0 %v12259_v38  ;;  %v12286_v30 = vld [vmem:[#allocation3 + $0x70] ss:$8 sps:$4 sm:$0xff]  }
 0x80e   :  { %2089 = vmatprep.subr.bf16.mxu1 %v12260_v22  ;;  %2156 = vmatprep.subr.bf16.mxu0 %v12261_v27  ;;  %v12287_v38 = vld [vmem:[#allocation6 + $0x30] ss:$8 sps:$4 sm:$0xff]   ;;  %v12288_v22 = vld [vmem:[#allocation3 + $0x4] ss:$8 sps:$4 sm:$0xff]  }
 0x80f   :  { %2119 = vmatprep.mubr.bf16.mxu1 %v14444_v63  ;;  %2186 = vmatprep.mubr.bf16.mxu0 %v14444_v63 }
 0x811   :  { %2090 = vmatpush1.bf16.msra.mxu1 %v12262_v7  ;;  %2157 = vmatpush1.bf16.msra.mxu0 %v12263_v33  ;;  %v12289_v7 = vld [vmem:[#allocation3] ss:$8 sps:$4 sm:$0xff]   ;;  %v12290_v33 = vld [vmem:[#allocation3 + $0x14] ss:$8 sps:$4 sm:$0xff]  }
 0x812   :  { %2091 = vmatprep.subr.bf16.mxu1 %v12264_v32  ;;  %2158 = vmatprep.subr.bf16.mxu0 %v12265_v56  ;;  %v12291_v32 = vld [vmem:[#allocation3 + $0x10] ss:$8 sps:$4 sm:$0xff]   ;;  %v12292_v56 = vld [vmem:[#allocation3 + $0x24] ss:$8 sps:$4 sm:$0xff]  }
 0x815   :  { %2092 = vmatpush1.bf16.msra.mxu1 %v12266_v26  ;;  %2159 = vmatpush1.bf16.msra.mxu0 %v12267_v40  ;;  %v12293_v26 = vld [vmem:[#allocation3 + $0x20] ss:$8 sps:$4 sm:$0xff]  }
 0x816   :  { %2093 = vmatprep.subr.bf16.mxu1 %v12268_v9  ;;  %2160 = vmatprep.subr.bf16.mxu0 %v12269_v3  ;;  %v10239_v40 = vld [vmem:[%s14371_s0 + $0x8] sm:$0x3]  ;;  %v12294_v9 = vld [vmem:[#allocation3 + $0x34] ss:$8 sps:$4 sm:$0xff]  }
 0x817   :  { %v2269_v3 = vpack.c.bf16 %v10239_v40, %v10239_v40 }
 0x819   :  { %2094 = vmatpush1.bf16.msra.mxu1 %v12270_v39  ;;  %2161 = vmatpush1.bf16.msra.mxu0 %v12271_v34  ;;  %v12295_v39 = vld [vmem:[#allocation3 + $0x30] ss:$8 sps:$4 sm:$0xff]   ;;  %v10220_v34 = vld [vmem:[%s14374_s3 + $0x8] sm:$0x3] }
 0x81a   :  { %2201 = vmatprep.subr.bf16.mxu1 %v12272_v50  ;;  %2270 = vmatprep.subr.bf16.mxu0 %v12273_v5  ;;  %v2083_v21 = vpop.permute.xlu0 %2082  ;;  %v1889_v50 = vrot.slane %v10220_v34, %v14463_v15 }
 0x81c   :  { %10230 = vmatmul.mubr.msk.bf16.vlgmr.msra.gmra.mrb[48].mxu1 %vm142_vm0, %v2083_v21  ;;  %10234 = vmatmul.mubr.msk.bf16.vlgmr.msra.gmra.mrb[52].mxu0 %vm142_vm0, %v2083_v21 }
 0x81d   :  { %2202 = vmatpush1.bf16.msra.mxu1 %v12274_v29  ;;  %2271 = vmatpush1.bf16.msra.mxu0 %v12275_v13  ;;  %v1893_v29 = vrot.slane %v10220_v34, %v14464_v43 }
 0x81e   :  { %2203 = vmatprep.subr.bf16.mxu1 %v12276_v35  ;;  %2272 = vmatprep.subr.bf16.mxu0 %v12277_v55 }
 0x81f   :  { %2233 = vmatprep.mubr.bf16.mxu1 %v14444_v63  ;;  %2302 = vmatprep.mubr.bf16.mxu0 %v14444_v63 }
 0x821   :  { %2204 = vmatpush1.bf16.msra.mxu1 %v12278_v23  ;;  %2273 = vmatpush1.bf16.msra.mxu0 %v12279_v51 }
 0x822   :  { %2205 = vmatprep.subr.bf16.mxu1 %v12280_v20  ;;  %2274 = vmatprep.subr.bf16.mxu0 %v12281_v53 }
 0x825   :  { %2206 = vmatpush1.bf16.msra.mxu1 %v12282_v37  ;;  %2275 = vmatpush1.bf16.msra.mxu0 %v12283_v36 }
 0x826   :  { %2207 = vmatprep.subr.bf16.mxu1 %v12284_v17  ;;  %2276 = vmatprep.subr.bf16.mxu0 %v12285_v24 }
 0x829   :  { %2208 = vmatpush1.bf16.msra.mxu1 %v12286_v30  ;;  %2277 = vmatpush1.bf16.msra.mxu0 %v12287_v38 }
 0x82a   :  { %2314 = vmatprep.subr.bf16.mxu1 %v12288_v22  ;;  %v2197_v27 = vpop.permute.xlu1 %2196 }
 0x82c   :  { %10235 = vmatmul.mubr.msk.bf16.vlgmr.msra.gmra.mrb[52].mxu1 %vm142_vm0, %v2197_v27  ;;  %10240 = vmatmul.mubr.msk.bf16.vlgmr.msra.gmra.mrb[56].mxu0 %vm142_vm0, %v2197_v27 }
 0x82d   :  { %2315 = vmatpush1.bf16.msra.mxu1 %v12289_v7  ;;  %2346 = vmatprep.mubr.bf16.mxu1 %v14444_v63 }
 0x82e   :  { %2316 = vmatprep.subr.bf16.mxu1 %v12290_v33  ;;  %2475 = vmatprep.mubr.bf16.mxu0 %v14444_v63 }
 0x831   :  { %2317 = vmatpush1.bf16.msra.mxu1 %v12291_v32 }
 0x832   :  { %2318 = vmatprep.subr.bf16.mxu1 %v12292_v56 }
 0x835   :  { %2319 = vmatpush1.bf16.msra.mxu1 %v12293_v26 }
 0x836   :  { %2320 = vmatprep.subr.bf16.mxu1 %v12294_v9 }
 0x839   :  { %2321 = vmatpush1.bf16.msra.mxu1 %v12295_v39 }
 0x83c   :  { %10241 = vmatmul.mubr.msk.bf16.vlgmr.msra.gmra.mrb[56].mxu1 %vm142_vm0, %v2269_v3 }
 0x83d   :  { %2562 = vmatprep.mubr.bf16.mxu1 %v14444_v63 }
 0x8cf   :  { %v1876_v5 = vpop.f32.mrb[40].mxu1  ;;  %v1960_v21 = vpop.f32.mrb[44].mxu0 }
 0x8d0   :  { %v1877_v13 = vadd.f32 %v1876_v5, %v1789_v48  ;;  %v1878_v35 = vpop.f32.mrb[41].mxu1  ;;  %v1962_v55 = vpop.f32.mrb[45].mxu0 }
 0x8d1   :  { %v1879_v19 = vadd.f32 %v1878_v35, %v1791_v54  ;;  %v1880_v23 = vpop.f32.mrb[42].mxu1  ;;  %v1964_v51 = vpop.f32.mrb[46].mxu0 }
 0x8d2   :  { %v1896_v42 = vadd.f32 %v1889_v50, %v1877_v13  ;;  %v1881_v20 = vpop.f32.mrb[43].mxu1  ;;  %v1965_v53 = vpop.f32.mrb[47].mxu0 }
 0x8d3   :  { %v1897_v37 = vadd.f32 %v1893_v29, %v1879_v19 }
 0x8d4   :  { %v10221_v36 = vmul.f32 -1.442695, %v1896_v42 }
 0x8d5   :  { %v10222_v17 = vmul.f32 -1.442695, %v1897_v37 }
 0x8d6   :  { %11823 = vpow2.f32 %v10221_v36 }
 0x8d7   :  { %11825 = vpow2.f32 %v10222_v17 }
 0x8df   :  { %v2007_v24 = vpop.f32.mrb[44].mxu1  ;;  %v2074_v30 = vpop.f32.mrb[48].mxu0 }
 0x8e0   :  { %v11824_v38 = vpop.eup %11823  ;;  %v2008_v22 = vadd.f32 %v2007_v24, %v1960_v21  ;;  %v2009_v27 = vpop.f32.mrb[45].mxu1 }
 0x8e1   :  { %v2076_v7 = vpop.f32.mrb[49].mxu0  ;;  %v11826_v48 = vpop.eup %11825  ;;  %v2010_v33 = vadd.f32 %v2009_v27, %v1962_v55  ;;  %v1904_v39 = vadd.f32 1.0, %v11824_v38 }
 0x8e2   :  { %v2011_v32 = vpop.f32.mrb[46].mxu1  ;;  %v2078_v54 = vpop.f32.mrb[50].mxu0  ;;  %v1905_v56 = vadd.f32 1.0, %v11826_v48  ;;  %v2014_v26 = vadd.f32 %v2008_v22, %v12924_v16 }
 0x8e3   :  { %v2012_v40 = vpop.f32.mrb[47].mxu1  ;;  %v2079_v9 = vpop.f32.mrb[51].mxu0  ;;  %v2015_v3 = vadd.f32 %v2010_v33, %v12927_v45 }
 0x8e4   :  { %11827 = vrcp.f32 %v1905_v56  ;;  %v10226_v34 = vmul.f32 -1.442695, %v2014_v26 }
 0x8e5   :  { %v10227_v50 = vmul.f32 -1.442695, %v2015_v3 }
 0x8e6   :  { %11829 = vpow2.f32 %v10226_v34 }
 0x8e7   :  { %11831 = vpow2.f32 %v10227_v50 }
 0x8e8   :  { %11833 = vrcp.f32 %v1904_v39 }
 0x8ee   :  { %v13096_v5 = vpop.eup %11827 }
 0x8ef   :  { %v2121_v21 = vpop.f32.mrb[48].mxu1  ;;  %v2188_v29 = vpop.f32.mrb[52].mxu0  ;;  %v1910_v13 = vmul.f32 2.0, %v13096_v5 }
 0x8f0   :  { %v11830_v35 = vpop.eup %11829  ;;  %v2122_v55 = vadd.f32 %v2121_v21, %v2074_v30  ;;  %v2123_v16 = vpop.f32.mrb[49].mxu1 }
 0x8f1   :  { %v2190_v19 = vpop.f32.mrb[53].mxu0  ;;  %v11832_v23 = vpop.eup %11831  ;;  %v2124_v51 = vadd.f32 %v2123_v16, %v2076_v7  ;;  %v10223_v20 = vadd.f32 -1.0, %v1910_v13  ;;  %v2022_v27 = vadd.f32 1.0, %v11830_v35 }
 0x8f2   :  { %v2125_v45 = vpop.f32.mrb[50].mxu1  ;;  %v2192_v42 = vpop.f32.mrb[54].mxu0  ;;  %v2023_v37 = vadd.f32 1.0, %v11832_v23  ;;  %v2128_v36 = vadd.f32 %v2122_v55, %v12746_v18 }
 0x8f3   :  { %v13099_v53 = vpop.eup %11833  ;;  %v2126_v17 = vpop.f32.mrb[51].mxu1  ;;  %v2129_v38 = vadd.f32 %v2124_v51, %v12749_v1 }
 0x8f4   :  { %v2193_v24 = vpop.f32.mrb[55].mxu0  ;;  %v1917_v22 = vmul.f32 %v13099_v53, %v10223_v20  ;;  %11835 = vrcp.f32 %v2023_v37  ;;  %v10231_v30 = vmul.f32 -1.442695, %v2128_v36 }
 0x8f5   :  { %v10232_v48 = vmul.f32 -1.442695, %v2129_v38 }
 0x8f6   :  { %1919 = vrot.lane.b32.xlu1 %v1917_v22, %s12373_s14  ;;  %11837 = vpow2.f32 %v10231_v30 }
 0x8f7   :  { %11839 = vpow2.f32 %v10232_v48 }
 0x8f8   :  { %11841 = vrcp.f32 %v2022_v27 }
 0x8fe   :  { %v13105_v7 = vpop.eup %11835 }
 0x8ff   :  { %v2235_v33 = vpop.f32.mrb[52].mxu1  ;;  %v2304_v32 = vpop.f32.mrb[56].mxu0  ;;  %v2028_v18 = vmul.f32 2.0, %v13105_v7 }
 0x900   :  { %v11838_v54 = vpop.eup %11837  ;;  %v2236_v56 = vadd.f32 %v2235_v33, %v2188_v29  ;;  %v2237_v1 = vpop.f32.mrb[53].mxu1 }
 0x901   :  { %v2306_v26 = vpop.f32.mrb[57].mxu0  ;;  %v11840_v40 = vpop.eup %11839  ;;  %v2238_v9 = vadd.f32 %v2237_v1, %v2190_v19  ;;  %v10228_v34 = vadd.f32 -1.0, %v2028_v18  ;;  %v2136_v51 = vadd.f32 1.0, %v11838_v54 }
 0x902   :  { %v2239_v3 = vpop.f32.mrb[54].mxu1  ;;  %v2308_v39 = vpop.f32.mrb[58].mxu0  ;;  %v2137_v21 = vadd.f32 1.0, %v11840_v40  ;;  %v2242_v13 = vadd.f32 %v2236_v56, %v12612_v44 }
 0x903   :  { %v13108_v50 = vpop.eup %11841  ;;  %v2240_v35 = vpop.f32.mrb[55].mxu1  ;;  %v2243_v16 = vadd.f32 %v2238_v9, %v12615_v47 }
 0x904   :  { %v2309_v55 = vpop.f32.mrb[59].mxu0  ;;  %v2031_v23 = vmul.f32 %v13108_v50, %v10228_v34  ;;  %11843 = vrcp.f32 %v2137_v21  ;;  %v10236_v29 = vmul.f32 -1.442695, %v2242_v13 }
 0x905   :  { %v10237_v45 = vmul.f32 -1.442695, %v2243_v16 }
 0x906   :  { %2033 = vrot.lane.b32.xlu0 %v2031_v23, %s12373_s14  ;;  %11845 = vpow2.f32 %v10236_v29  ;;  %v11129_v23 = vld [vmem:[#allocation6 + $0x140] ss:$8 sps:$4 sm:$0xff]   ;;  %v11134_v29 = vld [vmem:[#allocation6 + $0x154] ss:$8 sps:$4 sm:$0xff]  }
 0x907   :  { %11847 = vpow2.f32 %v10237_v45  ;;  %v11141_v45 = vld [vmem:[#allocation3 + $0x140] ss:$8 sps:$4 sm:$0xff]  }
 0x908   :  { %11849 = vrcp.f32 %v2136_v51  ;;  %v11131_v51 = vld [vmem:[#allocation6 + $0x144] ss:$8 sps:$4 sm:$0xff]  }
 0x909   :  { %2443 = vmatprep.subr.bf16.mxu0 %v11131_v51  ;;  %v11161_v51 = vld [vmem:[#allocation6 + $0xe4] ss:$8 sps:$4 sm:$0xff]  }
 0x90a   :  { %2444 = vmatpush1.bf16.msra.mxu0 %v11129_v23 }
 0x90b   :  { %2445 = vmatprep.subr.bf16.mxu0 %v11134_v29  ;;  %v11159_v29 = vld [vmem:[#allocation6 + $0xe0] ss:$8 sps:$4 sm:$0xff]  }
 0x90e   :  { %v13114_v19 = vpop.eup %11843 }
 0x90f   :  { %v2348_v42 = vpop.f32.mrb[56].mxu1  ;;  %v2142_v44 = vmul.f32 2.0, %v13114_v19 }
 0x910   :  { %v11846_v20 = vpop.eup %11845  ;;  %v2349_v37 = vadd.f32 %v2348_v42, %v2304_v32  ;;  %v2350_v36 = vpop.f32.mrb[57].mxu1  ;;  %v11132_v42 = vld [vmem:[#allocation6 + $0x150] ss:$8 sps:$4 sm:$0xff]  }
 0x911   :  { %v11848_v47 = vpop.eup %11847  ;;  %v2351_v17 = vadd.f32 %v2350_v36, %v2306_v26  ;;  %v2352_v24 = vpop.f32.mrb[58].mxu1  ;;  %v10233_v38 = vadd.f32 -1.0, %v2142_v44  ;;  %v2250_v54 = vadd.f32 1.0, %v11846_v20  ;;  %v11143_v44 = vld [vmem:[#allocation3 + $0x144] ss:$8 sps:$4 sm:$0xff]   ;;  %2446 = vmatpush1.bf16.msra.mxu0 %v11132_v42 }
 0x912   :  { %v13117_v22 = vpop.eup %11849  ;;  %v2251_v27 = vadd.f32 1.0, %v11848_v47  ;;  %v2355_v30 = vadd.f32 %v2349_v37, %v12478_v28  ;;  %v2353_v48 = vpop.f32.mrb[59].mxu1  ;;  %v11137_v20 = vld [vmem:[#allocation6 + $0x164] ss:$8 sps:$4 sm:$0xff]   ;;  %v11146_v37 = vld [vmem:[#allocation3 + $0x154] ss:$8 sps:$4 sm:$0xff]   ;;  %2530 = vmatprep.subr.bf16.mxu1 %v11143_v44 }
 0x913   :  { %v2356_v33 = vadd.f32 %v2351_v17, %v12481_v31  ;;  %v2145_v18 = vmul.f32 %v13117_v22, %v10233_v38  ;;  %2531 = vmatpush1.bf16.msra.mxu1 %v11141_v45  ;;  %v11144_v36 = vld [vmem:[#allocation3 + $0x150] ss:$8 sps:$4 sm:$0xff]   ;;  %v11135_v47 = vld [vmem:[#allocation6 + $0x160] ss:$8 sps:$4 sm:$0xff]   ;;  %v11149_v17 = vld [vmem:[#allocation3 + $0x164] ss:$8 sps:$4 sm:$0xff]   ;;  %2447 = vmatprep.subr.bf16.mxu0 %v11137_v20 }
 0x914   :  { %11851 = vrcp.f32 %v2251_v27  ;;  %v10242_v56 = vmul.f32 -1.442695, %v2355_v30  ;;  %2532 = vmatprep.subr.bf16.mxu1 %v11146_v37  ;;  %v11140_v24 = vld [vmem:[#allocation6 + $0x174] ss:$8 sps:$4 sm:$0xff]   ;;  %v11147_v38 = vld [vmem:[#allocation3 + $0x160] ss:$8 sps:$4 sm:$0xff]  }
 0x915   :  { %v10243_v1 = vmul.f32 -1.442695, %v2356_v33  ;;  %2147 = vrot.lane.b32.xlu1 %v2145_v18, %s12373_s14  ;;  %2448 = vmatpush1.bf16.msra.mxu0 %v11135_v47  ;;  %v11138_v27 = vld [vmem:[#allocation6 + $0x170] ss:$8 sps:$4 sm:$0xff]   ;;  %v10076_v30 = vld [vmem:[%s14375_s4 + $0xa] sm:$0x3] }
 0x916   :  { %11853 = vpow2.f32 %v10242_v56  ;;  %v11152_v48 = vld [vmem:[#allocation3 + $0x174] ss:$8 sps:$4 sm:$0xff]   ;;  %2449 = vmatprep.subr.bf16.mxu0 %v11140_v24  ;;  %v2390_v33 = vpack.c.bf16 %v10076_v30, %v10076_v30  ;;  %v11150_v18 = vld [vmem:[#allocation3 + $0x170] ss:$8 sps:$4 sm:$0xff]   ;;  %v11170_v42 = vld [vmem:[#allocation6 + $0x84] ss:$8 sps:$4 sm:$0xff]  }
 0x917   :  { %11855 = vpow2.f32 %v10243_v1  ;;  %2533 = vmatpush1.bf16.msra.mxu1 %v11144_v36  ;;  %v11164_v45 = vld [vmem:[#allocation6 + $0xf4] ss:$8 sps:$4 sm:$0xff]   ;;  %v11165_v44 = vld [vmem:[#allocation3 + $0xc0] ss:$8 sps:$4 sm:$0xff]   ;;  %v11179_v36 = vld [vmem:[#allocation3 + $0xe4] ss:$8 sps:$4 sm:$0xff]  }
 0x918   :  { %11857 = vrcp.f32 %v2250_v54  ;;  %2534 = vmatprep.subr.bf16.mxu1 %v11149_v17  ;;  %v1914_v54 = vpop.permute.xlu0 %1913  ;;  %v11173_v20 = vld [vmem:[#allocation3 + $0xd4] ss:$8 sps:$4 sm:$0xff]   ;;  %v11177_v47 = vld [vmem:[#allocation3 + $0xe0] ss:$8 sps:$4 sm:$0xff]   ;;  %v11186_v30 = vld [vmem:[#allocation6 + $0xb0] ss:$8 sps:$4 sm:$0xff]  }
 0x919   :  { %2450 = vmatpush1.bf16.msra.mxu0 %v11138_v27  ;;  %v11180_v17 = vld [vmem:[#allocation6 + $0xa0] ss:$8 sps:$4 sm:$0xff]   ;;  %v11185_v24 = vld [vmem:[#allocation3 + $0xf4] ss:$8 sps:$4 sm:$0xff]   ;;  %v11183_v27 = vld [vmem:[#allocation3 + $0xf0] ss:$8 sps:$4 sm:$0xff]  }
 0x91a   :  { %2704 = vmatprep.subr.bf16.mxu0 %v12967_v60  ;;  %v11155_v60 = vld [vmem:[#allocation6 + $0xc4] ss:$8 sps:$4 sm:$0xff]   ;;  %s12381_s4 = smov [#allocation8]  }
 0x91b   :  { %2535 = vmatpush1.bf16.msra.mxu1 %v11147_v38  ;;  %v11188_v38 = vld [vmem:[#allocation6 + $0xb4] ss:$8 sps:$4 sm:$0xff]   ;;  %s10062_s26 = sshll.u32 %s12381_s4, 4  ;;  %s10063_s26 = int_to_ptr.vmem [resolvable:$true] %s10062_s26 }
 0x91c   :  { %2536 = vmatprep.subr.bf16.mxu1 %v11152_v48  ;;  %10253 = vmatmul.mubr.msk.bf16.vlgmr.msra.gmra.mrb[60].mxu0 %vm142_vm0, %v2390_v33  ;;  %v11191_v48 = vld [vmem:[#allocation3 + $0x84] ss:$8 sps:$4 sm:$0xff]   ;;  %p12345_p3 = scmp.lt.s32.totalorder %s10063_s26, %s10063_s26 }
 0x91d   :  { %2705 = vmatpush1.bf16.msra.mxu0 %v12965_v49  ;;  %2736 = vmatprep.mubr.bf16.mxu0 %v14444_v63  ;;  %v1916_v49 = vmul.f32 %v13099_v53, %v1914_v54  ;;  %v11194_v33 = vld [vmem:[#allocation6 + $0x44] ss:$8 sps:$4 sm:$0xff]   ;;  %v11197_v54 = vld [vmem:[#allocation3 + $0x94] ss:$8 sps:$4 sm:$0xff]  }
 0x91e   :  { %v13123_v32 = vpop.eup %11851  ;;  %2706 = vmatprep.subr.bf16.mxu0 %v12969_v0 }
 0x91f   :  { %v2256_v26 = vmul.f32 2.0, %v13123_v32  ;;  %2537 = vmatpush1.bf16.msra.mxu1 %v11150_v18  ;;  %v11189_v18 = vld [vmem:[#allocation3 + $0x80] ss:$8 sps:$4 sm:$0xff]  }
 0x920   :  { %v11854_v40 = vpop.eup %11853  ;;  %2791 = vmatprep.subr.bf16.mxu1 %v12977_v58  ;;  %v2030_v58 = vmul.f32 %v13108_v50, %v13029_v25 }
 0x921   :  { %v11856_v28 = vpop.eup %11855  ;;  %v10238_v9 = vadd.f32 -1.0, %v2256_v26  ;;  %v2363_v34 = vadd.f32 1.0, %v11854_v40  ;;  %2707 = vmatpush1.bf16.msra.mxu0 %v12975_v46  ;;  %v2144_v26 = vmul.f32 %v13117_v22, %v13035_v52 }
 0x922   :  { %v13126_v3 = vpop.eup %11857  ;;  %v2364_v31 = vadd.f32 1.0, %v11856_v28  ;;  %2708 = vmatprep.subr.bf16.mxu0 %v12980_v59 }
 0x923   :  { %v2259_v39 = vmul.f32 %v13126_v3, %v10238_v9  ;;  %v2258_v9 = vmul.f32 %v13126_v3, %v13042_v11 }
 0x924   :  { %11859 = vrcp.f32 %v2364_v31 }
 0x925   :  { %2261 = vrot.lane.b32.xlu0 %v2259_v39, %s12373_s14  ;;  %11861 = vrcp.f32 %v2363_v34  ;;  %2709 = vmatpush1.bf16.msra.mxu0 %v12989_v2 }
 0x926   :  { %2710 = vmatprep.subr.bf16.mxu0 %v12995_v10 }
 0x929   :  { %2711 = vmatpush1.bf16.msra.mxu0 %v13001_v14 }
 0x92a   :  { %2926 = vmatprep.subr.bf16.mxu0 %v11155_v60  ;;  %v11192_v60 = vld [vmem:[#allocation6 + $0x40] ss:$8 sps:$4 sm:$0xff]  }
 0x92e   :  { %v13130_v21 = vpop.eup %11859 }
 0x92f   :  { %v2369_v13 = vmul.f32 2.0, %v13130_v21  ;;  %v13133_v55 = vpop.eup %11861 }
 0x930   :  { %v2371_v34 = vmul.f32 %v13133_v55, %v13049_v57  ;;  %v11153_v57 = vld [vmem:[#allocation6 + $0xc0] ss:$8 sps:$4 sm:$0xff]  }
 0x931   :  { %v10244_v35 = vadd.f32 -1.0, %v2369_v13 }
 0x933   :  { %v2372_v16 = vmul.f32 %v13133_v55, %v10244_v35  ;;  %v11158_v55 = vld [vmem:[#allocation6 + $0xd4] ss:$8 sps:$4 sm:$0xff]  }
 0x935   :  { %2374 = vrot.lane.b32.xlu1 %v2372_v16, %s12373_s14 }
 0x968   :  { %v1920_v56 = vpop.permute.xlu1 %1919 }
 0x969   :  { %v13152_v1 = vadd.f32 %v1920_v56, %v1916_v49  ;;  %v11200_v49 = vld [vmem:[#allocation6 + $0x54] ss:$8 sps:$4 sm:$0xff]  }
 0x96b   :  { %11863 = vtanh.f32 %v13152_v1 }
 0x975   :  { %v11864_v0 = vpop.eup %11863 }
 0x976   :  { %v1924_v46 = vmul.f32 %v11864_v0, %v13096_v5  ;;  %v11195_v0 = vld [vmem:[#allocation3 + $0x90] ss:$8 sps:$4 sm:$0xff]  }
 0x978   :  { %v2034_v59 = vpop.permute.xlu0 %2033  ;;  %v2380_v2 = vpack.c.bf16 %v1924_v46, %v1924_v46  ;;  %v11198_v46 = vld [vmem:[#allocation6 + $0x50] ss:$8 sps:$4 sm:$0xff]  }
 0x979   :  { %v13158_v10 = vadd.f32 %v2034_v59, %v2030_v58  ;;  %v11203_v58 = vld [vmem:[#allocation3 + $0xa4] ss:$8 sps:$4 sm:$0xff]  }
 0x97a   :  { %2485 = vrot.lane.b32.xlu0 %v2380_v2, %s12373_s14  ;;  %v11206_v59 = vld [vmem:[#allocation6 + $0x64] ss:$8 sps:$4 sm:$0xff]   ;;  %v11201_v2 = vld [vmem:[#allocation3 + $0xa0] ss:$8 sps:$4 sm:$0xff]  }
 0x97b   :  { %11865 = vtanh.f32 %v13158_v10 }
 0x985   :  { %v11866_v14 = vpop.eup %11865 }
 0x986   :  { %v2038_v53 = vmul.f32 %v11866_v14, %v13105_v7  ;;  %v11204_v14 = vld [vmem:[#allocation6 + $0x60] ss:$8 sps:$4 sm:$0xff]  }
 0x987   :  { %v2148_v40 = vpop.permute.xlu1 %2147 }
 0x988   :  { %v2647_v28 = vpack.c.bf16 %v2038_v53, %v2038_v53  ;;  %v13165_v5 = vadd.f32 %v2148_v40, %v2144_v26  ;;  %v11209_v53 = vld [vmem:[#allocation3 + $0xb4] ss:$8 sps:$4 sm:$0xff]   ;;  %v11207_v40 = vld [vmem:[#allocation3 + $0xb0] ss:$8 sps:$4 sm:$0xff]  }
 0x989   :  { %v11212_v26 = vld [vmem:[#allocation6 + $0x74] ss:$8 sps:$4 sm:$0xff]  }
 0x98a   :  { %2746 = vrot.lane.b32.xlu1 %v2647_v28, %s12373_s14  ;;  %11867 = vtanh.f32 %v13165_v5  ;;  %v11210_v28 = vld [vmem:[#allocation6 + $0x70] ss:$8 sps:$4 sm:$0xff]  }
 0x994   :  { %v11868_v25 = vpop.eup %11867 }
 0x995   :  { %v2152_v50 = vmul.f32 %v11868_v25, %v13114_v19  ;;  %v11215_v25 = vld [vmem:[#allocation3 + $0x44] ss:$8 sps:$4 sm:$0xff]  }
 0x997   :  { %v2262_v31 = vpop.permute.xlu0 %2261  ;;  %v2869_v39 = vpack.c.bf16 %v2152_v50, %v2152_v50  ;;  %v11218_v50 = vld [vmem:[#allocation6 + $0x4] ss:$8 sps:$4 sm:$0xff]  }
 0x998   :  { %v13172_v7 = vadd.f32 %v2262_v31, %v2258_v9  ;;  %v11213_v9 = vld [vmem:[#allocation3 + $0x40] ss:$8 sps:$4 sm:$0xff]  }
 0x999   :  { %2968 = vrot.lane.b32.xlu0 %v2869_v39, %s12373_s14  ;;  %v11216_v31 = vld [vmem:[#allocation6] ss:$8 sps:$4 sm:$0xff]   ;;  %v11221_v39 = vld [vmem:[#allocation3 + $0x54] ss:$8 sps:$4 sm:$0xff]  }
 0x99a   :  { %11869 = vtanh.f32 %v13172_v7 }
 0x9a4   :  { %v11870_v52 = vpop.eup %11869 }
 0x9a5   :  { %v2266_v22 = vmul.f32 %v11870_v52, %v13123_v32  ;;  %v10081_v32 = vld [vmem:[%s14376_s5 + $0xa] sm:$0x3]  ;;  %v11224_v52 = vld [vmem:[#allocation6 + $0x14] ss:$8 sps:$4 sm:$0xff]   ;;  %s12340_s5 = scalar_lea.vmem %s10063_s26, 32 }
 0x9a6   :  { %p12341_p2 = scmp.ne.s32.totalorder %s10063_s26, %s12340_s5  ;;  %p12346_p4 = scmp.lt.s32.totalorder %s12340_s5, %s12340_s5 }
 0x9a7   :  { %v2375_v13 = vpop.permute.xlu1 %2374  ;;  %v3091_v35 = vpack.c.bf16 %v2266_v22, %v2266_v22 }
 0x9a8   :  { %v13179_v19 = vadd.f32 %v2375_v13, %v2371_v34  ;;  %v11219_v34 = vld [vmem:[#allocation3 + $0x50] ss:$8 sps:$4 sm:$0xff]   ;;  %p12347_p5 = por %p12346_p4, %p12345_p3 }
 0x9a9   :  { %3190 = vrot.lane.b32.xlu1 %v3091_v35, %s12373_s14  ;;  %v11222_v13 = vld [vmem:[#allocation6 + $0x10] ss:$8 sps:$4 sm:$0xff]   ;;  %v11227_v35 = vld [vmem:[#allocation3 + $0x64] ss:$8 sps:$4 sm:$0xff]  }
 0x9aa   :  { %11871 = vtanh.f32 %v13179_v19  ;;  %p12348_p6 = pnand %p12347_p5, %p12341_p2 }
 0x9ad   :  { %2601 = vrot.lane.b32.xlu1 %v10081_v32, %s12373_s14 }
 0x9b4   :  { %v11872_v11 = vpop.eup %11871 }
 0x9b5   :  { %v2379_v3 = vmul.f32 %v11872_v11, %v13130_v21  ;;  %v11156_v21 = vld [vmem:[#allocation6 + $0xd0] ss:$8 sps:$4 sm:$0xff]   ;;  %v11230_v11 = vld [vmem:[#allocation6 + $0x24] ss:$8 sps:$4 sm:$0xff]  }
 0x9b7   :  { %v3313_v16 = vpack.c.bf16 %v2379_v3, %v2379_v3 }
 0x9b9   :  { %3412 = vrot.lane.b32.xlu0 %v3313_v16, %s12373_s14 }
 0x9ec   :  { %v2486_v23 = vpop.permute.xlu0 %2485 }
 0x9ed   :  { %10262 = vmatmul.mubr.msk.bf16.vlgmr.msra.gmra.mrb[60].mxu1 %vm142_vm0, %v2486_v23  ;;  %10278 = vmatmul.mubr.msk.bf16.vlgmr.msra.gmra.mrb[64].mxu0 %vm142_vm0, %v2486_v23 }
 0x9ee   :  { %2792 = vmatpush1.bf16.msra.mxu1 %v12972_v4  ;;  %2927 = vmatpush1.bf16.msra.mxu0 %v11153_v57  ;;  %v11162_v4 = vld [vmem:[#allocation6 + $0xf0] ss:$8 sps:$4 sm:$0xff]   ;;  %v11225_v57 = vld [vmem:[#allocation3 + $0x60] ss:$8 sps:$4 sm:$0xff]  }
 0x9ef   :  { %2793 = vmatprep.subr.bf16.mxu1 %v12982_v61  ;;  %2928 = vmatprep.subr.bf16.mxu0 %v11158_v55  ;;  %v11167_v61 = vld [vmem:[#allocation3 + $0xc4] ss:$8 sps:$4 sm:$0xff]   ;;  %v2477_v3 = vpop.f32.mrb[60].mxu0  ;;  %v11228_v55 = vld [vmem:[#allocation6 + $0x20] ss:$8 sps:$4 sm:$0xff]  }
 0x9f0   :  { %2823 = vmatprep.mubr.bf16.mxu1 %v14444_v63  ;;  %2958 = vmatprep.mubr.bf16.mxu0 %v14444_v63  ;;  %v2479_v16 = vpop.f32.mrb[61].mxu0 }
 0x9f1   :  { %v2481_v32 = vpop.f32.mrb[62].mxu0 }
 0x9f2   :  { %2794 = vmatpush1.bf16.msra.mxu1 %v12986_v62  ;;  %2929 = vmatpush1.bf16.msra.mxu0 %v11156_v21  ;;  %v11168_v62 = vld [vmem:[#allocation6 + $0x80] ss:$8 sps:$4 sm:$0xff]   ;;  %v2482_v23 = vpop.f32.mrb[63].mxu0  ;;  %v11233_v21 = vld [vmem:[#allocation3 + $0x74] ss:$8 sps:$4 sm:$0xff]  }
 0x9f3   :  { %2795 = vmatprep.subr.bf16.mxu1 %v12992_v6  ;;  %2930 = vmatprep.subr.bf16.mxu0 %v11161_v51  ;;  %v11176_v6 = vld [vmem:[#allocation6 + $0x94] ss:$8 sps:$4 sm:$0xff]  }
 0x9f4   :  { %v11236_v51 = vld [vmem:[#allocation6 + $0x34] ss:$8 sps:$4 sm:$0xff]  }
 0x9f6   :  { %2796 = vmatpush1.bf16.msra.mxu1 %v12998_v12  ;;  %2931 = vmatpush1.bf16.msra.mxu0 %v11159_v29  ;;  %v11171_v12 = vld [vmem:[#allocation3 + $0xd0] ss:$8 sps:$4 sm:$0xff]  }
 0x9f7   :  { %2797 = vmatprep.subr.bf16.mxu1 %v13007_v41  ;;  %2932 = vmatprep.subr.bf16.mxu0 %v11164_v45  ;;  %v11174_v41 = vld [vmem:[#allocation6 + $0x90] ss:$8 sps:$4 sm:$0xff]  }
 0x9f8   :  { %v11231_v29 = vld [vmem:[#allocation3 + $0x70] ss:$8 sps:$4 sm:$0xff]  }
 0x9f9   :  { %v11234_v45 = vld [vmem:[#allocation6 + $0x30] ss:$8 sps:$4 sm:$0xff]  }
 0x9fa   :  { %2798 = vmatpush1.bf16.msra.mxu1 %v13011_v8  ;;  %2933 = vmatpush1.bf16.msra.mxu0 %v11162_v4  ;;  %v11182_v8 = vld [vmem:[#allocation6 + $0xa4] ss:$8 sps:$4 sm:$0xff]  }
 0x9fb   :  { %3013 = vmatprep.subr.bf16.mxu1 %v11167_v61  ;;  %3148 = vmatprep.subr.bf16.mxu0 %v11170_v42  ;;  %v11239_v4 = vld [vmem:[#allocation3 + $0x4] ss:$8 sps:$4 sm:$0xff]   ;;  %v11237_v61 = vld [vmem:[#allocation3] ss:$8 sps:$4 sm:$0xff]   ;;  %v11242_v42 = vld [vmem:[#allocation3 + $0x14] ss:$8 sps:$4 sm:$0xff]  }
 0x9fc   :  { %v2747_v37 = vpop.permute.xlu1 %2746 }
 0x9fd   :  { %10287 = vmatmul.mubr.msk.bf16.vlgmr.msra.gmra.mrb[64].mxu1 %vm142_vm0, %v2747_v37  ;;  %10300 = vmatmul.mubr.msk.bf16.vlgmr.msra.gmra.mrb[68].mxu0 %vm142_vm0, %v2747_v37  ;;  %v11248_v37 = vld [vmem:[#allocation3 + $0x34] ss:$8 sps:$4 sm:$0xff]  }
 0x9fe   :  { %3014 = vmatpush1.bf16.msra.mxu1 %v11165_v44  ;;  %3149 = vmatpush1.bf16.msra.mxu0 %v11168_v62  ;;  %v11240_v62 = vld [vmem:[#allocation3 + $0x10] ss:$8 sps:$4 sm:$0xff]  }
 0x9ff   :  { %3015 = vmatprep.subr.bf16.mxu1 %v11173_v20  ;;  %3150 = vmatprep.subr.bf16.mxu0 %v11176_v6  ;;  %v11245_v20 = vld [vmem:[#allocation3 + $0x24] ss:$8 sps:$4 sm:$0xff]   ;;  %v11243_v6 = vld [vmem:[#allocation3 + $0x20] ss:$8 sps:$4 sm:$0xff]  }
 0xa00   :  { %3045 = vmatprep.mubr.bf16.mxu1 %v14444_v63  ;;  %3180 = vmatprep.mubr.bf16.mxu0 %v14444_v63 }
 0xa02   :  { %3016 = vmatpush1.bf16.msra.mxu1 %v11171_v12  ;;  %3151 = vmatpush1.bf16.msra.mxu0 %v11174_v41  ;;  %v11246_v12 = vld [vmem:[#allocation3 + $0x30] ss:$8 sps:$4 sm:$0xff]   ;;  %v10358_v41 = vld [vmem:[%s14371_s0 + $0xa] sm:$0x3] }
 0xa03   :  { %3017 = vmatprep.subr.bf16.mxu1 %v11179_v36  ;;  %3152 = vmatprep.subr.bf16.mxu0 %v11182_v8  ;;  %v3537_v36 = vpack.c.bf16 %v10358_v41, %v10358_v41  ;;  %v10263_v8 = vld [vmem:[%s14374_s3 + $0xa] sm:$0x3] }
 0xa06   :  { %3018 = vmatpush1.bf16.msra.mxu1 %v11177_v47  ;;  %3153 = vmatpush1.bf16.msra.mxu0 %v11180_v17  ;;  %v2577_v47 = vrot.slane %v10263_v8, %v14463_v15 }
 0xa07   :  { %3019 = vmatprep.subr.bf16.mxu1 %v11185_v24  ;;  %3154 = vmatprep.subr.bf16.mxu0 %v11188_v38  ;;  %v2581_v38 = vrot.slane %v10263_v8, %v14464_v43 }
 0xa0a   :  { %3020 = vmatpush1.bf16.msra.mxu1 %v11183_v27  ;;  %3155 = vmatpush1.bf16.msra.mxu0 %v11186_v30 }
 0xa0b   :  { %3235 = vmatprep.subr.bf16.mxu1 %v11191_v48  ;;  %3370 = vmatprep.subr.bf16.mxu0 %v11194_v33  ;;  %v2969_v56 = vpop.permute.xlu0 %2968 }
 0xa0d   :  { %10309 = vmatmul.mubr.msk.bf16.vlgmr.msra.gmra.mrb[68].mxu1 %vm142_vm0, %v2969_v56  ;;  %10322 = vmatmul.mubr.msk.bf16.vlgmr.msra.gmra.mrb[72].mxu0 %vm142_vm0, %v2969_v56 }
 0xa0e   :  { %3236 = vmatpush1.bf16.msra.mxu1 %v11189_v18  ;;  %3371 = vmatpush1.bf16.msra.mxu0 %v11192_v60 }
 0xa0f   :  { %3237 = vmatprep.subr.bf16.mxu1 %v11197_v54  ;;  %3372 = vmatprep.subr.bf16.mxu0 %v11200_v49 }
 0xa10   :  { %3267 = vmatprep.mubr.bf16.mxu1 %v14444_v63  ;;  %3402 = vmatprep.mubr.bf16.mxu0 %v14444_v63 }
 0xa12   :  { %3238 = vmatpush1.bf16.msra.mxu1 %v11195_v0  ;;  %3373 = vmatpush1.bf16.msra.mxu0 %v11198_v46 }
 0xa13   :  { %3239 = vmatprep.subr.bf16.mxu1 %v11203_v58  ;;  %3374 = vmatprep.subr.bf16.mxu0 %v11206_v59  ;;  %v10288_v59 = vld [vmem:[%s14374_s3 + $0x8] sm:$0x3] }
 0xa16   :  { %3240 = vmatpush1.bf16.msra.mxu1 %v11201_v2  ;;  %3375 = vmatpush1.bf16.msra.mxu0 %v11204_v14  ;;  %v2837_v2 = vrot.slane %v10288_v59, %v14463_v15 }
 0xa17   :  { %3241 = vmatprep.subr.bf16.mxu1 %v11209_v53  ;;  %3376 = vmatprep.subr.bf16.mxu0 %v11212_v26  ;;  %v2841_v26 = vrot.slane %v10288_v59, %v14464_v43 }
 0xa1a   :  { %3242 = vmatpush1.bf16.msra.mxu1 %v11207_v40  ;;  %3377 = vmatpush1.bf16.msra.mxu0 %v11210_v28 }
 0xa1b   :  { %3457 = vmatprep.subr.bf16.mxu1 %v11215_v25  ;;  %3594 = vmatprep.subr.bf16.mxu0 %v11218_v50  ;;  %v3191_v22 = vpop.permute.xlu1 %3190 }
 0xa1d   :  { %10331 = vmatmul.mubr.msk.bf16.vlgmr.msra.gmra.mrb[72].mxu1 %vm142_vm0, %v3191_v22  ;;  %10344 = vmatmul.mubr.msk.bf16.vlgmr.msra.gmra.mrb[76].mxu0 %vm142_vm0, %v3191_v22 }
 0xa1e   :  { %3458 = vmatpush1.bf16.msra.mxu1 %v11213_v9  ;;  %3595 = vmatpush1.bf16.msra.mxu0 %v11216_v31 }
 0xa1f   :  { %3459 = vmatprep.subr.bf16.mxu1 %v11221_v39  ;;  %3596 = vmatprep.subr.bf16.mxu0 %v11224_v52 }
 0xa20   :  { %3489 = vmatprep.mubr.bf16.mxu1 %v14444_v63  ;;  %3626 = vmatprep.mubr.bf16.mxu0 %v14444_v63 }
 0xa22   :  { %3460 = vmatpush1.bf16.msra.mxu1 %v11219_v34  ;;  %3597 = vmatpush1.bf16.msra.mxu0 %v11222_v13 }
 0xa23   :  { %3461 = vmatprep.subr.bf16.mxu1 %v11227_v35  ;;  %3598 = vmatprep.subr.bf16.mxu0 %v11230_v11 }
 0xa26   :  { %3462 = vmatpush1.bf16.msra.mxu1 %v11225_v57  ;;  %3599 = vmatpush1.bf16.msra.mxu0 %v11228_v55  ;;  %v10310_v57 = vld [vmem:[%s14374_s3 + $0x6] sm:$0x3] }
 0xa27   :  { %3463 = vmatprep.subr.bf16.mxu1 %v11233_v21  ;;  %3600 = vmatprep.subr.bf16.mxu0 %v11236_v51  ;;  %v3059_v23 = vrot.slane %v10310_v57, %v14463_v15 }
 0xa2a   :  { %3464 = vmatpush1.bf16.msra.mxu1 %v11231_v29  ;;  %3601 = vmatpush1.bf16.msra.mxu0 %v11234_v45  ;;  %v3063_v29 = vrot.slane %v10310_v57, %v14464_v43 }
 0xa2b   :  { %3678 = vmatprep.subr.bf16.mxu1 %v11239_v4  ;;  %v3413_v44 = vpop.permute.xlu0 %3412 }
 0xa2d   :  { %10353 = vmatmul.mubr.msk.bf16.vlgmr.msra.gmra.mrb[76].mxu1 %vm142_vm0, %v3413_v44  ;;  %10367 = vmatmul.mubr.msk.bf16.vlgmr.msra.gmra.mrb[80].mxu0 %vm142_vm0, %v3413_v44 }
 0xa2e   :  { %3679 = vmatpush1.bf16.msra.mxu1 %v11237_v61  ;;  %3710 = vmatprep.mubr.bf16.mxu1 %v14444_v63 }
 0xa2f   :  { %3680 = vmatprep.subr.bf16.mxu1 %v11242_v42  ;;  %3852 = vmatprep.mubr.bf16.mxu0 %v14444_v63 }
 0xa32   :  { %3681 = vmatpush1.bf16.msra.mxu1 %v11240_v62 }
 0xa33   :  { %3682 = vmatprep.subr.bf16.mxu1 %v11245_v20 }
 0xa36   :  { %3683 = vmatpush1.bf16.msra.mxu1 %v11243_v6 }
 0xa37   :  { %3684 = vmatprep.subr.bf16.mxu1 %v11248_v37 }
 0xa3a   :  { %3685 = vmatpush1.bf16.msra.mxu1 %v11246_v12 }
 0xa3d   :  { %10376 = vmatmul.mubr.msk.bf16.vlgmr.msra.gmra.mrb[80].mxu1 %vm142_vm0, %v3537_v36 }
 0xa3e   :  { %3939 = vmatprep.mubr.bf16.mxu1 %v14444_v63 }
 0xac0   :  { %v2564_v17 = vpop.f32.mrb[60].mxu1  ;;  %v2738_v24 = vpop.f32.mrb[64].mxu0 }
 0xac1   :  { %v2565_v27 = vadd.f32 %v2564_v17, %v2477_v3  ;;  %v2566_v30 = vpop.f32.mrb[61].mxu1  ;;  %v2740_v48 = vpop.f32.mrb[65].mxu0 }
 0xac2   :  { %v2567_v33 = vadd.f32 %v2566_v30, %v2479_v16  ;;  %v2568_v18 = vpop.f32.mrb[62].mxu1  ;;  %v2742_v60 = vpop.f32.mrb[66].mxu0 }
 0xac3   :  { %v2584_v54 = vadd.f32 %v2577_v47, %v2565_v27  ;;  %v2569_v49 = vpop.f32.mrb[63].mxu1  ;;  %v2743_v56 = vpop.f32.mrb[67].mxu0 }
 0xac4   :  { %v2585_v0 = vadd.f32 %v2581_v38, %v2567_v33  ;;  %v10332_v33 = vld [vmem:[%s14374_s3 + $0x4] sm:$0x3] }
 0xac5   :  { %v10264_v46 = vmul.f32 -1.442695, %v2584_v54  ;;  %v3281_v60 = vrot.slane %v10332_v33, %v14463_v15  ;;  %v3285_v56 = vrot.slane %v10332_v33, %v14464_v43 }
 0xac6   :  { %v10265_v58 = vmul.f32 -1.442695, %v2585_v0 }
 0xac7   :  { %11873 = vpow2.f32 %v10264_v46 }
 0xac8   :  { %11875 = vpow2.f32 %v10265_v58 }
 0xad0   :  { %v2825_v14 = vpop.f32.mrb[64].mxu1  ;;  %v2960_v53 = vpop.f32.mrb[68].mxu0 }
 0xad1   :  { %v11874_v40 = vpop.eup %11873  ;;  %v2826_v28 = vadd.f32 %v2825_v14, %v2738_v24  ;;  %v2827_v25 = vpop.f32.mrb[65].mxu1 }
 0xad2   :  { %v2962_v50 = vpop.f32.mrb[69].mxu0  ;;  %v11876_v9 = vpop.eup %11875  ;;  %v2828_v31 = vadd.f32 %v2827_v25, %v2740_v48  ;;  %v2592_v3 = vadd.f32 1.0, %v11874_v40 }
 0xad3   :  { %v2829_v39 = vpop.f32.mrb[66].mxu1  ;;  %v2964_v52 = vpop.f32.mrb[70].mxu0  ;;  %v2593_v22 = vadd.f32 1.0, %v11876_v9  ;;  %v2844_v34 = vadd.f32 %v2837_v2, %v2826_v28 }
 0xad4   :  { %v2830_v13 = vpop.f32.mrb[67].mxu1  ;;  %v2965_v35 = vpop.f32.mrb[71].mxu0  ;;  %v2845_v11 = vadd.f32 %v2841_v26, %v2828_v31 }
 0xad5   :  { %11877 = vrcp.f32 %v2593_v22  ;;  %v10289_v16 = vmul.f32 -1.442695, %v2844_v34 }
 0xad6   :  { %v10290_v32 = vmul.f32 -1.442695, %v2845_v11  ;;  %v10354_v11 = vld [vmem:[%s14374_s3 + $0x2] sm:$0x3] }
 0xad7   :  { %11879 = vpow2.f32 %v10289_v16  ;;  %v3503_v16 = vrot.slane %v10354_v11, %v14463_v15 }
 0xad8   :  { %11881 = vpow2.f32 %v10290_v32 }
 0xad9   :  { %11883 = vrcp.f32 %v2592_v3 }
 0xadf   :  { %v13234_v55 = vpop.eup %11877 }
 0xae0   :  { %v3047_v21 = vpop.f32.mrb[68].mxu1  ;;  %v3182_v51 = vpop.f32.mrb[72].mxu0  ;;  %v2598_v45 = vmul.f32 2.0, %v13234_v55 }
 0xae1   :  { %v11880_v4 = vpop.eup %11879  ;;  %v3048_v61 = vadd.f32 %v3047_v21, %v2960_v53  ;;  %v3049_v42 = vpop.f32.mrb[69].mxu1 }
 0xae2   :  { %v3184_v44 = vpop.f32.mrb[73].mxu0  ;;  %v11882_v62 = vpop.eup %11881  ;;  %v3050_v20 = vadd.f32 %v3049_v42, %v2962_v50  ;;  %v10266_v12 = vadd.f32 -1.0, %v2598_v45  ;;  %v2852_v27 = vadd.f32 1.0, %v11880_v4 }
 0xae3   :  { %v3051_v6 = vpop.f32.mrb[70].mxu1  ;;  %v3186_v37 = vpop.f32.mrb[74].mxu0  ;;  %v2853_v36 = vadd.f32 1.0, %v11882_v62  ;;  %v3066_v8 = vadd.f32 %v3059_v23, %v3048_v61  ;;  %v3507_v23 = vrot.slane %v10354_v11, %v14464_v43 }
 0xae4   :  { %v13239_v41 = vpop.eup %11883  ;;  %v3052_v47 = vpop.f32.mrb[71].mxu1  ;;  %v3067_v24 = vadd.f32 %v3063_v29, %v3050_v20 }
 0xae5   :  { %v3187_v17 = vpop.f32.mrb[75].mxu0  ;;  %v2605_v38 = vmul.f32 %v13239_v41, %v10266_v12  ;;  %11885 = vrcp.f32 %v2853_v36  ;;  %v10311_v30 = vmul.f32 -1.442695, %v3066_v8 }
 0xae6   :  { %v10312_v48 = vmul.f32 -1.442695, %v3067_v24 }
 0xae7   :  { %2607 = vrot.lane.b32.xlu0 %v2605_v38, %s12373_s14  ;;  %11887 = vpow2.f32 %v10311_v30  ;;  %v3719_v30 = vld [vmem:[%s14374_s3] sm:$0x3] }
 0xae8   :  { %11889 = vpow2.f32 %v10312_v48  ;;  %v3724_v33 = vrot.slane %v3719_v30, %v14463_v15 }
 0xae9   :  { %11891 = vrcp.f32 %v2852_v27 }
 0xaef   :  { %v13246_v18 = vpop.eup %11885 }
 0xaf0   :  { %v3269_v54 = vpop.f32.mrb[72].mxu1  ;;  %v3404_v49 = vpop.f32.mrb[76].mxu0  ;;  %v2858_v0 = vmul.f32 2.0, %v13246_v18 }
 0xaf1   :  { %v11888_v46 = vpop.eup %11887  ;;  %v3270_v58 = vadd.f32 %v3269_v54, %v3182_v51  ;;  %v3271_v59 = vpop.f32.mrb[73].mxu1  ;;  %v3728_v54 = vrot.slane %v3719_v30, %v14464_v43 }
 0xaf2   :  { %v3406_v2 = vpop.f32.mrb[77].mxu0  ;;  %v11890_v14 = vpop.eup %11889  ;;  %v3272_v53 = vadd.f32 %v3271_v59, %v3184_v44  ;;  %v10291_v28 = vadd.f32 -1.0, %v2858_v0  ;;  %v3074_v34 = vadd.f32 1.0, %v11888_v46 }
 0xaf3   :  { %v3273_v26 = vpop.f32.mrb[74].mxu1  ;;  %v3408_v40 = vpop.f32.mrb[78].mxu0  ;;  %v3075_v50 = vadd.f32 1.0, %v11890_v14  ;;  %v3288_v9 = vadd.f32 %v3281_v60, %v3270_v58 }
 0xaf4   :  { %v13251_v25 = vpop.eup %11891  ;;  %v3274_v31 = vpop.f32.mrb[75].mxu1  ;;  %v3289_v52 = vadd.f32 %v3285_v56, %v3272_v53 }
 0xaf5   :  { %v3409_v39 = vpop.f32.mrb[79].mxu0  ;;  %v2861_v22 = vmul.f32 %v13251_v25, %v10291_v28  ;;  %11893 = vrcp.f32 %v3075_v50  ;;  %v10333_v13 = vmul.f32 -1.442695, %v3288_v9 }
 0xaf6   :  { %v10334_v35 = vmul.f32 -1.442695, %v3289_v52 }
 0xaf7   :  { %2863 = vrot.lane.b32.xlu1 %v2861_v22, %s12373_s14  ;;  %11895 = vpow2.f32 %v10333_v13 }
 0xaf8   :  { %11897 = vpow2.f32 %v10334_v35 }
 0xaf9   :  { %11899 = vrcp.f32 %v3074_v34 }
 0xaff   :  { %v13258_v3 = vpop.eup %11893 }
 0xb00   :  { %v3491_v32 = vpop.f32.mrb[76].mxu1  ;;  %v3628_v57 = vpop.f32.mrb[80].mxu0  ;;  %v3080_v21 = vmul.f32 2.0, %v13258_v3 }
 0xb01   :  { %v11896_v51 = vpop.eup %11895  ;;  %v3492_v29 = vadd.f32 %v3491_v32, %v3404_v49  ;;  %v3493_v45 = vpop.f32.mrb[77].mxu1 }
 0xb02   :  { %v3630_v4 = vpop.f32.mrb[81].mxu0  ;;  %v11898_v61 = vpop.eup %11897  ;;  %v3494_v42 = vadd.f32 %v3493_v45, %v3406_v2  ;;  %v10313_v20 = vadd.f32 -1.0, %v3080_v21  ;;  %v3296_v24 = vadd.f32 1.0, %v11896_v51 }
 0xb03   :  { %v3495_v44 = vpop.f32.mrb[78].mxu1  ;;  %v3632_v62 = vpop.f32.mrb[82].mxu0  ;;  %v3297_v37 = vadd.f32 1.0, %v11898_v61  ;;  %v3510_v12 = vadd.f32 %v3503_v16, %v3492_v29  ;;  %v11249_v61 = vld [vmem:[#allocation6 + $0x140] ss:$8 sps:$4 sm:$0xff]  }
 0xb04   :  { %v13263_v6 = vpop.eup %11899  ;;  %v3496_v36 = vpop.f32.mrb[79].mxu1  ;;  %v3511_v47 = vadd.f32 %v3507_v23, %v3494_v42  ;;  %v11251_v42 = vld [vmem:[#allocation6 + $0x144] ss:$8 sps:$4 sm:$0xff]   ;;  %v11254_v44 = vld [vmem:[#allocation6 + $0x154] ss:$8 sps:$4 sm:$0xff]  }
 0xb05   :  { %v3633_v8 = vpop.f32.mrb[83].mxu0  ;;  %v3083_v17 = vmul.f32 %v13263_v6, %v10313_v20  ;;  %11901 = vrcp.f32 %v3297_v37  ;;  %v10355_v38 = vmul.f32 -1.442695, %v3510_v12  ;;  %3820 = vmatprep.subr.bf16.mxu0 %v11251_v42  ;;  %v11261_v62 = vld [vmem:[#allocation3 + $0x140] ss:$8 sps:$4 sm:$0xff]  }
 0xb06   :  { %v10356_v27 = vmul.f32 -1.442695, %v3511_v47  ;;  %3821 = vmatpush1.bf16.msra.mxu0 %v11249_v61  ;;  %v11252_v20 = vld [vmem:[#allocation6 + $0x150] ss:$8 sps:$4 sm:$0xff]   ;;  %v11263_v37 = vld [vmem:[#allocation3 + $0x144] ss:$8 sps:$4 sm:$0xff]  }
 0xb07   :  { %3085 = vrot.lane.b32.xlu0 %v3083_v17, %s12373_s14  ;;  %11903 = vpow2.f32 %v10355_v38  ;;  %3822 = vmatprep.subr.bf16.mxu0 %v11254_v44  ;;  %v11257_v12 = vld [vmem:[#allocation6 + $0x164] ss:$8 sps:$4 sm:$0xff]   ;;  %v11255_v36 = vld [vmem:[#allocation6 + $0x160] ss:$8 sps:$4 sm:$0xff]   ;;  %v11260_v8 = vld [vmem:[#allocation6 + $0x174] ss:$8 sps:$4 sm:$0xff]  }
 0xb08   :  { %11905 = vpow2.f32 %v10356_v27  ;;  %3907 = vmatprep.subr.bf16.mxu1 %v11263_v37  ;;  %v11258_v47 = vld [vmem:[#allocation6 + $0x170] ss:$8 sps:$4 sm:$0xff]   ;;  %v11266_v17 = vld [vmem:[#allocation6 + $0x104] ss:$8 sps:$4 sm:$0xff]   ;;  %v11276_v61 = vld [vmem:[#allocation6 + $0x120] ss:$8 sps:$4 sm:$0xff]  }
 0xb09   :  { %11907 = vrcp.f32 %v3296_v24  ;;  %3908 = vmatpush1.bf16.msra.mxu1 %v11261_v62  ;;  %v2602_v24 = vpop.permute.xlu1 %2601  ;;  %v11284_v42 = vld [vmem:[#allocation6 + $0x134] ss:$8 sps:$4 sm:$0xff]   ;;  %v11290_v44 = vld [vmem:[#allocation6 + $0xc4] ss:$8 sps:$4 sm:$0xff]   ;;  %v11285_v62 = vld [vmem:[#allocation3 + $0x100] ss:$8 sps:$4 sm:$0xff]  }
 0xb0a   :  { %3823 = vmatpush1.bf16.msra.mxu0 %v11252_v20  ;;  %v2604_v38 = vmul.f32 %v13239_v41, %v2602_v24  ;;  %v2860_v41 = vmul.f32 %v13251_v25, %v13152_v1  ;;  %v3082_v1 = vmul.f32 %v13263_v6, %v13158_v10  ;;  %v11288_v20 = vld [vmem:[#allocation6 + $0xc0] ss:$8 sps:$4 sm:$0xff]   ;;  %v11293_v37 = vld [vmem:[#allocation3 + $0x114] ss:$8 sps:$4 sm:$0xff]   ;;  %v11302_v24 = vld [vmem:[#allocation6 + $0xe4] ss:$8 sps:$4 sm:$0xff]  }
 0xb0b   :  { %3824 = vmatprep.subr.bf16.mxu0 %v11257_v12  ;;  %v11296_v12 = vld [vmem:[#allocation6 + $0xd4] ss:$8 sps:$4 sm:$0xff]  }
 0xb0e   :  { %3825 = vmatpush1.bf16.msra.mxu0 %v11255_v36 }
 0xb0f   :  { %v13270_v48 = vpop.eup %11901  ;;  %3826 = vmatprep.subr.bf16.mxu0 %v11260_v8  ;;  %v11291_v8 = vld [vmem:[#allocation3 + $0x110] ss:$8 sps:$4 sm:$0xff]  }
 0xb10   :  { %v3712_v60 = vpop.f32.mrb[80].mxu1  ;;  %v3302_v49 = vmul.f32 2.0, %v13270_v48 }
 0xb11   :  { %v11904_v56 = vpop.eup %11903  ;;  %v3713_v0 = vadd.f32 %v3712_v60, %v3628_v57  ;;  %v3714_v46 = vpop.f32.mrb[81].mxu1  ;;  %v11269_v60 = vld [vmem:[#allocation3 + $0x154] ss:$8 sps:$4 sm:$0xff]  }
 0xb12   :  { %v11906_v58 = vpop.eup %11905  ;;  %v3715_v59 = vadd.f32 %v3714_v46, %v3630_v4  ;;  %v3716_v2 = vpop.f32.mrb[82].mxu1  ;;  %v10335_v14 = vadd.f32 -1.0, %v3302_v49  ;;  %v3518_v31 = vadd.f32 1.0, %v11904_v56  ;;  %3827 = vmatpush1.bf16.msra.mxu0 %v11258_v47  ;;  %3909 = vmatprep.subr.bf16.mxu1 %v11269_v60  ;;  %v11275_v49 = vld [vmem:[#allocation3 + $0x164] ss:$8 sps:$4 sm:$0xff]  }
 0xb13   :  { %v13275_v53 = vpop.eup %11907  ;;  %v3519_v26 = vadd.f32 1.0, %v11906_v58  ;;  %v3731_v40 = vadd.f32 %v3724_v33, %v3713_v0  ;;  %v3717_v28 = vpop.f32.mrb[83].mxu1  ;;  %4079 = vmatprep.subr.bf16.mxu0 %v11266_v17  ;;  %v11267_v33 = vld [vmem:[#allocation3 + $0x150] ss:$8 sps:$4 sm:$0xff]   ;;  %v11281_v58 = vld [vmem:[#allocation3 + $0x174] ss:$8 sps:$4 sm:$0xff]  }
 0xb14   :  { %v3732_v50 = vadd.f32 %v3728_v54, %v3715_v59  ;;  %v3305_v9 = vmul.f32 %v13275_v53, %v10335_v14  ;;  %3910 = vmatpush1.bf16.msra.mxu1 %v11267_v33  ;;  %v11273_v54 = vld [vmem:[#allocation3 + $0x160] ss:$8 sps:$4 sm:$0xff]   ;;  %v11279_v46 = vld [vmem:[#allocation3 + $0x170] ss:$8 sps:$4 sm:$0xff]   ;;  %v11299_v17 = vld [vmem:[#allocation3 + $0x124] ss:$8 sps:$4 sm:$0xff]  }
 0xb15   :  { %11909 = vrcp.f32 %v3519_v26  ;;  %v10377_v39 = vmul.f32 -1.442695, %v3731_v40  ;;  %3911 = vmatprep.subr.bf16.mxu1 %v11275_v49  ;;  %v11287_v26 = vld [vmem:[#allocation3 + $0x104] ss:$8 sps:$4 sm:$0xff]   ;;  %v11294_v47 = vld [vmem:[#allocation6 + $0xd0] ss:$8 sps:$4 sm:$0xff]  }
 0xb16   :  { %v10378_v52 = vmul.f32 -1.442695, %v3732_v50  ;;  %3307 = vrot.lane.b32.xlu1 %v3305_v9, %s12373_s14  ;;  %v11305_v33 = vld [vmem:[#allocation3 + $0x134] ss:$8 sps:$4 sm:$0xff]   ;;  %v11306_v49 = vld [vmem:[#allocation6 + $0xf0] ss:$8 sps:$4 sm:$0xff]  }
 0xb17   :  { %11911 = vpow2.f32 %v10377_v39  ;;  %v3304_v39 = vmul.f32 %v13275_v53, %v13165_v5  ;;  %v11308_v60 = vld [vmem:[#allocation6 + $0xf4] ss:$8 sps:$4 sm:$0xff]  }
 0xb18   :  { %11913 = vpow2.f32 %v10378_v52  ;;  %3912 = vmatpush1.bf16.msra.mxu1 %v11273_v54  ;;  %v11303_v54 = vld [vmem:[#allocation3 + $0x130] ss:$8 sps:$4 sm:$0xff]  }
 0xb19   :  { %11915 = vrcp.f32 %v3518_v31  ;;  %3913 = vmatprep.subr.bf16.mxu1 %v11281_v58  ;;  %v11309_v58 = vld [vmem:[#allocation3 + $0xc0] ss:$8 sps:$4 sm:$0xff]  }
 0xb1c   :  { %3914 = vmatpush1.bf16.msra.mxu1 %v11279_v46  ;;  %v11314_v46 = vld [vmem:[#allocation6 + $0x84] ss:$8 sps:$4 sm:$0xff]  }
 0xb1d   :  { %4166 = vmatprep.subr.bf16.mxu1 %v11287_v26 }
 0xb1f   :  { %v13279_v22 = vpop.eup %11909 }
 0xb20   :  { %v3524_v34 = vmul.f32 2.0, %v13279_v22 }
 0xb21   :  { %v11912_v13 = vpop.eup %11911 }
 0xb22   :  { %v11914_v35 = vpop.eup %11913  ;;  %v10357_v11 = vadd.f32 -1.0, %v3524_v34  ;;  %v3739_v23 = vadd.f32 1.0, %v11912_v13 }
 0xb23   :  { %v13282_v16 = vpop.eup %11915  ;;  %v3740_v32 = vadd.f32 1.0, %v11914_v35 }
 0xb24   :  { %v3527_v57 = vmul.f32 %v13282_v16, %v10357_v11  ;;  %v3526_v13 = vmul.f32 %v13282_v16, %v13172_v7 }
 0xb25   :  { %11917 = vrcp.f32 %v3740_v32 }
 0xb26   :  { %3529 = vrot.lane.b32.xlu0 %v3527_v57, %s12373_s14  ;;  %11919 = vrcp.f32 %v3739_v23 }
 0xb2f   :  { %v13286_v21 = vpop.eup %11917 }
 0xb30   :  { %v3745_v51 = vmul.f32 2.0, %v13286_v21  ;;  %v13289_v45 = vpop.eup %11919 }
 0xb31   :  { %v3747_v32 = vmul.f32 %v13289_v45, %v13179_v19  ;;  %v11270_v19 = vld [vmem:[#allocation6 + $0x110] ss:$8 sps:$4 sm:$0xff]  }
 0xb32   :  { %v10379_v29 = vadd.f32 -1.0, %v3745_v51 }
 0xb34   :  { %v3748_v4 = vmul.f32 %v13289_v45, %v10379_v29  ;;  %v11264_v29 = vld [vmem:[#allocation6 + $0x100] ss:$8 sps:$4 sm:$0xff]   ;;  %v11278_v45 = vld [vmem:[#allocation6 + $0x124] ss:$8 sps:$4 sm:$0xff]  }
 0xb36   :  { %3750 = vrot.lane.b32.xlu1 %v3748_v4, %s12373_s14  ;;  %v11272_v4 = vld [vmem:[#allocation6 + $0x114] ss:$8 sps:$4 sm:$0xff]  }
 0xb59   :  { %v2608_v27 = vpop.permute.xlu0 %2607 }
 0xb5a   :  { %v13294_v30 = vadd.f32 %v2608_v27, %v2604_v38  ;;  %v11297_v38 = vld [vmem:[#allocation3 + $0x120] ss:$8 sps:$4 sm:$0xff]  }
 0xb5b   :  { %v11300_v27 = vld [vmem:[#allocation6 + $0xe0] ss:$8 sps:$4 sm:$0xff]  }
 0xb5c   :  { %11921 = vtanh.f32 %v13294_v30 }
 0xb66   :  { %v11922_v56 = vpop.eup %11921 }
 0xb67   :  { %v13298_v0 = vmul.f32 %v11922_v56, %v13234_v55  ;;  %v11311_v56 = vld [vmem:[#allocation3 + $0xc4] ss:$8 sps:$4 sm:$0xff]  }
 0xb69   :  { %14470 = vst [vmem:[#allocation26_spill] sm:$0xff] %v13298_v0  ;;  %v2864_v59 = vpop.permute.xlu1 %2863  ;;  %v3765_v2 = vpack.c.bf16 %v13298_v0, %v13298_v0  ;;  %v13797_v0 = vld [vmem:[#allocation6 + $0xa0] ss:$8 sps:$4 sm:$0xff]  }
 0xb6a   :  { %v13304_v14 = vadd.f32 %v2864_v59, %v2860_v41  ;;  %v11312_v41 = vld [vmem:[#allocation6 + $0x80] ss:$8 sps:$4 sm:$0xff]   ;;  %v11317_v59 = vld [vmem:[#allocation3 + $0xd4] ss:$8 sps:$4 sm:$0xff]   ;;  %14483 = vst [vmem:[#allocation24_spill] sm:$0xff] %v13797_v0 }
 0xb6b   :  { %3775 = vrot.lane.b32.xlu0 %v3765_v2, %s12373_s14  ;;  %v11320_v2 = vld [vmem:[#allocation6 + $0x94] ss:$8 sps:$4 sm:$0xff]  }
 0xb6c   :  { %11923 = vtanh.f32 %v13304_v14 }
 0xb76   :  { %v11924_v55 = vpop.eup %11923 }
 0xb77   :  { %v2868_v40 = vmul.f32 %v11924_v55, %v13246_v18  ;;  %v11315_v55 = vld [vmem:[#allocation3 + $0xd0] ss:$8 sps:$4 sm:$0xff]  }
 0xb79   :  { %v3086_v25 = vpop.permute.xlu0 %3085  ;;  %v3756_v28 = vpack.c.bf16 %v2868_v40, %v2868_v40  ;;  %v11318_v40 = vld [vmem:[#allocation6 + $0x90] ss:$8 sps:$4 sm:$0xff]  }
 0xb7a   :  { %v13311_v50 = vadd.f32 %v3086_v25, %v3082_v1  ;;  %v11323_v1 = vld [vmem:[#allocation3 + $0xe4] ss:$8 sps:$4 sm:$0xff]  }
 0xb7b   :  { %3862 = vrot.lane.b32.xlu1 %v3756_v28, %s12373_s14  ;;  %v11326_v25 = vld [vmem:[#allocation6 + $0xa4] ss:$8 sps:$4 sm:$0xff]   ;;  %v11321_v28 = vld [vmem:[#allocation3 + $0xe0] ss:$8 sps:$4 sm:$0xff]  }
 0xb7c   :  { %11925 = vtanh.f32 %v13311_v50 }
 0xb86   :  { %v11926_v9 = vpop.eup %11925 }
 0xb87   :  { %v3090_v31 = vmul.f32 %v11926_v9, %v13258_v3  ;;  %v11324_v9 = vld [vmem:[#allocation6 + $0xa0] ss:$8 sps:$4 sm:$0xff]  }
 0xb88   :  { %v3308_v52 = vpop.permute.xlu1 %3307 }
 0xb89   :  { %v4022_v34 = vpack.c.bf16 %v3090_v31, %v3090_v31  ;;  %v13318_v18 = vadd.f32 %v3308_v52, %v3304_v39  ;;  %v11329_v31 = vld [vmem:[#allocation3 + $0xf4] ss:$8 sps:$4 sm:$0xff]   ;;  %v11327_v52 = vld [vmem:[#allocation3 + $0xf0] ss:$8 sps:$4 sm:$0xff]  }
 0xb8a   :  { %v11332_v39 = vld [vmem:[#allocation6 + $0xb4] ss:$8 sps:$4 sm:$0xff]  }
 0xb8b   :  { %4121 = vrot.lane.b32.xlu0 %v4022_v34, %s12373_s14  ;;  %11927 = vtanh.f32 %v13318_v18  ;;  %v11330_v34 = vld [vmem:[#allocation6 + $0xb0] ss:$8 sps:$4 sm:$0xff]  }
 0xb95   :  { %v11928_v10 = vpop.eup %11927 }
 0xb96   :  { %v3312_v6 = vmul.f32 %v11928_v10, %v13270_v48  ;;  %v11335_v10 = vld [vmem:[#allocation3 + $0x84] ss:$8 sps:$4 sm:$0xff]  }
 0xb98   :  { %v3530_v35 = vpop.permute.xlu0 %3529  ;;  %v4244_v11 = vpack.c.bf16 %v3312_v6, %v3312_v6  ;;  %v11338_v6 = vld [vmem:[#allocation6 + $0x44] ss:$8 sps:$4 sm:$0xff]  }
 0xb99   :  { %v13325_v3 = vadd.f32 %v3530_v35, %v3526_v13  ;;  %v11333_v13 = vld [vmem:[#allocation3 + $0x80] ss:$8 sps:$4 sm:$0xff]  }
 0xb9a   :  { %4343 = vrot.lane.b32.xlu1 %v4244_v11, %s12373_s14  ;;  %v11336_v35 = vld [vmem:[#allocation6 + $0x40] ss:$8 sps:$4 sm:$0xff]   ;;  %v11341_v11 = vld [vmem:[#allocation3 + $0x94] ss:$8 sps:$4 sm:$0xff]  }
 0xb9b   :  { %11929 = vtanh.f32 %v13325_v3 }
 0xba5   :  { %v11930_v5 = vpop.eup %11929 }
 0xba6   :  { %v3534_v53 = vmul.f32 %v11930_v5, %v13279_v22  ;;  %v11344_v5 = vld [vmem:[#allocation6 + $0x54] ss:$8 sps:$4 sm:$0xff]  }
 0xba8   :  { %v3751_v57 = vpop.permute.xlu1 %3750  ;;  %v4466_v23 = vpack.c.bf16 %v3534_v53, %v3534_v53 }
 0xba9   :  { %v13332_v48 = vadd.f32 %v3751_v57, %v3747_v32  ;;  %v11339_v32 = vld [vmem:[#allocation3 + $0x90] ss:$8 sps:$4 sm:$0xff]  }
 0xbaa   :  { %4565 = vrot.lane.b32.xlu0 %v4466_v23, %s12373_s14  ;;  %v11342_v57 = vld [vmem:[#allocation6 + $0x50] ss:$8 sps:$4 sm:$0xff]   ;;  %v11347_v23 = vld [vmem:[#allocation3 + $0xa4] ss:$8 sps:$4 sm:$0xff]  }
 0xbab   :  { %11931 = vtanh.f32 %v13332_v48 }
 0xbb5   :  { %v11932_v7 = vpop.eup %11931 }
 0xbb6   :  { %v3755_v16 = vmul.f32 %v11932_v7, %v13286_v21  ;;  %v11282_v21 = vld [vmem:[#allocation6 + $0x130] ss:$8 sps:$4 sm:$0xff]   ;;  %v11350_v7 = vld [vmem:[#allocation6 + $0x64] ss:$8 sps:$4 sm:$0xff]  }
 0xbb8   :  { %v4688_v51 = vpack.c.bf16 %v3755_v16, %v3755_v16  ;;  %v11345_v16 = vld [vmem:[#allocation3 + $0xa0] ss:$8 sps:$4 sm:$0xff]  }
 0xbba   :  { %4787 = vrot.lane.b32.xlu1 %v4688_v51, %s12373_s14  ;;  %v11348_v51 = vld [vmem:[#allocation6 + $0x60] ss:$8 sps:$4 sm:$0xff]  }
 0xbdd   :  { %v3776_v22 = vpop.permute.xlu0 %3775 }
 0xbde   :  { %10388 = vmatmul.mubr.msk.bf16.vlgmr.msra.gmra.mrb[84].mxu0 %vm142_vm0, %v3776_v22  ;;  %v11351_v22 = vld [vmem:[#allocation3 + $0xb0] ss:$8 sps:$4 sm:$0xff]  }
 0xbdf   :  { %4080 = vmatpush1.bf16.msra.mxu0 %v11264_v29  ;;  %4111 = vmatprep.mubr.bf16.mxu0 %v14444_v63  ;;  %v11353_v29 = vld [vmem:[#allocation3 + $0xb4] ss:$8 sps:$4 sm:$0xff]  }
 0xbe0   :  { %4081 = vmatprep.subr.bf16.mxu0 %v11272_v4  ;;  %v11356_v4 = vld [vmem:[#allocation6 + $0x74] ss:$8 sps:$4 sm:$0xff]  }
 0xbe3   :  { %4082 = vmatpush1.bf16.msra.mxu0 %v11270_v19  ;;  %v11354_v19 = vld [vmem:[#allocation6 + $0x70] ss:$8 sps:$4 sm:$0xff]  }
 0xbe4   :  { %4083 = vmatprep.subr.bf16.mxu0 %v11278_v45  ;;  %v11359_v45 = vld [vmem:[#allocation3 + $0x44] ss:$8 sps:$4 sm:$0xff]  }
 0xbe7   :  { %4084 = vmatpush1.bf16.msra.mxu0 %v11276_v61  ;;  %v11362_v61 = vld [vmem:[#allocation6 + $0x4] ss:$8 sps:$4 sm:$0xff]  }
 0xbe8   :  { %4085 = vmatprep.subr.bf16.mxu0 %v11284_v42  ;;  %v11357_v42 = vld [vmem:[#allocation3 + $0x40] ss:$8 sps:$4 sm:$0xff]  }
 0xbeb   :  { %4086 = vmatpush1.bf16.msra.mxu0 %v11282_v21  ;;  %v11360_v21 = vld [vmem:[#allocation6] ss:$8 sps:$4 sm:$0xff]  }
 0xbec   :  { %4301 = vmatprep.subr.bf16.mxu0 %v11290_v44  ;;  %v11365_v44 = vld [vmem:[#allocation3 + $0x54] ss:$8 sps:$4 sm:$0xff]  }
 0xbed   :  { %v3863_v36 = vpop.permute.xlu1 %3862 }
 0xbee   :  { %10397 = vmatmul.mubr.msk.bf16.vlgmr.msra.gmra.mrb[84].mxu1 %vm142_vm0, %v3863_v36  ;;  %10413 = vmatmul.mubr.msk.bf16.vlgmr.msra.gmra.mrb[88].mxu0 %vm142_vm0, %v3863_v36  ;;  %v11371_v36 = vld [vmem:[#allocation3 + $0x64] ss:$8 sps:$4 sm:$0xff]  }
 0xbef   :  { %4167 = vmatpush1.bf16.msra.mxu1 %v11285_v62  ;;  %4302 = vmatpush1.bf16.msra.mxu0 %v11288_v20  ;;  %v11368_v62 = vld [vmem:[#allocation6 + $0x14] ss:$8 sps:$4 sm:$0xff]  }
 0xbf0   :  { %4168 = vmatprep.subr.bf16.mxu1 %v11293_v37  ;;  %4303 = vmatprep.subr.bf16.mxu0 %v11296_v12  ;;  %v11363_v37 = vld [vmem:[#allocation3 + $0x50] ss:$8 sps:$4 sm:$0xff]  }
 0xbf1   :  { %4198 = vmatprep.mubr.bf16.mxu1 %v14444_v63  ;;  %4333 = vmatprep.mubr.bf16.mxu0 %v14444_v63  ;;  %v11366_v12 = vld [vmem:[#allocation6 + $0x10] ss:$8 sps:$4 sm:$0xff]  }
 0xbf3   :  { %4169 = vmatpush1.bf16.msra.mxu1 %v11291_v8  ;;  %4304 = vmatpush1.bf16.msra.mxu0 %v11294_v47  ;;  %v11374_v8 = vld [vmem:[#allocation6 + $0x24] ss:$8 sps:$4 sm:$0xff]   ;;  %v11369_v47 = vld [vmem:[#allocation3 + $0x60] ss:$8 sps:$4 sm:$0xff]  }
 0xbf4   :  { %4170 = vmatprep.subr.bf16.mxu1 %v11299_v17  ;;  %4305 = vmatprep.subr.bf16.mxu0 %v11302_v24  ;;  %v11372_v17 = vld [vmem:[#allocation6 + $0x20] ss:$8 sps:$4 sm:$0xff]   ;;  %v11377_v24 = vld [vmem:[#allocation3 + $0x74] ss:$8 sps:$4 sm:$0xff]  }
 0xbf7   :  { %4171 = vmatpush1.bf16.msra.mxu1 %v11297_v38  ;;  %4306 = vmatpush1.bf16.msra.mxu0 %v11300_v27  ;;  %v11380_v38 = vld [vmem:[#allocation6 + $0x34] ss:$8 sps:$4 sm:$0xff]   ;;  %v11375_v27 = vld [vmem:[#allocation3 + $0x70] ss:$8 sps:$4 sm:$0xff]  }
 0xbf8   :  { %4172 = vmatprep.subr.bf16.mxu1 %v11305_v33  ;;  %4307 = vmatprep.subr.bf16.mxu0 %v11308_v60  ;;  %v11378_v33 = vld [vmem:[#allocation6 + $0x30] ss:$8 sps:$4 sm:$0xff]   ;;  %v11383_v60 = vld [vmem:[#allocation3 + $0x4] ss:$8 sps:$4 sm:$0xff]  }
 0xbfb   :  { %4173 = vmatpush1.bf16.msra.mxu1 %v11303_v54  ;;  %4308 = vmatpush1.bf16.msra.mxu0 %v11306_v49  ;;  %v11381_v54 = vld [vmem:[#allocation3] ss:$8 sps:$4 sm:$0xff]   ;;  %v11386_v49 = vld [vmem:[#allocation3 + $0x14] ss:$8 sps:$4 sm:$0xff]  }
 0xbfc   :  { %4388 = vmatprep.subr.bf16.mxu1 %v11311_v56  ;;  %4523 = vmatprep.subr.bf16.mxu0 %v11314_v46  ;;  %v11384_v46 = vld [vmem:[#allocation3 + $0x10] ss:$8 sps:$4 sm:$0xff]  }
 0xbfd   :  { %v4122_v26 = vpop.permute.xlu0 %4121 }
 0xbfe   :  { %10422 = vmatmul.mubr.msk.bf16.vlgmr.msra.gmra.mrb[88].mxu1 %vm142_vm0, %v4122_v26  ;;  %10435 = vmatmul.mubr.msk.bf16.vlgmr.msra.gmra.mrb[92].mxu0 %vm142_vm0, %v4122_v26  ;;  %v10493_v26 = vld [vmem:[%s14371_s0 + $0xc] sm:$0x3] }
 0xbff   :  { %4389 = vmatpush1.bf16.msra.mxu1 %v11309_v58  ;;  %4524 = vmatpush1.bf16.msra.mxu0 %v11312_v41  ;;  %v11389_v58 = vld [vmem:[#allocation3 + $0x24] ss:$8 sps:$4 sm:$0xff]   ;;  %v11387_v41 = vld [vmem:[#allocation3 + $0x20] ss:$8 sps:$4 sm:$0xff]  }
 0xc00   :  { %4390 = vmatprep.subr.bf16.mxu1 %v11317_v59  ;;  %4525 = vmatprep.subr.bf16.mxu0 %v11320_v2  ;;  %v11392_v59 = vld [vmem:[#allocation3 + $0x34] ss:$8 sps:$4 sm:$0xff]   ;;  %v11390_v2 = vld [vmem:[#allocation3 + $0x30] ss:$8 sps:$4 sm:$0xff]  }
 0xc01   :  { %4420 = vmatprep.mubr.bf16.mxu1 %v14444_v63  ;;  %4555 = vmatprep.mubr.bf16.mxu0 %v14444_v63 }
 0xc03   :  { %4391 = vmatpush1.bf16.msra.mxu1 %v11315_v55  ;;  %4526 = vmatpush1.bf16.msra.mxu0 %v11318_v40  ;;  %v4912_v55 = vpack.c.bf16 %v10493_v26, %v10493_v26 }
 0xc04   :  { %4392 = vmatprep.subr.bf16.mxu1 %v11323_v1  ;;  %4527 = vmatprep.subr.bf16.mxu0 %v11326_v25 }
 0xc07   :  { %4393 = vmatpush1.bf16.msra.mxu1 %v11321_v28  ;;  %4528 = vmatpush1.bf16.msra.mxu0 %v11324_v9  ;;  %v10398_v9 = vld [vmem:[%s14374_s3 + $0xa] sm:$0x3] }
 0xc08   :  { %4394 = vmatprep.subr.bf16.mxu1 %v11329_v31  ;;  %4529 = vmatprep.subr.bf16.mxu0 %v11332_v39  ;;  %v3953_v31 = vrot.slane %v10398_v9, %v14463_v15 }
 0xc0b   :  { %4395 = vmatpush1.bf16.msra.mxu1 %v11327_v52  ;;  %4530 = vmatpush1.bf16.msra.mxu0 %v11330_v34  ;;  %v3957_v34 = vrot.slane %v10398_v9, %v14464_v43 }
 0xc0c   :  { %4610 = vmatprep.subr.bf16.mxu1 %v11335_v10  ;;  %4745 = vmatprep.subr.bf16.mxu0 %v11338_v6  ;;  %v4344_v53 = vpop.permute.xlu1 %4343 }
 0xc0e   :  { %10444 = vmatmul.mubr.msk.bf16.vlgmr.msra.gmra.mrb[92].mxu1 %vm142_vm0, %v4344_v53  ;;  %10457 = vmatmul.mubr.msk.bf16.vlgmr.msra.gmra.mrb[96].mxu0 %vm142_vm0, %v4344_v53 }
 0xc0f   :  { %4611 = vmatpush1.bf16.msra.mxu1 %v11333_v13  ;;  %4746 = vmatpush1.bf16.msra.mxu0 %v11336_v35 }
 0xc10   :  { %4612 = vmatprep.subr.bf16.mxu1 %v11341_v11  ;;  %4747 = vmatprep.subr.bf16.mxu0 %v11344_v5 }
 0xc11   :  { %4642 = vmatprep.mubr.bf16.mxu1 %v14444_v63  ;;  %4777 = vmatprep.mubr.bf16.mxu0 %v14444_v63 }
 0xc13   :  { %4613 = vmatpush1.bf16.msra.mxu1 %v11339_v32  ;;  %4748 = vmatpush1.bf16.msra.mxu0 %v11342_v57 }
 0xc14   :  { %4614 = vmatprep.subr.bf16.mxu1 %v11347_v23  ;;  %4749 = vmatprep.subr.bf16.mxu0 %v11350_v7 }
 0xc17   :  { %4615 = vmatpush1.bf16.msra.mxu1 %v11345_v16  ;;  %4750 = vmatpush1.bf16.msra.mxu0 %v11348_v51  ;;  %v10423_v51 = vld [vmem:[%s14374_s3 + $0x8] sm:$0x3] }
 0xc18   :  { %4616 = vmatprep.subr.bf16.mxu1 %v11353_v29  ;;  %4751 = vmatprep.subr.bf16.mxu0 %v11356_v4  ;;  %v4212_v29 = vrot.slane %v10423_v51, %v14463_v15 }
 0xc1b   :  { %4617 = vmatpush1.bf16.msra.mxu1 %v11351_v22  ;;  %4752 = vmatpush1.bf16.msra.mxu0 %v11354_v19  ;;  %v4216_v19 = vrot.slane %v10423_v51, %v14464_v43 }
 0xc1c   :  { %4832 = vmatprep.subr.bf16.mxu1 %v11359_v45  ;;  %4969 = vmatprep.subr.bf16.mxu0 %v11362_v61  ;;  %v4566_v20 = vpop.permute.xlu0 %4565 }
 0xc1e   :  { %10466 = vmatmul.mubr.msk.bf16.vlgmr.msra.gmra.mrb[96].mxu1 %vm142_vm0, %v4566_v20  ;;  %10479 = vmatmul.mubr.msk.bf16.vlgmr.msra.gmra.mrb[100].mxu0 %vm142_vm0, %v4566_v20 }
 0xc1f   :  { %4833 = vmatpush1.bf16.msra.mxu1 %v11357_v42  ;;  %4970 = vmatpush1.bf16.msra.mxu0 %v11360_v21 }
 0xc20   :  { %4834 = vmatprep.subr.bf16.mxu1 %v11365_v44  ;;  %4971 = vmatprep.subr.bf16.mxu0 %v11368_v62 }
 0xc21   :  { %4864 = vmatprep.mubr.bf16.mxu1 %v14444_v63  ;;  %5001 = vmatprep.mubr.bf16.mxu0 %v14444_v63 }
 0xc23   :  { %4835 = vmatpush1.bf16.msra.mxu1 %v11363_v37  ;;  %4972 = vmatpush1.bf16.msra.mxu0 %v11366_v12 }
 0xc24   :  { %4836 = vmatprep.subr.bf16.mxu1 %v11371_v36  ;;  %4973 = vmatprep.subr.bf16.mxu0 %v11374_v8 }
 0xc27   :  { %4837 = vmatpush1.bf16.msra.mxu1 %v11369_v47  ;;  %4974 = vmatpush1.bf16.msra.mxu0 %v11372_v17 }
 0xc28   :  { %4838 = vmatprep.subr.bf16.mxu1 %v11377_v24  ;;  %4975 = vmatprep.subr.bf16.mxu0 %v11380_v38 }
 0xc2b   :  { %4839 = vmatpush1.bf16.msra.mxu1 %v11375_v27  ;;  %4976 = vmatpush1.bf16.msra.mxu0 %v11378_v33  ;;  %v10445_v33 = vld [vmem:[%s14374_s3 + $0x6] sm:$0x3] }
 0xc2c   :  { %5053 = vmatprep.subr.bf16.mxu1 %v11383_v60  ;;  %v4788_v56 = vpop.permute.xlu1 %4787 }
 0xc2e   :  { %10488 = vmatmul.mubr.msk.bf16.vlgmr.msra.gmra.mrb[100].mxu1 %vm142_vm0, %v4788_v56  ;;  %10502 = vmatmul.mubr.msk.bf16.vlgmr.msra.gmra.mrb[104].mxu0 %vm142_vm0, %v4788_v56 }
 0xc2f   :  { %5054 = vmatpush1.bf16.msra.mxu1 %v11381_v54  ;;  %5085 = vmatprep.mubr.bf16.mxu1 %v14444_v63  ;;  %v4434_v54 = vrot.slane %v10445_v33, %v14463_v15 }
 0xc30   :  { %5055 = vmatprep.subr.bf16.mxu1 %v11386_v49  ;;  %5227 = vmatprep.mubr.bf16.mxu0 %v14444_v63 }
 0xc33   :  { %5056 = vmatpush1.bf16.msra.mxu1 %v11384_v46  ;;  %v4438_v46 = vrot.slane %v10445_v33, %v14464_v43 }
 0xc34   :  { %5057 = vmatprep.subr.bf16.mxu1 %v11389_v58 }
 0xc37   :  { %5058 = vmatpush1.bf16.msra.mxu1 %v11387_v41 }
 0xc38   :  { %5059 = vmatprep.subr.bf16.mxu1 %v11392_v59 }
 0xc3b   :  { %5060 = vmatpush1.bf16.msra.mxu1 %v11390_v2 }
 0xc3e   :  { %10511 = vmatmul.mubr.msk.bf16.vlgmr.msra.gmra.mrb[104].mxu1 %vm142_vm0, %v4912_v55 }
 0xc3f   :  { %5314 = vmatprep.mubr.bf16.mxu1 %v14444_v63 }
 0xcb1   :  { %v3854_v40 = vpop.f32.mrb[84].mxu0 }
 0xcb2   :  { %v3856_v1 = vpop.f32.mrb[85].mxu0 }
 0xcb3   :  { %v3858_v25 = vpop.f32.mrb[86].mxu0 }
 0xcb4   :  { %v3859_v28 = vpop.f32.mrb[87].mxu0 }
 0xcc1   :  { %v3941_v39 = vpop.f32.mrb[84].mxu1  ;;  %v4113_v52 = vpop.f32.mrb[88].mxu0 }
 0xcc2   :  { %v3942_v10 = vadd.f32 %v3941_v39, %v3854_v40  ;;  %v3943_v6 = vpop.f32.mrb[85].mxu1  ;;  %v4115_v13 = vpop.f32.mrb[89].mxu0 }
 0xcc3   :  { %v3944_v35 = vadd.f32 %v3943_v6, %v3856_v1  ;;  %v3945_v11 = vpop.f32.mrb[86].mxu1  ;;  %v4117_v5 = vpop.f32.mrb[90].mxu0 }
 0xcc4   :  { %v3960_v53 = vadd.f32 %v3953_v31, %v3942_v10  ;;  %v3946_v32 = vpop.f32.mrb[87].mxu1  ;;  %v4118_v57 = vpop.f32.mrb[91].mxu0  ;;  %v10467_v5 = vld [vmem:[%s14374_s3 + $0x4] sm:$0x3] }
 0xcc5   :  { %v3961_v23 = vadd.f32 %v3957_v34, %v3944_v35  ;;  %v4656_v32 = vrot.slane %v10467_v5, %v14463_v15 }
 0xcc6   :  { %v10399_v7 = vmul.f32 -1.442695, %v3960_v53 }
 0xcc7   :  { %v10400_v16 = vmul.f32 -1.442695, %v3961_v23 }
 0xcc8   :  { %11933 = vpow2.f32 %v10399_v7  ;;  %v4660_v7 = vrot.slane %v10467_v5, %v14464_v43  ;;  %v5094_v5 = vld [vmem:[%s14374_s3] sm:$0x3] }
 0xcc9   :  { %11935 = vpow2.f32 %v10400_v16 }
 0xcd1   :  { %v4200_v4 = vpop.f32.mrb[88].mxu1  ;;  %v4335_v22 = vpop.f32.mrb[92].mxu0 }
 0xcd2   :  { %v11934_v45 = vpop.eup %11933  ;;  %v4201_v61 = vadd.f32 %v4200_v4, %v4113_v52  ;;  %v4202_v42 = vpop.f32.mrb[89].mxu1 }
 0xcd3   :  { %v4337_v21 = vpop.f32.mrb[93].mxu0  ;;  %v11936_v44 = vpop.eup %11935  ;;  %v4203_v62 = vadd.f32 %v4202_v42, %v4115_v13  ;;  %v3968_v24 = vadd.f32 1.0, %v11934_v45 }
 0xcd4   :  { %v4204_v20 = vpop.f32.mrb[90].mxu1  ;;  %v4339_v37 = vpop.f32.mrb[94].mxu0  ;;  %v3969_v12 = vadd.f32 1.0, %v11936_v44  ;;  %v4219_v36 = vadd.f32 %v4212_v29, %v4201_v61 }
 0xcd5   :  { %v4205_v8 = vpop.f32.mrb[91].mxu1  ;;  %v4340_v47 = vpop.f32.mrb[95].mxu0  ;;  %v4220_v17 = vadd.f32 %v4216_v19, %v4203_v62 }
 0xcd6   :  { %11937 = vrcp.f32 %v3969_v12  ;;  %v10424_v38 = vmul.f32 -1.442695, %v4219_v36 }
 0xcd7   :  { %v10425_v27 = vmul.f32 -1.442695, %v4220_v17 }
 0xcd8   :  { %11939 = vpow2.f32 %v10424_v38  ;;  %v10489_v38 = vld [vmem:[%s14374_s3 + $0x2] sm:$0x3] }
 0xcd9   :  { %11941 = vpow2.f32 %v10425_v27  ;;  %v4878_v33 = vrot.slane %v10489_v38, %v14463_v15 }
 0xcda   :  { %11943 = vrcp.f32 %v3968_v24 }
 0xce0   :  { %v13378_v60 = vpop.eup %11937 }
 0xce1   :  { %v4422_v49 = vpop.f32.mrb[92].mxu1  ;;  %v4557_v56 = vpop.f32.mrb[96].mxu0  ;;  %v3974_v58 = vmul.f32 2.0, %v13378_v60 }
 0xce2   :  { %v11940_v41 = vpop.eup %11939  ;;  %v4423_v59 = vadd.f32 %v4422_v49, %v4335_v22  ;;  %v4424_v2 = vpop.f32.mrb[93].mxu1 }
 0xce3   :  { %v4559_v26 = vpop.f32.mrb[97].mxu0  ;;  %v11942_v55 = vpop.eup %11941  ;;  %v4425_v40 = vadd.f32 %v4424_v2, %v4337_v21  ;;  %v10401_v28 = vadd.f32 -1.0, %v3974_v58  ;;  %v4227_v13 = vadd.f32 1.0, %v11940_v41 }
 0xce4   :  { %v4426_v1 = vpop.f32.mrb[94].mxu1  ;;  %v4561_v25 = vpop.f32.mrb[98].mxu0  ;;  %v4228_v31 = vadd.f32 1.0, %v11942_v55  ;;  %v4441_v39 = vadd.f32 %v4434_v54, %v4423_v59 }
 0xce5   :  { %v13383_v9 = vpop.eup %11943  ;;  %v4427_v52 = vpop.f32.mrb[95].mxu1  ;;  %v4442_v10 = vadd.f32 %v4438_v46, %v4425_v40 }
 0xce6   :  { %v4562_v34 = vpop.f32.mrb[99].mxu0  ;;  %v3977_v6 = vmul.f32 %v13383_v9, %v10401_v28  ;;  %11945 = vrcp.f32 %v4228_v31  ;;  %v10446_v35 = vmul.f32 -1.442695, %v4441_v39 }
 0xce7   :  { %v10447_v11 = vmul.f32 -1.442695, %v4442_v10 }
 0xce8   :  { %3979 = vrot.lane.b32.xlu0 %v3977_v6, %s12373_s14  ;;  %11947 = vpow2.f32 %v10446_v35 }
 0xce9   :  { %11949 = vpow2.f32 %v10447_v11 }
 0xcea   :  { %11951 = vrcp.f32 %v4227_v13 }
 0xcf0   :  { %v13390_v53 = vpop.eup %11945 }
 0xcf1   :  { %v4644_v57 = vpop.f32.mrb[96].mxu1  ;;  %v4779_v23 = vpop.f32.mrb[100].mxu0  ;;  %v4233_v16 = vmul.f32 2.0, %v13390_v53 }
 0xcf2   :  { %v11948_v51 = vpop.eup %11947  ;;  %v4645_v29 = vadd.f32 %v4644_v57, %v4557_v56  ;;  %v4646_v4 = vpop.f32.mrb[97].mxu1  ;;  %v4882_v56 = vrot.slane %v10489_v38, %v14464_v43  ;;  %v5099_v57 = vrot.slane %v5094_v5, %v14463_v15 }
 0xcf3   :  { %v4781_v22 = vpop.f32.mrb[101].mxu0  ;;  %v11950_v19 = vpop.eup %11949  ;;  %v4647_v45 = vadd.f32 %v4646_v4, %v4559_v26  ;;  %v10426_v21 = vadd.f32 -1.0, %v4233_v16  ;;  %v4449_v47 = vadd.f32 1.0, %v11948_v51 }
 0xcf4   :  { %v4648_v61 = vpop.f32.mrb[98].mxu1  ;;  %v4783_v42 = vpop.f32.mrb[102].mxu0  ;;  %v4450_v62 = vadd.f32 1.0, %v11950_v19  ;;  %v4663_v20 = vadd.f32 %v4656_v32, %v4645_v29 }
 0xcf5   :  { %v13395_v44 = vpop.eup %11951  ;;  %v4649_v37 = vpop.f32.mrb[99].mxu1  ;;  %v4664_v36 = vadd.f32 %v4660_v7, %v4647_v45  ;;  %v5103_v7 = vrot.slane %v5094_v5, %v14464_v43 }
 0xcf6   :  { %v4784_v12 = vpop.f32.mrb[103].mxu0  ;;  %v4236_v8 = vmul.f32 %v13395_v44, %v10426_v21  ;;  %11953 = vrcp.f32 %v4450_v62  ;;  %v10468_v17 = vmul.f32 -1.442695, %v4663_v20 }
 0xcf7   :  { %v10469_v24 = vmul.f32 -1.442695, %v4664_v36 }
 0xcf8   :  { %4238 = vrot.lane.b32.xlu1 %v4236_v8, %s12373_s14  ;;  %11955 = vpow2.f32 %v10468_v17 }
 0xcf9   :  { %11957 = vpow2.f32 %v10469_v24 }
 0xcfa   :  { %11959 = vrcp.f32 %v4449_v47 }
 0xd00   :  { %v13402_v27 = vpop.eup %11953 }
 0xd01   :  { %v4866_v54 = vpop.f32.mrb[100].mxu1  ;;  %v5003_v49 = vpop.f32.mrb[104].mxu0  ;;  %v4455_v46 = vmul.f32 2.0, %v13402_v27 }
 0xd02   :  { %v11956_v58 = vpop.eup %11955  ;;  %v4867_v41 = vadd.f32 %v4866_v54, %v4779_v23  ;;  %v4868_v59 = vpop.f32.mrb[101].mxu1 }
 0xd03   :  { %v5005_v2 = vpop.f32.mrb[105].mxu0  ;;  %v11958_v26 = vpop.eup %11957  ;;  %v4869_v55 = vadd.f32 %v4868_v59, %v4781_v22  ;;  %v10448_v25 = vadd.f32 -1.0, %v4455_v46  ;;  %v4671_v13 = vadd.f32 1.0, %v11956_v58 }
 0xd04   :  { %v4870_v40 = vpop.f32.mrb[102].mxu1  ;;  %v5007_v1 = vpop.f32.mrb[106].mxu0  ;;  %v4672_v31 = vadd.f32 1.0, %v11958_v26  ;;  %v4885_v39 = vadd.f32 %v4878_v33, %v4867_v41 }
 0xd05   :  { %v13407_v28 = vpop.eup %11959  ;;  %v4871_v52 = vpop.f32.mrb[103].mxu1  ;;  %v4886_v10 = vadd.f32 %v4882_v56, %v4869_v55  ;;  %v11393_v40 = vld [vmem:[#allocation6 + $0x140] ss:$8 sps:$4 sm:$0xff]   ;;  %v11395_v1 = vld [vmem:[#allocation6 + $0x144] ss:$8 sps:$4 sm:$0xff]  }
 0xd06   :  { %v5008_v34 = vpop.f32.mrb[107].mxu0  ;;  %v4458_v6 = vmul.f32 %v13407_v28, %v10448_v25  ;;  %11961 = vrcp.f32 %v4672_v31  ;;  %v10490_v35 = vmul.f32 -1.442695, %v4885_v39  ;;  %v11398_v25 = vld [vmem:[#allocation6 + $0x154] ss:$8 sps:$4 sm:$0xff]   ;;  %5195 = vmatprep.subr.bf16.mxu0 %v11395_v1 }
 0xd07   :  { %v10491_v11 = vmul.f32 -1.442695, %v4886_v10  ;;  %v11405_v31 = vld [vmem:[#allocation3 + $0x140] ss:$8 sps:$4 sm:$0xff]   ;;  %5196 = vmatpush1.bf16.msra.mxu0 %v11393_v40  ;;  %v11396_v39 = vld [vmem:[#allocation6 + $0x150] ss:$8 sps:$4 sm:$0xff]  }
 0xd08   :  { %4460 = vrot.lane.b32.xlu0 %v4458_v6, %s12373_s14  ;;  %11963 = vpow2.f32 %v10490_v35  ;;  %v11407_v52 = vld [vmem:[#allocation3 + $0x144] ss:$8 sps:$4 sm:$0xff]   ;;  %5197 = vmatprep.subr.bf16.mxu0 %v11398_v25  ;;  %v11399_v10 = vld [vmem:[#allocation6 + $0x160] ss:$8 sps:$4 sm:$0xff]   ;;  %v11404_v6 = vld [vmem:[#allocation6 + $0x174] ss:$8 sps:$4 sm:$0xff]  }
 0xd09   :  { %11965 = vpow2.f32 %v10491_v11  ;;  %v11401_v34 = vld [vmem:[#allocation6 + $0x164] ss:$8 sps:$4 sm:$0xff]   ;;  %5282 = vmatprep.subr.bf16.mxu1 %v11407_v52  ;;  %v3976_v11 = vmul.f32 %v13383_v9, %v13294_v30  ;;  %v4235_v30 = vmul.f32 %v13395_v44, %v13304_v14  ;;  %v4457_v14 = vmul.f32 %v13407_v28, %v13311_v50  ;;  %v11420_v40 = vld [vmem:[#allocation6 + $0x120] ss:$8 sps:$4 sm:$0xff]   ;;  %v11428_v1 = vld [vmem:[#allocation6 + $0x134] ss:$8 sps:$4 sm:$0xff]  }
 0xd0a   :  { %11967 = vrcp.f32 %v4671_v13  ;;  %5283 = vmatpush1.bf16.msra.mxu1 %v11405_v31  ;;  %v11402_v13 = vld [vmem:[#allocation6 + $0x170] ss:$8 sps:$4 sm:$0xff]   ;;  %v11410_v35 = vld [vmem:[#allocation6 + $0x104] ss:$8 sps:$4 sm:$0xff]   ;;  %v11429_v31 = vld [vmem:[#allocation3 + $0x100] ss:$8 sps:$4 sm:$0xff]  }
 0xd0b   :  { %5198 = vmatpush1.bf16.msra.mxu0 %v11396_v39  ;;  %v11434_v25 = vld [vmem:[#allocation6 + $0xc4] ss:$8 sps:$4 sm:$0xff]   ;;  %v11432_v39 = vld [vmem:[#allocation6 + $0xc0] ss:$8 sps:$4 sm:$0xff]   ;;  %v11437_v52 = vld [vmem:[#allocation3 + $0x114] ss:$8 sps:$4 sm:$0xff]  }
 0xd0c   :  { %5199 = vmatprep.subr.bf16.mxu0 %v11401_v34  ;;  %v11440_v34 = vld [vmem:[#allocation6 + $0xd4] ss:$8 sps:$4 sm:$0xff]  }
 0xd0f   :  { %5200 = vmatpush1.bf16.msra.mxu0 %v11399_v10 }
 0xd10   :  { %v13414_v32 = vpop.eup %11961  ;;  %5201 = vmatprep.subr.bf16.mxu0 %v11404_v6  ;;  %v11435_v6 = vld [vmem:[#allocation3 + $0x110] ss:$8 sps:$4 sm:$0xff]  }
 0xd11   :  { %v5087_v23 = vpop.f32.mrb[104].mxu1  ;;  %v4677_v16 = vmul.f32 2.0, %v13414_v32 }
 0xd12   :  { %v11964_v51 = vpop.eup %11963  ;;  %v5088_v29 = vadd.f32 %v5087_v23, %v5003_v49  ;;  %v5089_v4 = vpop.f32.mrb[105].mxu1  ;;  %v11411_v23 = vld [vmem:[#allocation3 + $0x150] ss:$8 sps:$4 sm:$0xff]  }
 0xd13   :  { %v11966_v22 = vpop.eup %11965  ;;  %v5090_v19 = vadd.f32 %v5089_v4, %v5005_v2  ;;  %v5091_v45 = vpop.f32.mrb[106].mxu1  ;;  %v10470_v61 = vadd.f32 -1.0, %v4677_v16  ;;  %v4893_v36 = vadd.f32 1.0, %v11964_v51  ;;  %5202 = vmatpush1.bf16.msra.mxu0 %v11402_v13  ;;  %v11417_v16 = vld [vmem:[#allocation3 + $0x160] ss:$8 sps:$4 sm:$0xff]  }
 0xd14   :  { %v13419_v42 = vpop.eup %11967  ;;  %v4894_v21 = vadd.f32 1.0, %v11966_v22  ;;  %v5106_v62 = vadd.f32 %v5099_v57, %v5088_v29  ;;  %v5092_v20 = vpop.f32.mrb[107].mxu1  ;;  %5454 = vmatprep.subr.bf16.mxu0 %v11410_v35  ;;  %v11419_v51 = vld [vmem:[#allocation3 + $0x164] ss:$8 sps:$4 sm:$0xff]   ;;  %v11423_v22 = vld [vmem:[#allocation3 + $0x170] ss:$8 sps:$4 sm:$0xff]  }
 0xd15   :  { %v5107_v37 = vadd.f32 %v5103_v7, %v5090_v19  ;;  %v4680_v12 = vmul.f32 %v13419_v42, %v10470_v61  ;;  %v11413_v7 = vld [vmem:[#allocation3 + $0x154] ss:$8 sps:$4 sm:$0xff]   ;;  %v11438_v13 = vld [vmem:[#allocation6 + $0xd0] ss:$8 sps:$4 sm:$0xff]   ;;  %v11443_v35 = vld [vmem:[#allocation3 + $0x124] ss:$8 sps:$4 sm:$0xff]  }
 0xd16   :  { %11969 = vrcp.f32 %v4894_v21  ;;  %v10512_v8 = vmul.f32 -1.442695, %v5106_v62  ;;  %5284 = vmatprep.subr.bf16.mxu1 %v11413_v7  ;;  %v11425_v19 = vld [vmem:[#allocation3 + $0x174] ss:$8 sps:$4 sm:$0xff]   ;;  %v11431_v21 = vld [vmem:[#allocation3 + $0x104] ss:$8 sps:$4 sm:$0xff]  }
 0xd17   :  { %v10513_v47 = vmul.f32 -1.442695, %v5107_v37  ;;  %4682 = vrot.lane.b32.xlu1 %v4680_v12, %s12373_s14  ;;  %5285 = vmatpush1.bf16.msra.mxu1 %v11411_v23  ;;  %v11444_v23 = vld [vmem:[#allocation6 + $0xe0] ss:$8 sps:$4 sm:$0xff]   ;;  %v11449_v7 = vld [vmem:[#allocation3 + $0x134] ss:$8 sps:$4 sm:$0xff]  }
 0xd18   :  { %11971 = vpow2.f32 %v10512_v8  ;;  %5286 = vmatprep.subr.bf16.mxu1 %v11419_v51  ;;  %v4679_v8 = vmul.f32 %v13419_v42, %v13318_v18  ;;  %v11447_v51 = vld [vmem:[#allocation3 + $0x130] ss:$8 sps:$4 sm:$0xff]  }
 0xd19   :  { %11973 = vpow2.f32 %v10513_v47 }
 0xd1a   :  { %11975 = vrcp.f32 %v4893_v36 }
 0xd1b   :  { %5287 = vmatpush1.bf16.msra.mxu1 %v11417_v16  ;;  %v11452_v16 = vld [vmem:[#allocation6 + $0xf4] ss:$8 sps:$4 sm:$0xff]  }
 0xd1c   :  { %5288 = vmatprep.subr.bf16.mxu1 %v11425_v19  ;;  %v11458_v19 = vld [vmem:[#allocation6 + $0x84] ss:$8 sps:$4 sm:$0xff]  }
 0xd1f   :  { %5289 = vmatpush1.bf16.msra.mxu1 %v11423_v22  ;;  %v11455_v22 = vld [vmem:[#allocation3 + $0xc4] ss:$8 sps:$4 sm:$0xff]  }
 0xd20   :  { %v13423_v17 = vpop.eup %11969  ;;  %5541 = vmatprep.subr.bf16.mxu1 %v11431_v21  ;;  %v11464_v21 = vld [vmem:[#allocation6 + $0x94] ss:$8 sps:$4 sm:$0xff]  }
 0xd21   :  { %v4899_v24 = vmul.f32 2.0, %v13423_v17 }
 0xd22   :  { %v11972_v38 = vpop.eup %11971 }
 0xd23   :  { %v11974_v33 = vpop.eup %11973  ;;  %v10492_v54 = vadd.f32 -1.0, %v4899_v24  ;;  %v5114_v58 = vadd.f32 1.0, %v11972_v38 }
 0xd24   :  { %v13426_v49 = vpop.eup %11975  ;;  %v5115_v56 = vadd.f32 1.0, %v11974_v33 }
 0xd25   :  { %v4902_v46 = vmul.f32 %v13426_v49, %v10492_v54  ;;  %v4901_v38 = vmul.f32 %v13426_v49, %v13325_v3 }
 0xd26   :  { %11977 = vrcp.f32 %v5115_v56 }
 0xd27   :  { %4904 = vrot.lane.b32.xlu0 %v4902_v46, %s12373_s14  ;;  %11979 = vrcp.f32 %v5114_v58 }
 0xd30   :  { %v13430_v41 = vpop.eup %11977 }
 0xd31   :  { %v5120_v59 = vmul.f32 2.0, %v13430_v41  ;;  %v13433_v26 = vpop.eup %11979 }
 0xd32   :  { %v5122_v56 = vmul.f32 %v13433_v26, %v13332_v48  ;;  %v11414_v48 = vld [vmem:[#allocation6 + $0x110] ss:$8 sps:$4 sm:$0xff]  }
 0xd33   :  { %v10514_v2 = vadd.f32 -1.0, %v5120_v59 }
 0xd35   :  { %v5123_v55 = vmul.f32 %v13433_v26, %v10514_v2  ;;  %v11408_v2 = vld [vmem:[#allocation6 + $0x100] ss:$8 sps:$4 sm:$0xff]   ;;  %v11422_v26 = vld [vmem:[#allocation6 + $0x124] ss:$8 sps:$4 sm:$0xff]  }
 0xd37   :  { %5125 = vrot.lane.b32.xlu1 %v5123_v55, %s12373_s14  ;;  %v11416_v55 = vld [vmem:[#allocation6 + $0x114] ss:$8 sps:$4 sm:$0xff]  }
 0xd5a   :  { %v3980_v5 = vpop.permute.xlu0 %3979 }
 0xd5b   :  { %v13439_v57 = vadd.f32 %v3980_v5, %v3976_v11  ;;  %v11446_v11 = vld [vmem:[#allocation6 + $0xe4] ss:$8 sps:$4 sm:$0xff]   ;;  %v11441_v5 = vld [vmem:[#allocation3 + $0x120] ss:$8 sps:$4 sm:$0xff]  }
 0xd5d   :  { %11981 = vtanh.f32 %v13439_v57 }
 0xd67   :  { %v11982_v29 = vpop.eup %11981 }
 0xd68   :  { %v13443_v4 = vmul.f32 %v11982_v29, %v13378_v60  ;;  %v11450_v29 = vld [vmem:[#allocation6 + $0xf0] ss:$8 sps:$4 sm:$0xff]  }
 0xd6a   :  { %14471 = vst [vmem:[#allocation15_spill] sm:$0xff] %v13443_v4  ;;  %v4239_v9 = vpop.permute.xlu1 %4238  ;;  %v5140_v45 = vpack.c.bf16 %v13443_v4, %v13443_v4  ;;  %v13789_v4 = vld [vmem:[#allocation6 + $0xa4] ss:$8 sps:$4 sm:$0xff]  }
 0xd6b   :  { %v13449_v61 = vadd.f32 %v4239_v9, %v4235_v30  ;;  %v11453_v30 = vld [vmem:[#allocation3 + $0xc0] ss:$8 sps:$4 sm:$0xff]   ;;  %14481 = vst [vmem:[#allocation22_spill] sm:$0xff] %v13789_v4 }
 0xd6c   :  { %5150 = vrot.lane.b32.xlu0 %v5140_v45, %s12373_s14  ;;  %v11456_v9 = vld [vmem:[#allocation6 + $0x80] ss:$8 sps:$4 sm:$0xff]   ;;  %v11461_v45 = vld [vmem:[#allocation3 + $0xd4] ss:$8 sps:$4 sm:$0xff]  }
 0xd6d   :  { %11983 = vtanh.f32 %v13449_v61 }
 0xd77   :  { %v11984_v60 = vpop.eup %11983 }
 0xd78   :  { %v4243_v62 = vmul.f32 %v11984_v60, %v13390_v53 }
 0xd7a   :  { %v4461_v44 = vpop.permute.xlu0 %4460  ;;  %v5131_v20 = vpack.c.bf16 %v4243_v62, %v4243_v62  ;;  %v11459_v62 = vld [vmem:[#allocation3 + $0xd0] ss:$8 sps:$4 sm:$0xff]  }
 0xd7b   :  { %v13456_v37 = vadd.f32 %v4461_v44, %v4457_v14  ;;  %v11462_v14 = vld [vmem:[#allocation6 + $0x90] ss:$8 sps:$4 sm:$0xff]   ;;  %v11467_v44 = vld [vmem:[#allocation3 + $0xe4] ss:$8 sps:$4 sm:$0xff]  }
 0xd7c   :  { %5237 = vrot.lane.b32.xlu1 %v5131_v20, %s12373_s14  ;;  %v11470_v20 = vld [vmem:[#allocation6 + $0xa4] ss:$8 sps:$4 sm:$0xff]  }
 0xd7d   :  { %11985 = vtanh.f32 %v13456_v37 }
 0xd87   :  { %v11986_v12 = vpop.eup %11985 }
 0xd88   :  { %v4465_v36 = vmul.f32 %v11986_v12, %v13402_v27  ;;  %v11465_v12 = vld [vmem:[#allocation3 + $0xe0] ss:$8 sps:$4 sm:$0xff]  }
 0xd89   :  { %v4683_v47 = vpop.permute.xlu1 %4682 }
 0xd8a   :  { %v5397_v24 = vpack.c.bf16 %v4465_v36, %v4465_v36  ;;  %v13463_v53 = vadd.f32 %v4683_v47, %v4679_v8  ;;  %v11468_v36 = vld [vmem:[#allocation6 + $0xa0] ss:$8 sps:$4 sm:$0xff]   ;;  %v11473_v8 = vld [vmem:[#allocation3 + $0xf4] ss:$8 sps:$4 sm:$0xff]  }
 0xd8b   :  { %v11476_v47 = vld [vmem:[#allocation6 + $0xb4] ss:$8 sps:$4 sm:$0xff]  }
 0xd8c   :  { %5496 = vrot.lane.b32.xlu0 %v5397_v24, %s12373_s14  ;;  %11987 = vtanh.f32 %v13463_v53  ;;  %v11471_v24 = vld [vmem:[#allocation3 + $0xf0] ss:$8 sps:$4 sm:$0xff]  }
 0xd96   :  { %v11988_v50 = vpop.eup %11987 }
 0xd97   :  { %v4687_v28 = vmul.f32 %v11988_v50, %v13414_v32  ;;  %v11474_v50 = vld [vmem:[#allocation6 + $0xb0] ss:$8 sps:$4 sm:$0xff]  }
 0xd99   :  { %v4905_v33 = vpop.permute.xlu0 %4904  ;;  %v5619_v54 = vpack.c.bf16 %v4687_v28, %v4687_v28  ;;  %v11479_v28 = vld [vmem:[#allocation3 + $0x84] ss:$8 sps:$4 sm:$0xff]  }
 0xd9a   :  { %v13470_v27 = vadd.f32 %v4905_v33, %v4901_v38  ;;  %v11482_v38 = vld [vmem:[#allocation6 + $0x44] ss:$8 sps:$4 sm:$0xff]   ;;  %v11477_v33 = vld [vmem:[#allocation3 + $0x80] ss:$8 sps:$4 sm:$0xff]  }
 0xd9b   :  { %5718 = vrot.lane.b32.xlu1 %v5619_v54, %s12373_s14  ;;  %v11480_v54 = vld [vmem:[#allocation6 + $0x40] ss:$8 sps:$4 sm:$0xff]  }
 0xd9c   :  { %11989 = vtanh.f32 %v13470_v27 }
 0xda6   :  { %v11990_v18 = vpop.eup %11989 }
 0xda7   :  { %v4909_v42 = vmul.f32 %v11990_v18, %v13423_v17  ;;  %v11485_v18 = vld [vmem:[#allocation3 + $0x94] ss:$8 sps:$4 sm:$0xff]  }
 0xda9   :  { %v5126_v46 = vpop.permute.xlu1 %5125  ;;  %v5841_v58 = vpack.c.bf16 %v4909_v42, %v4909_v42  ;;  %v11488_v42 = vld [vmem:[#allocation6 + $0x54] ss:$8 sps:$4 sm:$0xff]  }
 0xdaa   :  { %v13477_v32 = vadd.f32 %v5126_v46, %v5122_v56  ;;  %v11483_v46 = vld [vmem:[#allocation3 + $0x90] ss:$8 sps:$4 sm:$0xff]  }
 0xdab   :  { %5940 = vrot.lane.b32.xlu0 %v5841_v58, %s12373_s14  ;;  %v11486_v58 = vld [vmem:[#allocation6 + $0x50] ss:$8 sps:$4 sm:$0xff]  }
 0xdac   :  { %11991 = vtanh.f32 %v13477_v32 }
 0xdb6   :  { %v11992_v3 = vpop.eup %11991 }
 0xdb7   :  { %v5130_v49 = vmul.f32 %v11992_v3, %v13430_v41  ;;  %v11426_v41 = vld [vmem:[#allocation6 + $0x130] ss:$8 sps:$4 sm:$0xff]   ;;  %v11491_v3 = vld [vmem:[#allocation3 + $0xa4] ss:$8 sps:$4 sm:$0xff]  }
 0xdb9   :  { %v6063_v59 = vpack.c.bf16 %v5130_v49, %v5130_v49  ;;  %v11494_v49 = vld [vmem:[#allocation6 + $0x64] ss:$8 sps:$4 sm:$0xff]  }
 0xdbb   :  { %6162 = vrot.lane.b32.xlu1 %v6063_v59, %s12373_s14  ;;  %v11489_v59 = vld [vmem:[#allocation3 + $0xa0] ss:$8 sps:$4 sm:$0xff]  }
 0xdde   :  { %v5151_v17 = vpop.permute.xlu0 %5150 }
 0xddf   :  { %10523 = vmatmul.mubr.msk.bf16.vlgmr.msra.gmra.mrb[108].mxu0 %vm142_vm0, %v5151_v17  ;;  %v11500_v17 = vld [vmem:[#allocation6 + $0x74] ss:$8 sps:$4 sm:$0xff]  }
 0xde0   :  { %5455 = vmatpush1.bf16.msra.mxu0 %v11408_v2  ;;  %5486 = vmatprep.mubr.bf16.mxu0 %v14444_v63  ;;  %v11492_v2 = vld [vmem:[#allocation6 + $0x60] ss:$8 sps:$4 sm:$0xff]  }
 0xde1   :  { %5456 = vmatprep.subr.bf16.mxu0 %v11416_v55  ;;  %v11497_v55 = vld [vmem:[#allocation3 + $0xb4] ss:$8 sps:$4 sm:$0xff]  }
 0xde4   :  { %5457 = vmatpush1.bf16.msra.mxu0 %v11414_v48  ;;  %v11495_v48 = vld [vmem:[#allocation3 + $0xb0] ss:$8 sps:$4 sm:$0xff]  }
 0xde5   :  { %5458 = vmatprep.subr.bf16.mxu0 %v11422_v26  ;;  %v11498_v26 = vld [vmem:[#allocation6 + $0x70] ss:$8 sps:$4 sm:$0xff]  }
 0xde8   :  { %5459 = vmatpush1.bf16.msra.mxu0 %v11420_v40  ;;  %v11503_v40 = vld [vmem:[#allocation3 + $0x44] ss:$8 sps:$4 sm:$0xff]  }
 0xde9   :  { %5460 = vmatprep.subr.bf16.mxu0 %v11428_v1  ;;  %v11506_v1 = vld [vmem:[#allocation6 + $0x4] ss:$8 sps:$4 sm:$0xff]  }
 0xdec   :  { %5461 = vmatpush1.bf16.msra.mxu0 %v11426_v41  ;;  %v11501_v41 = vld [vmem:[#allocation3 + $0x40] ss:$8 sps:$4 sm:$0xff]  }
 0xded   :  { %5676 = vmatprep.subr.bf16.mxu0 %v11434_v25  ;;  %v11504_v25 = vld [vmem:[#allocation6] ss:$8 sps:$4 sm:$0xff]  }
 0xdee   :  { %v5238_v10 = vpop.permute.xlu1 %5237 }
 0xdef   :  { %10532 = vmatmul.mubr.msk.bf16.vlgmr.msra.gmra.mrb[108].mxu1 %vm142_vm0, %v5238_v10  ;;  %10548 = vmatmul.mubr.msk.bf16.vlgmr.msra.gmra.mrb[112].mxu0 %vm142_vm0, %v5238_v10  ;;  %v11510_v10 = vld [vmem:[#allocation6 + $0x10] ss:$8 sps:$4 sm:$0xff]  }
 0xdf0   :  { %5542 = vmatpush1.bf16.msra.mxu1 %v11429_v31  ;;  %5677 = vmatpush1.bf16.msra.mxu0 %v11432_v39  ;;  %v11509_v31 = vld [vmem:[#allocation3 + $0x54] ss:$8 sps:$4 sm:$0xff]  }
 0xdf1   :  { %5543 = vmatprep.subr.bf16.mxu1 %v11437_v52  ;;  %5678 = vmatprep.subr.bf16.mxu0 %v11440_v34  ;;  %v11512_v39 = vld [vmem:[#allocation6 + $0x14] ss:$8 sps:$4 sm:$0xff]   ;;  %v11507_v34 = vld [vmem:[#allocation3 + $0x50] ss:$8 sps:$4 sm:$0xff]  }
 0xdf2   :  { %5573 = vmatprep.mubr.bf16.mxu1 %v14444_v63  ;;  %5708 = vmatprep.mubr.bf16.mxu0 %v14444_v63 }
 0xdf4   :  { %5544 = vmatpush1.bf16.msra.mxu1 %v11435_v6  ;;  %5679 = vmatpush1.bf16.msra.mxu0 %v11438_v13  ;;  %v13499_v6 = vld [vmem:[#allocation3 + $0x64] ss:$8 sps:$4 sm:$0xff]  }
 0xdf5   :  { %5545 = vmatprep.subr.bf16.mxu1 %v11443_v35  ;;  %5680 = vmatprep.subr.bf16.mxu0 %v11446_v11  ;;  %v11518_v13 = vld [vmem:[#allocation6 + $0x24] ss:$8 sps:$4 sm:$0xff]   ;;  %v13503_v35 = vld [vmem:[#allocation3 + $0x60] ss:$8 sps:$4 sm:$0xff]  }
 0xdf6   :  { %v11516_v11 = vld [vmem:[#allocation6 + $0x20] ss:$8 sps:$4 sm:$0xff]  }
 0xdf8   :  { %5546 = vmatpush1.bf16.msra.mxu1 %v11441_v5  ;;  %5681 = vmatpush1.bf16.msra.mxu0 %v11444_v23  ;;  %v13506_v5 = vld [vmem:[#allocation3 + $0x74] ss:$8 sps:$4 sm:$0xff]  }
 0xdf9   :  { %5547 = vmatprep.subr.bf16.mxu1 %v11449_v7  ;;  %5682 = vmatprep.subr.bf16.mxu0 %v11452_v16  ;;  %v11524_v23 = vld [vmem:[#allocation6 + $0x34] ss:$8 sps:$4 sm:$0xff]   ;;  %v13509_v7 = vld [vmem:[#allocation3 + $0x70] ss:$8 sps:$4 sm:$0xff]  }
 0xdfa   :  { %v11522_v16 = vld [vmem:[#allocation6 + $0x30] ss:$8 sps:$4 sm:$0xff]  }
 0xdfc   :  { %5548 = vmatpush1.bf16.msra.mxu1 %v11447_v51  ;;  %5683 = vmatpush1.bf16.msra.mxu0 %v11450_v29  ;;  %v11527_v51 = vld [vmem:[#allocation3 + $0x4] ss:$8 sps:$4 sm:$0xff]   ;;  %v11525_v29 = vld [vmem:[#allocation3] ss:$8 sps:$4 sm:$0xff]  }
 0xdfd   :  { %5763 = vmatprep.subr.bf16.mxu1 %v11455_v22  ;;  %5898 = vmatprep.subr.bf16.mxu0 %v11458_v19  ;;  %v11530_v22 = vld [vmem:[#allocation3 + $0x14] ss:$8 sps:$4 sm:$0xff]  }
 0xdfe   :  { %v5497_v60 = vpop.permute.xlu0 %5496 }
 0xdff   :  { %10557 = vmatmul.mubr.msk.bf16.vlgmr.msra.gmra.mrb[112].mxu1 %vm142_vm0, %v5497_v60  ;;  %10570 = vmatmul.mubr.msk.bf16.vlgmr.msra.gmra.mrb[116].mxu0 %vm142_vm0, %v5497_v60  ;;  %v11534_v60 = vld [vmem:[#allocation3 + $0x30] ss:$8 sps:$4 sm:$0xff]  }
 0xe00   :  { %5764 = vmatpush1.bf16.msra.mxu1 %v11453_v30  ;;  %5899 = vmatpush1.bf16.msra.mxu0 %v11456_v9  ;;  %v11528_v30 = vld [vmem:[#allocation3 + $0x10] ss:$8 sps:$4 sm:$0xff]   ;;  %v11533_v9 = vld [vmem:[#allocation3 + $0x24] ss:$8 sps:$4 sm:$0xff]  }
 0xe01   :  { %5765 = vmatprep.subr.bf16.mxu1 %v11461_v45  ;;  %5900 = vmatprep.subr.bf16.mxu0 %v11464_v21  ;;  %v11531_v45 = vld [vmem:[#allocation3 + $0x20] ss:$8 sps:$4 sm:$0xff]   ;;  %v11536_v21 = vld [vmem:[#allocation3 + $0x34] ss:$8 sps:$4 sm:$0xff]  }
 0xe02   :  { %5795 = vmatprep.mubr.bf16.mxu1 %v14444_v63  ;;  %5930 = vmatprep.mubr.bf16.mxu0 %v14444_v63 }
 0xe04   :  { %5766 = vmatpush1.bf16.msra.mxu1 %v11459_v62  ;;  %5901 = vmatpush1.bf16.msra.mxu0 %v11462_v14  ;;  %v10628_v62 = vld [vmem:[%s14371_s0 + $0xe] sm:$0x3] }
 0xe05   :  { %5767 = vmatprep.subr.bf16.mxu1 %v11467_v44  ;;  %5902 = vmatprep.subr.bf16.mxu0 %v11470_v20  ;;  %v6287_v14 = vpack.c.bf16 %v10628_v62, %v10628_v62 }
 0xe08   :  { %5768 = vmatpush1.bf16.msra.mxu1 %v11465_v12  ;;  %5903 = vmatpush1.bf16.msra.mxu0 %v11468_v36 }
 0xe09   :  { %5769 = vmatprep.subr.bf16.mxu1 %v11473_v8  ;;  %5904 = vmatprep.subr.bf16.mxu0 %v11476_v47  ;;  %v10533_v8 = vld [vmem:[%s14374_s3 + $0xa] sm:$0x3] }
 0xe0a   :  { %v5328_v47 = vrot.slane %v10533_v8, %v14463_v15 }
 0xe0c   :  { %5770 = vmatpush1.bf16.msra.mxu1 %v11471_v24  ;;  %5905 = vmatpush1.bf16.msra.mxu0 %v11474_v50 }
 0xe0d   :  { %5985 = vmatprep.subr.bf16.mxu1 %v11479_v28  ;;  %6120 = vmatprep.subr.bf16.mxu0 %v11482_v38  ;;  %v5719_v56 = vpop.permute.xlu1 %5718  ;;  %v5332_v28 = vrot.slane %v10533_v8, %v14464_v43 }
 0xe0f   :  { %10579 = vmatmul.mubr.msk.bf16.vlgmr.msra.gmra.mrb[116].mxu1 %vm142_vm0, %v5719_v56  ;;  %10592 = vmatmul.mubr.msk.bf16.vlgmr.msra.gmra.mrb[120].mxu0 %vm142_vm0, %v5719_v56 }
 0xe10   :  { %5986 = vmatpush1.bf16.msra.mxu1 %v11477_v33  ;;  %6121 = vmatpush1.bf16.msra.mxu0 %v11480_v54 }
 0xe11   :  { %5987 = vmatprep.subr.bf16.mxu1 %v11485_v18  ;;  %6122 = vmatprep.subr.bf16.mxu0 %v11488_v42 }
 0xe12   :  { %6017 = vmatprep.mubr.bf16.mxu1 %v14444_v63  ;;  %6152 = vmatprep.mubr.bf16.mxu0 %v14444_v63 }
 0xe14   :  { %5988 = vmatpush1.bf16.msra.mxu1 %v11483_v46  ;;  %6123 = vmatpush1.bf16.msra.mxu0 %v11486_v58 }
 0xe15   :  { %5989 = vmatprep.subr.bf16.mxu1 %v11491_v3  ;;  %6124 = vmatprep.subr.bf16.mxu0 %v11494_v49 }
 0xe18   :  { %5990 = vmatpush1.bf16.msra.mxu1 %v11489_v59  ;;  %6125 = vmatpush1.bf16.msra.mxu0 %v11492_v2 }
 0xe19   :  { %5991 = vmatprep.subr.bf16.mxu1 %v11497_v55  ;;  %6126 = vmatprep.subr.bf16.mxu0 %v11500_v17  ;;  %v10558_v55 = vld [vmem:[%s14374_s3 + $0x8] sm:$0x3] }
 0xe1a   :  { %v5587_v17 = vrot.slane %v10558_v55, %v14463_v15 }
 0xe1c   :  { %5992 = vmatpush1.bf16.msra.mxu1 %v11495_v48  ;;  %6127 = vmatpush1.bf16.msra.mxu0 %v11498_v26 }
 0xe1d   :  { %6207 = vmatprep.subr.bf16.mxu1 %v11503_v40  ;;  %6344 = vmatprep.subr.bf16.mxu0 %v11506_v1  ;;  %v5941_v52 = vpop.permute.xlu0 %5940  ;;  %v5591_v40 = vrot.slane %v10558_v55, %v14464_v43 }
 0xe1f   :  { %10601 = vmatmul.mubr.msk.bf16.vlgmr.msra.gmra.mrb[120].mxu1 %vm142_vm0, %v5941_v52  ;;  %10614 = vmatmul.mubr.msk.bf16.vlgmr.msra.gmra.mrb[124].mxu0 %vm142_vm0, %v5941_v52 }
 0xe20   :  { %6208 = vmatpush1.bf16.msra.mxu1 %v11501_v41  ;;  %6345 = vmatpush1.bf16.msra.mxu0 %v11504_v25 }
 0xe21   :  { %6209 = vmatprep.subr.bf16.mxu1 %v11509_v31  ;;  %6346 = vmatprep.subr.bf16.mxu0 %v11512_v39 }
 0xe22   :  { %6239 = vmatprep.mubr.bf16.mxu1 %v14444_v63  ;;  %6376 = vmatprep.mubr.bf16.mxu0 %v14444_v63 }
 0xe24   :  { %6210 = vmatpush1.bf16.msra.mxu1 %v11507_v34  ;;  %6347 = vmatpush1.bf16.msra.mxu0 %v11510_v10 }
 0xe25   :  { %6211 = vmatprep.subr.bf16.mxu1 %v13499_v6  ;;  %6348 = vmatprep.subr.bf16.mxu0 %v11518_v13 }
 0xe28   :  { %6212 = vmatpush1.bf16.msra.mxu1 %v13503_v35  ;;  %6349 = vmatpush1.bf16.msra.mxu0 %v11516_v11 }
 0xe29   :  { %6213 = vmatprep.subr.bf16.mxu1 %v13506_v5  ;;  %6350 = vmatprep.subr.bf16.mxu0 %v11524_v23 }
 0xe2c   :  { %6214 = vmatpush1.bf16.msra.mxu1 %v13509_v7  ;;  %6351 = vmatpush1.bf16.msra.mxu0 %v11522_v16 }
 0xe2d   :  { %6428 = vmatprep.subr.bf16.mxu1 %v11527_v51  ;;  %v6163_v19 = vpop.permute.xlu1 %6162 }
 0xe2f   :  { %10623 = vmatmul.mubr.msk.bf16.vlgmr.msra.gmra.mrb[124].mxu1 %vm142_vm0, %v6163_v19  ;;  %10637 = vmatmul.mubr.msk.bf16.vlgmr.msra.gmra.mrb[128].mxu0 %vm142_vm0, %v6163_v19 }
 0xe30   :  { %6429 = vmatpush1.bf16.msra.mxu1 %v11525_v29  ;;  %6460 = vmatprep.mubr.bf16.mxu1 %v14444_v63 }
 0xe31   :  { %6430 = vmatprep.subr.bf16.mxu1 %v11530_v22  ;;  %6602 = vmatprep.mubr.bf16.mxu0 %v14444_v63 }
 0xe34   :  { %6431 = vmatpush1.bf16.msra.mxu1 %v11528_v30  ;;  %v10580_v30 = vld [vmem:[%s14374_s3 + $0x6] sm:$0x3] }
 0xe35   :  { %6432 = vmatprep.subr.bf16.mxu1 %v11533_v9  ;;  %v5813_v62 = vrot.slane %v10580_v30, %v14464_v43 }
 0xe38   :  { %6433 = vmatpush1.bf16.msra.mxu1 %v11531_v45  ;;  %v5809_v45 = vrot.slane %v10580_v30, %v14463_v15 }
 0xe39   :  { %6434 = vmatprep.subr.bf16.mxu1 %v11536_v21 }
 0xe3c   :  { %6435 = vmatpush1.bf16.msra.mxu1 %v11534_v60 }
 0xe3f   :  { %10646 = vmatmul.mubr.msk.bf16.vlgmr.msra.gmra.mrb[128].mxu1 %vm142_vm0, %v6287_v14 }
 0xe40   :  { %6689 = vmatprep.mubr.bf16.mxu1 %v14444_v63 }
 0xeb2   :  { %v5229_v44 = vpop.f32.mrb[108].mxu0 }
 0xeb3   :  { %v5231_v20 = vpop.f32.mrb[109].mxu0 }
 0xeb4   :  { %v5233_v12 = vpop.f32.mrb[110].mxu0 }
 0xeb5   :  { %v5234_v36 = vpop.f32.mrb[111].mxu0 }
 0xec2   :  { %v5316_v24 = vpop.f32.mrb[108].mxu1  ;;  %v5488_v50 = vpop.f32.mrb[112].mxu0 }
 0xec3   :  { %v5317_v38 = vadd.f32 %v5316_v24, %v5229_v44  ;;  %v5318_v33 = vpop.f32.mrb[109].mxu1  ;;  %v5490_v54 = vpop.f32.mrb[113].mxu0 }
 0xec4   :  { %v5319_v18 = vadd.f32 %v5318_v33, %v5231_v20  ;;  %v5320_v42 = vpop.f32.mrb[110].mxu1  ;;  %v5492_v56 = vpop.f32.mrb[114].mxu0 }
 0xec5   :  { %v5335_v46 = vadd.f32 %v5328_v47, %v5317_v38  ;;  %v5321_v58 = vpop.f32.mrb[111].mxu1  ;;  %v5493_v3 = vpop.f32.mrb[115].mxu0 }
 0xec6   :  { %v5336_v49 = vadd.f32 %v5332_v28, %v5319_v18 }
 0xec7   :  { %v10534_v59 = vmul.f32 -1.442695, %v5335_v46 }
 0xec8   :  { %v10535_v2 = vmul.f32 -1.442695, %v5336_v49 }
 0xec9   :  { %11993 = vpow2.f32 %v10534_v59  ;;  %v10602_v59 = vld [vmem:[%s14374_s3 + $0x4] sm:$0x3] }
 0xeca   :  { %11995 = vpow2.f32 %v10535_v2  ;;  %v6031_v55 = vrot.slane %v10602_v59, %v14463_v15 }
 0xed2   :  { %v5575_v48 = vpop.f32.mrb[112].mxu1  ;;  %v5710_v26 = vpop.f32.mrb[116].mxu0 }
 0xed3   :  { %v11994_v1 = vpop.eup %11993  ;;  %v5576_v41 = vadd.f32 %v5575_v48, %v5488_v50  ;;  %v5577_v25 = vpop.f32.mrb[113].mxu1 }
 0xed4   :  { %v5712_v31 = vpop.f32.mrb[117].mxu0  ;;  %v11996_v39 = vpop.eup %11995  ;;  %v5578_v52 = vadd.f32 %v5577_v25, %v5490_v54  ;;  %v5343_v29 = vadd.f32 1.0, %v11994_v1 }
 0xed5   :  { %v5579_v34 = vpop.f32.mrb[114].mxu1  ;;  %v5714_v10 = vpop.f32.mrb[118].mxu0  ;;  %v5344_v13 = vadd.f32 1.0, %v11996_v39  ;;  %v5594_v11 = vadd.f32 %v5587_v17, %v5576_v41 }
 0xed6   :  { %v5580_v23 = vpop.f32.mrb[115].mxu1  ;;  %v5715_v16 = vpop.f32.mrb[119].mxu0  ;;  %v5595_v51 = vadd.f32 %v5591_v40, %v5578_v52 }
 0xed7   :  { %11997 = vrcp.f32 %v5344_v13  ;;  %v10559_v22 = vmul.f32 -1.442695, %v5594_v11 }
 0xed8   :  { %v10560_v19 = vmul.f32 -1.442695, %v5595_v51 }
 0xed9   :  { %11999 = vpow2.f32 %v10559_v22 }
 0xeda   :  { %12001 = vpow2.f32 %v10560_v19 }
 0xedb   :  { %12003 = vrcp.f32 %v5343_v29 }
 0xee1   :  { %v13535_v9 = vpop.eup %11997 }
 0xee2   :  { %v5797_v21 = vpop.f32.mrb[116].mxu1  ;;  %v5932_v60 = vpop.f32.mrb[120].mxu0  ;;  %v5349_v14 = vmul.f32 2.0, %v13535_v9 }
 0xee3   :  { %v12000_v44 = vpop.eup %11999  ;;  %v5798_v20 = vadd.f32 %v5797_v21, %v5710_v26  ;;  %v5799_v12 = vpop.f32.mrb[117].mxu1  ;;  %v6035_v26 = vrot.slane %v10602_v59, %v14464_v43 }
 0xee4   :  { %v5934_v36 = vpop.f32.mrb[121].mxu0  ;;  %v12002_v8 = vpop.eup %12001  ;;  %v5800_v47 = vadd.f32 %v5799_v12, %v5712_v31  ;;  %v10536_v28 = vadd.f32 -1.0, %v5349_v14  ;;  %v5602_v58 = vadd.f32 1.0, %v12000_v44 }
 0xee5   :  { %v5801_v24 = vpop.f32.mrb[118].mxu1  ;;  %v5936_v50 = vpop.f32.mrb[122].mxu0  ;;  %v5603_v33 = vadd.f32 1.0, %v12002_v8  ;;  %v5816_v54 = vadd.f32 %v5809_v45, %v5798_v20 }
 0xee6   :  { %v13540_v38 = vpop.eup %12003  ;;  %v5802_v18 = vpop.f32.mrb[119].mxu1  ;;  %v5817_v56 = vadd.f32 %v5813_v62, %v5800_v47 }
 0xee7   :  { %v5937_v42 = vpop.f32.mrb[123].mxu0  ;;  %v5352_v46 = vmul.f32 %v13540_v38, %v10536_v28  ;;  %12005 = vrcp.f32 %v5603_v33  ;;  %v10581_v3 = vmul.f32 -1.442695, %v5816_v54 }
 0xee8   :  { %v10582_v49 = vmul.f32 -1.442695, %v5817_v56 }
 0xee9   :  { %5354 = vrot.lane.b32.xlu0 %v5352_v46, %s12373_s14  ;;  %12007 = vpow2.f32 %v10581_v3 }
 0xeea   :  { %12009 = vpow2.f32 %v10582_v49 }
 0xeeb   :  { %12011 = vrcp.f32 %v5602_v58 }
 0xef1   :  { %v13547_v2 = vpop.eup %12005 }
 0xef2   :  { %v6019_v17 = vpop.f32.mrb[120].mxu1  ;;  %v6154_v48 = vpop.f32.mrb[124].mxu0  ;;  %v5608_v40 = vmul.f32 2.0, %v13547_v2 }
 0xef3   :  { %v12008_v1 = vpop.eup %12007  ;;  %v6020_v41 = vadd.f32 %v6019_v17, %v5932_v60  ;;  %v6021_v25 = vpop.f32.mrb[121].mxu1  ;;  %v10624_v60 = vld [vmem:[%s14374_s3 + $0x2] sm:$0x3] }
 0xef4   :  { %v6156_v31 = vpop.f32.mrb[125].mxu0  ;;  %v12010_v39 = vpop.eup %12009  ;;  %v6022_v52 = vadd.f32 %v6021_v25, %v5934_v36  ;;  %v10561_v13 = vadd.f32 -1.0, %v5608_v40  ;;  %v5824_v30 = vadd.f32 1.0, %v12008_v1  ;;  %v6253_v14 = vrot.slane %v10624_v60, %v14463_v15  ;;  %v6469_v40 = vld [vmem:[%s14374_s3] sm:$0x3] }
 0xef5   :  { %v6023_v34 = vpop.f32.mrb[122].mxu1  ;;  %v6158_v10 = vpop.f32.mrb[126].mxu0  ;;  %v5825_v23 = vadd.f32 1.0, %v12010_v39  ;;  %v6038_v16 = vadd.f32 %v6031_v55, %v6020_v41  ;;  %v6257_v12 = vrot.slane %v10624_v60, %v14464_v43  ;;  %v6474_v41 = vrot.slane %v6469_v40, %v14463_v15 }
 0xef6   :  { %v13552_v11 = vpop.eup %12011  ;;  %v6024_v51 = vpop.f32.mrb[123].mxu1  ;;  %v6039_v22 = vadd.f32 %v6035_v26, %v6022_v52 }
 0xef7   :  { %v6159_v29 = vpop.f32.mrb[127].mxu0  ;;  %v5611_v19 = vmul.f32 %v13552_v11, %v10561_v13  ;;  %12013 = vrcp.f32 %v5825_v23  ;;  %v10603_v45 = vmul.f32 -1.442695, %v6038_v16 }
 0xef8   :  { %v10604_v21 = vmul.f32 -1.442695, %v6039_v22 }
 0xef9   :  { %5613 = vrot.lane.b32.xlu1 %v5611_v19, %s12373_s14  ;;  %12015 = vpow2.f32 %v10603_v45 }
 0xefa   :  { %12017 = vpow2.f32 %v10604_v21 }
 0xefb   :  { %12019 = vrcp.f32 %v5824_v30 }
 0xf01   :  { %v13559_v62 = vpop.eup %12013 }
 0xf02   :  { %v6241_v44 = vpop.f32.mrb[124].mxu1  ;;  %v6378_v20 = vpop.f32.mrb[128].mxu0  ;;  %v5830_v36 = vmul.f32 2.0, %v13559_v62 }
 0xf03   :  { %v12016_v8 = vpop.eup %12015  ;;  %v6242_v47 = vadd.f32 %v6241_v44, %v6154_v48  ;;  %v6243_v24 = vpop.f32.mrb[125].mxu1 }
 0xf04   :  { %v6380_v50 = vpop.f32.mrb[129].mxu0  ;;  %v12018_v28 = vpop.eup %12017  ;;  %v6244_v33 = vadd.f32 %v6243_v24, %v6156_v31  ;;  %v10583_v42 = vadd.f32 -1.0, %v5830_v36  ;;  %v6046_v17 = vadd.f32 1.0, %v12016_v8  ;;  %v6478_v31 = vrot.slane %v6469_v40, %v14464_v43  ;;  %v13614_v40 = vld [vmem:[#allocation6 + $0x160] ss:$8 sps:$4 sm:$0xff]  }
 0xf05   :  { %v6245_v54 = vpop.f32.mrb[126].mxu1  ;;  %v6382_v18 = vpop.f32.mrb[130].mxu0  ;;  %v6047_v46 = vadd.f32 1.0, %v12018_v28  ;;  %v6260_v58 = vadd.f32 %v6253_v14, %v6242_v47 }
 0xf06   :  { %v13564_v56 = vpop.eup %12019  ;;  %v6246_v3 = vpop.f32.mrb[127].mxu1  ;;  %v6261_v59 = vadd.f32 %v6257_v12, %v6244_v33 }
 0xf07   :  { %v6383_v49 = vpop.f32.mrb[131].mxu0  ;;  %v5833_v55 = vmul.f32 %v13564_v56, %v10583_v42  ;;  %12021 = vrcp.f32 %v6047_v46  ;;  %v10625_v26 = vmul.f32 -1.442695, %v6260_v58  ;;  %v13594_v3 = vld [vmem:[#allocation6 + $0x140] ss:$8 sps:$4 sm:$0xff]  }
 0xf08   :  { %v10626_v48 = vmul.f32 -1.442695, %v6261_v59  ;;  %v13596_v49 = vld [vmem:[#allocation6 + $0x144] ss:$8 sps:$4 sm:$0xff]   ;;  %v13598_v59 = vld [vmem:[#allocation6 + $0x154] ss:$8 sps:$4 sm:$0xff]  }
 0xf09   :  { %5835 = vrot.lane.b32.xlu0 %v5833_v55, %s12373_s14  ;;  %12023 = vpow2.f32 %v10625_v26  ;;  %6570 = vmatprep.subr.bf16.mxu0 %v13596_v49  ;;  %v13601_v55 = vld [vmem:[#allocation3 + $0x140] ss:$8 sps:$4 sm:$0xff]   ;;  %v13606_v26 = vld [vmem:[#allocation3 + $0x144] ss:$8 sps:$4 sm:$0xff]  }
 0xf0a   :  { %12025 = vpow2.f32 %v10626_v48  ;;  %6571 = vmatpush1.bf16.msra.mxu0 %v13594_v3  ;;  %v13609_v48 = vld [vmem:[#allocation6 + $0x164] ss:$8 sps:$4 sm:$0xff]   ;;  %6657 = vmatprep.subr.bf16.mxu1 %v13606_v26 }
 0xf0b   :  { %12027 = vrcp.f32 %v6046_v17  ;;  %v13604_v17 = vld [vmem:[#allocation6 + $0x150] ss:$8 sps:$4 sm:$0xff]   ;;  %6572 = vmatprep.subr.bf16.mxu0 %v13598_v59  ;;  %6658 = vmatpush1.bf16.msra.mxu1 %v13601_v55 }
 0xf0e   :  { %6573 = vmatpush1.bf16.msra.mxu0 %v13604_v17 }
 0xf0f   :  { %6574 = vmatprep.subr.bf16.mxu0 %v13609_v48 }
 0xf11   :  { %v13571_v1 = vpop.eup %12021 }
 0xf12   :  { %v6462_v25 = vpop.f32.mrb[128].mxu1  ;;  %v6052_v39 = vmul.f32 2.0, %v13571_v1  ;;  %6575 = vmatpush1.bf16.msra.mxu0 %v13614_v40 }
 0xf13   :  { %v12024_v52 = vpop.eup %12023  ;;  %v6463_v34 = vadd.f32 %v6462_v25, %v6378_v20  ;;  %v6464_v10 = vpop.f32.mrb[129].mxu1  ;;  %v13620_v25 = vld [vmem:[#allocation6 + $0x170] ss:$8 sps:$4 sm:$0xff]  }
 0xf14   :  { %v12026_v13 = vpop.eup %12025  ;;  %v6465_v23 = vadd.f32 %v6464_v10, %v6380_v50  ;;  %v6466_v16 = vpop.f32.mrb[130].mxu1  ;;  %v10605_v51 = vadd.f32 -1.0, %v6052_v39  ;;  %v6268_v60 = vadd.f32 1.0, %v12024_v52  ;;  %v5351_v39 = vmul.f32 %v13540_v38, %v13439_v57  ;;  %v13632_v10 = vld [vmem:[#allocation3 + $0x150] ss:$8 sps:$4 sm:$0xff]  }
 0xf15   :  { %v13576_v29 = vpop.eup %12027  ;;  %v6269_v22 = vadd.f32 1.0, %v12026_v13  ;;  %v6481_v19 = vadd.f32 %v6474_v41, %v6463_v34  ;;  %v6467_v30 = vpop.f32.mrb[131].mxu1  ;;  %v13617_v41 = vld [vmem:[#allocation6 + $0x174] ss:$8 sps:$4 sm:$0xff]   ;;  %v13640_v16 = vld [vmem:[#allocation3 + $0x164] ss:$8 sps:$4 sm:$0xff]  }
 0xf16   :  { %v6482_v45 = vadd.f32 %v6478_v31, %v6465_v23  ;;  %v6055_v21 = vmul.f32 %v13576_v29, %v10605_v51  ;;  %6576 = vmatprep.subr.bf16.mxu0 %v13617_v41  ;;  %v13623_v31 = vld [vmem:[#allocation6 + $0x104] ss:$8 sps:$4 sm:$0xff]   ;;  %v13634_v13 = vld [vmem:[#allocation3 + $0x154] ss:$8 sps:$4 sm:$0xff]   ;;  %v13638_v23 = vld [vmem:[#allocation3 + $0x160] ss:$8 sps:$4 sm:$0xff]  }
 0xf17   :  { %12029 = vrcp.f32 %v6269_v22  ;;  %v10647_v14 = vmul.f32 -1.442695, %v6481_v19  ;;  %6577 = vmatpush1.bf16.msra.mxu0 %v13620_v25  ;;  %6659 = vmatprep.subr.bf16.mxu1 %v13634_v13  ;;  %v13647_v51 = vld [vmem:[#allocation3 + $0x170] ss:$8 sps:$4 sm:$0xff]   ;;  %v13649_v22 = vld [vmem:[#allocation3 + $0x174] ss:$8 sps:$4 sm:$0xff]   ;;  %v5610_v19 = vmul.f32 %v13552_v11, %v13449_v61  ;;  %v5832_v11 = vmul.f32 %v13564_v56, %v13456_v37 }
 0xf18   :  { %v10648_v44 = vmul.f32 -1.442695, %v6482_v45  ;;  %6057 = vrot.lane.b32.xlu1 %v6055_v21, %s12373_s14  ;;  %6829 = vmatprep.subr.bf16.mxu0 %v13623_v31 }
 0xf19   :  { %12031 = vpow2.f32 %v10647_v14  ;;  %6660 = vmatpush1.bf16.msra.mxu1 %v13632_v10 }
 0xf1a   :  { %12033 = vpow2.f32 %v10648_v44  ;;  %6661 = vmatprep.subr.bf16.mxu1 %v13640_v16 }
 0xf1b   :  { %12035 = vrcp.f32 %v6268_v60 }
 0xf1d   :  { %6662 = vmatpush1.bf16.msra.mxu1 %v13638_v23 }
 0xf1e   :  { %6663 = vmatprep.subr.bf16.mxu1 %v13649_v22 }
 0xf21   :  { %v13580_v20 = vpop.eup %12029  ;;  %6664 = vmatpush1.bf16.msra.mxu1 %v13647_v51 }
 0xf22   :  { %v6274_v12 = vmul.f32 2.0, %v13580_v20 }
 0xf23   :  { %v12032_v36 = vpop.eup %12031 }
 0xf24   :  { %v12034_v8 = vpop.eup %12033  ;;  %v10627_v47 = vadd.f32 -1.0, %v6274_v12  ;;  %v6489_v33 = vadd.f32 1.0, %v12032_v36 }
 0xf25   :  { %v13583_v24 = vpop.eup %12035  ;;  %v6490_v50 = vadd.f32 1.0, %v12034_v8 }
 0xf26   :  { %v6277_v28 = vmul.f32 %v13583_v24, %v10627_v47  ;;  %v6054_v47 = vmul.f32 %v13576_v29, %v13463_v53 }
 0xf27   :  { %12037 = vrcp.f32 %v6490_v50 }
 0xf28   :  { %6279 = vrot.lane.b32.xlu0 %v6277_v28, %s12373_s14  ;;  %12039 = vrcp.f32 %v6489_v33  ;;  %v6276_v33 = vmul.f32 %v13583_v24, %v13470_v27 }
 0xf31   :  { %v13587_v54 = vpop.eup %12037 }
 0xf32   :  { %v6495_v18 = vmul.f32 2.0, %v13587_v54  ;;  %v13590_v46 = vpop.eup %12039 }
 0xf34   :  { %v10649_v42 = vadd.f32 -1.0, %v6495_v18 }
 0xf36   :  { %v6498_v58 = vmul.f32 %v13590_v46, %v10649_v42 }
 0xf38   :  { %6500 = vrot.lane.b32.xlu1 %v6498_v58, %s12373_s14  ;;  %v6497_v58 = vmul.f32 %v13590_v46, %v13477_v32  ;;  %v13697_v32 = vld [vmem:[#allocation6 + $0x110] ss:$8 sps:$4 sm:$0xff]   ;;  %v13701_v46 = vld [vmem:[#allocation6 + $0x124] ss:$8 sps:$4 sm:$0xff]  }
 0xf5b   :  { %v5355_v52 = vpop.permute.xlu0 %5354 }
 0xf5c   :  { %v13629_v34 = vadd.f32 %v5355_v52, %v5351_v39 }
 0xf5e   :  { %12041 = vtanh.f32 %v13629_v34 }
 0xf68   :  { %v12042_v57 = vpop.eup %12041 }
 0xf69   :  { %v13645_v38 = vmul.f32 %v12042_v57, %v13535_v9  ;;  %v13660_v9 = vld [vmem:[#allocation3 + $0x104] ss:$8 sps:$4 sm:$0xff]  }
 0xf6a   :  { %6916 = vmatprep.subr.bf16.mxu1 %v13660_v9 }
 0xf6b   :  { %14472 = vst [vmem:[#allocation27_spill] sm:$0xff] %v13645_v38  ;;  %v5614_v30 = vpop.permute.xlu1 %5613  ;;  %v6515_v45 = vpack.c.bf16 %v13645_v38, %v13645_v38  ;;  %v13787_v38 = vld [vmem:[#allocation3 + $0xe4] ss:$8 sps:$4 sm:$0xff]  }
 0xf6c   :  { %v13656_v21 = vadd.f32 %v5614_v30, %v5610_v19  ;;  %v13691_v19 = vld [vmem:[#allocation6 + $0x100] ss:$8 sps:$4 sm:$0xff]   ;;  %v13693_v30 = vld [vmem:[#allocation6 + $0x114] ss:$8 sps:$4 sm:$0xff]   ;;  %14480 = vst [vmem:[#allocation21_spill] sm:$0xff] %v13787_v38 }
 0xf6d   :  { %6525 = vrot.lane.b32.xlu0 %v6515_v45, %s12373_s14  ;;  %v13707_v45 = vld [vmem:[#allocation6 + $0x134] ss:$8 sps:$4 sm:$0xff]  }
 0xf6e   :  { %12043 = vtanh.f32 %v13656_v21 }
 0xf78   :  { %v12044_v60 = vpop.eup %12043 }
 0xf79   :  { %v5618_v61 = vmul.f32 %v12044_v60, %v13547_v2  ;;  %v13710_v60 = vld [vmem:[#allocation6 + $0x130] ss:$8 sps:$4 sm:$0xff]  }
 0xf7b   :  { %v5836_v14 = vpop.permute.xlu0 %5835  ;;  %v6506_v44 = vpack.c.bf16 %v5618_v61, %v5618_v61  ;;  %v13713_v61 = vld [vmem:[#allocation6 + $0xc4] ss:$8 sps:$4 sm:$0xff]  }
 0xf7c   :  { %v13667_v12 = vadd.f32 %v5836_v14, %v5832_v11  ;;  %v13716_v11 = vld [vmem:[#allocation3 + $0x100] ss:$8 sps:$4 sm:$0xff]  }
 0xf7d   :  { %6612 = vrot.lane.b32.xlu1 %v6506_v44, %s12373_s14  ;;  %v13718_v14 = vld [vmem:[#allocation6 + $0xc0] ss:$8 sps:$4 sm:$0xff]   ;;  %v13721_v44 = vld [vmem:[#allocation3 + $0x114] ss:$8 sps:$4 sm:$0xff]  }
 0xf7e   :  { %12045 = vtanh.f32 %v13667_v12 }
 0xf88   :  { %v12046_v36 = vpop.eup %12045 }
 0xf89   :  { %v5840_v8 = vmul.f32 %v12046_v36, %v13559_v62  ;;  %v13723_v36 = vld [vmem:[#allocation6 + $0xd4] ss:$8 sps:$4 sm:$0xff]  }
 0xf8a   :  { %v6058_v50 = vpop.permute.xlu1 %6057 }
 0xf8b   :  { %v6772_v28 = vpack.c.bf16 %v5840_v8, %v5840_v8  ;;  %v13674_v2 = vadd.f32 %v6058_v50, %v6054_v47  ;;  %v13729_v47 = vld [vmem:[#allocation3 + $0x110] ss:$8 sps:$4 sm:$0xff]  }
 0xf8c   :  { %v13731_v50 = vld [vmem:[#allocation6 + $0xd0] ss:$8 sps:$4 sm:$0xff]  }
 0xf8d   :  { %6871 = vrot.lane.b32.xlu0 %v6772_v28, %s12373_s14  ;;  %12047 = vtanh.f32 %v13674_v2  ;;  %v13735_v28 = vld [vmem:[#allocation3 + $0x124] ss:$8 sps:$4 sm:$0xff]  }
 0xf97   :  { %v12048_v37 = vpop.eup %12047 }
 0xf98   :  { %v6062_v56 = vmul.f32 %v12048_v37, %v13571_v1  ;;  %v13737_v37 = vld [vmem:[#allocation6 + $0xe4] ss:$8 sps:$4 sm:$0xff]  }
 0xf9a   :  { %v6280_v18 = vpop.permute.xlu0 %6279  ;;  %v6994_v42 = vpack.c.bf16 %v6062_v56, %v6062_v56  ;;  %v13743_v56 = vld [vmem:[#allocation3 + $0x120] ss:$8 sps:$4 sm:$0xff]  }
 0xf9b   :  { %v13681_v62 = vadd.f32 %v6280_v18, %v6276_v33  ;;  %v13745_v33 = vld [vmem:[#allocation6 + $0xe0] ss:$8 sps:$4 sm:$0xff]   ;;  %v13749_v18 = vld [vmem:[#allocation3 + $0x134] ss:$8 sps:$4 sm:$0xff]  }
 0xf9c   :  { %7093 = vrot.lane.b32.xlu1 %v6994_v42, %s12373_s14  ;;  %v13751_v42 = vld [vmem:[#allocation6 + $0xf4] ss:$8 sps:$4 sm:$0xff]  }
 0xf9d   :  { %12049 = vtanh.f32 %v13681_v62 }
 0xfa7   :  { %v12050_v53 = vpop.eup %12049 }
 0xfa8   :  { %v6284_v29 = vmul.f32 %v12050_v53, %v13580_v20  ;;  %v13755_v53 = vld [vmem:[#allocation3 + $0x130] ss:$8 sps:$4 sm:$0xff]  }
 0xfaa   :  { %v6501_v39 = vpop.permute.xlu1 %6500  ;;  %v7216_v52 = vpack.c.bf16 %v6284_v29, %v6284_v29  ;;  %v13757_v29 = vld [vmem:[#allocation6 + $0xf0] ss:$8 sps:$4 sm:$0xff]  }
 0xfab   :  { %v6503_v1 = vadd.f32 %v6501_v39, %v6497_v58  ;;  %v13761_v58 = vld [vmem:[#allocation3 + $0xc4] ss:$8 sps:$4 sm:$0xff]  }
 0xfac   :  { %7315 = vrot.lane.b32.xlu0 %v7216_v52, %s12373_s14  ;;  %v13763_v39 = vld [vmem:[#allocation6 + $0x84] ss:$8 sps:$4 sm:$0xff]   ;;  %v13767_v52 = vld [vmem:[#allocation3 + $0xc0] ss:$8 sps:$4 sm:$0xff]  }
 0xfad   :  { %12051 = vtanh.f32 %v6503_v1  ;;  %14473 = vst [vmem:[#allocation28_spill] sm:$0xff] %v13763_v39  ;;  %14474 = vst [vmem:[#allocation14_spill] sm:$0xff] %v13767_v52  ;;  %v13769_v1 = vld [vmem:[#allocation6 + $0x80] ss:$8 sps:$4 sm:$0xff]  }
 0xfae   :  { %14475 = vst [vmem:[#allocation16_spill] sm:$0xff] %v13769_v1 }
 0xfb7   :  { %v12052_v27 = vpop.eup %12051 }
 0xfb8   :  { %v6505_v24 = vmul.f32 %v12052_v27, %v13587_v54  ;;  %v13704_v54 = vld [vmem:[#allocation6 + $0x120] ss:$8 sps:$4 sm:$0xff]   ;;  %v13773_v27 = vld [vmem:[#allocation3 + $0xd4] ss:$8 sps:$4 sm:$0xff]  }
 0xfb9   :  { %14476 = vst [vmem:[#allocation17_spill] sm:$0xff] %v13773_v27 }
 0xfba   :  { %v7438_v57 = vpack.c.bf16 %v6505_v24, %v6505_v24  ;;  %v13775_v24 = vld [vmem:[#allocation6 + $0x94] ss:$8 sps:$4 sm:$0xff]  }
 0xfbb   :  { %14477 = vst [vmem:[#allocation18_spill] sm:$0xff] %v13775_v24 }
 0xfbc   :  { %7537 = vrot.lane.b32.xlu1 %v7438_v57, %s12373_s14 }
 0xfdf   :  { %v6526_v20 = vpop.permute.xlu0 %6525 }
 0xfe0   :  { %10658 = vmatmul.mubr.msk.bf16.vlgmr.msra.gmra.mrb[132].mxu0 %vm142_vm0, %v6526_v20  ;;  %v13781_v20 = vld [vmem:[#allocation3 + $0xd0] ss:$8 sps:$4 sm:$0xff]  }
 0xfe1   :  { %6830 = vmatpush1.bf16.msra.mxu0 %v13691_v19  ;;  %6861 = vmatprep.mubr.bf16.mxu0 %v14444_v63  ;;  %14478 = vst [vmem:[#allocation19_spill] sm:$0xff] %v13781_v20 }
 0xfe2   :  { %6831 = vmatprep.subr.bf16.mxu0 %v13693_v30 }
 0xfe5   :  { %6832 = vmatpush1.bf16.msra.mxu0 %v13697_v32 }
 0xfe6   :  { %6833 = vmatprep.subr.bf16.mxu0 %v13701_v46 }
 0xfe9   :  { %6834 = vmatpush1.bf16.msra.mxu0 %v13704_v54 }
 0xfea   :  { %6835 = vmatprep.subr.bf16.mxu0 %v13707_v45 }
 0xfed   :  { %6836 = vmatpush1.bf16.msra.mxu0 %v13710_v60 }
 0xfee   :  { %7051 = vmatprep.subr.bf16.mxu0 %v13713_v61 }
 0xfef   :  { %v6613_v8 = vpop.permute.xlu1 %6612 }
 0xff0   :  { %10667 = vmatmul.mubr.msk.bf16.vlgmr.msra.gmra.mrb[132].mxu1 %vm142_vm0, %v6613_v8  ;;  %10683 = vmatmul.mubr.msk.bf16.vlgmr.msra.gmra.mrb[136].mxu0 %vm142_vm0, %v6613_v8  ;;  %v13783_v8 = vld [vmem:[#allocation6 + $0x90] ss:$8 sps:$4 sm:$0xff]  }
 0xff1   :  { %6917 = vmatpush1.bf16.msra.mxu1 %v13716_v11  ;;  %7052 = vmatpush1.bf16.msra.mxu0 %v13718_v14  ;;  %14479 = vst [vmem:[#allocation20_spill] sm:$0xff] %v13783_v8 }
 0xff2   :  { %6918 = vmatprep.subr.bf16.mxu1 %v13721_v44  ;;  %7053 = vmatprep.subr.bf16.mxu0 %v13723_v36 }
 0xff3   :  { %6948 = vmatprep.mubr.bf16.mxu1 %v14444_v63  ;;  %7083 = vmatprep.mubr.bf16.mxu0 %v14444_v63 }
 0xff5   :  { %6919 = vmatpush1.bf16.msra.mxu1 %v13729_v47  ;;  %7054 = vmatpush1.bf16.msra.mxu0 %v13731_v50 }
 0xff6   :  { %6920 = vmatprep.subr.bf16.mxu1 %v13735_v28  ;;  %7055 = vmatprep.subr.bf16.mxu0 %v13737_v37 }
 0xff9   :  { %6921 = vmatpush1.bf16.msra.mxu1 %v13743_v56  ;;  %7056 = vmatpush1.bf16.msra.mxu0 %v13745_v33 }
 0xffa   :  { %6922 = vmatprep.subr.bf16.mxu1 %v13749_v18  ;;  %7057 = vmatprep.subr.bf16.mxu0 %v13751_v42 }
 0xffd   :  { %6923 = vmatpush1.bf16.msra.mxu1 %v13755_v53  ;;  %7058 = vmatpush1.bf16.msra.mxu0 %v13757_v29 }
 0xffe   :  { %7138 = vmatprep.subr.bf16.mxu1 %v13761_v58  ;;  %7273 = vmatprep.subr.bf16.mxu0 %v13763_v39 }
 0xfff   :  { %v6872_v57 = vpop.permute.xlu0 %6871 }
0x1000   :  { %10692 = vmatmul.mubr.msk.bf16.vlgmr.msra.gmra.mrb[136].mxu1 %vm142_vm0, %v6872_v57  ;;  %10705 = vmatmul.mubr.msk.bf16.vlgmr.msra.gmra.mrb[140].mxu0 %vm142_vm0, %v6872_v57  ;;  %v13795_v57 = vld [vmem:[#allocation3 + $0xe0] ss:$8 sps:$4 sm:$0xff]  }
0x1001   :  { %7139 = vmatpush1.bf16.msra.mxu1 %v13767_v52  ;;  %7274 = vmatpush1.bf16.msra.mxu0 %v13769_v1  ;;  %14482 = vst [vmem:[#allocation23_spill] sm:$0xff] %v13795_v57  ;;  %v13807_v1 = vld [vmem:[#allocation3 + $0xf0] ss:$8 sps:$4 sm:$0xff]   ;;  %v11632_v52 = vld [vmem:[#allocation6 + $0x54] ss:$8 sps:$4 sm:$0xff]  }
0x1002   :  { %7140 = vmatprep.subr.bf16.mxu1 %v13773_v27  ;;  %7275 = vmatprep.subr.bf16.mxu0 %v13775_v24  ;;  %v13801_v24 = vld [vmem:[#allocation3 + $0xf4] ss:$8 sps:$4 sm:$0xff]   ;;  %14485 = vst [vmem:[#allocation13_spill] sm:$0xff] %v13807_v1 }
0x1003   :  { %7170 = vmatprep.mubr.bf16.mxu1 %v14444_v63  ;;  %7305 = vmatprep.mubr.bf16.mxu0 %v14444_v63  ;;  %v13803_v27 = vld [vmem:[#allocation6 + $0xb4] ss:$8 sps:$4 sm:$0xff]  }
0x1004   :  { %14484 = vst [vmem:[#allocation12_spill] sm:$0xff] %v13803_v27 }
0x1005   :  { %7141 = vmatpush1.bf16.msra.mxu1 %v13781_v20  ;;  %7276 = vmatpush1.bf16.msra.mxu0 %v13783_v8  ;;  %v13809_v20 = vld [vmem:[#allocation6 + $0xb0] ss:$8 sps:$4 sm:$0xff]   ;;  %v13813_v8 = vld [vmem:[#allocation3 + $0x84] ss:$8 sps:$4 sm:$0xff]  }
0x1006   :  { %7142 = vmatprep.subr.bf16.mxu1 %v13787_v38  ;;  %7277 = vmatprep.subr.bf16.mxu0 %v13789_v4  ;;  %14486 = vst [vmem:[#allocation29_spill] sm:$0xff] %v13809_v20  ;;  %14487 = vst [vmem:[#allocation30_spill] sm:$0xff] %v13813_v8  ;;  %v11626_v38 = vld [vmem:[#allocation6 + $0x44] ss:$8 sps:$4 sm:$0xff]   ;;  %v13817_v4 = vld [vmem:[#allocation3 + $0x80] ss:$8 sps:$4 sm:$0xff]  }
0x1007   :  { %14488 = vst [vmem:[#allocation31_spill] sm:$0xff] %v13817_v4 }
0x1009   :  { %7143 = vmatpush1.bf16.msra.mxu1 %v13795_v57  ;;  %7278 = vmatpush1.bf16.msra.mxu0 %v13797_v0  ;;  %v11624_v57 = vld [vmem:[#allocation6 + $0x40] ss:$8 sps:$4 sm:$0xff]   ;;  %v13820_v0 = vld [vmem:[#allocation3 + $0x94] ss:$8 sps:$4 sm:$0xff]  }
0x100a   :  { %7144 = vmatprep.subr.bf16.mxu1 %v13801_v24  ;;  %7279 = vmatprep.subr.bf16.mxu0 %v13803_v27  ;;  %14489 = vst [vmem:[#allocation25_spill] sm:$0xff] %v13820_v0  ;;  %v13828_v27 = vld [vmem:[#allocation3 + $0xa4] ss:$8 sps:$4 sm:$0xff]  }
0x100b   :  { %14491 = vst [vmem:[#allocation33_spill] sm:$0xff] %v13828_v27 }
0x100d   :  { %7145 = vmatpush1.bf16.msra.mxu1 %v13807_v1  ;;  %7280 = vmatpush1.bf16.msra.mxu0 %v13809_v20  ;;  %v13825_v1 = vld [vmem:[#allocation3 + $0x90] ss:$8 sps:$4 sm:$0xff]  }
0x100e   :  { %7360 = vmatprep.subr.bf16.mxu1 %v13813_v8  ;;  %7495 = vmatprep.subr.bf16.mxu0 %v11626_v38  ;;  %v7094_v39 = vpop.permute.xlu1 %7093  ;;  %14490 = vst [vmem:[#allocation32_spill] sm:$0xff] %v13825_v1  ;;  %v11630_v20 = vld [vmem:[#allocation6 + $0x50] ss:$8 sps:$4 sm:$0xff]   ;;  %v11638_v38 = vld [vmem:[#allocation6 + $0x64] ss:$8 sps:$4 sm:$0xff]  }
0x100f   :  { %v11642_v8 = vld [vmem:[#allocation6 + $0x70] ss:$8 sps:$4 sm:$0xff]  }
0x1010   :  { %10714 = vmatmul.mubr.msk.bf16.vlgmr.msra.gmra.mrb[140].mxu1 %vm142_vm0, %v7094_v39  ;;  %10727 = vmatmul.mubr.msk.bf16.vlgmr.msra.gmra.mrb[144].mxu0 %vm142_vm0, %v7094_v39  ;;  %v13833_v39 = vld [vmem:[#allocation3 + $0xa0] ss:$8 sps:$4 sm:$0xff]  }
0x1011   :  { %7361 = vmatpush1.bf16.msra.mxu1 %v13817_v4  ;;  %7496 = vmatpush1.bf16.msra.mxu0 %v11624_v57  ;;  %v11636_v4 = vld [vmem:[#allocation6 + $0x60] ss:$8 sps:$4 sm:$0xff]   ;;  %v13836_v57 = vld [vmem:[#allocation3 + $0xb4] ss:$8 sps:$4 sm:$0xff]  }
0x1012   :  { %7362 = vmatprep.subr.bf16.mxu1 %v13820_v0  ;;  %7497 = vmatprep.subr.bf16.mxu0 %v11632_v52  ;;  %v11644_v0 = vld [vmem:[#allocation6 + $0x74] ss:$8 sps:$4 sm:$0xff]   ;;  %v13839_v52 = vld [vmem:[#allocation3 + $0xb0] ss:$8 sps:$4 sm:$0xff]  }
0x1013   :  { %7392 = vmatprep.mubr.bf16.mxu1 %v14444_v63  ;;  %7527 = vmatprep.mubr.bf16.mxu0 %v14444_v63 }
0x1015   :  { %7363 = vmatpush1.bf16.msra.mxu1 %v13825_v1  ;;  %7498 = vmatpush1.bf16.msra.mxu0 %v11630_v20  ;;  %v11647_v1 = vld [vmem:[#allocation3 + $0x44] ss:$8 sps:$4 sm:$0xff]   ;;  %v11645_v20 = vld [vmem:[#allocation3 + $0x40] ss:$8 sps:$4 sm:$0xff]  }
0x1016   :  { %7364 = vmatprep.subr.bf16.mxu1 %v13828_v27  ;;  %7499 = vmatprep.subr.bf16.mxu0 %v11638_v38  ;;  %v11650_v27 = vld [vmem:[#allocation3 + $0x54] ss:$8 sps:$4 sm:$0xff]  }
0x1019   :  { %7365 = vmatpush1.bf16.msra.mxu1 %v13833_v39  ;;  %7500 = vmatpush1.bf16.msra.mxu0 %v11636_v4  ;;  %v11648_v4 = vld [vmem:[#allocation3 + $0x50] ss:$8 sps:$4 sm:$0xff]  }
0x101a   :  { %7366 = vmatprep.subr.bf16.mxu1 %v13836_v57  ;;  %7501 = vmatprep.subr.bf16.mxu0 %v11644_v0 }
0x101d   :  { %7367 = vmatpush1.bf16.msra.mxu1 %v13839_v52  ;;  %7502 = vmatpush1.bf16.msra.mxu0 %v11642_v8 }
0x101e   :  { %7582 = vmatprep.subr.bf16.mxu1 %v11647_v1  ;;  %7724 = vmatprep.subr.bf16.mxu0 %v13596_v49  ;;  %v7316_v38 = vpop.permute.xlu0 %7315 }
0x1020   :  { %10736 = vmatmul.mubr.msk.bf16.vlgmr.msra.gmra.mrb[144].mxu1 %vm142_vm0, %v7316_v38  ;;  %10749 = vmatmul.mubr.msk.bf16.vlgmr.msra.gmra.mrb[148].mxu0 %vm142_vm0, %v7316_v38 }
0x1021   :  { %7583 = vmatpush1.bf16.msra.mxu1 %v11645_v20  ;;  %7614 = vmatprep.mubr.bf16.mxu1 %v14444_v63 }
0x1022   :  { %7584 = vmatprep.subr.bf16.mxu1 %v11650_v27  ;;  %7725 = vmatpush1.bf16.msra.mxu0 %v13594_v3  ;;  %v10668_v3 = vld [vmem:[%s14374_s3 + $0xa] sm:$0x3] }
0x1023   :  { %7726 = vmatprep.subr.bf16.mxu0 %v13598_v59  ;;  %7756 = vmatprep.mubr.bf16.mxu0 %v14444_v63  ;;  %v6703_v49 = vrot.slane %v10668_v3, %v14463_v15 }
0x1025   :  { %7585 = vmatpush1.bf16.msra.mxu1 %v11648_v4 }
0x1026   :  { %7586 = vmatprep.subr.bf16.mxu1 %v13499_v6  ;;  %7727 = vmatpush1.bf16.msra.mxu0 %v13604_v17  ;;  %v6707_v17 = vrot.slane %v10668_v3, %v14464_v43 }
0x1027   :  { %7728 = vmatprep.subr.bf16.mxu0 %v13609_v48 }
0x1029   :  { %7587 = vmatpush1.bf16.msra.mxu1 %v13503_v35 }
0x102a   :  { %7588 = vmatprep.subr.bf16.mxu1 %v13506_v5  ;;  %7729 = vmatpush1.bf16.msra.mxu0 %v13614_v40 }
0x102b   :  { %7730 = vmatprep.subr.bf16.mxu0 %v13617_v41 }
0x102d   :  { %7589 = vmatpush1.bf16.msra.mxu1 %v13509_v7 }
0x102e   :  { %7731 = vmatpush1.bf16.msra.mxu0 %v13620_v25  ;;  %7811 = vmatprep.subr.bf16.mxu1 %v13606_v26  ;;  %v7538_v0 = vpop.permute.xlu1 %7537 }
0x102f   :  { %7983 = vmatprep.subr.bf16.mxu0 %v13623_v31 }
0x1030   :  { %10758 = vmatmul.mubr.msk.bf16.vlgmr.msra.gmra.mrb[148].mxu1 %vm142_vm0, %v7538_v0 }
0x1031   :  { %7812 = vmatpush1.bf16.msra.mxu1 %v13601_v55  ;;  %7843 = vmatprep.mubr.bf16.mxu1 %v14444_v63 }
0x1032   :  { %7813 = vmatprep.subr.bf16.mxu1 %v13634_v13 }
0x1035   :  { %7814 = vmatpush1.bf16.msra.mxu1 %v13632_v10 }
0x1036   :  { %7815 = vmatprep.subr.bf16.mxu1 %v13640_v16 }
0x1039   :  { %7816 = vmatpush1.bf16.msra.mxu1 %v13638_v23 }
0x103a   :  { %7817 = vmatprep.subr.bf16.mxu1 %v13649_v22 }
0x103d   :  { %7818 = vmatpush1.bf16.msra.mxu1 %v13647_v51 }
0x103e   :  { %8070 = vmatprep.subr.bf16.mxu1 %v13660_v9  ;;  %v10693_v9 = vld [vmem:[%s14374_s3 + $0x8] sm:$0x3] }
0x103f   :  { %v6962_v1 = vrot.slane %v10693_v9, %v14463_v15  ;;  %v6966_v20 = vrot.slane %v10693_v9, %v14464_v43 }
0x10b3   :  { %v6604_v6 = vpop.f32.mrb[132].mxu0 }
0x10b4   :  { %v6606_v35 = vpop.f32.mrb[133].mxu0 }
0x10b5   :  { %v6608_v5 = vpop.f32.mrb[134].mxu0 }
0x10b6   :  { %v6609_v7 = vpop.f32.mrb[135].mxu0 }
0x10c3   :  { %v6691_v59 = vpop.f32.mrb[132].mxu1  ;;  %v6863_v55 = vpop.f32.mrb[136].mxu0 }
0x10c4   :  { %v6692_v26 = vadd.f32 %v6691_v59, %v6604_v6  ;;  %v6693_v48 = vpop.f32.mrb[133].mxu1  ;;  %v6865_v40 = vpop.f32.mrb[137].mxu0 }
0x10c5   :  { %v6694_v41 = vadd.f32 %v6693_v48, %v6606_v35  ;;  %v6695_v25 = vpop.f32.mrb[134].mxu1  ;;  %v6867_v31 = vpop.f32.mrb[138].mxu0 }
0x10c6   :  { %v6710_v10 = vadd.f32 %v6703_v49, %v6692_v26  ;;  %v6696_v13 = vpop.f32.mrb[135].mxu1  ;;  %v6868_v23 = vpop.f32.mrb[139].mxu0 }
0x10c7   :  { %v6711_v16 = vadd.f32 %v6707_v17, %v6694_v41 }
0x10c8   :  { %v10669_v51 = vmul.f32 -1.442695, %v6710_v10 }
0x10c9   :  { %v10670_v22 = vmul.f32 -1.442695, %v6711_v16 }
0x10ca   :  { %12053 = vpow2.f32 %v10669_v51 }
0x10cb   :  { %12055 = vpow2.f32 %v10670_v22 }
0x10d3   :  { %v6950_v27 = vpop.f32.mrb[136].mxu1  ;;  %v7085_v8 = vpop.f32.mrb[140].mxu0 }
0x10d4   :  { %v12054_v38 = vpop.eup %12053  ;;  %v6951_v4 = vadd.f32 %v6950_v27, %v6863_v55  ;;  %v6952_v0 = vpop.f32.mrb[137].mxu1  ;;  %v10715_v55 = vld [vmem:[%s14374_s3 + $0x6] sm:$0x3] }
0x10d5   :  { %v7087_v6 = vpop.f32.mrb[141].mxu0  ;;  %v12056_v35 = vpop.eup %12055  ;;  %v6953_v5 = vadd.f32 %v6952_v0, %v6865_v40  ;;  %v6718_v41 = vadd.f32 1.0, %v12054_v38  ;;  %v7184_v40 = vrot.slane %v10715_v55, %v14463_v15  ;;  %v7188_v16 = vrot.slane %v10715_v55, %v14464_v43 }
0x10d6   :  { %v6954_v7 = vpop.f32.mrb[138].mxu1  ;;  %v7089_v3 = vpop.f32.mrb[142].mxu0  ;;  %v6719_v49 = vadd.f32 1.0, %v12056_v35  ;;  %v6969_v59 = vadd.f32 %v6962_v1, %v6951_v4 }
0x10d7   :  { %v6955_v17 = vpop.f32.mrb[139].mxu1  ;;  %v7090_v26 = vpop.f32.mrb[143].mxu0  ;;  %v6970_v48 = vadd.f32 %v6966_v20, %v6953_v5 }
0x10d8   :  { %12057 = vrcp.f32 %v6719_v49  ;;  %v10694_v25 = vmul.f32 -1.442695, %v6969_v59 }
0x10d9   :  { %v10695_v31 = vmul.f32 -1.442695, %v6970_v48 }
0x10da   :  { %12059 = vpow2.f32 %v10694_v25 }
0x10db   :  { %12061 = vpow2.f32 %v10695_v31 }
0x10dc   :  { %12063 = vrcp.f32 %v6718_v41 }
0x10e2   :  { %v13884_v10 = vpop.eup %12057 }
0x10e3   :  { %v7172_v13 = vpop.f32.mrb[140].mxu1  ;;  %v7307_v23 = vpop.f32.mrb[144].mxu0  ;;  %v6724_v51 = vmul.f32 2.0, %v13884_v10 }
0x10e4   :  { %v12060_v22 = vpop.eup %12059  ;;  %v7173_v9 = vadd.f32 %v7172_v13, %v7085_v8  ;;  %v7174_v1 = vpop.f32.mrb[141].mxu1 }
0x10e5   :  { %v7309_v27 = vpop.f32.mrb[145].mxu0  ;;  %v12062_v20 = vpop.eup %12061  ;;  %v7175_v38 = vadd.f32 %v7174_v1, %v7087_v6  ;;  %v10671_v35 = vadd.f32 -1.0, %v6724_v51  ;;  %v6977_v48 = vadd.f32 1.0, %v12060_v22  ;;  %v10737_v6 = vld [vmem:[%s14374_s3 + $0x4] sm:$0x3] }
0x10e6   :  { %v7176_v4 = vpop.f32.mrb[142].mxu1  ;;  %v7311_v0 = vpop.f32.mrb[146].mxu0  ;;  %v6978_v7 = vadd.f32 1.0, %v12062_v20  ;;  %v7191_v3 = vadd.f32 %v7184_v40, %v7173_v9  ;;  %v7406_v31 = vrot.slane %v10737_v6, %v14463_v15  ;;  %v7410_v13 = vrot.slane %v10737_v6, %v14464_v43 }
0x10e7   :  { %v13889_v5 = vpop.eup %12063  ;;  %v7177_v49 = vpop.f32.mrb[143].mxu1  ;;  %v7192_v17 = vadd.f32 %v7188_v16, %v7175_v38 }
0x10e8   :  { %v7312_v59 = vpop.f32.mrb[147].mxu0  ;;  %v6727_v26 = vmul.f32 %v13889_v5, %v10671_v35  ;;  %12065 = vrcp.f32 %v6978_v7  ;;  %v10716_v41 = vmul.f32 -1.442695, %v7191_v3 }
0x10e9   :  { %v10717_v8 = vmul.f32 -1.442695, %v7192_v17 }
0x10ea   :  { %6729 = vrot.lane.b32.xlu0 %v6727_v26, %s12373_s14  ;;  %12067 = vpow2.f32 %v10716_v41 }
0x10eb   :  { %12069 = vpow2.f32 %v10717_v8 }
0x10ec   :  { %12071 = vrcp.f32 %v6977_v48 }
0x10f2   :  { %v13896_v25 = vpop.eup %12065 }
0x10f3   :  { %v7394_v55 = vpop.f32.mrb[144].mxu1  ;;  %v7529_v40 = vpop.f32.mrb[148].mxu0  ;;  %v6983_v16 = vmul.f32 2.0, %v13896_v25 }
0x10f4   :  { %v12068_v51 = vpop.eup %12067  ;;  %v7395_v22 = vadd.f32 %v7394_v55, %v7307_v23  ;;  %v7396_v9 = vpop.f32.mrb[145].mxu1 }
0x10f5   :  { %v7531_v1 = vpop.f32.mrb[149].mxu0  ;;  %v12070_v20 = vpop.eup %12069  ;;  %v7397_v38 = vadd.f32 %v7396_v9, %v7309_v27  ;;  %v10696_v35 = vadd.f32 -1.0, %v6983_v16  ;;  %v7199_v41 = vadd.f32 1.0, %v12068_v51  ;;  %v10759_v27 = vld [vmem:[%s14374_s3 + $0x2] sm:$0x3] }
0x10f6   :  { %v7398_v4 = vpop.f32.mrb[146].mxu1  ;;  %v7533_v0 = vpop.f32.mrb[150].mxu0  ;;  %v7200_v3 = vadd.f32 1.0, %v12070_v20  ;;  %v7413_v49 = vadd.f32 %v7406_v31, %v7395_v22  ;;  %v7628_v31 = vrot.slane %v10759_v27, %v14463_v15 }
0x10f7   :  { %v13901_v7 = vpop.eup %12071  ;;  %v7399_v59 = vpop.f32.mrb[147].mxu1  ;;  %v7414_v26 = vadd.f32 %v7410_v13, %v7397_v38  ;;  %v7632_v13 = vrot.slane %v10759_v27, %v14464_v43 }
0x10f8   :  { %v7534_v17 = vpop.f32.mrb[151].mxu0  ;;  %v6986_v48 = vmul.f32 %v13901_v7, %v10696_v35  ;;  %12073 = vrcp.f32 %v7200_v3  ;;  %v10738_v8 = vmul.f32 -1.442695, %v7413_v49 }
0x10f9   :  { %v10739_v23 = vmul.f32 -1.442695, %v7414_v26 }
0x10fa   :  { %6988 = vrot.lane.b32.xlu1 %v6986_v48, %s12373_s14  ;;  %12075 = vpow2.f32 %v10738_v8 }
0x10fb   :  { %12077 = vpow2.f32 %v10739_v23 }
0x10fc   :  { %12079 = vrcp.f32 %v7199_v41 }
0x1102   :  { %v13908_v6 = vpop.eup %12073 }
0x1103   :  { %v7616_v55 = vpop.f32.mrb[148].mxu1  ;;  %v7205_v16 = vmul.f32 2.0, %v13908_v6 }
0x1104   :  { %v12076_v51 = vpop.eup %12075  ;;  %v7617_v22 = vadd.f32 %v7616_v55, %v7529_v40  ;;  %v7618_v9 = vpop.f32.mrb[149].mxu1 }
0x1105   :  { %v12078_v20 = vpop.eup %12077  ;;  %v7619_v38 = vadd.f32 %v7618_v9, %v7531_v1  ;;  %v7620_v4 = vpop.f32.mrb[150].mxu1  ;;  %v10718_v0 = vadd.f32 -1.0, %v7205_v16  ;;  %v7421_v48 = vadd.f32 1.0, %v12076_v51 }
0x1106   :  { %v12080_v35 = vpop.eup %12079  ;;  %v7422_v3 = vadd.f32 1.0, %v12078_v20  ;;  %v7635_v49 = vadd.f32 %v7628_v31, %v7617_v22  ;;  %v7621_v59 = vpop.f32.mrb[151].mxu1 }
0x1107   :  { %v7636_v17 = vadd.f32 %v7632_v13, %v7619_v38  ;;  %v7208_v26 = vmul.f32 %v12080_v35, %v10718_v0  ;;  %v6726_v0 = vmul.f32 %v13889_v5, %v13629_v34 }
0x1108   :  { %12081 = vrcp.f32 %v7422_v3  ;;  %v10760_v41 = vmul.f32 -1.442695, %v7635_v49 }
0x1109   :  { %v10761_v8 = vmul.f32 -1.442695, %v7636_v17  ;;  %7210 = vrot.lane.b32.xlu0 %v7208_v26, %s12373_s14  ;;  %v6985_v26 = vmul.f32 %v13901_v7, %v13656_v21 }
0x110a   :  { %12083 = vpow2.f32 %v10760_v41 }
0x110b   :  { %12085 = vpow2.f32 %v10761_v8 }
0x110c   :  { %12087 = vrcp.f32 %v7421_v48 }
0x1112   :  { %v12082_v40 = vpop.eup %12081 }
0x1113   :  { %v7427_v23 = vmul.f32 2.0, %v12082_v40 }
0x1114   :  { %v12084_v1 = vpop.eup %12083 }
0x1115   :  { %v12086_v27 = vpop.eup %12085  ;;  %v10740_v55 = vadd.f32 -1.0, %v7427_v23  ;;  %v7643_v22 = vadd.f32 1.0, %v12084_v1  ;;  %v7207_v23 = vmul.f32 %v12080_v35, %v13667_v12 }
0x1116   :  { %v12088_v16 = vpop.eup %12087  ;;  %v7644_v9 = vadd.f32 1.0, %v12086_v27 }
0x1117   :  { %v7430_v31 = vmul.f32 %v12088_v16, %v10740_v55  ;;  %v7429_v55 = vmul.f32 %v12088_v16, %v13674_v2 }
0x1118   :  { %12089 = vrcp.f32 %v7644_v9 }
0x1119   :  { %7432 = vrot.lane.b32.xlu1 %v7430_v31, %s12373_s14  ;;  %12091 = vrcp.f32 %v7643_v22 }
0x1122   :  { %v12090_v13 = vpop.eup %12089 }
0x1123   :  { %v7649_v51 = vmul.f32 2.0, %v12090_v13  ;;  %v12092_v38 = vpop.eup %12091 }
0x1124   :  { %v7651_v35 = vmul.f32 %v12092_v38, %v13681_v62 }
0x1125   :  { %v10762_v20 = vadd.f32 -1.0, %v7649_v51 }
0x1127   :  { %v7652_v4 = vmul.f32 %v12092_v38, %v10762_v20  ;;  %v10781_v38 = vld [vmem:[%s14374_s3 + $0xa] sm:$0x3] }
0x1129   :  { %7654 = vrot.lane.b32.xlu0 %v7652_v4, %s12373_s14 }
0x115c   :  { %v6730_v3 = vpop.permute.xlu0 %6729 }
0x115d   :  { %v13918_v49 = vadd.f32 %v6730_v3, %v6726_v0  ;;  %v7857_v3 = vrot.slane %v10781_v38, %v14463_v15 }
0x115f   :  { %12093 = vtanh.f32 %v13918_v49 }
0x1169   :  { %v12094_v59 = vpop.eup %12093 }
0x116a   :  { %v13922_v17 = vmul.f32 %v12094_v59, %v13884_v10 }
0x116c   :  { %v6989_v48 = vpop.permute.xlu1 %6988  ;;  %v7669_v41 = vpack.c.bf16 %v13922_v17, %v13922_v17 }
0x116d   :  { %v13928_v8 = vadd.f32 %v6989_v48, %v6985_v26 }
0x116e   :  { %7679 = vrot.lane.b32.xlu1 %v7669_v41, %s12373_s14 }
0x116f   :  { %12095 = vtanh.f32 %v13928_v8 }
0x1179   :  { %v12096_v34 = vpop.eup %12095 }
0x117a   :  { %v6993_v5 = vmul.f32 %v12096_v34, %v13896_v25 }
0x117b   :  { %v7211_v10 = vpop.permute.xlu0 %7210 }
0x117c   :  { %v7660_v1 = vpack.c.bf16 %v6993_v5, %v6993_v5  ;;  %v13934_v27 = vadd.f32 %v7211_v10, %v7207_v23 }
0x117e   :  { %7766 = vrot.lane.b32.xlu0 %v7660_v1, %s12373_s14  ;;  %12097 = vtanh.f32 %v13934_v27 }
0x1188   :  { %v12098_v21 = vpop.eup %12097 }
0x1189   :  { %v7215_v7 = vmul.f32 %v12098_v21, %v13908_v6 }
0x118b   :  { %v7433_v9 = vpop.permute.xlu1 %7432  ;;  %v7926_v31 = vpack.c.bf16 %v7215_v7, %v7215_v7 }
0x118c   :  { %v13940_v22 = vadd.f32 %v7433_v9, %v7429_v55  ;;  %v10806_v9 = vld [vmem:[%s14374_s3 + $0x8] sm:$0x3] }
0x118d   :  { %8025 = vrot.lane.b32.xlu1 %v7926_v31, %s12373_s14  ;;  %v8116_v31 = vrot.slane %v10806_v9, %v14463_v15 }
0x118e   :  { %12099 = vtanh.f32 %v13940_v22 }
0x1198   :  { %v12100_v12 = vpop.eup %12099 }
0x1199   :  { %v7437_v25 = vmul.f32 %v12100_v12, %v12082_v40 }
0x119b   :  { %v7655_v51 = vpop.permute.xlu0 %7654  ;;  %v8148_v20 = vpack.c.bf16 %v7437_v25, %v7437_v25 }
0x119c   :  { %v7657_v4 = vadd.f32 %v7655_v51, %v7651_v35  ;;  %v8120_v35 = vrot.slane %v10806_v9, %v14464_v43 }
0x119d   :  { %8247 = vrot.lane.b32.xlu0 %v8148_v20, %s12373_s14 }
0x119e   :  { %12101 = vtanh.f32 %v7657_v4 }
0x11a8   :  { %v12102_v6 = vpop.eup %12101 }
0x11a9   :  { %v7659_v2 = vmul.f32 %v12102_v6, %v12090_v13 }
0x11ab   :  { %v8370_v16 = vpack.c.bf16 %v7659_v2, %v7659_v2 }
0x11ad   :  { %8469 = vrot.lane.b32.xlu1 %v8370_v16, %s12373_s14 }
0x11e0   :  { %v7680_v0 = vpop.permute.xlu1 %7679 }
0x11e1   :  { %10771 = vmatmul.mubr.msk.bf16.vlgmr.msra.gmra.mrb[152].mxu0 %vm142_vm0, %v7680_v0 }
0x11e2   :  { %7984 = vmatpush1.bf16.msra.mxu0 %v13691_v19  ;;  %8015 = vmatprep.mubr.bf16.mxu0 %v14444_v63  ;;  %v14492_v19 = vld [vmem:[#allocation28_spill] sm:$0xff] }
0x11e3   :  { %7985 = vmatprep.subr.bf16.mxu0 %v13693_v30 }
0x11e6   :  { %7986 = vmatpush1.bf16.msra.mxu0 %v13697_v32  ;;  %v14493_v32 = vld [vmem:[#allocation14_spill] sm:$0xff] }
0x11e7   :  { %7987 = vmatprep.subr.bf16.mxu0 %v13701_v46  ;;  %v14494_v46 = vld [vmem:[#allocation16_spill] sm:$0xff] }
0x11ea   :  { %7988 = vmatpush1.bf16.msra.mxu0 %v13704_v54  ;;  %v14495_v54 = vld [vmem:[#allocation17_spill] sm:$0xff] }
0x11eb   :  { %7989 = vmatprep.subr.bf16.mxu0 %v13707_v45  ;;  %v14496_v45 = vld [vmem:[#allocation18_spill] sm:$0xff] }
0x11ee   :  { %7990 = vmatpush1.bf16.msra.mxu0 %v13710_v60  ;;  %v14497_v60 = vld [vmem:[#allocation19_spill] sm:$0xff] }
0x11ef   :  { %8205 = vmatprep.subr.bf16.mxu0 %v13713_v61  ;;  %v14498_v61 = vld [vmem:[#allocation20_spill] sm:$0xff] }
0x11f0   :  { %v7767_v62 = vpop.permute.xlu0 %7766 }
0x11f1   :  { %10780 = vmatmul.mubr.msk.bf16.vlgmr.msra.gmra.mrb[152].mxu1 %vm142_vm0, %v7767_v62  ;;  %10796 = vmatmul.mubr.msk.bf16.vlgmr.msra.gmra.mrb[156].mxu0 %vm142_vm0, %v7767_v62 }
0x11f2   :  { %8071 = vmatpush1.bf16.msra.mxu1 %v13716_v11  ;;  %8206 = vmatpush1.bf16.msra.mxu0 %v13718_v14  ;;  %v14499_v11 = vld [vmem:[#allocation21_spill] sm:$0xff]  ;;  %v14500_v14 = vld [vmem:[#allocation22_spill] sm:$0xff] }
0x11f3   :  { %8072 = vmatprep.subr.bf16.mxu1 %v13721_v44  ;;  %8207 = vmatprep.subr.bf16.mxu0 %v13723_v36  ;;  %v14501_v44 = vld [vmem:[#allocation23_spill] sm:$0xff]  ;;  %v14502_v36 = vld [vmem:[#allocation24_spill] sm:$0xff] }
0x11f4   :  { %8102 = vmatprep.mubr.bf16.mxu1 %v14444_v63  ;;  %8237 = vmatprep.mubr.bf16.mxu0 %v14444_v63 }
0x11f6   :  { %8073 = vmatpush1.bf16.msra.mxu1 %v13729_v47  ;;  %8208 = vmatpush1.bf16.msra.mxu0 %v13731_v50  ;;  %v14503_v47 = vld [vmem:[#allocation12_spill] sm:$0xff]  ;;  %v14504_v50 = vld [vmem:[#allocation13_spill] sm:$0xff] }
0x11f7   :  { %8074 = vmatprep.subr.bf16.mxu1 %v13735_v28  ;;  %8209 = vmatprep.subr.bf16.mxu0 %v13737_v37  ;;  %v14505_v28 = vld [vmem:[#allocation29_spill] sm:$0xff]  ;;  %v14506_v37 = vld [vmem:[#allocation30_spill] sm:$0xff] }
0x11fa   :  { %8075 = vmatpush1.bf16.msra.mxu1 %v13743_v56  ;;  %8210 = vmatpush1.bf16.msra.mxu0 %v13745_v33  ;;  %v14507_v33 = vld [vmem:[#allocation31_spill] sm:$0xff] }
0x11fb   :  { %8076 = vmatprep.subr.bf16.mxu1 %v13749_v18  ;;  %8211 = vmatprep.subr.bf16.mxu0 %v13751_v42  ;;  %v14508_v18 = vld [vmem:[#allocation25_spill] sm:$0xff]  ;;  %v14509_v42 = vld [vmem:[#allocation32_spill] sm:$0xff] }
0x11fe   :  { %8077 = vmatpush1.bf16.msra.mxu1 %v13755_v53  ;;  %8212 = vmatpush1.bf16.msra.mxu0 %v13757_v29  ;;  %v14510_v53 = vld [vmem:[#allocation33_spill] sm:$0xff] }
0x11ff   :  { %8292 = vmatprep.subr.bf16.mxu1 %v13761_v58  ;;  %8427 = vmatprep.subr.bf16.mxu0 %v14492_v19  ;;  %v8026_v30 = vpop.permute.xlu1 %8025 }
0x1201   :  { %10805 = vmatmul.mubr.msk.bf16.vlgmr.msra.gmra.mrb[156].mxu1 %vm142_vm0, %v8026_v30  ;;  %10818 = vmatmul.mubr.msk.bf16.vlgmr.msra.gmra.mrb[160].mxu0 %vm142_vm0, %v8026_v30 }
0x1202   :  { %8293 = vmatpush1.bf16.msra.mxu1 %v14493_v32  ;;  %8428 = vmatpush1.bf16.msra.mxu0 %v14494_v46 }
0x1203   :  { %8294 = vmatprep.subr.bf16.mxu1 %v14495_v54  ;;  %8429 = vmatprep.subr.bf16.mxu0 %v14496_v45 }
0x1204   :  { %8324 = vmatprep.mubr.bf16.mxu1 %v14444_v63  ;;  %8459 = vmatprep.mubr.bf16.mxu0 %v14444_v63 }
0x1206   :  { %8295 = vmatpush1.bf16.msra.mxu1 %v14497_v60  ;;  %8430 = vmatpush1.bf16.msra.mxu0 %v14498_v61 }
0x1207   :  { %8296 = vmatprep.subr.bf16.mxu1 %v14499_v11  ;;  %8431 = vmatprep.subr.bf16.mxu0 %v14500_v14  ;;  %v10828_v11 = vld [vmem:[%s14374_s3 + $0x6] sm:$0x3] }
0x120a   :  { %8297 = vmatpush1.bf16.msra.mxu1 %v14501_v44  ;;  %8432 = vmatpush1.bf16.msra.mxu0 %v14502_v36  ;;  %v8338_v44 = vrot.slane %v10828_v11, %v14463_v15 }
0x120b   :  { %8298 = vmatprep.subr.bf16.mxu1 %v13801_v24  ;;  %8433 = vmatprep.subr.bf16.mxu0 %v14503_v47 }
0x120e   :  { %8299 = vmatpush1.bf16.msra.mxu1 %v14504_v50  ;;  %8434 = vmatpush1.bf16.msra.mxu0 %v14505_v28  ;;  %v8342_v50 = vrot.slane %v10828_v11, %v14464_v43 }
0x120f   :  { %8514 = vmatprep.subr.bf16.mxu1 %v14506_v37  ;;  %v8248_v56 = vpop.permute.xlu0 %8247 }
0x1211   :  { %10827 = vmatmul.mubr.msk.bf16.vlgmr.msra.gmra.mrb[160].mxu1 %vm142_vm0, %v8248_v56  ;;  %10840 = vmatmul.mubr.msk.bf16.vlgmr.msra.gmra.mrb[164].mxu0 %vm142_vm0, %v8248_v56 }
0x1212   :  { %8515 = vmatpush1.bf16.msra.mxu1 %v14507_v33  ;;  %8546 = vmatprep.mubr.bf16.mxu1 %v14444_v63 }
0x1213   :  { %8516 = vmatprep.subr.bf16.mxu1 %v14508_v18  ;;  %8688 = vmatprep.mubr.bf16.mxu0 %v14444_v63 }
0x1216   :  { %8517 = vmatpush1.bf16.msra.mxu1 %v14509_v42 }
0x1217   :  { %8518 = vmatprep.subr.bf16.mxu1 %v14510_v53 }
0x121a   :  { %8519 = vmatpush1.bf16.msra.mxu1 %v13833_v39 }
0x121b   :  { %8520 = vmatprep.subr.bf16.mxu1 %v13836_v57  ;;  %v7861_v57 = vrot.slane %v10781_v38, %v14464_v43 }
0x121e   :  { %8521 = vmatpush1.bf16.msra.mxu1 %v13839_v52 }
0x121f   :  { %v8470_v29 = vpop.permute.xlu1 %8469 }
0x1221   :  { %10849 = vmatmul.mubr.msk.bf16.vlgmr.msra.gmra.mrb[164].mxu1 %vm142_vm0, %v8470_v29 }
0x1222   :  { %8775 = vmatprep.mubr.bf16.mxu1 %v14444_v63 }
0x12b4   :  { %v7758_v58 = vpop.f32.mrb[152].mxu0 }
0x12b5   :  { %v7760_v24 = vpop.f32.mrb[153].mxu0 }
0x12b6   :  { %v7762_v40 = vpop.f32.mrb[154].mxu0 }
0x12b7   :  { %v7763_v13 = vpop.f32.mrb[155].mxu0 }
0x12c4   :  { %v7845_v39 = vpop.f32.mrb[152].mxu1  ;;  %v8017_v59 = vpop.f32.mrb[156].mxu0 }
0x12c5   :  { %v7846_v52 = vadd.f32 %v7845_v39, %v7758_v58  ;;  %v7847_v26 = vpop.f32.mrb[153].mxu1  ;;  %v8019_v48 = vpop.f32.mrb[157].mxu0 }
0x12c6   :  { %v7848_v41 = vadd.f32 %v7847_v26, %v7760_v24  ;;  %v7849_v34 = vpop.f32.mrb[154].mxu1  ;;  %v8021_v5 = vpop.f32.mrb[158].mxu0 }
0x12c7   :  { %v7864_v23 = vadd.f32 %v7857_v3, %v7846_v52  ;;  %v7850_v10 = vpop.f32.mrb[155].mxu1  ;;  %v8022_v1 = vpop.f32.mrb[159].mxu0 }
0x12c8   :  { %v7865_v21 = vadd.f32 %v7861_v57, %v7848_v41  ;;  %v10850_v41 = vld [vmem:[%s14374_s3 + $0x4] sm:$0x3] }
0x12c9   :  { %v10782_v7 = vmul.f32 -1.442695, %v7864_v23  ;;  %v8560_v5 = vrot.slane %v10850_v41, %v14463_v15  ;;  %v8564_v10 = vrot.slane %v10850_v41, %v14464_v43  ;;  %v14107_v41 = vld [vmem:[#allocation3 + $0x170] ss:$8 sps:$4 sm:$0xff]  }
0x12ca   :  { %v10783_v55 = vmul.f32 -1.442695, %v7865_v21 }
0x12cb   :  { %12103 = vpow2.f32 %v10782_v7 }
0x12cc   :  { %12105 = vpow2.f32 %v10783_v55 }
0x12d4   :  { %v8104_v12 = vpop.f32.mrb[156].mxu1  ;;  %v8239_v25 = vpop.f32.mrb[160].mxu0 }
0x12d5   :  { %v12104_v51 = vpop.eup %12103  ;;  %v8105_v20 = vadd.f32 %v8104_v12, %v8017_v59  ;;  %v8106_v4 = vpop.f32.mrb[157].mxu1 }
0x12d6   :  { %v8241_v6 = vpop.f32.mrb[161].mxu0  ;;  %v12106_v2 = vpop.eup %12105  ;;  %v8107_v16 = vadd.f32 %v8106_v4, %v8019_v48  ;;  %v7872_v45 = vadd.f32 1.0, %v12104_v51 }
0x12d7   :  { %v8108_v0 = vpop.f32.mrb[158].mxu1  ;;  %v8243_v62 = vpop.f32.mrb[162].mxu0  ;;  %v7873_v19 = vadd.f32 1.0, %v12106_v2  ;;  %v8123_v30 = vadd.f32 %v8116_v31, %v8105_v20 }
0x12d8   :  { %v8109_v32 = vpop.f32.mrb[159].mxu1  ;;  %v8244_v46 = vpop.f32.mrb[163].mxu0  ;;  %v8124_v54 = vadd.f32 %v8120_v35, %v8107_v16 }
0x12d9   :  { %12107 = vrcp.f32 %v7873_v19  ;;  %v10807_v60 = vmul.f32 -1.442695, %v8123_v30 }
0x12da   :  { %v10808_v61 = vmul.f32 -1.442695, %v8124_v54 }
0x12db   :  { %12109 = vpow2.f32 %v10807_v60 }
0x12dc   :  { %12111 = vpow2.f32 %v10808_v61 }
0x12dd   :  { %12113 = vrcp.f32 %v7872_v45 }
0x12e3   :  { %v14022_v14 = vpop.eup %12107 }
0x12e4   :  { %v8326_v36 = vpop.f32.mrb[160].mxu1  ;;  %v8461_v47 = vpop.f32.mrb[164].mxu0  ;;  %v7878_v28 = vmul.f32 2.0, %v14022_v14 }
0x12e5   :  { %v12110_v37 = vpop.eup %12109  ;;  %v8327_v56 = vadd.f32 %v8326_v36, %v8239_v25  ;;  %v8328_v33 = vpop.f32.mrb[161].mxu1 }
0x12e6   :  { %v8463_v18 = vpop.f32.mrb[165].mxu0  ;;  %v12112_v42 = vpop.eup %12111  ;;  %v8329_v53 = vadd.f32 %v8328_v33, %v8241_v6  ;;  %v10784_v24 = vadd.f32 -1.0, %v7878_v28  ;;  %v8131_v52 = vadd.f32 1.0, %v12110_v37  ;;  %v14054_v37 = vld [vmem:[#allocation6 + $0x140] ss:$8 sps:$4 sm:$0xff]  }
0x12e7   :  { %v8330_v29 = vpop.f32.mrb[162].mxu1  ;;  %v8465_v58 = vpop.f32.mrb[166].mxu0  ;;  %v8132_v13 = vadd.f32 1.0, %v12112_v42  ;;  %v8345_v38 = vadd.f32 %v8338_v44, %v8327_v56  ;;  %v14056_v56 = vld [vmem:[#allocation6 + $0x144] ss:$8 sps:$4 sm:$0xff]  }
0x12e8   :  { %v14027_v40 = vpop.eup %12113  ;;  %v8331_v3 = vpop.f32.mrb[163].mxu1  ;;  %v8346_v59 = vadd.f32 %v8342_v50, %v8329_v53  ;;  %v14058_v33 = vld [vmem:[#allocation6 + $0x154] ss:$8 sps:$4 sm:$0xff]   ;;  %8656 = vmatprep.subr.bf16.mxu0 %v14056_v56  ;;  %v14064_v42 = vld [vmem:[#allocation6 + $0x150] ss:$8 sps:$4 sm:$0xff]  }
0x12e9   :  { %v8466_v39 = vpop.f32.mrb[167].mxu0  ;;  %v7881_v57 = vmul.f32 %v14027_v40, %v10784_v24  ;;  %12115 = vrcp.f32 %v8132_v13  ;;  %v10829_v26 = vmul.f32 -1.442695, %v8345_v38  ;;  %8657 = vmatpush1.bf16.msra.mxu0 %v14054_v37  ;;  %v14066_v53 = vld [vmem:[#allocation3 + $0x144] ss:$8 sps:$4 sm:$0xff]   ;;  %v7880_v3 = vmul.f32 %v14027_v40, %v13918_v49 }
0x12ea   :  { %v10830_v48 = vmul.f32 -1.442695, %v8346_v59  ;;  %8658 = vmatprep.subr.bf16.mxu0 %v14058_v33  ;;  %v14069_v29 = vld [vmem:[#allocation6 + $0x164] ss:$8 sps:$4 sm:$0xff]   ;;  %8743 = vmatprep.subr.bf16.mxu1 %v14066_v53  ;;  %v14074_v58 = vld [vmem:[#allocation6 + $0x160] ss:$8 sps:$4 sm:$0xff]  }
0x12eb   :  { %7883 = vrot.lane.b32.xlu0 %v7881_v57, %s12373_s14  ;;  %12117 = vpow2.f32 %v10829_v26  ;;  %v14077_v24 = vld [vmem:[#allocation6 + $0x174] ss:$8 sps:$4 sm:$0xff]   ;;  %v14080_v13 = vld [vmem:[#allocation6 + $0x170] ss:$8 sps:$4 sm:$0xff]   ;;  %v14083_v38 = vld [vmem:[#allocation6 + $0x104] ss:$8 sps:$4 sm:$0xff]  }
0x12ec   :  { %12119 = vpow2.f32 %v10830_v48  ;;  %v14092_v57 = vld [vmem:[#allocation3 + $0x150] ss:$8 sps:$4 sm:$0xff]   ;;  %v14098_v26 = vld [vmem:[#allocation3 + $0x160] ss:$8 sps:$4 sm:$0xff]   ;;  %v14100_v48 = vld [vmem:[#allocation3 + $0x164] ss:$8 sps:$4 sm:$0xff]  }
0x12ed   :  { %12121 = vrcp.f32 %v8131_v52  ;;  %8659 = vmatpush1.bf16.msra.mxu0 %v14064_v42  ;;  %v14094_v52 = vld [vmem:[#allocation3 + $0x154] ss:$8 sps:$4 sm:$0xff]  }
0x12ee   :  { %8660 = vmatprep.subr.bf16.mxu0 %v14069_v29 }
0x12f1   :  { %8661 = vmatpush1.bf16.msra.mxu0 %v14074_v58 }
0x12f2   :  { %8662 = vmatprep.subr.bf16.mxu0 %v14077_v24 }
0x12f3   :  { %v14034_v34 = vpop.eup %12115 }
0x12f4   :  { %v8548_v23 = vpop.f32.mrb[164].mxu1  ;;  %v8137_v1 = vmul.f32 2.0, %v14034_v34 }
0x12f5   :  { %v12118_v21 = vpop.eup %12117  ;;  %v8549_v7 = vadd.f32 %v8548_v23, %v8461_v47  ;;  %v8550_v55 = vpop.f32.mrb[165].mxu1  ;;  %8663 = vmatpush1.bf16.msra.mxu0 %v14080_v13 }
0x12f6   :  { %v12120_v9 = vpop.eup %12119  ;;  %v8551_v31 = vadd.f32 %v8550_v55, %v8463_v18  ;;  %v8552_v12 = vpop.f32.mrb[166].mxu1  ;;  %v10809_v25 = vadd.f32 -1.0, %v8137_v1  ;;  %v8353_v16 = vadd.f32 1.0, %v12118_v21  ;;  %v14061_v18 = vld [vmem:[#allocation3 + $0x140] ss:$8 sps:$4 sm:$0xff]   ;;  %8915 = vmatprep.subr.bf16.mxu0 %v14083_v38 }
0x12f7   :  { %v14039_v35 = vpop.eup %12121  ;;  %v8354_v51 = vadd.f32 1.0, %v12120_v9  ;;  %v8567_v20 = vadd.f32 %v8560_v5, %v8549_v7  ;;  %v8553_v4 = vpop.f32.mrb[167].mxu1  ;;  %8744 = vmatpush1.bf16.msra.mxu1 %v14061_v18  ;;  %v14109_v5 = vld [vmem:[#allocation3 + $0x174] ss:$8 sps:$4 sm:$0xff]  }
0x12f8   :  { %v8568_v6 = vadd.f32 %v8564_v10, %v8551_v31  ;;  %v8140_v2 = vmul.f32 %v14039_v35, %v10809_v25  ;;  %8745 = vmatprep.subr.bf16.mxu1 %v14094_v52  ;;  %v8139_v23 = vmul.f32 %v14039_v35, %v13928_v8 }
0x12f9   :  { %12123 = vrcp.f32 %v8354_v51  ;;  %v10851_v0 = vmul.f32 -1.442695, %v8567_v20 }
0x12fa   :  { %v10852_v62 = vmul.f32 -1.442695, %v8568_v6  ;;  %8142 = vrot.lane.b32.xlu1 %v8140_v2, %s12373_s14 }
0x12fb   :  { %12125 = vpow2.f32 %v10851_v0  ;;  %8746 = vmatpush1.bf16.msra.mxu1 %v14092_v57  ;;  %v14138_v0 = vld [vmem:[#allocation6 + $0x114] ss:$8 sps:$4 sm:$0xff]  }
0x12fc   :  { %12127 = vpow2.f32 %v10852_v62  ;;  %8747 = vmatprep.subr.bf16.mxu1 %v14100_v48 }
0x12fd   :  { %12129 = vrcp.f32 %v8353_v16  ;;  %v14136_v16 = vld [vmem:[#allocation6 + $0x100] ss:$8 sps:$4 sm:$0xff]  }
0x12ff   :  { %8748 = vmatpush1.bf16.msra.mxu1 %v14098_v26 }
0x1300   :  { %8749 = vmatprep.subr.bf16.mxu1 %v14109_v5 }
0x1303   :  { %v14043_v19 = vpop.eup %12123  ;;  %8750 = vmatpush1.bf16.msra.mxu1 %v14107_v41 }
0x1304   :  { %v8359_v30 = vmul.f32 2.0, %v14043_v19 }
0x1305   :  { %v12126_v32 = vpop.eup %12125 }
0x1306   :  { %v12128_v46 = vpop.eup %12127  ;;  %v10831_v54 = vadd.f32 -1.0, %v8359_v30  ;;  %v8575_v11 = vadd.f32 1.0, %v12126_v32  ;;  %v14149_v30 = vld [vmem:[#allocation6 + $0x120] ss:$8 sps:$4 sm:$0xff]   ;;  %v14152_v32 = vld [vmem:[#allocation6 + $0x134] ss:$8 sps:$4 sm:$0xff]  }
0x1307   :  { %v14046_v45 = vpop.eup %12129  ;;  %v8576_v60 = vadd.f32 1.0, %v12128_v46  ;;  %v14155_v46 = vld [vmem:[#allocation6 + $0x130] ss:$8 sps:$4 sm:$0xff]  }
0x1308   :  { %v8362_v61 = vmul.f32 %v14046_v45, %v10831_v54  ;;  %v8361_v55 = vmul.f32 %v14046_v45, %v13934_v27  ;;  %v11692_v54 = vld [vmem:[#allocation6 + $0xc4] ss:$8 sps:$4 sm:$0xff]   ;;  %v14159_v45 = vld [vmem:[#allocation3 + $0x100] ss:$8 sps:$4 sm:$0xff]  }
0x1309   :  { %12131 = vrcp.f32 %v8576_v60  ;;  %v11690_v60 = vld [vmem:[#allocation6 + $0xc0] ss:$8 sps:$4 sm:$0xff]  }
0x130a   :  { %8364 = vrot.lane.b32.xlu0 %v8362_v61, %s12373_s14  ;;  %12133 = vrcp.f32 %v8575_v11  ;;  %v14161_v61 = vld [vmem:[#allocation3 + $0x114] ss:$8 sps:$4 sm:$0xff]  }
0x130b   :  { %v11698_v11 = vld [vmem:[#allocation6 + $0xd4] ss:$8 sps:$4 sm:$0xff]  }
0x1313   :  { %v14050_v44 = vpop.eup %12131 }
0x1314   :  { %v8581_v36 = vmul.f32 2.0, %v14050_v44  ;;  %v12134_v50 = vpop.eup %12133 }
0x1315   :  { %v8583_v51 = vmul.f32 %v12134_v50, %v13940_v22  ;;  %v14142_v22 = vld [vmem:[#allocation6 + $0x110] ss:$8 sps:$4 sm:$0xff]  }
0x1316   :  { %v10853_v47 = vadd.f32 -1.0, %v8581_v36  ;;  %v14166_v36 = vld [vmem:[#allocation3 + $0x110] ss:$8 sps:$4 sm:$0xff]  }
0x1318   :  { %v8584_v28 = vmul.f32 %v12134_v50, %v10853_v47  ;;  %v11696_v47 = vld [vmem:[#allocation6 + $0xd0] ss:$8 sps:$4 sm:$0xff]   ;;  %v14169_v50 = vld [vmem:[#allocation3 + $0x124] ss:$8 sps:$4 sm:$0xff]  }
0x131a   :  { %8586 = vrot.lane.b32.xlu1 %v8584_v28, %s12373_s14  ;;  %v11704_v28 = vld [vmem:[#allocation6 + $0xe4] ss:$8 sps:$4 sm:$0xff]  }
0x135d   :  { %v7884_v39 = vpop.permute.xlu0 %7883 }
0x135e   :  { %v14089_v59 = vadd.f32 %v7884_v39, %v7880_v3  ;;  %v14174_v3 = vld [vmem:[#allocation3 + $0x120] ss:$8 sps:$4 sm:$0xff]  }
0x135f   :  { %v11702_v39 = vld [vmem:[#allocation6 + $0xe0] ss:$8 sps:$4 sm:$0xff]  }
0x1360   :  { %12135 = vtanh.f32 %v14089_v59 }
0x136a   :  { %v12136_v49 = vpop.eup %12135 }
0x136b   :  { %v14105_v40 = vmul.f32 %v12136_v49, %v14022_v14  ;;  %v14120_v14 = vld [vmem:[#allocation3 + $0x104] ss:$8 sps:$4 sm:$0xff]   ;;  %v14177_v49 = vld [vmem:[#allocation3 + $0x134] ss:$8 sps:$4 sm:$0xff]  }
0x136c   :  { %v8143_v10 = vpop.permute.xlu1 %8142  ;;  %9002 = vmatprep.subr.bf16.mxu1 %v14120_v14 }
0x136d   :  { %v8601_v1 = vpack.c.bf16 %v14105_v40, %v14105_v40  ;;  %v14116_v21 = vadd.f32 %v8143_v10, %v8139_v23  ;;  %v11710_v23 = vld [vmem:[#allocation6 + $0xf4] ss:$8 sps:$4 sm:$0xff]   ;;  %v14180_v10 = vld [vmem:[#allocation3 + $0x130] ss:$8 sps:$4 sm:$0xff]  }
0x136f   :  { %8611 = vrot.lane.b32.xlu0 %v8601_v1, %s12373_s14  ;;  %12137 = vtanh.f32 %v14116_v21  ;;  %v11708_v1 = vld [vmem:[#allocation6 + $0xf0] ss:$8 sps:$4 sm:$0xff]  }
0x1379   :  { %v12138_v7 = vpop.eup %12137 }
0x137a   :  { %v8147_v8 = vmul.f32 %v12138_v7, %v14034_v34  ;;  %v11713_v7 = vld [vmem:[#allocation3 + $0xc4] ss:$8 sps:$4 sm:$0xff]  }
0x137c   :  { %v8365_v9 = vpop.permute.xlu0 %8364  ;;  %v8592_v31 = vpack.c.bf16 %v8147_v8, %v8147_v8  ;;  %v11711_v8 = vld [vmem:[#allocation3 + $0xc0] ss:$8 sps:$4 sm:$0xff]  }
0x137d   :  { %v14127_v12 = vadd.f32 %v8365_v9, %v8361_v55  ;;  %v11716_v55 = vld [vmem:[#allocation3 + $0xd4] ss:$8 sps:$4 sm:$0xff]  }
0x137e   :  { %8698 = vrot.lane.b32.xlu1 %v8592_v31, %s12373_s14  ;;  %v11714_v31 = vld [vmem:[#allocation3 + $0xd0] ss:$8 sps:$4 sm:$0xff]  }
0x137f   :  { %12139 = vtanh.f32 %v14127_v12 }
0x1389   :  { %v12140_v25 = vpop.eup %12139 }
0x138a   :  { %v8369_v35 = vmul.f32 %v12140_v25, %v14043_v19  ;;  %v14146_v19 = vld [vmem:[#allocation6 + $0x124] ss:$8 sps:$4 sm:$0xff]  }
0x138b   :  { %v11719_v25 = vld [vmem:[#allocation3 + $0xe4] ss:$8 sps:$4 sm:$0xff]  }
0x138c   :  { %v8587_v20 = vpop.permute.xlu1 %8586  ;;  %v8858_v4 = vpack.c.bf16 %v8369_v35, %v8369_v35  ;;  %v11717_v35 = vld [vmem:[#allocation3 + $0xe0] ss:$8 sps:$4 sm:$0xff]  }
0x138d   :  { %v8589_v6 = vadd.f32 %v8587_v20, %v8583_v51  ;;  %v11722_v51 = vld [vmem:[#allocation3 + $0xf4] ss:$8 sps:$4 sm:$0xff]   ;;  %v11720_v20 = vld [vmem:[#allocation3 + $0xf0] ss:$8 sps:$4 sm:$0xff]  }
0x138e   :  { %8957 = vrot.lane.b32.xlu0 %v8858_v4, %s12373_s14 }
0x138f   :  { %12141 = vtanh.f32 %v8589_v6 }
0x1399   :  { %v12142_v27 = vpop.eup %12141 }
0x139a   :  { %v8591_v34 = vmul.f32 %v12142_v27, %v14050_v44 }
0x139c   :  { %v9080_v2 = vpack.c.bf16 %v8591_v34, %v8591_v34 }
0x139e   :  { %9179 = vrot.lane.b32.xlu1 %v9080_v2, %s12373_s14  ;;  %v10872_v2 = vld [vmem:[%s14374_s3 + $0xa] sm:$0x3] }
0x13e1   :  { %v8612_v62 = vpop.permute.xlu0 %8611 }
0x13e2   :  { %10862 = vmatmul.mubr.msk.bf16.vlgmr.msra.gmra.mrb[168].mxu0 %vm142_vm0, %v8612_v62  ;;  %v8789_v62 = vrot.slane %v10872_v2, %v14463_v15 }
0x13e3   :  { %8916 = vmatpush1.bf16.msra.mxu0 %v14136_v16  ;;  %8947 = vmatprep.mubr.bf16.mxu0 %v14444_v63 }
0x13e4   :  { %8917 = vmatprep.subr.bf16.mxu0 %v14138_v0 }
0x13e7   :  { %8918 = vmatpush1.bf16.msra.mxu0 %v14142_v22 }
0x13e8   :  { %8919 = vmatprep.subr.bf16.mxu0 %v14146_v19 }
0x13eb   :  { %8920 = vmatpush1.bf16.msra.mxu0 %v14149_v30 }
0x13ec   :  { %8921 = vmatprep.subr.bf16.mxu0 %v14152_v32 }
0x13ef   :  { %8922 = vmatpush1.bf16.msra.mxu0 %v14155_v46 }
0x13f0   :  { %9137 = vmatprep.subr.bf16.mxu0 %v11692_v54  ;;  %v8699_v44 = vpop.permute.xlu1 %8698 }
0x13f1   :  { %10871 = vmatmul.mubr.msk.bf16.vlgmr.msra.gmra.mrb[168].mxu1 %vm142_vm0, %v8699_v44 }
0x13f2   :  { %10887 = vmatmul.mubr.msk.bf16.vlgmr.msra.gmra.mrb[172].mxu0 %vm142_vm0, %v8699_v44  ;;  %9003 = vmatpush1.bf16.msra.mxu1 %v14159_v45 }
0x13f3   :  { %9138 = vmatpush1.bf16.msra.mxu0 %v11690_v60  ;;  %9004 = vmatprep.subr.bf16.mxu1 %v14161_v61 }
0x13f4   :  { %9139 = vmatprep.subr.bf16.mxu0 %v11698_v11  ;;  %9034 = vmatprep.mubr.bf16.mxu1 %v14444_v63  ;;  %v8793_v11 = vrot.slane %v10872_v2, %v14464_v43 }
0x13f5   :  { %9169 = vmatprep.mubr.bf16.mxu0 %v14444_v63 }
0x13f6   :  { %9005 = vmatpush1.bf16.msra.mxu1 %v14166_v36 }
0x13f7   :  { %9140 = vmatpush1.bf16.msra.mxu0 %v11696_v47  ;;  %9006 = vmatprep.subr.bf16.mxu1 %v14169_v50 }
0x13f8   :  { %9141 = vmatprep.subr.bf16.mxu0 %v11704_v28 }
0x13fa   :  { %9007 = vmatpush1.bf16.msra.mxu1 %v14174_v3 }
0x13fb   :  { %9142 = vmatpush1.bf16.msra.mxu0 %v11702_v39  ;;  %9008 = vmatprep.subr.bf16.mxu1 %v14177_v49 }
0x13fc   :  { %9143 = vmatprep.subr.bf16.mxu0 %v11710_v23 }
0x13fe   :  { %9009 = vmatpush1.bf16.msra.mxu1 %v14180_v10 }
0x13ff   :  { %9144 = vmatpush1.bf16.msra.mxu0 %v11708_v1  ;;  %9224 = vmatprep.subr.bf16.mxu1 %v11713_v7 }
0x1400   :  { %9366 = vmatprep.subr.bf16.mxu0 %v14056_v56  ;;  %v8958_v9 = vpop.permute.xlu0 %8957 }
0x1401   :  { %10896 = vmatmul.mubr.msk.bf16.vlgmr.msra.gmra.mrb[172].mxu1 %vm142_vm0, %v8958_v9 }
0x1402   :  { %10909 = vmatmul.mubr.msk.bf16.vlgmr.msra.gmra.mrb[176].mxu0 %vm142_vm0, %v8958_v9  ;;  %9225 = vmatpush1.bf16.msra.mxu1 %v11711_v8 }
0x1403   :  { %9256 = vmatprep.mubr.bf16.mxu1 %v14444_v63  ;;  %9226 = vmatprep.subr.bf16.mxu1 %v11716_v55 }
0x1404   :  { %9367 = vmatpush1.bf16.msra.mxu0 %v14054_v37  ;;  %9398 = vmatprep.mubr.bf16.mxu0 %v14444_v63 }
0x1405   :  { %9368 = vmatprep.subr.bf16.mxu0 %v14058_v33 }
0x1406   :  { %9227 = vmatpush1.bf16.msra.mxu1 %v11714_v31 }
0x1407   :  { %9228 = vmatprep.subr.bf16.mxu1 %v11719_v25  ;;  %v10897_v25 = vld [vmem:[%s14374_s3 + $0x8] sm:$0x3] }
0x1408   :  { %9369 = vmatpush1.bf16.msra.mxu0 %v14064_v42 }
0x1409   :  { %9370 = vmatprep.subr.bf16.mxu0 %v14069_v29 }
0x140a   :  { %9229 = vmatpush1.bf16.msra.mxu1 %v11717_v35  ;;  %v9048_v35 = vrot.slane %v10897_v25, %v14463_v15 }
0x140b   :  { %9230 = vmatprep.subr.bf16.mxu1 %v11722_v51 }
0x140c   :  { %9371 = vmatpush1.bf16.msra.mxu0 %v14074_v58 }
0x140d   :  { %9372 = vmatprep.subr.bf16.mxu0 %v14077_v24 }
0x140e   :  { %9231 = vmatpush1.bf16.msra.mxu1 %v11720_v20 }
0x140f   :  { %9453 = vmatprep.subr.bf16.mxu1 %v14066_v53 }
0x1410   :  { %9373 = vmatpush1.bf16.msra.mxu0 %v14080_v13  ;;  %v9180_v4 = vpop.permute.xlu1 %9179 }
0x1411   :  { %9625 = vmatprep.subr.bf16.mxu0 %v14083_v38  ;;  %10918 = vmatmul.mubr.msk.bf16.vlgmr.msra.gmra.mrb[176].mxu1 %vm142_vm0, %v9180_v4  ;;  %v9052_v4 = vrot.slane %v10897_v25, %v14464_v43 }
0x1412   :  { %9454 = vmatpush1.bf16.msra.mxu1 %v14061_v18  ;;  %9485 = vmatprep.mubr.bf16.mxu1 %v14444_v63 }
0x1413   :  { %9455 = vmatprep.subr.bf16.mxu1 %v14094_v52 }
0x1416   :  { %9456 = vmatpush1.bf16.msra.mxu1 %v14092_v57 }
0x1417   :  { %9457 = vmatprep.subr.bf16.mxu1 %v14100_v48 }
0x141a   :  { %9458 = vmatpush1.bf16.msra.mxu1 %v14098_v26 }
0x141b   :  { %9459 = vmatprep.subr.bf16.mxu1 %v14109_v5 }
0x141e   :  { %9460 = vmatpush1.bf16.msra.mxu1 %v14107_v41 }
0x141f   :  { %9712 = vmatprep.subr.bf16.mxu1 %v14120_v14 }
0x14b5   :  { %v8690_v38 = vpop.f32.mrb[168].mxu0 }
0x14b6   :  { %v8692_v6 = vpop.f32.mrb[169].mxu0 }
0x14b7   :  { %v8694_v27 = vpop.f32.mrb[170].mxu0 }
0x14b8   :  { %v8695_v34 = vpop.f32.mrb[171].mxu0 }
0x14c4   :  { %v8777_v54 = vpop.f32.mrb[168].mxu1 }
0x14c5   :  { %v8949_v60 = vpop.f32.mrb[172].mxu0  ;;  %v8778_v44 = vadd.f32 %v8777_v54, %v8690_v38  ;;  %v8779_v47 = vpop.f32.mrb[169].mxu1 }
0x14c6   :  { %v8951_v28 = vpop.f32.mrb[173].mxu0  ;;  %v8780_v39 = vadd.f32 %v8779_v47, %v8692_v6  ;;  %v8781_v23 = vpop.f32.mrb[170].mxu1 }
0x14c7   :  { %v8953_v14 = vpop.f32.mrb[174].mxu0  ;;  %v8796_v1 = vadd.f32 %v8789_v62, %v8778_v44  ;;  %v8782_v7 = vpop.f32.mrb[171].mxu1 }
0x14c8   :  { %v8954_v8 = vpop.f32.mrb[175].mxu0  ;;  %v8797_v55 = vadd.f32 %v8793_v11, %v8780_v39 }
0x14c9   :  { %v10873_v9 = vmul.f32 -1.442695, %v8796_v1 }
0x14ca   :  { %v10874_v31 = vmul.f32 -1.442695, %v8797_v55 }
0x14cb   :  { %12143 = vpow2.f32 %v10873_v9 }
0x14cc   :  { %12145 = vpow2.f32 %v10874_v31 }
0x14d4   :  { %v9036_v51 = vpop.f32.mrb[172].mxu1 }
0x14d5   :  { %v9171_v20 = vpop.f32.mrb[176].mxu0  ;;  %v12144_v38 = vpop.eup %12143  ;;  %v9037_v6 = vadd.f32 %v9036_v51, %v8949_v60  ;;  %v10919_v60 = vld [vmem:[%s14374_s3 + $0x6] sm:$0x3] }
0x14d6   :  { %v9038_v27 = vpop.f32.mrb[173].mxu1  ;;  %v9173_v34 = vpop.f32.mrb[177].mxu0  ;;  %v8804_v1 = vadd.f32 1.0, %v12144_v38  ;;  %v9274_v31 = vrot.slane %v10919_v60, %v14464_v43 }
0x14d7   :  { %v12146_v2 = vpop.eup %12145  ;;  %v9039_v62 = vadd.f32 %v9038_v27, %v8951_v28  ;;  %v9040_v54 = vpop.f32.mrb[174].mxu1  ;;  %v9055_v47 = vadd.f32 %v9048_v35, %v9037_v6  ;;  %v9270_v28 = vrot.slane %v10919_v60, %v14463_v15 }
0x14d8   :  { %v9175_v11 = vpop.f32.mrb[178].mxu0  ;;  %v8805_v44 = vadd.f32 1.0, %v12146_v2  ;;  %v9041_v39 = vpop.f32.mrb[175].mxu1 }
0x14d9   :  { %v9176_v23 = vpop.f32.mrb[179].mxu0  ;;  %v9056_v14 = vadd.f32 %v9052_v4, %v9039_v62  ;;  %v10898_v7 = vmul.f32 -1.442695, %v9055_v47 }
0x14da   :  { %12147 = vrcp.f32 %v8805_v44 }
0x14db   :  { %v10899_v8 = vmul.f32 -1.442695, %v9056_v14  ;;  %12149 = vpow2.f32 %v10898_v7 }
0x14dd   :  { %12151 = vpow2.f32 %v10899_v8 }
0x14de   :  { %12153 = vrcp.f32 %v8804_v1 }
0x14e4   :  { %v12148_v55 = vpop.eup %12147  ;;  %v9258_v9 = vpop.f32.mrb[176].mxu1 }
0x14e5   :  { %v8810_v25 = vmul.f32 2.0, %v12148_v55  ;;  %v12150_v35 = vpop.eup %12149  ;;  %v9259_v51 = vadd.f32 %v9258_v9, %v9171_v20  ;;  %v9260_v4 = vpop.f32.mrb[177].mxu1 }
0x14e6   :  { %v9261_v6 = vadd.f32 %v9260_v4, %v9173_v34  ;;  %v9262_v27 = vpop.f32.mrb[178].mxu1  ;;  %v9063_v23 = vadd.f32 1.0, %v12150_v35 }
0x14e7   :  { %v12152_v38 = vpop.eup %12151  ;;  %v10875_v2 = vadd.f32 -1.0, %v8810_v25  ;;  %v9277_v11 = vadd.f32 %v9270_v28, %v9259_v51  ;;  %v9263_v44 = vpop.f32.mrb[179].mxu1 }
0x14e8   :  { %v12154_v62 = vpop.eup %12153  ;;  %v9064_v54 = vadd.f32 1.0, %v12152_v38  ;;  %v9278_v47 = vadd.f32 %v9274_v31, %v9261_v6 }
0x14e9   :  { %v8813_v39 = vmul.f32 %v12154_v62, %v10875_v2  ;;  %v10920_v14 = vmul.f32 -1.442695, %v9277_v11  ;;  %v8812_v27 = vmul.f32 %v12154_v62, %v14089_v59 }
0x14ea   :  { %12155 = vrcp.f32 %v9064_v54  ;;  %v10921_v1 = vmul.f32 -1.442695, %v9278_v47 }
0x14eb   :  { %8815 = vrot.lane.b32.xlu0 %v8813_v39, %s12373_s14  ;;  %12157 = vpow2.f32 %v10920_v14 }
0x14ec   :  { %12159 = vpow2.f32 %v10921_v1 }
0x14ed   :  { %12161 = vrcp.f32 %v9063_v23 }
0x14f4   :  { %v12156_v20 = vpop.eup %12155 }
0x14f5   :  { %v9069_v7 = vmul.f32 2.0, %v12156_v20  ;;  %v12158_v34 = vpop.eup %12157 }
0x14f6   :  { %v12160_v8 = vpop.eup %12159  ;;  %v9285_v51 = vadd.f32 1.0, %v12158_v34 }
0x14f7   :  { %v10900_v60 = vadd.f32 -1.0, %v9069_v7  ;;  %v12162_v9 = vpop.eup %12161  ;;  %v9286_v25 = vadd.f32 1.0, %v12160_v8 }
0x14f8   :  { %v9071_v47 = vmul.f32 %v12162_v9, %v14116_v21 }
0x14f9   :  { %v9072_v28 = vmul.f32 %v12162_v9, %v10900_v60  ;;  %12163 = vrcp.f32 %v9286_v25 }
0x14fa   :  { %12165 = vrcp.f32 %v9285_v51 }
0x14fb   :  { %9074 = vrot.lane.b32.xlu1 %v9072_v28, %s12373_s14 }
0x1503   :  { %v12164_v31 = vpop.eup %12163 }
0x1504   :  { %v9291_v35 = vmul.f32 2.0, %v12164_v31  ;;  %v12166_v38 = vpop.eup %12165 }
0x1505   :  { %v9293_v1 = vmul.f32 %v12166_v38, %v14127_v12 }
0x1506   :  { %v10922_v4 = vadd.f32 -1.0, %v9291_v35 }
0x1508   :  { %v9294_v6 = vmul.f32 %v12166_v38, %v10922_v4 }
0x150a   :  { %9296 = vrot.lane.b32.xlu0 %v9294_v6, %s12373_s14 }
0x155d   :  { %v8816_v2 = vpop.permute.xlu0 %8815 }
0x155e   :  { %v14227_v54 = vadd.f32 %v8816_v2, %v8812_v27 }
0x1560   :  { %12167 = vtanh.f32 %v14227_v54 }
0x156a   :  { %v12168_v11 = vpop.eup %12167 }
0x156b   :  { %v14230_v44 = vmul.f32 %v12168_v11, %v12148_v55 }
0x156d   :  { %v9075_v39 = vpop.permute.xlu1 %9074  ;;  %v9311_v23 = vpack.c.bf16 %v14230_v44, %v14230_v44 }
0x156e   :  { %v14235_v14 = vadd.f32 %v9075_v39, %v9071_v47 }
0x156f   :  { %9321 = vrot.lane.b32.xlu1 %v9311_v23, %s12373_s14 }
0x1570   :  { %12169 = vtanh.f32 %v14235_v14 }
0x157a   :  { %v12170_v59 = vpop.eup %12169 }
0x157b   :  { %v9079_v62 = vmul.f32 %v12170_v59, %v12156_v20 }
0x157c   :  { %v9297_v7 = vpop.permute.xlu0 %9296 }
0x157d   :  { %v9302_v34 = vpack.c.bf16 %v9079_v62, %v9079_v62  ;;  %v9299_v55 = vadd.f32 %v9297_v7, %v9293_v1 }
0x157f   :  { %9408 = vrot.lane.b32.xlu0 %v9302_v34, %s12373_s14  ;;  %12171 = vtanh.f32 %v9299_v55 }
0x1589   :  { %v12172_v21 = vpop.eup %12171 }
0x158a   :  { %v9301_v8 = vmul.f32 %v12172_v21, %v12164_v31 }
0x158c   :  { %v9568_v60 = vpack.c.bf16 %v9301_v8, %v9301_v8 }
0x158e   :  { %9667 = vrot.lane.b32.xlu1 %v9568_v60, %s12373_s14 }
0x15e1   :  { %v9322_v9 = vpop.permute.xlu1 %9321 }
0x15e2   :  { %10931 = vmatmul.mubr.msk.bf16.vlgmr.msra.gmra.mrb[180].mxu0 %vm142_vm0, %v9322_v9 }
0x15e3   :  { %9626 = vmatpush1.bf16.msra.mxu0 %v14136_v16  ;;  %9657 = vmatprep.mubr.bf16.mxu0 %v14444_v63 }
0x15e4   :  { %9627 = vmatprep.subr.bf16.mxu0 %v14138_v0 }
0x15e7   :  { %9628 = vmatpush1.bf16.msra.mxu0 %v14142_v22 }
0x15e8   :  { %9629 = vmatprep.subr.bf16.mxu0 %v14146_v19 }
0x15eb   :  { %9630 = vmatpush1.bf16.msra.mxu0 %v14149_v30 }
0x15ec   :  { %9631 = vmatprep.subr.bf16.mxu0 %v14152_v32  ;;  %v10966_v32 = vld [vmem:[%s14374_s3 + $0x8] sm:$0x3] }
0x15ef   :  { %9632 = vmatpush1.bf16.msra.mxu0 %v14155_v46  ;;  %v9758_v46 = vrot.slane %v10966_v32, %v14463_v15 }
0x15f0   :  { %9854 = vmatprep.subr.bf16.mxu0 %v14056_v56 }
0x15f1   :  { %v9409_v12 = vpop.permute.xlu0 %9408 }
0x15f2   :  { %10940 = vmatmul.mubr.msk.bf16.vlgmr.msra.gmra.mrb[180].mxu1 %vm142_vm0, %v9409_v12  ;;  %10956 = vmatmul.mubr.msk.bf16.vlgmr.msra.gmra.mrb[184].mxu0 %vm142_vm0, %v9409_v12 }
0x15f3   :  { %9713 = vmatpush1.bf16.msra.mxu1 %v14159_v45  ;;  %9744 = vmatprep.mubr.bf16.mxu1 %v14444_v63 }
0x15f4   :  { %9714 = vmatprep.subr.bf16.mxu1 %v14161_v61  ;;  %9855 = vmatpush1.bf16.msra.mxu0 %v14054_v37  ;;  %v9762_v61 = vrot.slane %v10966_v32, %v14464_v43 }
0x15f5   :  { %9856 = vmatprep.subr.bf16.mxu0 %v14058_v33  ;;  %9886 = vmatprep.mubr.bf16.mxu0 %v14444_v63 }
0x15f7   :  { %9715 = vmatpush1.bf16.msra.mxu1 %v14166_v36 }
0x15f8   :  { %9716 = vmatprep.subr.bf16.mxu1 %v14169_v50  ;;  %9857 = vmatpush1.bf16.msra.mxu0 %v14064_v42 }
0x15f9   :  { %9858 = vmatprep.subr.bf16.mxu0 %v14069_v29 }
0x15fb   :  { %9717 = vmatpush1.bf16.msra.mxu1 %v14174_v3 }
0x15fc   :  { %9718 = vmatprep.subr.bf16.mxu1 %v14177_v49  ;;  %9859 = vmatpush1.bf16.msra.mxu0 %v14074_v58 }
0x15fd   :  { %9860 = vmatprep.subr.bf16.mxu0 %v14077_v24 }
0x15ff   :  { %9719 = vmatpush1.bf16.msra.mxu1 %v14180_v10 }
0x1600   :  { %9861 = vmatpush1.bf16.msra.mxu0 %v14080_v13  ;;  %9941 = vmatprep.subr.bf16.mxu1 %v14066_v53  ;;  %v9668_v37 = vpop.permute.xlu1 %9667 }
0x1602   :  { %10965 = vmatmul.mubr.msk.bf16.vlgmr.msra.gmra.mrb[184].mxu1 %vm142_vm0, %v9668_v37 }
0x1603   :  { %9942 = vmatpush1.bf16.msra.mxu1 %v14061_v18  ;;  %9973 = vmatprep.mubr.bf16.mxu1 %v14444_v63  ;;  %v10941_v63 = vld [vmem:[%s14374_s3 + $0xa] sm:$0x3] }
0x1604   :  { %9943 = vmatprep.subr.bf16.mxu1 %v14094_v52  ;;  %v9499_v18 = vrot.slane %v10941_v63, %v14463_v15  ;;  %v9503_v24 = vrot.slane %v10941_v63, %v14464_v43 }
0x1607   :  { %9944 = vmatpush1.bf16.msra.mxu1 %v14092_v57 }
0x1608   :  { %9945 = vmatprep.subr.bf16.mxu1 %v14100_v48 }
0x160b   :  { %9946 = vmatpush1.bf16.msra.mxu1 %v14098_v26 }
0x160c   :  { %9947 = vmatprep.subr.bf16.mxu1 %v14109_v5 }
0x160f   :  { %9948 = vmatpush1.bf16.msra.mxu1 %v14107_v41 }
0x16b5   :  { %v9400_v56 = vpop.f32.mrb[180].mxu0 }
0x16b6   :  { %v9402_v33 = vpop.f32.mrb[181].mxu0 }
0x16b7   :  { %v9404_v42 = vpop.f32.mrb[182].mxu0 }
0x16b8   :  { %v9405_v53 = vpop.f32.mrb[183].mxu0 }
0x16c5   :  { %v9487_v29 = vpop.f32.mrb[180].mxu1  ;;  %v9659_v58 = vpop.f32.mrb[184].mxu0 }
0x16c6   :  { %v9488_v13 = vadd.f32 %v9487_v29, %v9400_v56  ;;  %v9489_v57 = vpop.f32.mrb[181].mxu1  ;;  %v9661_v52 = vpop.f32.mrb[185].mxu0  ;;  %v10402_v29 = vld [vmem:[%s14377_s6] ss:$0 sm:$0xff] }
0x16c7   :  { %v9490_v26 = vadd.f32 %v9489_v57, %v9402_v33  ;;  %v9491_v48 = vpop.f32.mrb[182].mxu1  ;;  %v9663_v41 = vpop.f32.mrb[186].mxu0 }
0x16c8   :  { %v9506_v5 = vadd.f32 %v9499_v18, %v9488_v13  ;;  %v9492_v16 = vpop.f32.mrb[183].mxu1  ;;  %v9664_v0 = vpop.f32.mrb[187].mxu0 }
0x16c9   :  { %v9507_v22 = vadd.f32 %v9503_v24, %v9490_v26  ;;  %v10988_v26 = vld [vmem:[%s14374_s3 + $0xa] sm:$0x3]  ;;  %s12374_s3 = smov 1  }
0x16ca   :  { %v10942_v19 = vmul.f32 -1.442695, %v9506_v5  ;;  %v9987_v48 = vrot.slane %v10988_v26, %v14463_v15  ;;  %v9991_v5 = vrot.slane %v10988_v26, %v14464_v43 }
0x16cb   :  { %v10943_v30 = vmul.f32 -1.442695, %v9507_v22 }
0x16cc   :  { %12173 = vpow2.f32 %v10942_v19 }
0x16cd   :  { %12175 = vpow2.f32 %v10943_v30 }
0x16d5   :  { %v9746_v45 = vpop.f32.mrb[184].mxu1 }
0x16d6   :  { %v12174_v36 = vpop.eup %12173  ;;  %v9747_v50 = vadd.f32 %v9746_v45, %v9659_v58  ;;  %v9748_v3 = vpop.f32.mrb[185].mxu1 }
0x16d7   :  { %v12176_v49 = vpop.eup %12175  ;;  %v9749_v10 = vadd.f32 %v9748_v3, %v9661_v52  ;;  %v9750_v20 = vpop.f32.mrb[186].mxu1  ;;  %v9514_v35 = vadd.f32 1.0, %v12174_v36 }
0x16d8   :  { %v9515_v25 = vadd.f32 1.0, %v12176_v49  ;;  %v9765_v28 = vadd.f32 %v9758_v46, %v9747_v50  ;;  %v9751_v51 = vpop.f32.mrb[187].mxu1 }
0x16d9   :  { %v9766_v31 = vadd.f32 %v9762_v61, %v9749_v10 }
0x16da   :  { %12177 = vrcp.f32 %v9515_v25  ;;  %v10967_v4 = vmul.f32 -1.442695, %v9765_v28 }
0x16db   :  { %v10968_v38 = vmul.f32 -1.442695, %v9766_v31 }
0x16dc   :  { %12179 = vpow2.f32 %v10967_v4 }
0x16dd   :  { %12181 = vpow2.f32 %v10968_v38  ;;  %v14511_v38 = vld [vmem:[#allocation26_spill] sm:$0xff] }
0x16de   :  { %12183 = vrcp.f32 %v9514_v35 }
0x16e4   :  { %v12178_v6 = vpop.eup %12177 }
0x16e5   :  { %v9520_v27 = vmul.f32 2.0, %v12178_v6 }
0x16e6   :  { %v12180_v2 = vpop.eup %12179 }
0x16e7   :  { %v12182_v11 = vpop.eup %12181  ;;  %v10944_v47 = vadd.f32 -1.0, %v9520_v27  ;;  %v9773_v62 = vadd.f32 1.0, %v12180_v2  ;;  %v14512_v2 = vld [vmem:[#allocation15_spill] sm:$0xff] }
0x16e8   :  { %v12184_v39 = vpop.eup %12183  ;;  %v9774_v23 = vadd.f32 1.0, %v12182_v11 }
0x16e9   :  { %v9523_v59 = vmul.f32 %v12184_v39, %v10944_v47  ;;  %v9522_v8 = vmul.f32 %v12184_v39, %v14227_v54 }
0x16ea   :  { %12185 = vrcp.f32 %v9774_v23  ;;  %v14513_v23 = vld [vmem:[#allocation27_spill] sm:$0xff] }
0x16eb   :  { %9525 = vrot.lane.b32.xlu0 %v9523_v59, %s12373_s14  ;;  %12187 = vrcp.f32 %v9773_v62 }
0x16f4   :  { %v12186_v1 = vpop.eup %12185 }
0x16f5   :  { %v9779_v7 = vmul.f32 2.0, %v12186_v1  ;;  %v12188_v55 = vpop.eup %12187 }
0x16f6   :  { %v9781_v56 = vmul.f32 %v12188_v55, %v14235_v14 }
0x16f7   :  { %v10969_v34 = vadd.f32 -1.0, %v9779_v7 }
0x16f9   :  { %v9782_v21 = vmul.f32 %v12188_v55, %v10969_v34 }
0x16fb   :  { %9784 = vrot.lane.b32.xlu1 %v9782_v21, %s12373_s14 }
0x175d   :  { %v9526_v60 = vpop.permute.xlu0 %9525 }
0x175e   :  { %v14293_v9 = vadd.f32 %v9526_v60, %v9522_v8 }
0x1760   :  { %12189 = vtanh.f32 %v14293_v9 }
0x176a   :  { %v12190_v12 = vpop.eup %12189 }
0x176b   :  { %v14296_v37 = vmul.f32 %v12190_v12, %v12178_v6 }
0x176d   :  { %v9785_v33 = vpop.permute.xlu1 %9784  ;;  %v9799_v42 = vpack.c.bf16 %v14296_v37, %v14296_v37 }
0x176e   :  { %v9787_v53 = vadd.f32 %v9785_v33, %v9781_v56 }
0x176f   :  { %9809 = vrot.lane.b32.xlu0 %v9799_v42, %s12373_s14 }
0x1770   :  { %12191 = vtanh.f32 %v9787_v53 }
0x177a   :  { %v12192_v63 = vpop.eup %12191 }
0x177b   :  { %v9789_v54 = vmul.f32 %v12192_v63, %v12186_v1 }
0x177d   :  { %v9790_v18 = vpack.c.bf16 %v9789_v54, %v9789_v54 }
0x177f   :  { %9896 = vrot.lane.b32.xlu1 %v9790_v18, %s12373_s14 }
0x1783   :  { %3991 = vrot.lane.b32.xlu1 %v10402_v29, %s12373_s14 }
0x1787   :  { %6741 = vrot.lane.b32.xlu1 %v10402_v29, %s12373_s14 }
0x178b   :  { %8827 = vrot.lane.b32.xlu1 %v10402_v29, %s12373_s14 }
0x178f   :  { %10025 = vrot.lane.b32.xlu1 %v10402_v29, %s12373_s14 }
0x17e1   :  { %v9810_v14 = vpop.permute.xlu0 %9809 }
0x17e2   :  { %10978 = vmatmul.mubr.msk.bf16.vlgmr.msra.gmra.mrb[188].mxu0 %vm142_vm0, %v9810_v14 }
0x17f1   :  { %v9897_v58 = vpop.permute.xlu1 %9896 }
0x17f2   :  { %10987 = vmatmul.mubr.msk.bf16.vlgmr.msra.gmra.mrb[188].mxu1 %vm142_vm0, %v9897_v58 }
0x17f5   :  { %v3992_v27 = vpop.permute.xlu1 %3991 }
0x17f6   :  { %v3994_v11 = vmul.f32 %v3992_v27, %v14512_v2 }
0x17f9   :  { %v6742_v62 = vpop.permute.xlu1 %6741 }
0x17fa   :  { %v6744_v1 = vmul.f32 %v6742_v62, %v13922_v17 }
0x17fd   :  { %v8828_v34 = vpop.permute.xlu1 %8827 }
0x17fe   :  { %v8830_v55 = vmul.f32 %v8828_v34, %v14230_v44 }
0x18b5   :  { %v9888_v24 = vpop.f32.mrb[188].mxu0 }
0x18b6   :  { %v9890_v13 = vpop.f32.mrb[189].mxu0 }
0x18b7   :  { %v9892_v57 = vpop.f32.mrb[190].mxu0 }
0x18b8   :  { %v9893_v52 = vpop.f32.mrb[191].mxu0  ;;  %v14348_v57 = vld [vmem:[#allocation2] ss:$0 sm:$0xff] }
0x18c5   :  { %v9975_v41 = vpop.f32.mrb[188].mxu1 }
0x18c6   :  { %v9976_v16 = vadd.f32 %v9975_v41, %v9888_v24  ;;  %v9977_v0 = vpop.f32.mrb[189].mxu1 }
0x18c7   :  { %v9978_v22 = vadd.f32 %v9977_v0, %v9890_v13  ;;  %v9979_v19 = vpop.f32.mrb[190].mxu1 }
0x18c8   :  { %v9994_v30 = vadd.f32 %v9987_v48, %v9976_v16  ;;  %v9980_v32 = vpop.f32.mrb[191].mxu1 }
0x18c9   :  { %v9995_v46 = vadd.f32 %v9991_v5, %v9978_v22 }
0x18ca   :  { %v10989_v45 = vmul.f32 -1.442695, %v9994_v30 }
0x18cb   :  { %v10990_v61 = vmul.f32 -1.442695, %v9995_v46 }
0x18cc   :  { %12193 = vpow2.f32 %v10989_v45 }
0x18cd   :  { %12195 = vpow2.f32 %v10990_v61 }
0x18d6   :  { %v12194_v36 = vpop.eup %12193 }
0x18d7   :  { %v12196_v50 = vpop.eup %12195  ;;  %v10002_v49 = vadd.f32 1.0, %v12194_v36 }
0x18d8   :  { %v10003_v3 = vadd.f32 1.0, %v12196_v50 }
0x18da   :  { %12197 = vrcp.f32 %v10003_v3 }
0x18db   :  { %12199 = vrcp.f32 %v10002_v49 }
0x18e4   :  { %v12198_v15 = vpop.eup %12197 }
0x18e5   :  { %v10008_v10 = vmul.f32 2.0, %v12198_v15  ;;  %v12200_v20 = vpop.eup %12199 }
0x18e6   :  { %v10010_v47 = vmul.f32 %v12200_v20, %v14293_v9  ;;  %v10026_v9 = vpop.permute.xlu1 %10025 }
0x18e7   :  { %v10991_v43 = vadd.f32 -1.0, %v10008_v10 }
0x18e9   :  { %v10011_v25 = vmul.f32 %v12200_v20, %v10991_v43 }
0x18eb   :  { %10013 = vrot.lane.b32.xlu0 %v10011_v25, %s12373_s14 }
0x18ef   :  { %5366 = vrot.lane.b32.xlu0 %v10402_v29, %s12373_s14 }
0x18f3   :  { %7895 = vrot.lane.b32.xlu0 %v10402_v29, %s12373_s14 }
0x18f7   :  { %9537 = vrot.lane.b32.xlu0 %v10402_v29, %s12373_s14 }
0x18fb   :  { %2619 = vrot.lane.b32.xlu0 %v10402_v29, %s12373_s14 }
0x195d   :  { %v10014_v28 = vpop.permute.xlu0 %10013 }
0x195e   :  { %v10016_v39 = vadd.f32 %v10014_v28, %v10010_v47 }
0x1960   :  { %12201 = vtanh.f32 %v10016_v39 }
0x1961   :  { %v5367_v51 = vpop.permute.xlu0 %5366 }
0x1962   :  { %v5369_v59 = vmul.f32 %v5367_v51, %v14513_v23 }
0x1965   :  { %v7896_v31 = vpop.permute.xlu0 %7895 }
0x1966   :  { %v7898_v7 = vmul.f32 %v7896_v31, %v14105_v40 }
0x1969   :  { %v9538_v35 = vpop.permute.xlu0 %9537 }
0x196a   :  { %v12202_v21 = vpop.eup %12201  ;;  %v9540_v8 = vmul.f32 %v9538_v35, %v14296_v37 }
0x196b   :  { %v10018_v60 = vmul.f32 %v12202_v21, %v12198_v15 }
0x196d   :  { %v2620_v4 = vpop.permute.xlu0 %2619  ;;  %v10028_v12 = vmul.f32 %v10026_v9, %v10018_v60 }
0x196e   :  { %v2622_v6 = vmul.f32 %v2620_v4, %v14511_v38 }
0x1970   :  { %2624 = vrot.lane.b32.xlu1 %v2622_v6, %s12373_s14 }
0x1974   :  { %3996 = vrot.lane.b32.xlu1 %v3994_v11, %s12373_s14 }
0x1978   :  { %5371 = vrot.lane.b32.xlu1 %v5369_v59, %s12373_s14 }
0x197c   :  { %6746 = vrot.lane.b32.xlu1 %v6744_v1, %s12373_s14 }
0x1980   :  { %7900 = vrot.lane.b32.xlu1 %v7898_v7, %s12373_s14 }
0x1984   :  { %8832 = vrot.lane.b32.xlu1 %v8830_v55, %s12373_s14 }
0x1988   :  { %9542 = vrot.lane.b32.xlu1 %v9540_v8, %s12373_s14 }
0x198c   :  { %10030 = vrot.lane.b32.xlu1 %v10028_v12, %s12373_s14  ;;  %s12375_s14 = smov 3  }
0x19e2   :  { %v2625_v17 = vpop.permute.xlu1 %2624 }
0x19e3   :  { %v2628_v40 = vsel %vm2627_vm1, %v2625_v17, 0.0 }
0x19e4   :  { %2629 = vadd.xlane.f32.xlu0 %v2628_v40 }
0x19e6   :  { %v3997_v56 = vpop.permute.xlu1 %3996 }
0x19e7   :  { %v3999_v44 = vsel %vm2627_vm1, %v3997_v56, 0.0 }
0x19e8   :  { %4000 = vadd.xlane.f32.xlu1 %v3999_v44 }
0x19ea   :  { %v5372_v33 = vpop.permute.xlu1 %5371 }
0x19eb   :  { %v14341_v42 = vsel %vm2627_vm1, %v5372_v33, 0.0 }
0x19ee   :  { %v6747_v37 = vpop.permute.xlu1 %6746 }
0x19ef   :  { %v6749_v53 = vsel %vm2627_vm1, %v6747_v37, 0.0 }
0x19f0   :  { %6750 = vadd.xlane.f32.xlu1 %v6749_v53 }
0x19f2   :  { %v7901_v63 = vpop.permute.xlu1 %7900 }
0x19f3   :  { %v7903_v54 = vsel %vm2627_vm1, %v7901_v63, 0.0 }
0x19f4   :  { %7904 = vadd.xlane.f32.xlu1 %v7903_v54 }
0x19f6   :  { %v8833_v18 = vpop.permute.xlu1 %8832 }
0x19f7   :  { %v8835_v29 = vsel %vm2627_vm1, %v8833_v18, 0.0 }
0x19f8   :  { %8836 = vadd.xlane.f32.xlu1 %v8835_v29 }
0x19fa   :  { %v9543_v14 = vpop.permute.xlu1 %9542 }
0x19fb   :  { %v9545_v58 = vsel %vm2627_vm1, %v9543_v14, 0.0 }
0x19fc   :  { %9546 = vadd.xlane.f32.xlu1 %v9545_v58 }
0x19fe   :  { %v10031_v24 = vpop.permute.xlu1 %10030 }
0x19ff   :  { %v10033_v13 = vsel %vm2627_vm1, %v10031_v24, 0.0 }
0x1a00   :  { %10034 = vadd.xlane.f32.xlu1 %v10033_v13 }
0x1a71   :  { %v2630_v52 = vpop.xlane.xlu0 %2629 }
0x1a72   :  { %v2638_v26 = vadd.f32 %v14348_v57, %v2630_v52 }
0x1a74   :  { %v10269_v48 = vmul.f32 -1.442695, %v2638_v26 }
0x1a75   :  { %v4001_v41 = vpop.xlane.xlu1 %4000 }
0x1a76   :  { %12203 = vpow2.f32 %v10269_v48  ;;  %v4009_v5 = vadd.f32 %v14348_v57, %v4001_v41 }
0x1a78   :  { %v10404_v16 = vmul.f32 -1.442695, %v4009_v5 }
0x1a7a   :  { %12205 = vpow2.f32 %v10404_v16 }
0x1a7d   :  { %v6751_v0 = vpop.xlane.xlu1 %6750 }
0x1a7e   :  { %v6759_v22 = vadd.f32 %v14348_v57, %v6751_v0 }
0x1a80   :  { %v12204_v19 = vpop.eup %12203  ;;  %v10674_v30 = vmul.f32 -1.442695, %v6759_v22 }
0x1a81   :  { %v2642_v32 = vadd.f32 1.0, %v12204_v19  ;;  %v7905_v46 = vpop.xlane.xlu1 %7904 }
0x1a82   :  { %12207 = vpow2.f32 %v10674_v30  ;;  %v7913_v45 = vadd.f32 %v14348_v57, %v7905_v46 }
0x1a83   :  { %12209 = vrcp.f32 %v2642_v32 }
0x1a84   :  { %v12206_v61 = vpop.eup %12205  ;;  %v10787_v36 = vmul.f32 -1.442695, %v7913_v45 }
0x1a85   :  { %v4013_v50 = vadd.f32 1.0, %v12206_v61  ;;  %v8837_v3 = vpop.xlane.xlu1 %8836 }
0x1a86   :  { %12211 = vpow2.f32 %v10787_v36  ;;  %v8845_v49 = vadd.f32 %v14348_v57, %v8837_v3 }
0x1a87   :  { %12213 = vrcp.f32 %v4013_v50 }
0x1a88   :  { %v10878_v15 = vmul.f32 -1.442695, %v8845_v49 }
0x1a89   :  { %v9547_v10 = vpop.xlane.xlu1 %9546 }
0x1a8a   :  { %12215 = vpow2.f32 %v10878_v15  ;;  %v9555_v1 = vadd.f32 %v14348_v57, %v9547_v10 }
0x1a8c   :  { %v12208_v43 = vpop.eup %12207  ;;  %v10947_v7 = vmul.f32 -1.442695, %v9555_v1 }
0x1a8d   :  { %v12210_v20 = vpop.eup %12209  ;;  %v6763_v25 = vadd.f32 1.0, %v12208_v43  ;;  %v10035_v28 = vpop.xlane.xlu1 %10034 }
0x1a8e   :  { %v10043_v51 = vadd.f32 %v14348_v57, %v10035_v28  ;;  %2646 = vst.msk [vmem:[#allocation8] sm:$0x3] %vm2645_vm2, %v12210_v20 }
0x1a8f   :  { %12217 = vrcp.f32 %v6763_v25 }
0x1a90   :  { %v12212_v31 = vpop.eup %12211  ;;  %v10994_v35 = vmul.f32 -1.442695, %v10043_v51 }
0x1a91   :  { %v12214_v4 = vpop.eup %12213  ;;  %v7917_v38 = vadd.f32 1.0, %v12212_v31 }
0x1a92   :  { %12219 = vpow2.f32 %v10994_v35  ;;  %4017 = vrot.lane.b32.xlu0 %v12214_v4, %s12374_s3 }
0x1a93   :  { %12221 = vrcp.f32 %v7917_v38 }
0x1a94   :  { %v12216_v6 = vpop.eup %12215 }
0x1a95   :  { %v8849_v27 = vadd.f32 1.0, %v12216_v6 }
0x1a97   :  { %12223 = vrcp.f32 %v8849_v27 }
0x1a99   :  { %v12218_v2 = vpop.eup %12217 }
0x1a9a   :  { %6767 = vrot.lane.b32.xlu1 %v12218_v2, %s12375_s14 }
0x1a9c   :  { %v12220_v11 = vpop.eup %12219 }
0x1a9d   :  { %v12222_v47 = vpop.eup %12221  ;;  %v10047_v39 = vadd.f32 1.0, %v12220_v11 }
0x1a9e   :  { %7921 = vrot.lane.b32.xlu1 %v12222_v47, %s12376_s21 }
0x1a9f   :  { %12225 = vrcp.f32 %v10047_v39 }
0x1aa0   :  { %12227 = vpow2.f32 %v10947_v7 }
0x1aa1   :  { %v12224_v23 = vpop.eup %12223 }
0x1aa2   :  { %8853 = vrot.lane.b32.xlu1 %v12224_v23, %s12377_s22 }
0x1aa9   :  { %v12226_v59 = vpop.eup %12225 }
0x1aaa   :  { %10051 = vrot.lane.b32.xlu1 %v12226_v59, %s12378_s23  ;;  %v12228_v8 = vpop.eup %12227 }
0x1aab   :  { %v9559_v12 = vadd.f32 1.0, %v12228_v8 }
0x1ab1   :  { %5375 = vadd.xlane.f32.xlu0 %v14341_v42 }
0x1b04   :  { %v4018_v62 = vpop.permute.xlu0 %4017 }
0x1b05   :  { %4021 = vst.msk [vmem:[#allocation8] sm:$0x3] %vm4020_vm3, %v4018_v62 }
0x1b0c   :  { %v6768_v56 = vpop.permute.xlu1 %6767 }
0x1b10   :  { %v7922_v44 = vpop.permute.xlu1 %7921 }
0x1b14   :  { %v8854_v42 = vpop.permute.xlu1 %8853 }
0x1b1c   :  { %v10052_v53 = vpop.permute.xlu1 %10051 }
0x1b3e   :  { %v5376_v34 = vpop.xlane.xlu0 %5375 }
0x1b3f   :  { %v5384_v55 = vadd.f32 %v14348_v57, %v5376_v34 }
0x1b41   :  { %v10539_v21 = vmul.f32 -1.442695, %v5384_v55 }
0x1b43   :  { %12229 = vpow2.f32 %v10539_v21 }
0x1b4d   :  { %v12230_v60 = vpop.eup %12229 }
0x1b4e   :  { %v5388_v9 = vadd.f32 1.0, %v12230_v60 }
0x1b50   :  { %12231 = vrcp.f32 %v5388_v9 }
0x1b51   :  { %12233 = vrcp.f32 %v9559_v12 }
0x1b5a   :  { %v12232_v17 = vpop.eup %12231 }
0x1b5b   :  { %5392 = vrot.lane.b32.xlu0 %v12232_v17, %s12379_s24  ;;  %v12234_v40 = vpop.eup %12233 }
0x1b5f   :  { %9563 = vrot.lane.b32.xlu0 %v12234_v40, %s12380_s25 }
0x1bcd   :  { %v5393_v33 = vpop.permute.xlu0 %5392 }
0x1bce   :  { %5396 = vst.msk [vmem:[#allocation8] sm:$0x3] %vm5395_vm4, %v5393_v33 }
0x1bcf   :  { %6771 = vst.msk [vmem:[#allocation8] sm:$0x3] %vm6770_vm5, %v6768_v56 }
0x1bd0   :  { %7925 = vst.msk [vmem:[#allocation8] sm:$0x3] %vm7924_vm6, %v7922_v44 }
0x1bd1   :  { %v9564_v37 = vpop.permute.xlu0 %9563  ;;  %8857 = vst.msk [vmem:[#allocation8] sm:$0x3] %vm8856_vm7, %v8854_v42 }
0x1bd2   :  { %9567 = vst.msk [vmem:[#allocation8] sm:$0x3] %vm9566_vm8, %v9564_v37 }
0x1bd3   :  { %10055 = vst.msk [vmem:[#allocation8] sm:$0x3] %vm10054_vm9, %v10052_v53 }
0x1bd4   :  { %12351 = shalt.err (!%p12348_p6)
}
0x1bd5   :  { %s12352_s29 = scalar_lea.hbm %s14379_s8, 32 }
0x1bd6   :  { %p12353_p7 = scmp.ne.s32.totalorder %s14379_s8, %s12352_s29  ;;  %p12356_p8 = scmp.lt.u32.totalorder %s12352_s29, %s14379_s8 }
0x1bd8   :  { %p12358_p9 = pnand %p12356_p8, %p12353_p7 }
0x1bda   :  { %12361 = shalt.err (!%p12358_p9)
}
0x1bdb   :  { %10065 = dma.vmem_to_hbm [thread:$0]  %s10063_s26, 32, %s14379_s8, [#allocation5]  }
0x1bdc   :  { %12366 = dma.done.wait [#allocation5], 32  }
0x1bdd   :  { %12367 = vsyncadd [#allocation5], 4294967264 }
0x1bde   :  { %10069 = vsyncpa [#allocation4], 1 }
0x1bdf   :  { %10070 = vsyncpa [#allocation7], 1 }
0x1be0   :  { %10071 = vsyncpa [#allocation5], 1 }

</bundles_post_ra>
